<compile_context>
chip_gen: v5e
topology: v5e:2x2
jax: 0.10.0
libtpu: 0.0.40
codegen_flags: <defaults>
</compile_context>

<pallas_src>
import functools

import jax
import jax.numpy as jnp
from jax.experimental import pallas as pl
from jax.experimental.pallas import tpu as pltpu


def _round_up(x, m):
    return (x + m - 1) // m * m


# ----------------------------------------------------------------------------
# In-kernel 3x3 conv: 3 accumulated deep-K matmuls (one per dx column window)
# ----------------------------------------------------------------------------
def _conv3x3(pad_ref, w_ref, b_ref, *, H, W, off):
    """pad_ref: (H+2, Wp, Cin) zero-halo buffer (interior rows [1,H+1),
    cols [off, off+W));  w_ref: (3, 3*Cin, Cout) packed [dx, dy*Cin+ci, co];
    b_ref: (1, Cout).  Returns (H*W, Cout) float32 pre-activation."""
    cin = pad_ref.shape[-1]
    acc = None
    for dx in range(3):
        # One column window per dx (dx=1 aligned; dx=0,2 off-by-one).
        win = pad_ref[:, off - 1 + dx: off - 1 + dx + W, :]      # (H+2, W, Cin)
        # dy slices are leading-dim slices (free); 3-chunk lane concat only.
        lhs = jnp.concatenate(
            [win[0:H], win[1:H + 1], win[2:H + 2]], axis=-1
        ).reshape(H * W, 3 * cin)
        part = jnp.dot(lhs, w_ref[dx], preferred_element_type=jnp.float32)
        acc = part if acc is None else acc + part
    return acc + b_ref[...]


# ----------------------------------------------------------------------------
# Fused kernel: enc1 -> enc2 -> motion fusion -> dis1 -> dis2 (* 0.02)
# ----------------------------------------------------------------------------
def _fused_kernel(x_ref, m_ref,
                  w1_ref, b1_ref, w2_ref, b2_ref,
                  wfi_ref, wfm_ref, bf_ref,
                  w3_ref, b3_ref, w4_ref, b4_ref,
                  o_ref,
                  pad_in, pad_a, pad_b,
                  *, H, W, off):
    C = pad_in.shape[-1]
    c1 = pad_a.shape[-1]          # 32
    c2 = pad_b.shape[-1]          # 64
    c_out = o_ref.shape[1]        # real output channels (== C)
    conv = functools.partial(_conv3x3, H=H, W=W, off=off)

    # ---- halo-only zeroing (interior is fully overwritten every step) ------
    for buf in (pad_in, pad_a, pad_b):
        wp = buf.shape[1]
        cc = buf.shape[-1]
        buf[0:1, :, :] = jnp.zeros((1, wp, cc), buf.dtype)
        buf[H + 1:H + 2, :, :] = jnp.zeros((1, wp, cc), buf.dtype)
        buf[:, off - 1:off, :] = jnp.zeros((H + 2, 1, cc), buf.dtype)
        buf[:, off + W:off + W + 1, :] = jnp.zeros((H + 2, 1, cc), buf.dtype)

    r = slice(1, H + 1)
    c = slice(off, off + W)

    # ---- lane-dense NCHW input block -> NHWC interior of pad_in ------------
    x_t = jnp.transpose(x_ref[0].astype(jnp.float32), (1, 0))    # (H*W, C)
    pad_in[r, c, :] = x_t.reshape(H, W, C).astype(pad_in.dtype)

    # ---- image_encoder: conv3x3 -> ReLU -> conv3x3 -> ReLU -----------------
    h1 = jnp.maximum(conv(pad_in, w1_ref, b1_ref), 0.0)          # (H*W, 32)
    pad_a[r, c, :] = h1.reshape(H, W, c1).astype(pad_a.dtype)
    feat = jnp.maximum(conv(pad_a, w2_ref, b2_ref), 0.0)         # (H*W, 64)

    # ---- motion fusion: split 1x1 conv (no broadcast map / concat) ---------
    mterm = jnp.dot(m_ref[0], wfm_ref[...],
                    preferred_element_type=jnp.float32) + bf_ref[...]   # (1,64)
    fused = jnp.dot(feat.astype(wfi_ref.dtype), wfi_ref[...],
                    preferred_element_type=jnp.float32) + mterm         # (H*W,64)
    pad_b[r, c, :] = fused.reshape(H, W, c2).astype(pad_b.dtype)

    # ---- disruptor: conv3x3 -> ReLU -> conv3x3 -> tanh, * 0.02 -------------
    d1 = jnp.maximum(conv(pad_b, w3_ref, b3_ref), 0.0)           # (H*W, 32)
    pad_a[r, c, :] = d1.reshape(H, W, c1).astype(pad_a.dtype)
    pre = conv(pad_a, w4_ref, b4_ref)                            # (H*W, 8pad)
    # Transpose BEFORE tanh/scale so the EUP/VPU work runs on the compact
    # (8, H*W) form and the HBM store is lane-dense along H*W.
    pre_t = jnp.transpose(pre, (1, 0))                           # (8pad, H*W)
    d2_t = jnp.tanh(pre_t) * 0.02
    o_ref[...] = d2_t[:c_out, :].reshape(1, c_out, H * W).astype(o_ref.dtype)


# ----------------------------------------------------------------------------
# Pallas wrapper
# ----------------------------------------------------------------------------
def motion_disruptor_pallas(x_flat, motion_b1m, params, *, H, W):
    """x_flat: (B, C, H*W) NCHW-flattened images; motion_b1m: (B, 1, mdim)."""
    B, C, HW = x_flat.shape
    assert HW == H * W
    mdim = motion_b1m.shape[-1]
    c1 = params["enc1_b"].shape[-1]       # 32
    c2 = params["enc2_b"].shape[-1]       # 64
    c_out_pad = params["dis2_b"].shape[-1]
    cdt = x_flat.dtype
    itemsize = jnp.dtype(cdt).itemsize
    off = 8 if itemsize >= 4 else 16      # sublane-aligned interior offset
    wp = off + _round_up(W + 1, 8)        # minimal right pad

    kernel = functools.partial(_fused_kernel, H=H, W=W, off=off)

    def _full(arr):
        return pl.BlockSpec(arr.shape, lambda *_: (0,) * arr.ndim)

    # ---- VMEM budget & cost estimate ---------------------------------------
    pads_b = (H + 2) * wp * (C + c1 + c2) * itemsize
    patch_b = H * W * (3 * c2) * itemsize + 2 * H * W * c2 * 4
    io_b = 2 * (C * HW + c_out_pad * HW) * 4
    w_b = 4 * (9 * C * c1 + 9 * c1 * c2 + c2 * c2 + mdim * c2
               + 9 * c2 * c1 + 9 * c1 * c_out_pad)
    est = 2 * (pads_b + patch_b + io_b + w_b) + (8 << 20)
    cap = 100 * 1024 * 1024
    try:
        cap = int(pltpu.get_tpu_info().vmem_capacity_bytes * 7 // 8)
    except Exception:
        pass
    vmem_limit = int(max(32 << 20, min(est, cap)))

    flops = 2 * B * H * W * (9 * C * c1 + 9 * c1 * c2 + c2 * c2
                             + 9 * c2 * c1 + 9 * c1 * c_out_pad)
    bytes_accessed = int((B * C * HW + B * mdim) * itemsize
                         + B * C * HW * 4 + w_b)
    cost = pl.CostEstimate(flops=int(flops),
                           transcendentals=int(B * H * W * c_out_pad),
                           bytes_accessed=bytes_accessed)

    return pl.pallas_call(
        kernel,
        out_shape=jax.ShapeDtypeStruct((B, C, HW), jnp.float32),
        grid=(B,),
        in_specs=[
            pl.BlockSpec((1, C, HW), lambda b: (b, 0, 0)),
            pl.BlockSpec((1, 1, mdim), lambda b: (b, 0, 0)),
            _full(params["enc1_w"]), _full(params["enc1_b"]),
            _full(params["enc2_w"]), _full(params["enc2_b"]),
            _full(params["fuse_w_img"]), _full(params["fuse_w_mot"]),
            _full(params["fuse_b"]),
            _full(params["dis1_w"]), _full(params["dis1_b"]),
            _full(params["dis2_w"]), _full(params["dis2_b"]),
        ],
        out_specs=pl.BlockSpec((1, C, HW), lambda b: (b, 0, 0)),
        scratch_shapes=[
            pltpu.VMEM((H + 2, wp, C), cdt),
            pltpu.VMEM((H + 2, wp, c1), cdt),
            pltpu.VMEM((H + 2, wp, c2), cdt),
        ],
        compiler_params=pltpu.CompilerParams(
            dimension_semantics=("parallel",),
            vmem_limit_bytes=vmem_limit),
        cost_estimate=cost,
    )(x_flat, motion_b1m,
      params["enc1_w"], params["enc1_b"],
      params["enc2_w"], params["enc2_b"],
      params["fuse_w_img"], params["fuse_w_mot"], params["fuse_b"],
      params["dis1_w"], params["dis1_b"],
      params["dis2_w"], params["dis2_b"])


# ----------------------------------------------------------------------------
# Parameter init (PyTorch Conv2d default U(-1/sqrt(fan_in), +1/sqrt(fan_in)))
# 3x3 weights stored dx-grouped: (3, 3*Cin, Cout) with [dx, dy*Cin+ci, co].
# ----------------------------------------------------------------------------
def _uniform(key, shape, bound):
    return jax.random.uniform(key, shape, jnp.float32, -bound, bound)


def _init_conv3x3_packed(key, cin, cout, cout_pad=None):
    bound = 1.0 / (cin * 9) ** 0.5
    kw, kb = jax.random.split(key)
    w_pt = _uniform(kw, (cout, cin, 3, 3), bound)      # PyTorch (O, I, kH, kW)
    b = _uniform(kb, (1, cout), bound)
    # (O, I, kH, kW) -> (kW, kH, I, O) -> (3, 3*I, O)
    w = jnp.transpose(w_pt, (3, 2, 1, 0)).reshape(3, 3 * cin, cout)
    if cout_pad is not None and cout_pad > cout:
        w = jnp.pad(w, ((0, 0), (0, 0), (0, cout_pad - cout)))
        b = jnp.pad(b, ((0, 0), (0, cout_pad - cout)))
    return w, b


def init_params(seed=0, input_dim=3, motion_dim=64):
    keys = jax.random.split(jax.random.PRNGKey(seed), 5)
    p = {}
    p["enc1_w"], p["enc1_b"] = _init_conv3x3_packed(keys[0], input_dim, 32)
    p["enc2_w"], p["enc2_b"] = _init_conv3x3_packed(keys[1], 32, 64)
    # 1x1 fuse conv over concat([img_feat(64), motion(motion_dim)]) -> 64.
    cin_f = 64 + motion_dim
    bound = 1.0 / cin_f ** 0.5
    kw, kb = jax.random.split(keys[2])
    wf = _uniform(kw, (cin_f, 64), bound)
    p["fuse_w_img"] = wf[:64]                      # (64, 64)
    p["fuse_w_mot"] = wf[64:]                      # (motion_dim, 64)
    p["fuse_b"] = _uniform(kb, (1, 64), bound)
    p["dis1_w"], p["dis1_b"] = _init_conv3x3_packed(keys[3], 64, 32)
    # Final conv: output channels zero-padded to a multiple of 8 (>= 8) so the
    # in-kernel (H*W, Cout)->(Cout, H*W) transpose is tile-friendly.
    cpad = _round_up(max(input_dim, 8), 8)
    p["dis2_w"], p["dis2_b"] = _init_conv3x3_packed(keys[4], 32, input_dim,
                                                    cout_pad=cpad)
    return p


# ----------------------------------------------------------------------------
# Full forward (matches MotionDisruptor.forward): NCHW in -> NCHW out
# ----------------------------------------------------------------------------
@functools.partial(jax.jit, static_argnames=("compute_dtype",))
def motion_disruptor_forward(images_nchw, motion_features, params,
                             compute_dtype=jnp.float32):
    B, C, H, W = images_nchw.shape
    x = images_nchw.reshape(B, C, H * W).astype(compute_dtype)   # free reshape
    motion = motion_features.reshape(B, 1, -1).astype(compute_dtype)

    p = dict(params)
    if compute_dtype != jnp.float32:
        # bf16 activations/weights with f32 accumulation (recommended on
        # v6e/v7x); biases stay f32.
        for k in ("enc1_w", "enc2_w", "fuse_w_img", "fuse_w_mot",
                  "dis1_w", "dis2_w"):
            p[k] = p[k].astype(compute_dtype)

    out = motion_disruptor_pallas(x, motion, p, H=H, W=W)        # (B, C, H*W)
    return out.reshape(B, C, H, W)                               # free reshape


# ----------------------------------------------------------------------------
# Pure-JAX reference (for correctness check)
# ----------------------------------------------------------------------------
def _reference_forward(images_nchw, motion_features, params):
    x = jnp.transpose(images_nchw, (0, 2, 3, 1))   # NHWC
    C = images_nchw.shape[1]

    def conv3x3(v, w_packed, b):
        cin = v.shape[-1]
        cout = w_packed.shape[-1]
        # packed [dx, dy*Cin+ci, co] -> HWIO [dy, dx, ci, co]
        w = jnp.transpose(w_packed.reshape(3, 3, cin, cout), (1, 0, 2, 3))
        y = jax.lax.conv_general_dilated(
            v, w, window_strides=(1, 1), padding="SAME",
            dimension_numbers=("NHWC", "HWIO", "NHWC"),
            precision=jax.lax.Precision.HIGHEST)
        return y + b.reshape(1, 1, 1, -1)

    f = jax.nn.relu(conv3x3(x, params["enc1_w"], params["enc1_b"]))
    f = jax.nn.relu(conv3x3(f, params["enc2_w"], params["enc2_b"]))
    mterm = motion_features @ params["fuse_w_mot"] + params["fuse_b"]
    fused = jnp.einsum("bhwc,cd->bhwd", f, params["fuse_w_img"],
                       precision=jax.lax.Precision.HIGHEST)
    fused = fused + mterm[:, None, None, :]
    d = jax.nn.relu(conv3x3(fused, params["dis1_w"], params["dis1_b"]))
    d = jnp.tanh(conv3x3(d, params["dis2_w"], params["dis2_b"])) * 0.02
    d = d[..., :C]                                   # drop zero-padded chans
    return jnp.transpose(d, (0, 3, 1, 2))


if __name__ == "__main__":
    B, C, H, W = 2, 3, 16, 16
    motion_dim = 64

    key = jax.random.PRNGKey(0)
    k_img, k_mot = jax.random.split(key)
    images = jax.random.normal(k_img, (B, C, H, W), jnp.float32)
    motion = jax.random.normal(k_mot, (B, motion_dim), jnp.float32)

    params = init_params(seed=0, input_dim=C, motion_dim=motion_dim)

    out = motion_disruptor_forward(images, motion, params)
    out = jax.block_until_ready(out)
    assert out.shape == (B, C, H, W), out.shape

    ref = jax.block_until_ready(jax.jit(_reference_forward)(images, motion,
                                                            params))
    max_err = float(jnp.max(jnp.abs(out - ref)))
    assert max_err < 1e-3, f"max abs err vs reference: {max_err}"

    print("KERNEL_OK")
</pallas_src>

<mosaic_0001>
module attributes {stable_mosaic.version = 11 : i64} {
  func.func @_fused_kernel(%arg0: i32, %arg1: memref<1x3x256xf32, #tpu.memory_space<vmem>>, %arg2: memref<1x1x64xf32, #tpu.memory_space<vmem>>, %arg3: memref<3x9x32xf32, #tpu.memory_space<vmem>>, %arg4: memref<1x32xf32, #tpu.memory_space<vmem>>, %arg5: memref<3x96x64xf32, #tpu.memory_space<vmem>>, %arg6: memref<1x64xf32, #tpu.memory_space<vmem>>, %arg7: memref<64x64xf32, #tpu.memory_space<vmem>>, %arg8: memref<64x64xf32, #tpu.memory_space<vmem>>, %arg9: memref<1x64xf32, #tpu.memory_space<vmem>>, %arg10: memref<3x192x32xf32, #tpu.memory_space<vmem>>, %arg11: memref<1x32xf32, #tpu.memory_space<vmem>>, %arg12: memref<3x96x8xf32, #tpu.memory_space<vmem>>, %arg13: memref<1x8xf32, #tpu.memory_space<vmem>>, %arg14: memref<1x3x256xf32, #tpu.memory_space<vmem>>, %arg15: memref<18x32x3xf32, #tpu.memory_space<vmem>>, %arg16: memref<18x32x32xf32, #tpu.memory_space<vmem>>, %arg17: memref<18x32x64xf32, #tpu.memory_space<vmem>>) attributes {dimension_semantics = [#tpu.dimension_semantics<parallel>], iteration_bounds = array<i64: 2>, scalar_prefetch = 0 : i64, scratch_operands = 3 : i64, tpu.core_type = #tpu.core_type<tc>, window_params = [{transform_indices = @transform_0, window_bounds = array<i64: 1, 3, 256>}, {transform_indices = @transform_1, window_bounds = array<i64: 1, 1, 64>}, {pipeline_mode = #tpu.pipeline_mode<synchronous>, transform_indices = @transform_2, window_bounds = array<i64: 3, 9, 32>}, {pipeline_mode = #tpu.pipeline_mode<synchronous>, transform_indices = @transform_3, window_bounds = array<i64: 1, 32>}, {pipeline_mode = #tpu.pipeline_mode<synchronous>, transform_indices = @transform_4, window_bounds = array<i64: 3, 96, 64>}, {pipeline_mode = #tpu.pipeline_mode<synchronous>, transform_indices = @transform_5, window_bounds = array<i64: 1, 64>}, {pipeline_mode = #tpu.pipeline_mode<synchronous>, transform_indices = @transform_6, window_bounds = array<i64: 64, 64>}, {pipeline_mode = #tpu.pipeline_mode<synchronous>, transform_indices = @transform_7, window_bounds = array<i64: 64, 64>}, {pipeline_mode = #tpu.pipeline_mode<synchronous>, transform_indices = @transform_8, window_bounds = array<i64: 1, 64>}, {pipeline_mode = #tpu.pipeline_mode<synchronous>, transform_indices = @transform_9, window_bounds = array<i64: 3, 192, 32>}, {pipeline_mode = #tpu.pipeline_mode<synchronous>, transform_indices = @transform_10, window_bounds = array<i64: 1, 32>}, {pipeline_mode = #tpu.pipeline_mode<synchronous>, transform_indices = @transform_11, window_bounds = array<i64: 3, 96, 8>}, {pipeline_mode = #tpu.pipeline_mode<synchronous>, transform_indices = @transform_12, window_bounds = array<i64: 1, 8>}, {transform_indices = @transform_13, window_bounds = array<i64: 1, 3, 256>}]} {
    %cst = arith.constant 0.000000e+00 : f32
    %0 = vector.broadcast %cst : f32 to vector<1x32x3xf32>
    %c0 = arith.constant 0 : index
    %c0_0 = arith.constant 0 : index
    %c0_1 = arith.constant 0 : index
    %1 = vector.load %arg15[%c0, %c0_0, %c0_1] : memref<18x32x3xf32, #tpu.memory_space<vmem>>, vector<1x32x3xf32>
    tpu.vector_store %arg15[%c0, %c0_0, %c0_1], %0 {strides = array<i32>} : memref<18x32x3xf32, #tpu.memory_space<vmem>>, vector<1x32x3xf32>,
    %cst_2 = arith.constant 0.000000e+00 : f32
    %2 = vector.broadcast %cst_2 : f32 to vector<1x32x3xf32>
    %c17 = arith.constant 17 : index
    %c0_3 = arith.constant 0 : index
    %c0_4 = arith.constant 0 : index
    %3 = vector.load %arg15[%c17, %c0_3, %c0_4] : memref<18x32x3xf32, #tpu.memory_space<vmem>>, vector<1x32x3xf32>
    tpu.vector_store %arg15[%c17, %c0_3, %c0_4], %2 {strides = array<i32>} : memref<18x32x3xf32, #tpu.memory_space<vmem>>, vector<1x32x3xf32>,
    %cst_5 = arith.constant 0.000000e+00 : f32
    %4 = vector.broadcast %cst_5 : f32 to vector<18x1x3xf32>
    %c0_6 = arith.constant 0 : index
    %c7 = arith.constant 7 : index
    %c0_7 = arith.constant 0 : index
    %5 = vector.load %arg15[%c0_6, %c7, %c0_7] : memref<18x32x3xf32, #tpu.memory_space<vmem>>, vector<18x1x3xf32>
    tpu.vector_store %arg15[%c0_6, %c7, %c0_7], %4 {strides = array<i32>} : memref<18x32x3xf32, #tpu.memory_space<vmem>>, vector<18x1x3xf32>,
    %cst_8 = arith.constant 0.000000e+00 : f32
    %6 = vector.broadcast %cst_8 : f32 to vector<18x1x3xf32>
    %c0_9 = arith.constant 0 : index
    %c24 = arith.constant 24 : index
    %c0_10 = arith.constant 0 : index
    %7 = vector.load %arg15[%c0_9, %c24, %c0_10] : memref<18x32x3xf32, #tpu.memory_space<vmem>>, vector<18x1x3xf32>
    tpu.vector_store %arg15[%c0_9, %c24, %c0_10], %6 {strides = array<i32>} : memref<18x32x3xf32, #tpu.memory_space<vmem>>, vector<18x1x3xf32>,
    %cst_11 = arith.constant 0.000000e+00 : f32
    %8 = vector.broadcast %cst_11 : f32 to vector<1x32x32xf32>
    %c0_12 = arith.constant 0 : index
    %c0_13 = arith.constant 0 : index
    %c0_14 = arith.constant 0 : index
    %9 = vector.load %arg16[%c0_12, %c0_13, %c0_14] : memref<18x32x32xf32, #tpu.memory_space<vmem>>, vector<1x32x32xf32>
    tpu.vector_store %arg16[%c0_12, %c0_13, %c0_14], %8 {strides = array<i32>} : memref<18x32x32xf32, #tpu.memory_space<vmem>>, vector<1x32x32xf32>,
    %cst_15 = arith.constant 0.000000e+00 : f32
    %10 = vector.broadcast %cst_15 : f32 to vector<1x32x32xf32>
    %c17_16 = arith.constant 17 : index
    %c0_17 = arith.constant 0 : index
    %c0_18 = arith.constant 0 : index
    %11 = vector.load %arg16[%c17_16, %c0_17, %c0_18] : memref<18x32x32xf32, #tpu.memory_space<vmem>>, vector<1x32x32xf32>
    tpu.vector_store %arg16[%c17_16, %c0_17, %c0_18], %10 {strides = array<i32>} : memref<18x32x32xf32, #tpu.memory_space<vmem>>, vector<1x32x32xf32>,
    %cst_19 = arith.constant 0.000000e+00 : f32
    %12 = vector.broadcast %cst_19 : f32 to vector<18x1x32xf32>
    %c0_20 = arith.constant 0 : index
    %c7_21 = arith.constant 7 : index
    %c0_22 = arith.constant 0 : index
    %13 = vector.load %arg16[%c0_20, %c7_21, %c0_22] : memref<18x32x32xf32, #tpu.memory_space<vmem>>, vector<18x1x32xf32>
    tpu.vector_store %arg16[%c0_20, %c7_21, %c0_22], %12 {strides = array<i32>} : memref<18x32x32xf32, #tpu.memory_space<vmem>>, vector<18x1x32xf32>,
    %cst_23 = arith.constant 0.000000e+00 : f32
    %14 = vector.broadcast %cst_23 : f32 to vector<18x1x32xf32>
    %c0_24 = arith.constant 0 : index
    %c24_25 = arith.constant 24 : index
    %c0_26 = arith.constant 0 : index
    %15 = vector.load %arg16[%c0_24, %c24_25, %c0_26] : memref<18x32x32xf32, #tpu.memory_space<vmem>>, vector<18x1x32xf32>
    tpu.vector_store %arg16[%c0_24, %c24_25, %c0_26], %14 {strides = array<i32>} : memref<18x32x32xf32, #tpu.memory_space<vmem>>, vector<18x1x32xf32>,
    %cst_27 = arith.constant 0.000000e+00 : f32
    %16 = vector.broadcast %cst_27 : f32 to vector<1x32x64xf32>
    %c0_28 = arith.constant 0 : index
    %c0_29 = arith.constant 0 : index
    %c0_30 = arith.constant 0 : index
    %17 = vector.load %arg17[%c0_28, %c0_29, %c0_30] : memref<18x32x64xf32, #tpu.memory_space<vmem>>, vector<1x32x64xf32>
    tpu.vector_store %arg17[%c0_28, %c0_29, %c0_30], %16 {strides = array<i32>} : memref<18x32x64xf32, #tpu.memory_space<vmem>>, vector<1x32x64xf32>,
    %cst_31 = arith.constant 0.000000e+00 : f32
    %18 = vector.broadcast %cst_31 : f32 to vector<1x32x64xf32>
    %c17_32 = arith.constant 17 : index
    %c0_33 = arith.constant 0 : index
    %c0_34 = arith.constant 0 : index
    %19 = vector.load %arg17[%c17_32, %c0_33, %c0_34] : memref<18x32x64xf32, #tpu.memory_space<vmem>>, vector<1x32x64xf32>
    tpu.vector_store %arg17[%c17_32, %c0_33, %c0_34], %18 {strides = array<i32>} : memref<18x32x64xf32, #tpu.memory_space<vmem>>, vector<1x32x64xf32>,
    %cst_35 = arith.constant 0.000000e+00 : f32
    %20 = vector.broadcast %cst_35 : f32 to vector<18x1x64xf32>
    %c0_36 = arith.constant 0 : index
    %c7_37 = arith.constant 7 : index
    %c0_38 = arith.constant 0 : index
    %21 = vector.load %arg17[%c0_36, %c7_37, %c0_38] : memref<18x32x64xf32, #tpu.memory_space<vmem>>, vector<18x1x64xf32>
    tpu.vector_store %arg17[%c0_36, %c7_37, %c0_38], %20 {strides = array<i32>} : memref<18x32x64xf32, #tpu.memory_space<vmem>>, vector<18x1x64xf32>,
    %cst_39 = arith.constant 0.000000e+00 : f32
    %22 = vector.broadcast %cst_39 : f32 to vector<18x1x64xf32>
    %c0_40 = arith.constant 0 : index
    %c24_41 = arith.constant 24 : index
    %c0_42 = arith.constant 0 : index
    %23 = vector.load %arg17[%c0_40, %c24_41, %c0_42] : memref<18x32x64xf32, #tpu.memory_space<vmem>>, vector<18x1x64xf32>
    tpu.vector_store %arg17[%c0_40, %c24_41, %c0_42], %22 {strides = array<i32>} : memref<18x32x64xf32, #tpu.memory_space<vmem>>, vector<18x1x64xf32>,
    %c0_43 = arith.constant 0 : index
    %c0_44 = arith.constant 0 : index
    %c0_45 = arith.constant 0 : index
    %24 = vector.load %arg1[%c0_43, %c0_44, %c0_45] : memref<1x3x256xf32, #tpu.memory_space<vmem>>, vector<1x3x256xf32>
    %25 = vector.shape_cast %24 : vector<1x3x256xf32> to vector<3x256xf32>
    %26 = tpu.transpose %25, [1, 0] : vector<3x256xf32> -> vector<256x3xf32>
    %27 = vector.shape_cast %26 : vector<256x3xf32> to vector<16x16x3xf32>
    %c1 = arith.constant 1 : index
    %c8 = arith.constant 8 : index
    %c0_46 = arith.constant 0 : index
    %28 = vector.load %arg15[%c1, %c8, %c0_46] : memref<18x32x3xf32, #tpu.memory_space<vmem>>, vector<16x16x3xf32>
    tpu.vector_store %arg15[%c1, %c8, %c0_46], %27 {strides = array<i32>} : memref<18x32x3xf32, #tpu.memory_space<vmem>>, vector<16x16x3xf32>,
    %c0_47 = arith.constant 0 : index
    %c7_48 = arith.constant 7 : index
    %c0_49 = arith.constant 0 : index
    %29 = vector.load %arg15[%c0_47, %c7_48, %c0_49] : memref<18x32x3xf32, #tpu.memory_space<vmem>>, vector<18x16x3xf32>
    %30 = vector.extract_strided_slice %29 {offsets = [0, 0, 0], sizes = [16, 16, 3], strides = [1, 1, 1]} : vector<18x16x3xf32> to vector<16x16x3xf32>
    %31 = vector.extract_strided_slice %29 {offsets = [1, 0, 0], sizes = [16, 16, 3], strides = [1, 1, 1]} : vector<18x16x3xf32> to vector<16x16x3xf32>
    %32 = vector.extract_strided_slice %29 {offsets = [2, 0, 0], sizes = [16, 16, 3], strides = [1, 1, 1]} : vector<18x16x3xf32> to vector<16x16x3xf32>
    %33 = tpu.concatenate %30, %31, %32 in 2 : vector<16x16x3xf32>, vector<16x16x3xf32>, vector<16x16x3xf32> -> vector<16x16x9xf32>
    %34 = vector.shape_cast %33 : vector<16x16x9xf32> to vector<256x9xf32>
    %c0_50 = arith.constant 0 : index
    %c0_51 = arith.constant 0 : index
    %c0_52 = arith.constant 0 : index
    %35 = vector.load %arg3[%c0_50, %c0_51, %c0_52] : memref<3x9x32xf32, #tpu.memory_space<vmem>>, vector<1x9x32xf32>
    %36 = vector.shape_cast %35 : vector<1x9x32xf32> to vector<9x32xf32>
    %cst_53 = arith.constant dense<0.000000e+00> : vector<256x32xf32>
    %37 = tpu.matmul %34, %36, %cst_53 {dimension_numbers = #tpu.dot_dimension_numbers<[1], [0], [0], [1], [0, 0, 1, 1], [], []>} : vector<256x9xf32>, vector<9x32xf32>, vector<256x32xf32> -> vector<256x32xf32>
    %c0_54 = arith.constant 0 : index
    %c8_55 = arith.constant 8 : index
    %c0_56 = arith.constant 0 : index
    %38 = vector.load %arg15[%c0_54, %c8_55, %c0_56] : memref<18x32x3xf32, #tpu.memory_space<vmem>>, vector<18x16x3xf32>
    %39 = vector.extract_strided_slice %38 {offsets = [0, 0, 0], sizes = [16, 16, 3], strides = [1, 1, 1]} : vector<18x16x3xf32> to vector<16x16x3xf32>
    %40 = vector.extract_strided_slice %38 {offsets = [1, 0, 0], sizes = [16, 16, 3], strides = [1, 1, 1]} : vector<18x16x3xf32> to vector<16x16x3xf32>
    %41 = vector.extract_strided_slice %38 {offsets = [2, 0, 0], sizes = [16, 16, 3], strides = [1, 1, 1]} : vector<18x16x3xf32> to vector<16x16x3xf32>
    %42 = tpu.concatenate %39, %40, %41 in 2 : vector<16x16x3xf32>, vector<16x16x3xf32>, vector<16x16x3xf32> -> vector<16x16x9xf32>
    %43 = vector.shape_cast %42 : vector<16x16x9xf32> to vector<256x9xf32>
    %c1_57 = arith.constant 1 : index
    %c0_58 = arith.constant 0 : index
    %c0_59 = arith.constant 0 : index
    %44 = vector.load %arg3[%c1_57, %c0_58, %c0_59] : memref<3x9x32xf32, #tpu.memory_space<vmem>>, vector<1x9x32xf32>
    %45 = vector.shape_cast %44 : vector<1x9x32xf32> to vector<9x32xf32>
    %cst_60 = arith.constant dense<0.000000e+00> : vector<256x32xf32>
    %46 = tpu.matmul %43, %45, %cst_60 {dimension_numbers = #tpu.dot_dimension_numbers<[1], [0], [0], [1], [0, 0, 1, 1], [], []>} : vector<256x9xf32>, vector<9x32xf32>, vector<256x32xf32> -> vector<256x32xf32>
    %47 = arith.addf %37, %46 : vector<256x32xf32>
    %c0_61 = arith.constant 0 : index
    %c9 = arith.constant 9 : index
    %c0_62 = arith.constant 0 : index
    %48 = vector.load %arg15[%c0_61, %c9, %c0_62] : memref<18x32x3xf32, #tpu.memory_space<vmem>>, vector<18x16x3xf32>
    %49 = vector.extract_strided_slice %48 {offsets = [0, 0, 0], sizes = [16, 16, 3], strides = [1, 1, 1]} : vector<18x16x3xf32> to vector<16x16x3xf32>
    %50 = vector.extract_strided_slice %48 {offsets = [1, 0, 0], sizes = [16, 16, 3], strides = [1, 1, 1]} : vector<18x16x3xf32> to vector<16x16x3xf32>
    %51 = vector.extract_strided_slice %48 {offsets = [2, 0, 0], sizes = [16, 16, 3], strides = [1, 1, 1]} : vector<18x16x3xf32> to vector<16x16x3xf32>
    %52 = tpu.concatenate %49, %50, %51 in 2 : vector<16x16x3xf32>, vector<16x16x3xf32>, vector<16x16x3xf32> -> vector<16x16x9xf32>
    %53 = vector.shape_cast %52 : vector<16x16x9xf32> to vector<256x9xf32>
    %c2 = arith.constant 2 : index
    %c0_63 = arith.constant 0 : index
    %c0_64 = arith.constant 0 : index
    %54 = vector.load %arg3[%c2, %c0_63, %c0_64] : memref<3x9x32xf32, #tpu.memory_space<vmem>>, vector<1x9x32xf32>
    %55 = vector.shape_cast %54 : vector<1x9x32xf32> to vector<9x32xf32>
    %cst_65 = arith.constant dense<0.000000e+00> : vector<256x32xf32>
    %56 = tpu.matmul %53, %55, %cst_65 {dimension_numbers = #tpu.dot_dimension_numbers<[1], [0], [0], [1], [0, 0, 1, 1], [], []>} : vector<256x9xf32>, vector<9x32xf32>, vector<256x32xf32> -> vector<256x32xf32>
    %57 = arith.addf %47, %56 : vector<256x32xf32>
    %c0_66 = arith.constant 0 : index
    %c0_67 = arith.constant 0 : index
    %58 = vector.load %arg4[%c0_66, %c0_67] : memref<1x32xf32, #tpu.memory_space<vmem>>, vector<1x32xf32>
    %59 = vector.broadcast %58 : vector<1x32xf32> to vector<256x32xf32>
    %60 = arith.addf %57, %59 : vector<256x32xf32>
    %cst_68 = arith.constant 0.000000e+00 : f32
    %61 = vector.broadcast %cst_68 : f32 to vector<256x32xf32>
    %62 = arith.maximumf %60, %61 : vector<256x32xf32>
    %63 = vector.shape_cast %62 : vector<256x32xf32> to vector<16x16x32xf32>
    %c1_69 = arith.constant 1 : index
    %c8_70 = arith.constant 8 : index
    %c0_71 = arith.constant 0 : index
    %64 = vector.load %arg16[%c1_69, %c8_70, %c0_71] : memref<18x32x32xf32, #tpu.memory_space<vmem>>, vector<16x16x32xf32>
    tpu.vector_store %arg16[%c1_69, %c8_70, %c0_71], %63 {strides = array<i32>} : memref<18x32x32xf32, #tpu.memory_space<vmem>>, vector<16x16x32xf32>,
    %c0_72 = arith.constant 0 : index
    %c7_73 = arith.constant 7 : index
    %c0_74 = arith.constant 0 : index
    %65 = vector.load %arg16[%c0_72, %c7_73, %c0_74] : memref<18x32x32xf32, #tpu.memory_space<vmem>>, vector<18x16x32xf32>
    %66 = vector.extract_strided_slice %65 {offsets = [0, 0, 0], sizes = [16, 16, 32], strides = [1, 1, 1]} : vector<18x16x32xf32> to vector<16x16x32xf32>
    %67 = vector.extract_strided_slice %65 {offsets = [1, 0, 0], sizes = [16, 16, 32], strides = [1, 1, 1]} : vector<18x16x32xf32> to vector<16x16x32xf32>
    %68 = vector.extract_strided_slice %65 {offsets = [2, 0, 0], sizes = [16, 16, 32], strides = [1, 1, 1]} : vector<18x16x32xf32> to vector<16x16x32xf32>
    %69 = tpu.concatenate %66, %67, %68 in 2 : vector<16x16x32xf32>, vector<16x16x32xf32>, vector<16x16x32xf32> -> vector<16x16x96xf32>
    %70 = vector.shape_cast %69 : vector<16x16x96xf32> to vector<256x96xf32>
    %c0_75 = arith.constant 0 : index
    %c0_76 = arith.constant 0 : index
    %c0_77 = arith.constant 0 : index
    %71 = vector.load %arg5[%c0_75, %c0_76, %c0_77] : memref<3x96x64xf32, #tpu.memory_space<vmem>>, vector<1x96x64xf32>
    %72 = vector.shape_cast %71 : vector<1x96x64xf32> to vector<96x64xf32>
    %cst_78 = arith.constant dense<0.000000e+00> : vector<256x64xf32>
    %73 = tpu.matmul %70, %72, %cst_78 {dimension_numbers = #tpu.dot_dimension_numbers<[1], [0], [0], [1], [0, 0, 1, 1], [], []>} : vector<256x96xf32>, vector<96x64xf32>, vector<256x64xf32> -> vector<256x64xf32>
    %c0_79 = arith.constant 0 : index
    %c8_80 = arith.constant 8 : index
    %c0_81 = arith.constant 0 : index
    %74 = vector.load %arg16[%c0_79, %c8_80, %c0_81] : memref<18x32x32xf32, #tpu.memory_space<vmem>>, vector<18x16x32xf32>
    %75 = vector.extract_strided_slice %74 {offsets = [0, 0, 0], sizes = [16, 16, 32], strides = [1, 1, 1]} : vector<18x16x32xf32> to vector<16x16x32xf32>
    %76 = vector.extract_strided_slice %74 {offsets = [1, 0, 0], sizes = [16, 16, 32], strides = [1, 1, 1]} : vector<18x16x32xf32> to vector<16x16x32xf32>
    %77 = vector.extract_strided_slice %74 {offsets = [2, 0, 0], sizes = [16, 16, 32], strides = [1, 1, 1]} : vector<18x16x32xf32> to vector<16x16x32xf32>
    %78 = tpu.concatenate %75, %76, %77 in 2 : vector<16x16x32xf32>, vector<16x16x32xf32>, vector<16x16x32xf32> -> vector<16x16x96xf32>
    %79 = vector.shape_cast %78 : vector<16x16x96xf32> to vector<256x96xf32>
    %c1_82 = arith.constant 1 : index
    %c0_83 = arith.constant 0 : index
    %c0_84 = arith.constant 0 : index
    %80 = vector.load %arg5[%c1_82, %c0_83, %c0_84] : memref<3x96x64xf32, #tpu.memory_space<vmem>>, vector<1x96x64xf32>
    %81 = vector.shape_cast %80 : vector<1x96x64xf32> to vector<96x64xf32>
    %cst_85 = arith.constant dense<0.000000e+00> : vector<256x64xf32>
    %82 = tpu.matmul %79, %81, %cst_85 {dimension_numbers = #tpu.dot_dimension_numbers<[1], [0], [0], [1], [0, 0, 1, 1], [], []>} : vector<256x96xf32>, vector<96x64xf32>, vector<256x64xf32> -> vector<256x64xf32>
    %83 = arith.addf %73, %82 : vector<256x64xf32>
    %c0_86 = arith.constant 0 : index
    %c9_87 = arith.constant 9 : index
    %c0_88 = arith.constant 0 : index
    %84 = vector.load %arg16[%c0_86, %c9_87, %c0_88] : memref<18x32x32xf32, #tpu.memory_space<vmem>>, vector<18x16x32xf32>
    %85 = vector.extract_strided_slice %84 {offsets = [0, 0, 0], sizes = [16, 16, 32], strides = [1, 1, 1]} : vector<18x16x32xf32> to vector<16x16x32xf32>
    %86 = vector.extract_strided_slice %84 {offsets = [1, 0, 0], sizes = [16, 16, 32], strides = [1, 1, 1]} : vector<18x16x32xf32> to vector<16x16x32xf32>
    %87 = vector.extract_strided_slice %84 {offsets = [2, 0, 0], sizes = [16, 16, 32], strides = [1, 1, 1]} : vector<18x16x32xf32> to vector<16x16x32xf32>
    %88 = tpu.concatenate %85, %86, %87 in 2 : vector<16x16x32xf32>, vector<16x16x32xf32>, vector<16x16x32xf32> -> vector<16x16x96xf32>
    %89 = vector.shape_cast %88 : vector<16x16x96xf32> to vector<256x96xf32>
    %c2_89 = arith.constant 2 : index
    %c0_90 = arith.constant 0 : index
    %c0_91 = arith.constant 0 : index
    %90 = vector.load %arg5[%c2_89, %c0_90, %c0_91] : memref<3x96x64xf32, #tpu.memory_space<vmem>>, vector<1x96x64xf32>
    %91 = vector.shape_cast %90 : vector<1x96x64xf32> to vector<96x64xf32>
    %cst_92 = arith.constant dense<0.000000e+00> : vector<256x64xf32>
    %92 = tpu.matmul %89, %91, %cst_92 {dimension_numbers = #tpu.dot_dimension_numbers<[1], [0], [0], [1], [0, 0, 1, 1], [], []>} : vector<256x96xf32>, vector<96x64xf32>, vector<256x64xf32> -> vector<256x64xf32>
    %93 = arith.addf %83, %92 : vector<256x64xf32>
    %c0_93 = arith.constant 0 : index
    %c0_94 = arith.constant 0 : index
    %94 = vector.load %arg6[%c0_93, %c0_94] : memref<1x64xf32, #tpu.memory_space<vmem>>, vector<1x64xf32>
    %95 = vector.broadcast %94 : vector<1x64xf32> to vector<256x64xf32>
    %96 = arith.addf %93, %95 : vector<256x64xf32>
    %cst_95 = arith.constant 0.000000e+00 : f32
    %97 = vector.broadcast %cst_95 : f32 to vector<256x64xf32>
    %98 = arith.maximumf %96, %97 : vector<256x64xf32>
    %c0_96 = arith.constant 0 : index
    %c0_97 = arith.constant 0 : index
    %c0_98 = arith.constant 0 : index
    %99 = vector.load %arg2[%c0_96, %c0_97, %c0_98] : memref<1x1x64xf32, #tpu.memory_space<vmem>>, vector<1x1x64xf32>
    %100 = vector.shape_cast %99 : vector<1x1x64xf32> to vector<1x64xf32>
    %c0_99 = arith.constant 0 : index
    %c0_100 = arith.constant 0 : index
    %101 = vector.load %arg8[%c0_99, %c0_100] : memref<64x64xf32, #tpu.memory_space<vmem>>, vector<64x64xf32>
    %cst_101 = arith.constant dense<0.000000e+00> : vector<1x64xf32>
    %102 = tpu.matmul %100, %101, %cst_101 {dimension_numbers = #tpu.dot_dimension_numbers<[1], [0], [0], [1], [0, 0, 1, 1], [], []>} : vector<1x64xf32>, vector<64x64xf32>, vector<1x64xf32> -> vector<1x64xf32>
    %c0_102 = arith.constant 0 : index
    %c0_103 = arith.constant 0 : index
    %103 = vector.load %arg9[%c0_102, %c0_103] : memref<1x64xf32, #tpu.memory_space<vmem>>, vector<1x64xf32>
    %104 = arith.addf %102, %103 : vector<1x64xf32>
    %c0_104 = arith.constant 0 : index
    %c0_105 = arith.constant 0 : index
    %105 = vector.load %arg7[%c0_104, %c0_105] : memref<64x64xf32, #tpu.memory_space<vmem>>, vector<64x64xf32>
    %cst_106 = arith.constant dense<0.000000e+00> : vector<256x64xf32>
    %106 = tpu.matmul %98, %105, %cst_106 {dimension_numbers = #tpu.dot_dimension_numbers<[1], [0], [0], [1], [0, 0, 1, 1], [], []>} : vector<256x64xf32>, vector<64x64xf32>, vector<256x64xf32> -> vector<256x64xf32>
    %107 = vector.broadcast %104 : vector<1x64xf32> to vector<256x64xf32>
    %108 = arith.addf %106, %107 : vector<256x64xf32>
    %109 = vector.shape_cast %108 : vector<256x64xf32> to vector<16x16x64xf32>
    %c1_107 = arith.constant 1 : index
    %c8_108 = arith.constant 8 : index
    %c0_109 = arith.constant 0 : index
    %110 = vector.load %arg17[%c1_107, %c8_108, %c0_109] : memref<18x32x64xf32, #tpu.memory_space<vmem>>, vector<16x16x64xf32>
    tpu.vector_store %arg17[%c1_107, %c8_108, %c0_109], %109 {strides = array<i32>} : memref<18x32x64xf32, #tpu.memory_space<vmem>>, vector<16x16x64xf32>,
    %c0_110 = arith.constant 0 : index
    %c7_111 = arith.constant 7 : index
    %c0_112 = arith.constant 0 : index
    %111 = vector.load %arg17[%c0_110, %c7_111, %c0_112] : memref<18x32x64xf32, #tpu.memory_space<vmem>>, vector<18x16x64xf32>
    %112 = vector.extract_strided_slice %111 {offsets = [0, 0, 0], sizes = [16, 16, 64], strides = [1, 1, 1]} : vector<18x16x64xf32> to vector<16x16x64xf32>
    %113 = vector.extract_strided_slice %111 {offsets = [1, 0, 0], sizes = [16, 16, 64], strides = [1, 1, 1]} : vector<18x16x64xf32> to vector<16x16x64xf32>
    %114 = vector.extract_strided_slice %111 {offsets = [2, 0, 0], sizes = [16, 16, 64], strides = [1, 1, 1]} : vector<18x16x64xf32> to vector<16x16x64xf32>
    %115 = tpu.concatenate %112, %113, %114 in 2 : vector<16x16x64xf32>, vector<16x16x64xf32>, vector<16x16x64xf32> -> vector<16x16x192xf32>
    %116 = vector.shape_cast %115 : vector<16x16x192xf32> to vector<256x192xf32>
    %c0_113 = arith.constant 0 : index
    %c0_114 = arith.constant 0 : index
    %c0_115 = arith.constant 0 : index
    %117 = vector.load %arg10[%c0_113, %c0_114, %c0_115] : memref<3x192x32xf32, #tpu.memory_space<vmem>>, vector<1x192x32xf32>
    %118 = vector.shape_cast %117 : vector<1x192x32xf32> to vector<192x32xf32>
    %cst_116 = arith.constant dense<0.000000e+00> : vector<256x32xf32>
    %119 = tpu.matmul %116, %118, %cst_116 {dimension_numbers = #tpu.dot_dimension_numbers<[1], [0], [0], [1], [0, 0, 1, 1], [], []>} : vector<256x192xf32>, vector<192x32xf32>, vector<256x32xf32> -> vector<256x32xf32>
    %c0_117 = arith.constant 0 : index
    %c8_118 = arith.constant 8 : index
    %c0_119 = arith.constant 0 : index
    %120 = vector.load %arg17[%c0_117, %c8_118, %c0_119] : memref<18x32x64xf32, #tpu.memory_space<vmem>>, vector<18x16x64xf32>
    %121 = vector.extract_strided_slice %120 {offsets = [0, 0, 0], sizes = [16, 16, 64], strides = [1, 1, 1]} : vector<18x16x64xf32> to vector<16x16x64xf32>
    %122 = vector.extract_strided_slice %120 {offsets = [1, 0, 0], sizes = [16, 16, 64], strides = [1, 1, 1]} : vector<18x16x64xf32> to vector<16x16x64xf32>
    %123 = vector.extract_strided_slice %120 {offsets = [2, 0, 0], sizes = [16, 16, 64], strides = [1, 1, 1]} : vector<18x16x64xf32> to vector<16x16x64xf32>
    %124 = tpu.concatenate %121, %122, %123 in 2 : vector<16x16x64xf32>, vector<16x16x64xf32>, vector<16x16x64xf32> -> vector<16x16x192xf32>
    %125 = vector.shape_cast %124 : vector<16x16x192xf32> to vector<256x192xf32>
    %c1_120 = arith.constant 1 : index
    %c0_121 = arith.constant 0 : index
    %c0_122 = arith.constant 0 : index
    %126 = vector.load %arg10[%c1_120, %c0_121, %c0_122] : memref<3x192x32xf32, #tpu.memory_space<vmem>>, vector<1x192x32xf32>
    %127 = vector.shape_cast %126 : vector<1x192x32xf32> to vector<192x32xf32>
    %cst_123 = arith.constant dense<0.000000e+00> : vector<256x32xf32>
    %128 = tpu.matmul %125, %127, %cst_123 {dimension_numbers = #tpu.dot_dimension_numbers<[1], [0], [0], [1], [0, 0, 1, 1], [], []>} : vector<256x192xf32>, vector<192x32xf32>, vector<256x32xf32> -> vector<256x32xf32>
    %129 = arith.addf %119, %128 : vector<256x32xf32>
    %c0_124 = arith.constant 0 : index
    %c9_125 = arith.constant 9 : index
    %c0_126 = arith.constant 0 : index
    %130 = vector.load %arg17[%c0_124, %c9_125, %c0_126] : memref<18x32x64xf32, #tpu.memory_space<vmem>>, vector<18x16x64xf32>
    %131 = vector.extract_strided_slice %130 {offsets = [0, 0, 0], sizes = [16, 16, 64], strides = [1, 1, 1]} : vector<18x16x64xf32> to vector<16x16x64xf32>
    %132 = vector.extract_strided_slice %130 {offsets = [1, 0, 0], sizes = [16, 16, 64], strides = [1, 1, 1]} : vector<18x16x64xf32> to vector<16x16x64xf32>
    %133 = vector.extract_strided_slice %130 {offsets = [2, 0, 0], sizes = [16, 16, 64], strides = [1, 1, 1]} : vector<18x16x64xf32> to vector<16x16x64xf32>
    %134 = tpu.concatenate %131, %132, %133 in 2 : vector<16x16x64xf32>, vector<16x16x64xf32>, vector<16x16x64xf32> -> vector<16x16x192xf32>
    %135 = vector.shape_cast %134 : vector<16x16x192xf32> to vector<256x192xf32>
    %c2_127 = arith.constant 2 : index
    %c0_128 = arith.constant 0 : index
    %c0_129 = arith.constant 0 : index
    %136 = vector.load %arg10[%c2_127, %c0_128, %c0_129] : memref<3x192x32xf32, #tpu.memory_space<vmem>>, vector<1x192x32xf32>
    %137 = vector.shape_cast %136 : vector<1x192x32xf32> to vector<192x32xf32>
    %cst_130 = arith.constant dense<0.000000e+00> : vector<256x32xf32>
    %138 = tpu.matmul %135, %137, %cst_130 {dimension_numbers = #tpu.dot_dimension_numbers<[1], [0], [0], [1], [0, 0, 1, 1], [], []>} : vector<256x192xf32>, vector<192x32xf32>, vector<256x32xf32> -> vector<256x32xf32>
    %139 = arith.addf %129, %138 : vector<256x32xf32>
    %c0_131 = arith.constant 0 : index
    %c0_132 = arith.constant 0 : index
    %140 = vector.load %arg11[%c0_131, %c0_132] : memref<1x32xf32, #tpu.memory_space<vmem>>, vector<1x32xf32>
    %141 = vector.broadcast %140 : vector<1x32xf32> to vector<256x32xf32>
    %142 = arith.addf %139, %141 : vector<256x32xf32>
    %cst_133 = arith.constant 0.000000e+00 : f32
    %143 = vector.broadcast %cst_133 : f32 to vector<256x32xf32>
    %144 = arith.maximumf %142, %143 : vector<256x32xf32>
    %145 = vector.shape_cast %144 : vector<256x32xf32> to vector<16x16x32xf32>
    %c1_134 = arith.constant 1 : index
    %c8_135 = arith.constant 8 : index
    %c0_136 = arith.constant 0 : index
    %146 = vector.load %arg16[%c1_134, %c8_135, %c0_136] : memref<18x32x32xf32, #tpu.memory_space<vmem>>, vector<16x16x32xf32>
    tpu.vector_store %arg16[%c1_134, %c8_135, %c0_136], %145 {strides = array<i32>} : memref<18x32x32xf32, #tpu.memory_space<vmem>>, vector<16x16x32xf32>,
    %c0_137 = arith.constant 0 : index
    %c7_138 = arith.constant 7 : index
    %c0_139 = arith.constant 0 : index
    %147 = vector.load %arg16[%c0_137, %c7_138, %c0_139] : memref<18x32x32xf32, #tpu.memory_space<vmem>>, vector<18x16x32xf32>
    %148 = vector.extract_strided_slice %147 {offsets = [0, 0, 0], sizes = [16, 16, 32], strides = [1, 1, 1]} : vector<18x16x32xf32> to vector<16x16x32xf32>
    %149 = vector.extract_strided_slice %147 {offsets = [1, 0, 0], sizes = [16, 16, 32], strides = [1, 1, 1]} : vector<18x16x32xf32> to vector<16x16x32xf32>
    %150 = vector.extract_strided_slice %147 {offsets = [2, 0, 0], sizes = [16, 16, 32], strides = [1, 1, 1]} : vector<18x16x32xf32> to vector<16x16x32xf32>
    %151 = tpu.concatenate %148, %149, %150 in 2 : vector<16x16x32xf32>, vector<16x16x32xf32>, vector<16x16x32xf32> -> vector<16x16x96xf32>
    %152 = vector.shape_cast %151 : vector<16x16x96xf32> to vector<256x96xf32>
    %c0_140 = arith.constant 0 : index
    %c0_141 = arith.constant 0 : index
    %c0_142 = arith.constant 0 : index
    %153 = vector.load %arg12[%c0_140, %c0_141, %c0_142] : memref<3x96x8xf32, #tpu.memory_space<vmem>>, vector<1x96x8xf32>
    %154 = vector.shape_cast %153 : vector<1x96x8xf32> to vector<96x8xf32>
    %cst_143 = arith.constant dense<0.000000e+00> : vector<256x8xf32>
    %155 = tpu.matmul %152, %154, %cst_143 {dimension_numbers = #tpu.dot_dimension_numbers<[1], [0], [0], [1], [0, 0, 1, 1], [], []>} : vector<256x96xf32>, vector<96x8xf32>, vector<256x8xf32> -> vector<256x8xf32>
    %c0_144 = arith.constant 0 : index
    %c8_145 = arith.constant 8 : index
    %c0_146 = arith.constant 0 : index
    %156 = vector.load %arg16[%c0_144, %c8_145, %c0_146] : memref<18x32x32xf32, #tpu.memory_space<vmem>>, vector<18x16x32xf32>
    %157 = vector.extract_strided_slice %156 {offsets = [0, 0, 0], sizes = [16, 16, 32], strides = [1, 1, 1]} : vector<18x16x32xf32> to vector<16x16x32xf32>
    %158 = vector.extract_strided_slice %156 {offsets = [1, 0, 0], sizes = [16, 16, 32], strides = [1, 1, 1]} : vector<18x16x32xf32> to vector<16x16x32xf32>
    %159 = vector.extract_strided_slice %156 {offsets = [2, 0, 0], sizes = [16, 16, 32], strides = [1, 1, 1]} : vector<18x16x32xf32> to vector<16x16x32xf32>
    %160 = tpu.concatenate %157, %158, %159 in 2 : vector<16x16x32xf32>, vector<16x16x32xf32>, vector<16x16x32xf32> -> vector<16x16x96xf32>
    %161 = vector.shape_cast %160 : vector<16x16x96xf32> to vector<256x96xf32>
    %c1_147 = arith.constant 1 : index
    %c0_148 = arith.constant 0 : index
    %c0_149 = arith.constant 0 : index
    %162 = vector.load %arg12[%c1_147, %c0_148, %c0_149] : memref<3x96x8xf32, #tpu.memory_space<vmem>>, vector<1x96x8xf32>
    %163 = vector.shape_cast %162 : vector<1x96x8xf32> to vector<96x8xf32>
    %cst_150 = arith.constant dense<0.000000e+00> : vector<256x8xf32>
    %164 = tpu.matmul %161, %163, %cst_150 {dimension_numbers = #tpu.dot_dimension_numbers<[1], [0], [0], [1], [0, 0, 1, 1], [], []>} : vector<256x96xf32>, vector<96x8xf32>, vector<256x8xf32> -> vector<256x8xf32>
    %165 = arith.addf %155, %164 : vector<256x8xf32>
    %c0_151 = arith.constant 0 : index
    %c9_152 = arith.constant 9 : index
    %c0_153 = arith.constant 0 : index
    %166 = vector.load %arg16[%c0_151, %c9_152, %c0_153] : memref<18x32x32xf32, #tpu.memory_space<vmem>>, vector<18x16x32xf32>
    %167 = vector.extract_strided_slice %166 {offsets = [0, 0, 0], sizes = [16, 16, 32], strides = [1, 1, 1]} : vector<18x16x32xf32> to vector<16x16x32xf32>
    %168 = vector.extract_strided_slice %166 {offsets = [1, 0, 0], sizes = [16, 16, 32], strides = [1, 1, 1]} : vector<18x16x32xf32> to vector<16x16x32xf32>
    %169 = vector.extract_strided_slice %166 {offsets = [2, 0, 0], sizes = [16, 16, 32], strides = [1, 1, 1]} : vector<18x16x32xf32> to vector<16x16x32xf32>
    %170 = tpu.concatenate %167, %168, %169 in 2 : vector<16x16x32xf32>, vector<16x16x32xf32>, vector<16x16x32xf32> -> vector<16x16x96xf32>
    %171 = vector.shape_cast %170 : vector<16x16x96xf32> to vector<256x96xf32>
    %c2_154 = arith.constant 2 : index
    %c0_155 = arith.constant 0 : index
    %c0_156 = arith.constant 0 : index
    %172 = vector.load %arg12[%c2_154, %c0_155, %c0_156] : memref<3x96x8xf32, #tpu.memory_space<vmem>>, vector<1x96x8xf32>
    %173 = vector.shape_cast %172 : vector<1x96x8xf32> to vector<96x8xf32>
    %cst_157 = arith.constant dense<0.000000e+00> : vector<256x8xf32>
    %174 = tpu.matmul %171, %173, %cst_157 {dimension_numbers = #tpu.dot_dimension_numbers<[1], [0], [0], [1], [0, 0, 1, 1], [], []>} : vector<256x96xf32>, vector<96x8xf32>, vector<256x8xf32> -> vector<256x8xf32>
    %175 = arith.addf %165, %174 : vector<256x8xf32>
    %c0_158 = arith.constant 0 : index
    %c0_159 = arith.constant 0 : index
    %176 = vector.load %arg13[%c0_158, %c0_159] : memref<1x8xf32, #tpu.memory_space<vmem>>, vector<1x8xf32>
    %177 = vector.broadcast %176 : vector<1x8xf32> to vector<256x8xf32>
    %178 = arith.addf %175, %177 : vector<256x8xf32>
    %179 = tpu.transpose %178, [1, 0] : vector<256x8xf32> -> vector<8x256xf32>
    %180 = math.tanh %179 : vector<8x256xf32>
    %cst_160 = arith.constant 2.000000e-02 : f32
    %181 = vector.broadcast %cst_160 : f32 to vector<8x256xf32>
    %182 = arith.mulf %180, %181 : vector<8x256xf32>
    %183 = vector.extract_strided_slice %182 {offsets = [0, 0], sizes = [3, 256], strides = [1, 1]} : vector<8x256xf32> to vector<3x256xf32>
    %184 = vector.shape_cast %183 : vector<3x256xf32> to vector<1x3x256xf32>
    %c0_161 = arith.constant 0 : index
    %c0_162 = arith.constant 0 : index
    %c0_163 = arith.constant 0 : index
    %185 = vector.load %arg14[%c0_161, %c0_162, %c0_163] : memref<1x3x256xf32, #tpu.memory_space<vmem>>, vector<1x3x256xf32>
    tpu.vector_store %arg14[%c0_161, %c0_162, %c0_163], %184 {strides = array<i32>} : memref<1x3x256xf32, #tpu.memory_space<vmem>>, vector<1x3x256xf32>,
    return
  }
  func.func @transform_0(%arg0: i32) -> (i32, i32, i32) {
    %c0_i32 = arith.constant 0 : i32
    %c0_i32_0 = arith.constant 0 : i32
    %c0_i32_1 = arith.constant 0 : i32
    return %arg0, %c0_i32, %c0_i32_0 : i32, i32, i32
  }
  func.func @transform_1(%arg0: i32) -> (i32, i32, i32) {
    %c0_i32 = arith.constant 0 : i32
    %c0_i32_0 = arith.constant 0 : i32
    %c0_i32_1 = arith.constant 0 : i32
    return %arg0, %c0_i32, %c0_i32_0 : i32, i32, i32
  }
  func.func @transform_2(%arg0: i32) -> (i32, i32, i32) {
    %c0_i32 = arith.constant 0 : i32
    %c0_i32_0 = arith.constant 0 : i32
    %c0_i32_1 = arith.constant 0 : i32
    %c0_i32_2 = arith.constant 0 : i32
    return %c0_i32, %c0_i32_0, %c0_i32_1 : i32, i32, i32
  }
  func.func @transform_3(%arg0: i32) -> (i32, i32) {
    %c0_i32 = arith.constant 0 : i32
    %c0_i32_0 = arith.constant 0 : i32
    %c0_i32_1 = arith.constant 0 : i32
    return %c0_i32, %c0_i32_0 : i32, i32
  }
  func.func @transform_4(%arg0: i32) -> (i32, i32, i32) {
    %c0_i32 = arith.constant 0 : i32
    %c0_i32_0 = arith.constant 0 : i32
    %c0_i32_1 = arith.constant 0 : i32
    %c0_i32_2 = arith.constant 0 : i32
    return %c0_i32, %c0_i32_0, %c0_i32_1 : i32, i32, i32
  }
  func.func @transform_5(%arg0: i32) -> (i32, i32) {
    %c0_i32 = arith.constant 0 : i32
    %c0_i32_0 = arith.constant 0 : i32
    %c0_i32_1 = arith.constant 0 : i32
    return %c0_i32, %c0_i32_0 : i32, i32
  }
  func.func @transform_6(%arg0: i32) -> (i32, i32) {
    %c0_i32 = arith.constant 0 : i32
    %c0_i32_0 = arith.constant 0 : i32
    %c0_i32_1 = arith.constant 0 : i32
    return %c0_i32, %c0_i32_0 : i32, i32
  }
  func.func @transform_7(%arg0: i32) -> (i32, i32) {
    %c0_i32 = arith.constant 0 : i32
    %c0_i32_0 = arith.constant 0 : i32
    %c0_i32_1 = arith.constant 0 : i32
    return %c0_i32, %c0_i32_0 : i32, i32
  }
  func.func @transform_8(%arg0: i32) -> (i32, i32) {
    %c0_i32 = arith.constant 0 : i32
    %c0_i32_0 = arith.constant 0 : i32
    %c0_i32_1 = arith.constant 0 : i32
    return %c0_i32, %c0_i32_0 : i32, i32
  }
  func.func @transform_9(%arg0: i32) -> (i32, i32, i32) {
    %c0_i32 = arith.constant 0 : i32
    %c0_i32_0 = arith.constant 0 : i32
    %c0_i32_1 = arith.constant 0 : i32
    %c0_i32_2 = arith.constant 0 : i32
    return %c0_i32, %c0_i32_0, %c0_i32_1 : i32, i32, i32
  }
  func.func @transform_10(%arg0: i32) -> (i32, i32) {
    %c0_i32 = arith.constant 0 : i32
    %c0_i32_0 = arith.constant 0 : i32
    %c0_i32_1 = arith.constant 0 : i32
    return %c0_i32, %c0_i32_0 : i32, i32
  }
  func.func @transform_11(%arg0: i32) -> (i32, i32, i32) {
    %c0_i32 = arith.constant 0 : i32
    %c0_i32_0 = arith.constant 0 : i32
    %c0_i32_1 = arith.constant 0 : i32
    %c0_i32_2 = arith.constant 0 : i32
    return %c0_i32, %c0_i32_0, %c0_i32_1 : i32, i32, i32
  }
  func.func @transform_12(%arg0: i32) -> (i32, i32) {
    %c0_i32 = arith.constant 0 : i32
    %c0_i32_0 = arith.constant 0 : i32
    %c0_i32_1 = arith.constant 0 : i32
    return %c0_i32, %c0_i32_0 : i32, i32
  }
  func.func @transform_13(%arg0: i32) -> (i32, i32, i32) {
    %c0_i32 = arith.constant 0 : i32
    %c0_i32_0 = arith.constant 0 : i32
    %c0_i32_1 = arith.constant 0 : i32
    return %arg0, %c0_i32, %c0_i32_0 : i32, i32, i32
  }
}

</mosaic_0001>

<bundles_post_ra>
// kernel: motion_disruptor_forward.1
= control target key start
LH: loop header
LB: loop body
LE: loop exit
PB: predicated region body
PF: predicated region fallthrough
CT: control target
= control target key end

     0   :  { %s8970_s25 = smov 0   ;;  %s14887_s0 = inlined_call_operand.vmem [shape: f32[2,3,256], index: 0, kind: input, shape index: {}]   ;;  %s14888_s1 = inlined_call_operand.vmem [shape: f32[2,1,64], index: 1, kind: input, shape index: {}]   ;;  %s14889_s2 = inlined_call_operand.vmem [shape: f32[3,9,32], index: 2, kind: input, shape index: {}]   ;;  %s14890_s3 = inlined_call_operand.vmem [shape: f32[1,32], index: 3, kind: input, shape index: {}]   ;;  %s14891_s4 = inlined_call_operand.vmem [shape: f32[3,96,64], index: 4, kind: input, shape index: {}]   ;;  %s14892_s5 = inlined_call_operand.vmem [shape: f32[1,64], index: 5, kind: input, shape index: {}]   ;;  %s14893_s6 = inlined_call_operand.vmem [shape: f32[64,64], index: 6, kind: input, shape index: {}]   ;;  %s14894_s7 = inlined_call_operand.vmem [shape: f32[64,64], index: 7, kind: input, shape index: {}]   ;;  %s14895_s8 = inlined_call_operand.vmem [shape: f32[1,64], index: 8, kind: input, shape index: {}]   ;;  %s14896_s9 = inlined_call_operand.vmem [shape: f32[3,192,32], index: 9, kind: input, shape index: {}]   ;;  %s14897_s10 = inlined_call_operand.vmem [shape: f32[1,32], index: 10, kind: input, shape index: {}]   ;;  %s14898_s11 = inlined_call_operand.vmem [shape: f32[3,96,8], index: 11, kind: input, shape index: {}]   ;;  %s14899_s12 = inlined_call_operand.vmem [shape: f32[1,8], index: 12, kind: input, shape index: {}]   ;;  %s14900_s13 = inlined_call_operand.vmem [shape: f32[2,3,256], index: 13, kind: output, shape index: {}]  }
   0x1 LB: > { %s8006_s26 = sadd.s32 4294967295, %s8893_s25   ;;  %p8010_p0 = scmp.ge.s32.totalorder %s8893_s25, 1  ;;  %s8893_s25 = sphi %s8970_s25, %s23_s25  }
   0x2   : > { %p395_p1 = scmp.lt.s32.totalorder %s8893_s25, 3 }
   0x4   : > { %p396_p2 = pnand %p8010_p0, %p395_p1 }
   0x6   : > { %399 = sbr.rel (%p396_p2) target bundleno = 3450 (0xd7a), region = 72 }
   0xb   : > { %p442_p3 = scmp.lt.s32.totalorder %s8006_s26, 1  ;;  %vm465_vm0 = vcmask 16384   ;;  %vm455_vm1 = vcmask 23552   ;;  %v14901_v3 = vmov 0.0   ;;  %s8896_s14 = smov 3   ;;  %vm1455_vm2 = vcmask 1040384  }
   0xc   : > { %467 = vst.msk [vmem:[#allocation2 + $0x27] sm:$0x1] %vm465_vm0, %v14901_v3  ;;  %s8897_s15 = smov 6   ;;  %v1028_v55 = vld [vmem:[%s14889_s2 + $0x8] sm:$0x1]  ;;  %v1027_v58 = vld [vmem:[%s14889_s2] sm:$0xff] }
   0xd   : > { %s15202_s26 = smov (!%p442_p3, %s8006_s26), 1  ;;  %456 = vst.msk [vmem:[#allocation2] sm:$0xff] %vm455_vm1, %v14901_v3  ;;  %8050 = vmatpush.msk.msra.mxu1 %vm1455_vm2, %v1028_v55  ;;  %vm1358_vm3 = vcmask 72704   ;;  %vm994_vm4 = vcmask 48128   ;;  %vm502_vm5 = vcmask 261120   ;;  %vm512_vm6 = vcmask 253952  }
   0xe   : > { %s8537_s27 = sshll.u32 %s15202_s26, 3  ;;  %457 = vst.msk [vmem:[#allocation2 + $0x8] sm:$0xff] %vm455_vm1, %v14901_v3  ;;  %s8898_s16 = smov 32   ;;  %vm549_vm7 = vcmask 523264   ;;  %vm3135_vm8 = vcmask 785408   ;;  %vm559_vm9 = vcmask 516096  }
   0xf   : > { %s446_s30 = scalar_lea.vmem %s14887_s0, %s8537_s27  ;;  %458 = vst.msk [vmem:[#allocation2 + $0x10] sm:$0xff] %vm455_vm1, %v14901_v3  ;;  %1686 = vmatpush.msra.mxu1 %v1027_v58  ;;  %s8899_s17 = smov 64   ;;  %vm7938_vm10 = vcmask 1043456  }
  0x10   : > { %v596_v0 = vld [vmem:[%s446_s30] sm:$0x77]  ;;  %459 = vst.msk [vmem:[#allocation2 + $0x18] sm:$0xff] %vm455_vm1, %v14901_v3  ;;  %s449_s18 = scalar_lea.vmem %s14888_s1, %s15202_s26 }
  0x11   : > { %598 = vst [vmem:[#allocation1] ss:$2 sm:$0xff] %v596_v0 }
  0x12   : > { %461 = vst.msk [vmem:[#allocation2 + $0x220] sm:$0xff] %vm455_vm1, %v14901_v3 }
  0x13   : > { %462 = vst.msk [vmem:[#allocation2 + $0x228] sm:$0xff] %vm455_vm1, %v14901_v3 }
  0x14   : > { %463 = vst.msk [vmem:[#allocation2 + $0x230] sm:$0xff] %vm455_vm1, %v14901_v3 }
  0x15   : > { %464 = vst.msk [vmem:[#allocation2 + $0x238] sm:$0xff] %vm455_vm1, %v14901_v3 }
  0x16   : > { %468 = vst.msk [vmem:[#allocation2 + $0x47] sm:$0x1] %vm465_vm0, %v14901_v3 }
  0x17   : > { %469 = vst.msk [vmem:[#allocation2 + $0x67] sm:$0x1] %vm465_vm0, %v14901_v3 }
  0x18   : > { %v599_v1 = vld.sshfl [vmem:[#allocation1] sm:$0xff pattern:$0x75316420]  ;;  %v600_v2 = vld.sshfl [vmem:[#allocation1 + $0x8] sm:$0xff pattern:$0x75316420] }
  0x19   : > { %603 = vxpose.xlu0.b32.start.end [1/1] (short) %v599_v1, 128  ;;  %470 = vst.msk [vmem:[#allocation2 + $0x87] sm:$0x1] %vm465_vm0, %v14901_v3 }
  0x1a   : > { %471 = vst.msk [vmem:[#allocation2 + $0xa7] sm:$0x1] %vm465_vm0, %v14901_v3 }
  0x1b   : > { %472 = vst.msk [vmem:[#allocation2 + $0xc7] sm:$0x1] %vm465_vm0, %v14901_v3 }
  0x1c   : > { %473 = vst.msk [vmem:[#allocation2 + $0xe7] sm:$0x1] %vm465_vm0, %v14901_v3 }
  0x1d   : > { %474 = vst.msk [vmem:[#allocation2 + $0x107] sm:$0x1] %vm465_vm0, %v14901_v3 }
  0x1e   : > { %475 = vst.msk [vmem:[#allocation2 + $0x127] sm:$0x1] %vm465_vm0, %v14901_v3 }
  0x1f   : > { %476 = vst.msk [vmem:[#allocation2 + $0x147] sm:$0x1] %vm465_vm0, %v14901_v3 }
  0x20   : > { %477 = vst.msk [vmem:[#allocation2 + $0x167] sm:$0x1] %vm465_vm0, %v14901_v3 }
  0x21   : > { %478 = vst.msk [vmem:[#allocation2 + $0x187] sm:$0x1] %vm465_vm0, %v14901_v3 }
  0x22   : > { %479 = vst.msk [vmem:[#allocation2 + $0x1a7] sm:$0x1] %vm465_vm0, %v14901_v3 }
  0x23   : > { %480 = vst.msk [vmem:[#allocation2 + $0x1c7] sm:$0x1] %vm465_vm0, %v14901_v3 }
  0x24   : > { %481 = vst.msk [vmem:[#allocation2 + $0x1e7] sm:$0x1] %vm465_vm0, %v14901_v3 }
  0x25   : > { %482 = vst.msk [vmem:[#allocation2 + $0x207] sm:$0x1] %vm465_vm0, %v14901_v3 }
  0x26   : > { %485 = vst.msk [vmem:[#allocation2 + $0x38] sm:$0x1] %vm465_vm0, %v14901_v3 }
  0x27   : > { %486 = vst.msk [vmem:[#allocation2 + $0x58] sm:$0x1] %vm465_vm0, %v14901_v3 }
  0x28   : > { %487 = vst.msk [vmem:[#allocation2 + $0x78] sm:$0x1] %vm465_vm0, %v14901_v3 }
  0x29   : > { %488 = vst.msk [vmem:[#allocation2 + $0x98] sm:$0x1] %vm465_vm0, %v14901_v3 }
  0x2a   : > { %489 = vst.msk [vmem:[#allocation2 + $0xb8] sm:$0x1] %vm465_vm0, %v14901_v3 }
  0x2b   : > { %490 = vst.msk [vmem:[#allocation2 + $0xd8] sm:$0x1] %vm465_vm0, %v14901_v3 }
  0x2c   : > { %491 = vst.msk [vmem:[#allocation2 + $0xf8] sm:$0x1] %vm465_vm0, %v14901_v3 }
  0x2d   : > { %492 = vst.msk [vmem:[#allocation2 + $0x118] sm:$0x1] %vm465_vm0, %v14901_v3 }
  0x2e   : > { %493 = vst.msk [vmem:[#allocation2 + $0x138] sm:$0x1] %vm465_vm0, %v14901_v3 }
  0x2f   : > { %494 = vst.msk [vmem:[#allocation2 + $0x158] sm:$0x1] %vm465_vm0, %v14901_v3 }
  0x30   : > { %495 = vst.msk [vmem:[#allocation2 + $0x178] sm:$0x1] %vm465_vm0, %v14901_v3 }
  0x31   : > { %496 = vst.msk [vmem:[#allocation2 + $0x198] sm:$0x1] %vm465_vm0, %v14901_v3 }
  0x32   : > { %497 = vst.msk [vmem:[#allocation2 + $0x1b8] sm:$0x1] %vm465_vm0, %v14901_v3 }
  0x33   : > { %498 = vst.msk [vmem:[#allocation2 + $0x1d8] sm:$0x1] %vm465_vm0, %v14901_v3 }
  0x34   : > { %499 = vst.msk [vmem:[#allocation2 + $0x1f8] sm:$0x1] %vm465_vm0, %v14901_v3 }
  0x35   : > { %500 = vst.msk [vmem:[#allocation2 + $0x218] sm:$0x1] %vm465_vm0, %v14901_v3 }
  0x36   : > { %466 = vst.msk [vmem:[#allocation2 + $0x7] sm:$0x1] %vm465_vm0, %v14901_v3 }
  0x37   : > { %483 = vst.msk [vmem:[#allocation2 + $0x227] sm:$0x1] %vm465_vm0, %v14901_v3 }
  0x38   : > { %484 = vst.msk [vmem:[#allocation2 + $0x18] sm:$0x1] %vm465_vm0, %v14901_v3 }
  0x39   : > { %501 = vst.msk [vmem:[#allocation2 + $0x238] sm:$0x1] %vm465_vm0, %v14901_v3 }
  0x99   : > { %635 = vxpose.xlu0.b32.start.end [1/1] (short) %v600_v2, 128 }
  0xbd   : > { %v619_v4 = vpop.trf.xlu0 }
  0xbe   : > { %668 = vst.msk [vmem:[#allocation2 + $0x28] sm:$0xff] %vm455_vm1, %v619_v4 }
  0xc5   : > { %v620_v5 = vpop.trf.xlu0  ;;  %v9063_v6 = vld [vmem:[#allocation2 + $0x27] sm:$0xff] }
  0xc6   : > { %669 = vst.msk [vmem:[#allocation2 + $0x30] sm:$0xff] %vm455_vm1, %v620_v5  ;;  %768 = vrot.lane.b32.xlu1 %v9063_v6, %s8896_s14 }
  0xcd   : > { %v621_v7 = vpop.trf.xlu0  ;;  %v9100_v25 = vld [vmem:[#allocation2 + $0x2f] sm:$0xff] }
  0xce   : > { %670 = vst.msk [vmem:[#allocation2 + $0x48] sm:$0xff] %vm455_vm1, %v621_v7  ;;  %v9439_v3 = vld [vmem:[#allocation2 + $0x30] sm:$0xff] }
  0xcf   : > { %14952 = vst [vmem:[#allocation12_spill] sm:$0xff] %v9439_v3 }
  0xd5   : > { %v622_v8 = vpop.trf.xlu0  ;;  %v9109_v28 = vld [vmem:[#allocation2 + $0x47] sm:$0xff] }
  0xd6   : > { %671 = vst.msk [vmem:[#allocation2 + $0x50] sm:$0xff] %vm455_vm1, %v622_v8  ;;  %v9221_v60 = vld [vmem:[#allocation2 + $0x48] sm:$0xff] }
  0xd7   : > { %14945 = vst [vmem:[#allocation5_spill] sm:$0xff] %v9221_v60 }
  0xdd   : > { %v623_v9 = vpop.trf.xlu0  ;;  %v9118_v31 = vld [vmem:[#allocation2 + $0x4f] sm:$0xff] }
  0xde   : > { %672 = vst.msk [vmem:[#allocation2 + $0x68] sm:$0xff] %vm455_vm1, %v623_v9 }
  0xe5   : > { %v624_v10 = vpop.trf.xlu0  ;;  %v9125_v33 = vld [vmem:[#allocation2 + $0x67] sm:$0xff] }
  0xe6   : > { %673 = vst.msk [vmem:[#allocation2 + $0x70] sm:$0xff] %vm455_vm1, %v624_v10 }
  0xed   : > { %v625_v11 = vpop.trf.xlu0  ;;  %v9146_v39 = vld [vmem:[#allocation2 + $0x6f] sm:$0xff] }
  0xee   : > { %674 = vst.msk [vmem:[#allocation2 + $0x88] sm:$0xff] %vm455_vm1, %v625_v11  ;;  %v9238_v2 = vld [vmem:[#allocation2 + $0x70] sm:$0xff] }
  0xef   : > { %14946 = vst [vmem:[#allocation6_spill] sm:$0xff] %v9238_v2 }
  0xf5   : > { %v626_v12 = vpop.trf.xlu0  ;;  %v9155_v41 = vld [vmem:[#allocation2 + $0x87] sm:$0xff] }
  0xf6   : > { %675 = vst.msk [vmem:[#allocation2 + $0x90] sm:$0xff] %vm455_vm1, %v626_v12  ;;  %v700_v12 = vld [vmem:[#allocation2 + $0x7] sm:$0xff] }
  0xfd   : > { %v627_v13 = vpop.trf.xlu0  ;;  %v9171_v46 = vld [vmem:[#allocation2 + $0x8f] sm:$0xff] }
  0xfe   : > { %676 = vst.msk [vmem:[#allocation2 + $0xa8] sm:$0xff] %vm455_vm1, %v627_v13 }
 0x105   : > { %v628_v14 = vpop.trf.xlu0  ;;  %v9178_v48 = vld [vmem:[#allocation2 + $0xa7] sm:$0xff] }
 0x106   : > { %677 = vst.msk [vmem:[#allocation2 + $0xb0] sm:$0xff] %vm455_vm1, %v628_v14  ;;  %v9251_v9 = vld [vmem:[#allocation2 + $0xa8] sm:$0xff] }
 0x10d   : > { %v629_v15 = vpop.trf.xlu0  ;;  %v9196_v53 = vld [vmem:[#allocation2 + $0xaf] sm:$0xff] }
 0x10e   : > { %678 = vst.msk [vmem:[#allocation2 + $0xc8] sm:$0xff] %vm455_vm1, %v629_v15 }
 0x115   : > { %v630_v16 = vpop.trf.xlu0  ;;  %v9215_v59 = vld [vmem:[#allocation2 + $0xc7] sm:$0xff] }
 0x116   : > { %679 = vst.msk [vmem:[#allocation2 + $0xd0] sm:$0xff] %vm455_vm1, %v630_v16 }
 0x11d   : > { %v631_v17 = vpop.trf.xlu0  ;;  %v9245_v8 = vld [vmem:[#allocation2 + $0xcf] sm:$0xff] }
 0x11e   : > { %680 = vst.msk [vmem:[#allocation2 + $0xe8] sm:$0xff] %vm455_vm1, %v631_v17  ;;  %v9263_v14 = vld [vmem:[#allocation2 + $0xd0] sm:$0xff] }
 0x11f   : > { %14947 = vst [vmem:[#allocation7_spill] sm:$0xff] %v9263_v14 }
 0x125   : > { %v632_v18 = vpop.trf.xlu0  ;;  %v9257_v13 = vld [vmem:[#allocation2 + $0xe7] sm:$0xff] }
 0x126   : > { %681 = vst.msk [vmem:[#allocation2 + $0xf0] sm:$0xff] %vm455_vm1, %v632_v18 }
 0x12d   : > { %v633_v19 = vpop.trf.xlu0 }
 0x12e   : > { %682 = vst.msk [vmem:[#allocation2 + $0x108] sm:$0xff] %vm455_vm1, %v633_v19 }
 0x135   : > { %v634_v20 = vpop.trf.xlu0 }
 0x136   : > { %683 = vst.msk [vmem:[#allocation2 + $0x110] sm:$0xff] %vm455_vm1, %v634_v20  ;;  %v701_v20 = vld [vmem:[#allocation2 + $0xf] sm:$0xff] }
 0x138   : > { %v769_v56 = vpop.permute.xlu1 %768 }
 0x139   : > { %v962_v15 = vsel %vm455_vm1, %v700_v12, %v769_v56 }
 0x13d   : > { %v651_v21 = vpop.trf.xlu0 }
 0x13e   : > { %684 = vst.msk [vmem:[#allocation2 + $0x128] sm:$0xff] %vm455_vm1, %v651_v21 }
 0x145   : > { %v652_v22 = vpop.trf.xlu0  ;;  %v9095_v23 = vld [vmem:[#allocation2 + $0x127] sm:$0xff] }
 0x146   : > { %685 = vst.msk [vmem:[#allocation2 + $0x130] sm:$0xff] %vm455_vm1, %v652_v22  ;;  %800 = vrot.lane.b32.xlu1 %v9095_v23, %s8896_s14  ;;  %v9280_v22 = vld [vmem:[#allocation2 + $0x108] sm:$0xff] }
 0x14d   : > { %v653_v24 = vpop.trf.xlu0  ;;  %v9102_v26 = vld [vmem:[#allocation2 + $0x12f] sm:$0xff] }
 0x14e   : > { %686 = vst.msk [vmem:[#allocation2 + $0x148] sm:$0xff] %vm455_vm1, %v653_v24  ;;  %770 = vrot.lane.b32.xlu1 %v9100_v25, %s8896_s14  ;;  %802 = vrot.lane.b32.xlu2 %v9102_v26, %s8896_s14 }
 0x155   : > { %v654_v27 = vpop.trf.xlu0  ;;  %v9111_v29 = vld [vmem:[#allocation2 + $0x147] sm:$0xff] }
 0x156   : > { %687 = vst.msk [vmem:[#allocation2 + $0x150] sm:$0xff] %vm455_vm1, %v654_v27  ;;  %772 = vrot.lane.b32.xlu2 %v9109_v28, %s8896_s14  ;;  %804 = vrot.lane.b32.xlu1 %v9111_v29, %s8896_s14 }
 0x15d   : > { %v655_v30 = vpop.trf.xlu0  ;;  %v9127_v34 = vld [vmem:[#allocation2 + $0x14f] sm:$0xff] }
 0x15e   : > { %688 = vst.msk [vmem:[#allocation2 + $0x168] sm:$0xff] %vm455_vm1, %v655_v30  ;;  %774 = vrot.lane.b32.xlu2 %v9118_v31, %s8896_s14  ;;  %866 = vrot.lane.b32.xlu1 %v9109_v28, %s8897_s15 }
 0x165   : > { %v656_v32 = vpop.trf.xlu0  ;;  %v9134_v35 = vld [vmem:[#allocation2 + $0x167] sm:$0xff] }
 0x166   : > { %689 = vst.msk [vmem:[#allocation2 + $0x170] sm:$0xff] %vm455_vm1, %v656_v32  ;;  %776 = vrot.lane.b32.xlu1 %v9125_v33, %s8896_s14  ;;  %806 = vrot.lane.b32.xlu2 %v9127_v34, %s8896_s14 }
 0x16d   : > { %v657_v36 = vpop.trf.xlu0  ;;  %v9164_v44 = vld [vmem:[#allocation2 + $0x16f] sm:$0xff] }
 0x16e   : > { %690 = vst.msk [vmem:[#allocation2 + $0x188] sm:$0xff] %vm455_vm1, %v657_v36  ;;  %868 = vrot.lane.b32.xlu2 %v9118_v31, %s8897_s15  ;;  %808 = vrot.lane.b32.xlu1 %v9134_v35, %s8896_s14  ;;  %v9289_v36 = vld [vmem:[#allocation2 + $0xef] sm:$0xff] }
 0x175   : > { %v658_v37 = vpop.trf.xlu0  ;;  %v9162_v42 = vld [vmem:[#allocation2 + $0x187] sm:$0xff] }
 0x176   : > { %691 = vst.msk [vmem:[#allocation2 + $0x190] sm:$0xff] %vm455_vm1, %v658_v37  ;;  %894 = vrot.lane.b32.xlu2 %v9095_v23, %s8897_s15  ;;  %896 = vrot.lane.b32.xlu1 %v9102_v26, %s8897_s15  ;;  %v9295_v37 = vld [vmem:[#allocation2 + $0x130] sm:$0xff] }
 0x17d   : > { %v659_v38 = vpop.trf.xlu0  ;;  %v9187_v51 = vld [vmem:[#allocation2 + $0x18f] sm:$0xff] }
 0x17e   : > { %692 = vst.msk [vmem:[#allocation2 + $0x1a8] sm:$0xff] %vm455_vm1, %v659_v38  ;;  %898 = vrot.lane.b32.xlu2 %v9111_v29, %s8897_s15  ;;  %872 = vrot.lane.b32.xlu1 %v9146_v39, %s8897_s15  ;;  %v9319_v58 = vld [vmem:[#allocation2 + $0x190] sm:$0xff] }
 0x17f   : > { %870 = vrot.lane.b32.xlu0 %v9125_v33, %s8897_s15 }
 0x185   : > { %v660_v40 = vpop.trf.xlu0  ;;  %v9185_v49 = vld [vmem:[#allocation2 + $0x1a7] sm:$0xff] }
 0x186   : > { %693 = vst.msk [vmem:[#allocation2 + $0x1b0] sm:$0xff] %vm455_vm1, %v660_v40  ;;  %778 = vrot.lane.b32.xlu2 %v9146_v39, %s8896_s14  ;;  %780 = vrot.lane.b32.xlu1 %v9155_v41, %s8896_s14 }
 0x18d   : > { %v661_v43 = vpop.trf.xlu0  ;;  %v9232_v1 = vld [vmem:[#allocation2 + $0x1af] sm:$0xff] }
 0x18e   : > { %694 = vst.msk [vmem:[#allocation2 + $0x1c8] sm:$0xff] %vm455_vm1, %v661_v43  ;;  %810 = vrot.lane.b32.xlu2 %v9164_v44, %s8896_s14  ;;  %812 = vrot.lane.b32.xlu1 %v9162_v42, %s8896_s14  ;;  %v9301_v43 = vld [vmem:[#allocation2 + $0x107] sm:$0xff] }
 0x195   : > { %v662_v45 = vpop.trf.xlu0  ;;  %v9229_v0 = vld [vmem:[#allocation2 + $0x1c7] sm:$0xff] }
 0x196   : > { %695 = vst.msk [vmem:[#allocation2 + $0x1d0] sm:$0xff] %vm455_vm1, %v662_v45  ;;  %874 = vrot.lane.b32.xlu2 %v9155_v41, %s8897_s15  ;;  %876 = vrot.lane.b32.xlu1 %v9171_v46, %s8897_s15  ;;  %v9307_v45 = vld [vmem:[#allocation2 + $0x168] sm:$0xff] }
 0x19d   : > { %v663_v47 = vpop.trf.xlu0  ;;  %v9274_v21 = vld [vmem:[#allocation2 + $0x1cf] sm:$0xff] }
 0x19e   : > { %696 = vst.msk [vmem:[#allocation2 + $0x1e8] sm:$0xff] %vm455_vm1, %v663_v47  ;;  %782 = vrot.lane.b32.xlu2 %v9171_v46, %s8896_s14  ;;  %784 = vrot.lane.b32.xlu1 %v9178_v48, %s8896_s14 }
 0x19f   : > { %14949 = vst [vmem:[#allocation9_spill] sm:$0xff] %v9274_v21 }
 0x1a5   : > { %v664_v50 = vpop.trf.xlu0  ;;  %v9272_v19 = vld [vmem:[#allocation2 + $0x1e7] sm:$0xff] }
 0x1a6   : > { %697 = vst.msk [vmem:[#allocation2 + $0x1f0] sm:$0xff] %vm455_vm1, %v664_v50  ;;  %814 = vrot.lane.b32.xlu2 %v9187_v51, %s8896_s14  ;;  %816 = vrot.lane.b32.xlu1 %v9185_v49, %s8896_s14 }
 0x1a7   : > { %14948 = vst [vmem:[#allocation8_spill] sm:$0xff] %v9272_v19 }
 0x1a8   : > { %v9194_v52 = vpop.permute.xlu2 %802 }
 0x1ad   : > { %v9198_v54 = vld [vmem:[#allocation2 + $0x1f0] sm:$0xff]  ;;  %v665_v63 = vpop.trf.xlu0 }
 0x1ae   : > { %878 = vrot.lane.b32.xlu2 %v9178_v48, %s8897_s15  ;;  %880 = vrot.lane.b32.xlu1 %v9196_v53, %s8897_s15  ;;  %698 = vst.msk [vmem:[#allocation2 + $0x208] sm:$0xff] %vm455_vm1, %v665_v63  ;;  %v9317_v56 = vld [vmem:[#allocation2 + $0x1ef] sm:$0xff] }
 0x1af   : > { %1155 = vrot.lane.b32.xlu0 %v9198_v54, %s8896_s14  ;;  %14950 = vst [vmem:[#allocation10_spill] sm:$0xff] %v9317_v56 }
 0x1b0   : > { %v9209_v57 = vpop.permute.xlu2 %772 }
 0x1b5   : > { %v666_v7 = vpop.trf.xlu0  ;;  %v9315_v55 = vld [vmem:[#allocation2 + $0x207] sm:$0xff] }
 0x1b6   : > { %786 = vrot.lane.b32.xlu2 %v9196_v53, %s8896_s14  ;;  %788 = vrot.lane.b32.xlu1 %v9215_v59, %s8896_s14  ;;  %699 = vst.msk [vmem:[#allocation2 + $0x210] sm:$0xff] %vm455_vm1, %v666_v7  ;;  %v964_v7 = vsel %vm455_vm1, %v9063_v6, %v9209_v57 }
 0x1b7   : > { %1195 = vrot.lane.b32.xlu0 %v9221_v60, %s8897_s15 }
 0x1b8   : > { %v9225_v61 = vpop.permute.xlu1 %800  ;;  %v9227_v62 = vpop.permute.xlu2 %774 }
 0x1b9   : > { %v965_v57 = vsel %vm455_vm1, %v9100_v25, %v9227_v62 }
 0x1be   : > { %818 = vrot.lane.b32.xlu2 %v9232_v1, %s8896_s14  ;;  %820 = vrot.lane.b32.xlu1 %v9229_v0, %s8896_s14 }
 0x1bf   : > { %1201 = vrot.lane.b32.xlu0 %v9238_v2, %s8897_s15 }
 0x1c0   : > { %v771_v4 = vpop.permute.xlu1 %770  ;;  %v9242_v5 = vpop.permute.xlu2 %806 }
 0x1c1   : > { %v963_v24 = vsel %vm455_vm1, %v701_v20, %v771_v4 }
 0x1c6   : > { %882 = vrot.lane.b32.xlu2 %v9215_v59, %s8897_s15  ;;  %884 = vrot.lane.b32.xlu1 %v9245_v8, %s8897_s15 }
 0x1c7   : > { %1207 = vrot.lane.b32.xlu0 %v9251_v9, %s8897_s15 }
 0x1c8   : > { %v9255_v10 = vpop.permute.xlu1 %804  ;;  %v869_v11 = vpop.permute.xlu2 %868 }
 0x1c9   : > { %v996_v32 = vsel %vm994_vm4, %v963_v24, %v869_v11 }
 0x1ce   : > { %790 = vrot.lane.b32.xlu2 %v9245_v8, %s8896_s14  ;;  %792 = vrot.lane.b32.xlu1 %v9257_v13, %s8896_s14 }
 0x1cf   : > { %1213 = vrot.lane.b32.xlu0 %v9263_v14, %s8897_s15 }
 0x1d0   : > { %v867_v16 = vpop.permute.xlu1 %866  ;;  %v9268_v17 = vpop.permute.xlu2 %894 }
 0x1d1   : > { %v995_v18 = vsel %vm994_vm4, %v962_v15, %v867_v16  ;;  %v9332_v15 = vld [vmem:[#allocation2 + $0x10f] sm:$0xff] }
 0x1d2   : > { %8051 = vmatmul.msk.f32.vlgmr.msra.gmra.mxu1 %vm1358_vm3, %v995_v18  ;;  %v9334_v16 = vld [vmem:[#allocation2 + $0x1c8] sm:$0xff] }
 0x1d6   : > { %822 = vrot.lane.b32.xlu2 %v9274_v21, %s8896_s14  ;;  %824 = vrot.lane.b32.xlu1 %v9272_v19, %s8896_s14 }
 0x1d7   : > { %1219 = vrot.lane.b32.xlu0 %v9280_v22, %s8897_s15 }
 0x1d8   : > { %v777_v27 = vpop.permute.xlu1 %776  ;;  %v9285_v30 = vpop.permute.xlu2 %898 }
 0x1d9   : > { %v966_v25 = vsel %vm455_vm1, %v9109_v28, %v777_v27  ;;  %v9369_v27 = vld [vmem:[#allocation2 + $0x31] sm:$0xff] }
 0x1da   : > { %8052 = vmatmul.msk.f32.gmra.mxu1 %vm1358_vm3, %v996_v32  ;;  %14951 = vst [vmem:[#allocation11_spill] sm:$0xff] %v9369_v27 }
 0x1de   : > { %886 = vrot.lane.b32.xlu2 %v9257_v13, %s8897_s15  ;;  %888 = vrot.lane.b32.xlu1 %v9289_v36, %s8897_s15 }
 0x1df   : > { %1225 = vrot.lane.b32.xlu0 %v9295_v37, %s8897_s15 }
 0x1e0   : > { %v779_v38 = vpop.permute.xlu2 %778  ;;  %v9299_v40 = vpop.permute.xlu1 %808 }
 0x1e6   : > { %794 = vrot.lane.b32.xlu2 %v9289_v36, %s8896_s14  ;;  %796 = vrot.lane.b32.xlu1 %v9301_v43, %s8896_s14 }
 0x1e7   : > { %1231 = vrot.lane.b32.xlu0 %v9307_v45, %s8897_s15 }
 0x1e8   : > { %v9311_v47 = vpop.permute.xlu1 %896  ;;  %v9313_v50 = vpop.permute.xlu2 %810 }
 0x1ee   : > { %826 = vrot.lane.b32.xlu2 %v9317_v56, %s8896_s14  ;;  %828 = vrot.lane.b32.xlu1 %v9315_v55, %s8896_s14 }
 0x1ef   : > { %1237 = vrot.lane.b32.xlu0 %v9319_v58, %s8897_s15 }
 0x1f0   : > { %v873_v63 = vpop.permute.xlu1 %872  ;;  %v875_v4 = vpop.permute.xlu2 %874 }
 0x1f1   : > { %v871_v11 = vpop.permute.xlu0 %870  ;;  %v998_v20 = vsel %vm994_vm4, %v965_v57, %v873_v63  ;;  %v999_v62 = vsel %vm994_vm4, %v966_v25, %v875_v4  ;;  %v1063_v63 = vld [vmem:[#allocation2 + $0x228] sm:$0xff] }
 0x1f2   : > { %v997_v12 = vsel %vm994_vm4, %v964_v7, %v871_v11  ;;  %v733_v7 = vld [vmem:[#allocation2 + $0x20f] sm:$0xff] }
 0x1f3   : > { %8053 = vmatmul.msk.f32.gmra.mxu1 %vm1358_vm3, %v997_v12 }
 0x1f6   : > { %890 = vrot.lane.b32.xlu2 %v9301_v43, %s8897_s15  ;;  %892 = vrot.lane.b32.xlu1 %v9332_v15, %s8897_s15 }
 0x1f7   : > { %1243 = vrot.lane.b32.xlu0 %v9334_v16, %s8897_s15 }
 0x1f8   : > { %v781_v18 = vpop.permute.xlu1 %780  ;;  %v783_v6 = vpop.permute.xlu2 %782 }
 0x1fb   : > { %8054 = vmatmul.msk.f32.gmra.mxu1 %vm1358_vm3, %v998_v20  ;;  %v9381_v20 = vld [vmem:[#allocation2 + $0x69] sm:$0xff] }
 0x1fe   : > { %798 = vrot.lane.b32.xlu2 %v9332_v15, %s8896_s14  ;;  %900 = vrot.lane.b32.xlu1 %v9127_v34, %s8897_s15 }
 0x1ff   : > { %1249 = vrot.lane.b32.xlu0 %v9198_v54, %s8897_s15  ;;  %v967_v54 = vsel %vm455_vm1, %v9118_v31, %v779_v38  ;;  %v968_v31 = vsel %vm455_vm1, %v9125_v33, %v781_v18  ;;  %v9393_v33 = vld [vmem:[#allocation2 + $0x91] sm:$0xff]  ;;  %v969_v18 = vsel %vm455_vm1, %v9146_v39, %v783_v6 }
 0x200   : > { %v9353_v24 = vpop.permute.xlu1 %812  ;;  %v9355_v32 = vpop.permute.xlu2 %814 }
 0x203   : > { %8055 = vmatmul.msk.f32.gmra.mxu1 %vm1358_vm3, %v999_v62 }
 0x206   : > { %904 = vrot.lane.b32.xlu1 %v9164_v44, %s8897_s15  ;;  %830 = vrot.lane.b32.xlu2 %v733_v7, %s8896_s14 }
 0x207   : > { %1255 = vrot.lane.b32.xlu0 %v1063_v63, %s8897_s15 }
 0x208   : > { %v877_v11 = vpop.permute.xlu1 %876  ;;  %v879_v12 = vpop.permute.xlu2 %878 }
 0x209   : > { %v1000_v28 = vsel %vm994_vm4, %v967_v54, %v877_v11  ;;  %v1001_v38 = vsel %vm994_vm4, %v968_v31, %v879_v12  ;;  %v9405_v12 = vld [vmem:[#allocation2 + $0xc9] sm:$0xff] }
 0x20b   : > { %8056 = vmatmul.msk.f32.gmra.mxu1 %vm1358_vm3, %v1000_v28 }
 0x20e   : > { %908 = vrot.lane.b32.xlu1 %v9187_v51, %s8897_s15  ;;  %902 = vrot.lane.b32.xlu2 %v9134_v35, %s8897_s15 }
 0x20f   : > { %1854 = vrot.lane.b32.xlu0 %v9369_v27, %s8896_s14  ;;  %v9441_v27 = vld [vmem:[#allocation2 + $0x151] sm:$0xff] }
 0x210   : > { %v785_v4 = vpop.permute.xlu1 %784  ;;  %v787_v57 = vpop.permute.xlu2 %786 }
 0x211   : > { %v970_v39 = vsel %vm455_vm1, %v9155_v41, %v785_v4  ;;  %v735_v41 = vld [vmem:[#allocation2 + $0x22f] sm:$0xff] }
 0x212   : > { %v9428_v4 = vld [vmem:[#allocation2 + $0x129] sm:$0xff] }
 0x213   : > { %8057 = vmatmul.msk.f32.gmra.mxu1 %vm1358_vm3, %v1001_v38  ;;  %v9417_v38 = vld [vmem:[#allocation2 + $0xf1] sm:$0xff] }
 0x216   : > { %912 = vrot.lane.b32.xlu1 %v9232_v1, %s8897_s15  ;;  %906 = vrot.lane.b32.xlu2 %v9162_v42, %s8897_s15 }
 0x217   : > { %1860 = vrot.lane.b32.xlu0 %v9381_v20, %s8896_s14 }
 0x218   : > { %v9389_v25 = vpop.permute.xlu1 %816  ;;  %v9391_v62 = vpop.permute.xlu2 %818 }
 0x21e   : > { %916 = vrot.lane.b32.xlu1 %v9274_v21, %s8897_s15  ;;  %910 = vrot.lane.b32.xlu2 %v9185_v49, %s8897_s15 }
 0x21f   : > { %1866 = vrot.lane.b32.xlu0 %v9393_v33, %s8896_s14 }
 0x220   : > { %v881_v63 = vpop.permute.xlu1 %880  ;;  %v883_v54 = vpop.permute.xlu2 %882 }
 0x221   : > { %v1002_v11 = vsel %vm994_vm4, %v969_v18, %v881_v63  ;;  %v1003_v31 = vsel %vm994_vm4, %v970_v39, %v883_v54 }
 0x222   : > { %8058 = vmatmul.msk.f32.gmra.mxu1 %vm1358_vm3, %v1002_v11 }
 0x226   : > { %920 = vrot.lane.b32.xlu1 %v9317_v56, %s8897_s15  ;;  %914 = vrot.lane.b32.xlu2 %v9229_v0, %s8897_s15  ;;  %v9482_v56 = vld [vmem:[#allocation2 + $0x68] sm:$0xff] }
 0x227   : > { %1872 = vrot.lane.b32.xlu0 %v9405_v12, %s8896_s14 }
 0x228   : > { %v789_v6 = vpop.permute.xlu1 %788  ;;  %v791_v28 = vpop.permute.xlu2 %790 }
 0x22a   : > { %8059 = vmatmul.msk.f32.gmra.mxu1 %vm1358_vm3, %v1003_v31  ;;  %v734_v31 = vld [vmem:[#allocation2 + $0x227] sm:$0xff] }
 0x22e   : > { %924 = vrot.lane.b32.xlu1 %v733_v7, %s8897_s15  ;;  %918 = vrot.lane.b32.xlu2 %v9272_v19, %s8897_s15  ;;  %v971_v7 = vsel %vm455_vm1, %v9171_v46, %v787_v57  ;;  %v972_v46 = vsel %vm455_vm1, %v9178_v48, %v789_v6  ;;  %v9500_v19 = vld [vmem:[#allocation2 + $0x211] sm:$0xff] }
 0x22f   : > { %1878 = vrot.lane.b32.xlu0 %v9417_v38, %s8896_s14 }
 0x230   : > { %v9424_v18 = vpop.permute.xlu1 %820  ;;  %v9426_v63 = vpop.permute.xlu2 %822 }
 0x236   : > { %928 = vrot.lane.b32.xlu1 %v735_v41, %s8897_s15  ;;  %922 = vrot.lane.b32.xlu2 %v9315_v55, %s8897_s15 }
 0x237   : > { %1884 = vrot.lane.b32.xlu0 %v9428_v4, %s8896_s14 }
 0x238   : > { %v885_v54 = vpop.permute.xlu1 %884  ;;  %v887_v11 = vpop.permute.xlu2 %886 }
 0x239   : > { %v1004_v39 = vsel %vm994_vm4, %v971_v7, %v885_v54  ;;  %v1005_v41 = vsel %vm994_vm4, %v972_v46, %v887_v11  ;;  %v9452_v7 = vld [vmem:[#allocation2 + $0x50] sm:$0xff]  ;;  %v9454_v54 = vld [vmem:[#allocation2 + $0x28] sm:$0xff] }
 0x23a   : > { %8060 = vmatmul.msk.f32.gmra.mxu1 %vm1358_vm3, %v1004_v39  ;;  %14953 = vst [vmem:[#allocation13_spill] sm:$0xff] %v9454_v54  ;;  %v9456_v39 = vld [vmem:[#allocation2 + $0x189] sm:$0xff]  ;;  %v9468_v11 = vld [vmem:[#allocation2 + $0x1b1] sm:$0xff] }
 0x23e   : > { %1099 = vrot.lane.b32.xlu1 %v9439_v3, %s8896_s14  ;;  %926 = vrot.lane.b32.xlu2 %v734_v31, %s8897_s15  ;;  %v973_v31 = vsel %vm455_vm1, %v9196_v53, %v791_v28 }
 0x23f   : > { %1890 = vrot.lane.b32.xlu0 %v9441_v27, %s8896_s14 }
 0x240   : > { %v793_v55 = vpop.permute.xlu1 %792  ;;  %v795_v57 = vpop.permute.xlu2 %794 }
 0x241   : > { %v974_v53 = vsel %vm455_vm1, %v9215_v59, %v793_v55 }
 0x242   : > { %8061 = vmatmul.msk.f32.gmra.mxu1 %vm1358_vm3, %v1005_v41 }
 0x246   : > { %1103 = vrot.lane.b32.xlu1 %v9452_v7, %s8896_s14  ;;  %1097 = vrot.lane.b32.xlu2 %v9454_v54, %s8896_s14  ;;  %v9480_v54 = vld [vmem:[#allocation2 + $0x90] sm:$0xff] }
 0x247   : > { %1896 = vrot.lane.b32.xlu0 %v9456_v39, %s8896_s14 }
 0x248   : > { %v9464_v48 = vpop.permute.xlu1 %824  ;;  %v9466_v6 = vpop.permute.xlu2 %826 }
 0x24e   : > { %1107 = vrot.lane.b32.xlu1 %v9238_v2, %s8896_s14  ;;  %1101 = vrot.lane.b32.xlu2 %v9221_v60, %s8896_s14  ;;  %v9484_v2 = vld [vmem:[#allocation2 + $0x1e9] sm:$0xff] }
 0x24f   : > { %1902 = vrot.lane.b32.xlu0 %v9468_v11, %s8896_s14  ;;  %v9498_v60 = vld [vmem:[#allocation2 + $0x88] sm:$0xff] }
 0x250   : > { %v889_v46 = vpop.permute.xlu1 %888  ;;  %v891_v41 = vpop.permute.xlu2 %890 }
 0x251   : > { %v1006_v3 = vsel %vm994_vm4, %v973_v31, %v889_v46  ;;  %v1007_v31 = vsel %vm994_vm4, %v974_v53, %v891_v41  ;;  %v9496_v46 = vld [vmem:[#allocation2 + $0xb0] sm:$0xff]  ;;  %v975_v41 = vsel %vm455_vm1, %v9245_v8, %v795_v57 }
 0x252   : > { %8062 = vmatmul.msk.f32.gmra.mxu1 %vm1358_vm3, %v1006_v3  ;;  %v9539_v57 = vld [vmem:[#allocation2 + $0x110] sm:$0xff] }
 0x256   : > { %1111 = vrot.lane.b32.xlu1 %v9480_v54, %s8896_s14  ;;  %1105 = vrot.lane.b32.xlu2 %v9482_v56, %s8896_s14 }
 0x257   : > { %1908 = vrot.lane.b32.xlu0 %v9484_v2, %s8896_s14 }
 0x258   : > { %v797_v28 = vpop.permute.xlu1 %796  ;;  %v799_v3 = vpop.permute.xlu2 %798 }
 0x25a   : > { %8063 = vmatmul.msk.f32.gmra.mxu1 %vm1358_vm3, %v1007_v31 }
 0x25e   : > { %1115 = vrot.lane.b32.xlu1 %v9496_v46, %s8896_s14  ;;  %1109 = vrot.lane.b32.xlu2 %v9498_v60, %s8896_s14 }
 0x25f   : > { %1914 = vrot.lane.b32.xlu0 %v9500_v19, %s8896_s14 }
 0x260   : > { %v9508_v59 = vpop.permute.xlu1 %828  ;;  %v9510_v55 = vpop.permute.xlu2 %830 }
 0x261   : > { %14954 = vst [vmem:[#allocation14_spill] sm:$0xff] %v9508_v59  ;;  %v9522_v59 = vld [vmem:[#allocation2 + $0xf0] sm:$0xff] }
 0x262   : > { %14955 = vst [vmem:[#allocation15_spill] sm:$0xff] %v9510_v55  ;;  %v9524_v55 = vld [vmem:[#allocation2 + $0xc8] sm:$0xff] }
 0x266   : > { %1119 = vrot.lane.b32.xlu1 %v9263_v14, %s8896_s14  ;;  %1113 = vrot.lane.b32.xlu2 %v9251_v9, %s8896_s14  ;;  %v976_v14 = vsel %vm455_vm1, %v9257_v13, %v797_v28  ;;  %v9541_v13 = vld [vmem:[#allocation2 + $0xe8] sm:$0xff]  ;;  %v977_v28 = vsel %vm455_vm1, %v9289_v36, %v799_v3  ;;  %v8016_v36 = vld [vmem:[%s14889_s2 + $0x18] sm:$0x1] }
 0x267   : > { %1954 = vrot.lane.b32.xlu0 %v9381_v20, %s8897_s15  ;;  %8017 = vmatpush.msk.msra.mxu0 %vm1455_vm2, %v8016_v36  ;;  %v9619_v36 = vpop.permute.xlu0 %1155 }
 0x268   : > { %v893_v53 = vpop.permute.xlu1 %892  ;;  %v903_v31 = vpop.permute.xlu2 %902  ;;  %14958 = vst [vmem:[#allocation18_spill] sm:$0xff] %v9619_v36  ;;  %v9901_v36 = vld [vmem:[#allocation2 + $0x109] sm:$0xff] }
 0x269   : > { %v1008_v21 = vsel %vm994_vm4, %v975_v41, %v893_v53  ;;  %v9577_v41 = vld [vmem:[#allocation2 + $0x150] sm:$0xff]  ;;  %v9579_v53 = vld [vmem:[#allocation2 + $0x128] sm:$0xff] }
 0x26a   : > { %8064 = vmatmul.msk.f32.gmra.mxu1 %vm1358_vm3, %v1008_v21  ;;  %v1009_v21 = vsel %vm994_vm4, %v976_v14, %v9268_v17  ;;  %v1010_v17 = vsel %vm994_vm4, %v977_v28, %v9311_v47  ;;  %14956 = vst [vmem:[#allocation16_spill] sm:$0xff] %v9577_v41  ;;  %v9596_v28 = vld [vmem:[#allocation2 + $0x170] sm:$0xff] }
 0x26b   : > { %14957 = vst [vmem:[#allocation17_spill] sm:$0xff] %v9596_v28 }
 0x26e   : > { %1123 = vrot.lane.b32.xlu1 %v9522_v59, %s8896_s14  ;;  %1117 = vrot.lane.b32.xlu2 %v9524_v55, %s8896_s14 }
 0x26f   : > { %1960 = vrot.lane.b32.xlu0 %v9393_v33, %s8897_s15 }
 0x270   : > { %v901_v8 = vpop.permute.xlu1 %900  ;;  %v9534_v20 = vpop.permute.xlu2 %906 }
 0x272   : > { %8065 = vmatmul.msk.f32.gmra.mxu1 %vm1358_vm3, %v1009_v21 }
 0x276   : > { %1127 = vrot.lane.b32.xlu1 %v9539_v57, %s8896_s14  ;;  %1121 = vrot.lane.b32.xlu2 %v9541_v13, %s8896_s14 }
 0x277   : > { %1966 = vrot.lane.b32.xlu0 %v9405_v12, %s8897_s15  ;;  %v978_v12 = vsel %vm455_vm1, %v9301_v43, %v9225_v61  ;;  %v979_v61 = vsel %vm455_vm1, %v9332_v15, %v9194_v52  ;;  %v980_v52 = vsel %vm455_vm1, %v9095_v23, %v9255_v10  ;;  %v981_v23 = vsel %vm455_vm1, %v9102_v26, %v9242_v5 }
 0x278   : > { %v905_v33 = vpop.permute.xlu1 %904  ;;  %v9551_v14 = vpop.permute.xlu2 %910  ;;  %v1012_v21 = vsel %vm994_vm4, %v979_v61, %v901_v8  ;;  %v1013_v8 = vsel %vm994_vm4, %v980_v52, %v903_v31  ;;  %v982_v26 = vsel %vm455_vm1, %v9111_v29, %v9299_v40  ;;  %v983_v29 = vsel %vm455_vm1, %v9127_v34, %v9313_v50 }
 0x279   : > { %v1014_v31 = vsel %vm994_vm4, %v981_v23, %v905_v33  ;;  %v984_v34 = vsel %vm455_vm1, %v9134_v35, %v9353_v24  ;;  %v9690_v23 = vld [vmem:[#allocation2 + $0x1e8] sm:$0xff]  ;;  %v985_v35 = vsel %vm455_vm1, %v9164_v44, %v9355_v32  ;;  %v986_v44 = vsel %vm455_vm1, %v9162_v42, %v9389_v25 }
 0x27a   : > { %8066 = vmatmul.msk.f32.gmra.mxu1 %vm1358_vm3, %v1010_v17  ;;  %v9598_v17 = vld [vmem:[#allocation2 + $0x148] sm:$0xff]  ;;  %14963 = vst [vmem:[#allocation23_spill] sm:$0xff] %v9690_v23  ;;  %v987_v42 = vsel %vm455_vm1, %v9187_v51, %v9391_v62  ;;  %v988_v51 = vsel %vm455_vm1, %v9185_v49, %v9424_v18  ;;  %v989_v49 = vsel %vm455_vm1, %v9232_v1, %v9426_v63 }
 0x27b   : > { %v990_v1 = vsel %vm455_vm1, %v9229_v0, %v9464_v48 }
 0x27e   : > { %1131 = vrot.lane.b32.xlu1 %v9295_v37, %s8896_s14  ;;  %1125 = vrot.lane.b32.xlu2 %v9280_v22, %s8896_s14  ;;  %v1011_v37 = vsel %vm994_vm4, %v978_v12, %v9285_v30  ;;  %v1196_v12 = vpop.permute.xlu0 %1195 }
 0x27f   : > { %1972 = vrot.lane.b32.xlu0 %v9417_v38, %s8897_s15  ;;  %v8015_v38 = vld [vmem:[%s14889_s2 + $0x10] sm:$0xff] }
 0x280   : > { %v909_v47 = vpop.permute.xlu1 %908  ;;  %v9568_v3 = vpop.permute.xlu2 %914  ;;  %1474 = vmatpush.msra.mxu0 %v8015_v38  ;;  %v1015_v38 = vsel %vm994_vm4, %v982_v26, %v9534_v20 }
 0x281   : > { %v1016_v52 = vsel %vm994_vm4, %v983_v29, %v909_v47  ;;  %v1017_v47 = vsel %vm994_vm4, %v984_v34, %v9551_v14 }
 0x282   : > { %8067 = vmatmul.msk.f32.gmra.mxu1 %vm1358_vm3, %v1011_v37 }
 0x286   : > { %1135 = vrot.lane.b32.xlu1 %v9577_v41, %s8896_s14  ;;  %1129 = vrot.lane.b32.xlu2 %v9579_v53, %s8896_s14 }
 0x287   : > { %1978 = vrot.lane.b32.xlu0 %v9428_v4, %s8897_s15 }
 0x288   : > { %v9590_v30 = vpop.permute.xlu1 %912  ;;  %v9592_v43 = vpop.permute.xlu2 %918 }
 0x289   : > { %v1018_v14 = vsel %vm994_vm4, %v985_v35, %v9590_v30  ;;  %v1019_v30 = vsel %vm994_vm4, %v986_v44, %v9568_v3  ;;  %v14972_v44 = vld [vmem:[#allocation8_spill] sm:$0xff] }
 0x28a   : > { %8068 = vmatmul.msk.f32.gmra.mxu1 %vm1358_vm3, %v1012_v21  ;;  %v9655_v21 = vld [vmem:[#allocation2 + $0x1a8] sm:$0xff] }
 0x28b   : > { %14962 = vst [vmem:[#allocation22_spill] sm:$0xff] %v9655_v21 }
 0x28e   : > { %1139 = vrot.lane.b32.xlu1 %v9596_v28, %s8896_s14  ;;  %1133 = vrot.lane.b32.xlu2 %v9598_v17, %s8896_s14 }
 0x28f   : > { %1984 = vrot.lane.b32.xlu0 %v9441_v27, %s8897_s15 }
 0x290   : > { %v9609_v15 = vpop.permute.xlu1 %916  ;;  %v9611_v4 = vpop.permute.xlu2 %922 }
 0x291   : > { %v1020_v3 = vsel %vm994_vm4, %v987_v42, %v9609_v15 }
 0x292   : > { %8069 = vmatmul.msk.f32.gmra.mxu1 %vm1358_vm3, %v1013_v8  ;;  %v9672_v8 = vld [vmem:[#allocation2 + $0x208] sm:$0xff] }
 0x296   : > { %1143 = vrot.lane.b32.xlu1 %v9319_v58, %s8896_s14  ;;  %1137 = vrot.lane.b32.xlu2 %v9307_v45, %s8896_s14  ;;  %v9632_v58 = vld [vmem:[#allocation2 + $0x1b0] sm:$0xff]  ;;  %v9634_v45 = vld [vmem:[#allocation2 + $0x188] sm:$0xff] }
 0x297   : > { %1990 = vrot.lane.b32.xlu0 %v9456_v39, %s8897_s15  ;;  %14959 = vst [vmem:[#allocation19_spill] sm:$0xff] %v9632_v58  ;;  %v1029_v39 = vld [vmem:[#allocation2 + $0x8] sm:$0xff] }
 0x298   : > { %v9626_v10 = vpop.permute.xlu1 %920  ;;  %v9628_v27 = vpop.permute.xlu2 %926  ;;  %14960 = vst [vmem:[#allocation20_spill] sm:$0xff] %v9634_v45 }
 0x29a   : > { %8070 = vmatmul.msk.f32.gmra.mxu1 %vm1358_vm3, %v1014_v31  ;;  %v9708_v31 = vld [vmem:[#allocation2 + $0x210] sm:$0xff] }
 0x29e   : > { %1147 = vrot.lane.b32.xlu1 %v9632_v58, %s8896_s14  ;;  %1141 = vrot.lane.b32.xlu2 %v9634_v45, %s8896_s14 }
 0x29f   : > { %1996 = vrot.lane.b32.xlu0 %v9468_v11, %s8897_s15  ;;  %v9653_v11 = vld [vmem:[#allocation2 + $0x1d0] sm:$0xff] }
 0x2a0   : > { %v9645_v5 = vpop.permute.xlu1 %924  ;;  %v1098_v33 = vpop.permute.xlu2 %1097  ;;  %14961 = vst [vmem:[#allocation21_spill] sm:$0xff] %v9653_v11 }
 0x2a1   : > { %v1291_v37 = vsel %vm455_vm1, %v1029_v39, %v1098_v33 }
 0x2a2   : > { %8071 = vmatmul.msk.f32.gmra.mxu1 %vm1358_vm3, %v1015_v38  ;;  %v1323_v61 = vsel %vm994_vm4, %v1291_v37, %v1196_v12  ;;  %v1021_v38 = vsel %vm994_vm4, %v988_v51, %v9592_v43  ;;  %v1022_v43 = vsel %vm994_vm4, %v989_v49, %v9626_v10  ;;  %v1023_v10 = vsel %vm994_vm4, %v990_v1, %v9611_v4  ;;  %v14974_v51 = vld [vmem:[#allocation15_spill] sm:$0xff] }
 0x2a3   : > { %8018 = vmatmul.msk.f32.vlgmr.msra.gmra.mxu0 %vm1358_vm3, %v1323_v61 }
 0x2a6   : > { %1151 = vrot.lane.b32.xlu1 %v9653_v11, %s8896_s14  ;;  %1145 = vrot.lane.b32.xlu2 %v9655_v21, %s8896_s14 }
 0x2a7   : > { %2002 = vrot.lane.b32.xlu0 %v9484_v2, %s8897_s15 }
 0x2a8   : > { %v9666_v40 = vpop.permute.xlu1 %928  ;;  %v9668_v20 = vpop.permute.xlu2 %1101 }
 0x2aa   : > { %8072 = vmatmul.msk.f32.gmra.mxu1 %vm1358_vm3, %v1016_v52 }
 0x2ae   : > { %1157 = vrot.lane.b32.xlu1 %v9672_v8, %s8896_s14  ;;  %1149 = vrot.lane.b32.xlu2 %v9334_v16, %s8896_s14 }
 0x2af   : > { %2008 = vrot.lane.b32.xlu0 %v9500_v19, %s8897_s15  ;;  %v9696_v19 = vpop.f32.mrf.mxu1 }
 0x2b0   : > { %v9683_v2 = vpop.permute.xlu1 %1099  ;;  %v9685_v50 = vpop.permute.xlu2 %1105  ;;  %14964 = vst [vmem:[#allocation24_spill] sm:$0xff] %v9696_v19 }
 0x2b2   : > { %8073 = vmatmul.msk.f32.gmra.mxu1 %vm1358_vm3, %v1017_v47  ;;  %v14970_v47 = vld [vmem:[#allocation9_spill] sm:$0xff] }
 0x2b3   : > { %v991_v0 = vsel %vm455_vm1, %v14970_v47, %v9466_v6 }
 0x2b4   : > { %v1024_v4 = vsel %vm994_vm4, %v991_v0, %v9645_v5 }
 0x2b6   : > { %1197 = vrot.lane.b32.xlu1 %v9452_v7, %s8897_s15  ;;  %1153 = vrot.lane.b32.xlu2 %v9690_v23, %s8896_s14 }
 0x2b7   : > { %v9721_v26 = vpop.f32.mrf.mxu1 }
 0x2b8   : > { %v9701_v16 = vpop.permute.xlu1 %1103  ;;  %v9703_v24 = vpop.permute.xlu2 %1109  ;;  %14965 = vst [vmem:[#allocation25_spill] sm:$0xff] %v9721_v26  ;;  %v9889_v26 = vld [vmem:[#allocation2 + $0x89] sm:$0xff] }
 0x2ba   : > { %8074 = vmatmul.msk.f32.gmra.mxu1 %vm1358_vm3, %v1018_v14  ;;  %v14971_v14 = vld [vmem:[#allocation14_spill] sm:$0xff] }
 0x2be   : > { %1203 = vrot.lane.b32.xlu1 %v9498_v60, %s8897_s15  ;;  %1159 = vrot.lane.b32.xlu2 %v9708_v31, %s8896_s14 }
 0x2bf   : > { %v9737_v12 = vpop.f32.mrf.mxu1 }
 0x2c0   : > { %v9717_v32 = vpop.permute.xlu1 %1107  ;;  %v9719_v39 = vpop.permute.xlu2 %1113  ;;  %14966 = vst [vmem:[#allocation26_spill] sm:$0xff] %v9737_v12  ;;  %v1030_v12 = vld [vmem:[#allocation2 + $0x10] sm:$0xff] }
 0x2c1   : > { %v1292_v19 = vsel %vm455_vm1, %v1030_v12, %v9683_v2  ;;  %v14987_v2 = vld [vmem:[#allocation13_spill] sm:$0xff] }
 0x2c2   : > { %8075 = vmatmul.msk.f32.gmra.mxu1 %vm1358_vm3, %v1019_v30  ;;  %v992_v30 = vsel %vm455_vm1, %v14972_v44, %v14971_v14  ;;  %v1202_v44 = vpop.permute.xlu0 %1201  ;;  %v1293_v12 = vsel %vm455_vm1, %v14987_v2, %v9668_v20 }
 0x2c6   : > { %1209 = vrot.lane.b32.xlu1 %v9496_v46, %s8897_s15  ;;  %1199 = vrot.lane.b32.xlu2 %v9482_v56, %s8897_s15 }
 0x2c7   : > { %v9756_v15 = vpop.f32.mrf.mxu1 }
 0x2c8   : > { %v9733_v25 = vpop.permute.xlu1 %1111  ;;  %v9735_v33 = vpop.permute.xlu2 %1117  ;;  %14967 = vst [vmem:[#allocation27_spill] sm:$0xff] %v9756_v15  ;;  %v9887_v15 = vld [vmem:[#allocation2 + $0xd1] sm:$0xff] }
 0x2ca   : > { %8076 = vmatmul.msk.f32.gmra.mxu1 %vm1358_vm3, %v1020_v3  ;;  %v1025_v3 = vsel %vm994_vm4, %v992_v30, %v9628_v27  ;;  %v9851_v30 = vld [vmem:[#allocation2 + $0x49] sm:$0xff] }
 0x2ce   : > { %1215 = vrot.lane.b32.xlu1 %v9541_v13, %s8897_s15  ;;  %1205 = vrot.lane.b32.xlu2 %v9480_v54, %s8897_s15 }
 0x2cf   : > { %v9772_v29 = vpop.f32.mrf.mxu1 }
 0x2d0   : > { %v9749_v62 = vpop.permute.xlu1 %1115  ;;  %v9751_v37 = vpop.permute.xlu2 %1121  ;;  %14968 = vst [vmem:[#allocation28_spill] sm:$0xff] %v9772_v29 }
 0x2d2   : > { %8077 = vmatmul.msk.f32.gmra.mxu1 %vm1358_vm3, %v1021_v38  ;;  %v14975_v38 = vld [vmem:[#allocation10_spill] sm:$0xff] }
 0x2d3   : > { %v993_v49 = vsel %vm455_vm1, %v14975_v38, %v14974_v51  ;;  %v9861_v51 = vld [vmem:[#allocation2 + $0x71] sm:$0xff]  ;;  %v9863_v38 = vld [vmem:[#allocation2 + $0x29] sm:$0xff] }
 0x2d4   : > { %v1026_v27 = vsel %vm994_vm4, %v993_v49, %v9666_v40  ;;  %14983 = vst [vmem:[#allocation33_spill] sm:$0xff] %v9863_v38  ;;  %v9869_v49 = vpop.permute.xlu0 %1207 }
 0x2d6   : > { %1221 = vrot.lane.b32.xlu1 %v9539_v57, %s8897_s15  ;;  %1211 = vrot.lane.b32.xlu2 %v9524_v55, %s8897_s15 }
 0x2d7   : > { %v9792_v34 = vpop.f32.mrf.mxu1 }
 0x2d8   : > { %v9765_v18 = vpop.permute.xlu1 %1119  ;;  %v9767_v61 = vpop.permute.xlu2 %1125  ;;  %14969 = vst [vmem:[#allocation29_spill] sm:$0xff] %v9792_v34 }
 0x2da   : > { %8078 = vmatmul.msk.f32.gmra.mxu1 %vm1358_vm3, %v1022_v43 }
 0x2dc   : > { %v9885_v29 = vpop.permute.xlu0 %1213 }
 0x2de   : > { %1227 = vrot.lane.b32.xlu1 %v9598_v17, %s8897_s15  ;;  %1217 = vrot.lane.b32.xlu2 %v9522_v59, %s8897_s15 }
 0x2df   : > { %v9817_v5 = vpop.f32.mrf.mxu1 }
 0x2e0   : > { %v9781_v63 = vpop.permute.xlu1 %1123  ;;  %v9783_v52 = vpop.permute.xlu2 %1129  ;;  %14973 = vst [vmem:[#allocation9_spill] sm:$0xff] %v9817_v5 }
 0x2e2   : > { %8079 = vmatmul.msk.f32.gmra.mxu1 %vm1358_vm3, %v1023_v10 }
 0x2e6   : > { %1233 = vrot.lane.b32.xlu1 %v9596_v28, %s8897_s15  ;;  %1223 = vrot.lane.b32.xlu2 %v9579_v53, %s8897_s15 }
 0x2e7   : > { %v9833_v10 = vpop.f32.mrf.mxu1 }
 0x2e8   : > { %v9797_v48 = vpop.permute.xlu1 %1127  ;;  %v9799_v35 = vpop.permute.xlu2 %1133  ;;  %14977 = vst [vmem:[#allocation8_spill] sm:$0xff] %v9833_v10  ;;  %v9877_v10 = vld [vmem:[#allocation2 + $0x51] sm:$0xff] }
 0x2ea   : > { %8080 = vmatmul.msk.f32.gmra.mxu1 %vm1358_vm3, %v1024_v4  ;;  %v1064_v4 = vld [vmem:[#allocation2 + $0x230] sm:$0xff] }
 0x2ee   : > { %1239 = vrot.lane.b32.xlu1 %v9655_v21, %s8897_s15  ;;  %1229 = vrot.lane.b32.xlu2 %v9577_v41, %s8897_s15  ;;  %v9918_v21 = vld [vmem:[#allocation2 + $0xe9] sm:$0xff] }
 0x2f0   : > { %v9811_v6 = vpop.permute.xlu1 %1131  ;;  %v9813_v42 = vpop.permute.xlu2 %1137 }
 0x2f2   : > { %8081 = vmatmul.msk.f32.gmra.mxu1 %vm1358_vm3, %v1025_v3 }
 0x2f6   : > { %1245 = vrot.lane.b32.xlu1 %v9653_v11, %s8897_s15  ;;  %1235 = vrot.lane.b32.xlu2 %v9634_v45, %s8897_s15  ;;  %v9899_v11 = vpop.permute.xlu0 %1219 }
 0x2f8   : > { %v9827_v43 = vpop.permute.xlu1 %1135  ;;  %v9829_v1 = vpop.permute.xlu2 %1141 }
 0x2f9   : > { %14976 = vst [vmem:[#allocation14_spill] sm:$0xff] %v9829_v1  ;;  %v1297_v1 = vsel %vm455_vm1, %v9482_v56, %v9703_v24  ;;  %v9989_v56 = vld [vmem:[#allocation2 + $0x1a9] sm:$0xff] }
 0x2fa   : > { %8082 = vmatmul.msk.f32.gmra.mxu1 %vm1358_vm3, %v1026_v27  ;;  %v14994_v24 = vld [vmem:[#allocation6_spill] sm:$0xff] }
 0x2fe   : > { %1251 = vrot.lane.b32.xlu1 %v9672_v8, %s8897_s15  ;;  %1241 = vrot.lane.b32.xlu2 %v9632_v58, %s8897_s15 }
 0x300   : > { %v9840_v47 = vpop.permute.xlu1 %1139  ;;  %v9842_v0 = vpop.permute.xlu2 %1145 }
 0x301   : > { %14978 = vst [vmem:[#allocation15_spill] sm:$0xff] %v9842_v0  ;;  %v9950_v0 = vld [vmem:[#allocation2 + $0x149] sm:$0xff] }
 0x306   : > { %1257 = vrot.lane.b32.xlu1 %v1064_v4, %s8897_s15  ;;  %1247 = vrot.lane.b32.xlu2 %v9690_v23, %s8897_s15 }
 0x308   : > { %v9847_v40 = vpop.permute.xlu1 %1143  ;;  %v9849_v14 = vpop.permute.xlu2 %1149 }
 0x309   : > { %14979 = vst [vmem:[#allocation10_spill] sm:$0xff] %v9847_v40  ;;  %v9969_v40 = vld [vmem:[#allocation2 + $0x171] sm:$0xff] }
 0x30a   : > { %14980 = vst [vmem:[#allocation30_spill] sm:$0xff] %v9849_v14  ;;  %v14988_v14 = vld [vmem:[#allocation12_spill] sm:$0xff] }
 0x30e   : > { %1856 = vrot.lane.b32.xlu1 %v9851_v30, %s8896_s14  ;;  %1253 = vrot.lane.b32.xlu2 %v9708_v31, %s8897_s15  ;;  %v9875_v31 = vld [vmem:[#allocation2 + $0xa9] sm:$0xff] }
 0x310   : > { %v9857_v8 = vpop.permute.xlu1 %1147  ;;  %v9859_v3 = vpop.permute.xlu2 %1153 }
 0x311   : > { %14981 = vst [vmem:[#allocation31_spill] sm:$0xff] %v9857_v8  ;;  %v1294_v8 = vsel %vm455_vm1, %v14988_v14, %v9701_v16  ;;  %v14989_v14 = vld [vmem:[#allocation5_spill] sm:$0xff] }
 0x312   : > { %14982 = vst [vmem:[#allocation32_spill] sm:$0xff] %v9859_v3  ;;  %v9903_v3 = vld [vmem:[#allocation2 + $0xb1] sm:$0xff]  ;;  %v1326_v2 = vsel %vm994_vm4, %v1294_v8, %v1202_v44 }
 0x316   : > { %1862 = vrot.lane.b32.xlu1 %v9861_v51, %s8896_s14  ;;  %1852 = vrot.lane.b32.xlu2 %v9863_v38, %s8896_s14  ;;  %v1295_v38 = vsel %vm455_vm1, %v14989_v14, %v9685_v50  ;;  %v1296_v50 = vsel %vm455_vm1, %v9452_v7, %v9717_v32 }
 0x318   : > { %v9871_v27 = vpop.permute.xlu1 %1151  ;;  %v9873_v4 = vpop.permute.xlu2 %1159 }
 0x319   : > { %14984 = vst [vmem:[#allocation34_spill] sm:$0xff] %v9871_v27  ;;  %v9916_v27 = vld [vmem:[#allocation2 + $0x131] sm:$0xff] }
 0x31a   : > { %14985 = vst [vmem:[#allocation35_spill] sm:$0xff] %v9873_v4 }
 0x31e   : > { %1868 = vrot.lane.b32.xlu1 %v9875_v31, %s8896_s14  ;;  %1858 = vrot.lane.b32.xlu2 %v9877_v10, %s8896_s14 }
 0x320   : > { %v9883_v5 = vpop.permute.xlu1 %1157  ;;  %v1200_v34 = vpop.permute.xlu2 %1199 }
 0x321   : > { %14986 = vst [vmem:[#allocation36_spill] sm:$0xff] %v9883_v5 }
 0x326   : > { %1874 = vrot.lane.b32.xlu1 %v9887_v15, %s8896_s14  ;;  %1864 = vrot.lane.b32.xlu2 %v9889_v26, %s8896_s14 }
 0x328   : > { %v1198_v4 = vpop.permute.xlu1 %1197  ;;  %v1206_v23 = vpop.permute.xlu2 %1205 }
 0x329   : > { %v1324_v5 = vsel %vm994_vm4, %v1292_v19, %v1198_v4  ;;  %v9914_v4 = vpop.permute.xlu0 %1225 }
 0x32a   : > { %8019 = vmatmul.msk.f32.gmra.mxu0 %vm1358_vm3, %v1324_v5  ;;  %v1325_v5 = vsel %vm994_vm4, %v1293_v12, %v1200_v34  ;;  %v9931_v12 = vld [vmem:[#allocation2 + $0x169] sm:$0xff] }
 0x32e   : > { %1880 = vrot.lane.b32.xlu1 %v9901_v36, %s8896_s14  ;;  %1870 = vrot.lane.b32.xlu2 %v9903_v3, %s8896_s14 }
 0x330   : > { %v1204_v58 = vpop.permute.xlu1 %1203  ;;  %v1212_v19 = vpop.permute.xlu2 %1211 }
 0x331   : > { %v9939_v16 = vpop.permute.xlu0 %1231  ;;  %v1327_v8 = vsel %vm994_vm4, %v1295_v38, %v1204_v58  ;;  %v1328_v38 = vsel %vm994_vm4, %v1296_v50, %v1206_v23  ;;  %v1329_v23 = vsel %vm994_vm4, %v1297_v1, %v9869_v49 }
 0x332   : > { %8020 = vmatmul.msk.f32.gmra.mxu0 %vm1358_vm3, %v1325_v5  ;;  %v9933_v5 = vld [vmem:[#allocation2 + $0x111] sm:$0xff] }
 0x336   : > { %1886 = vrot.lane.b32.xlu1 %v9916_v27, %s8896_s14  ;;  %1876 = vrot.lane.b32.xlu2 %v9918_v21, %s8896_s14 }
 0x338   : > { %v1210_v20 = vpop.permute.xlu1 %1209  ;;  %v9927_v34 = vpop.permute.xlu2 %1217 }
 0x339   : > { %v9963_v58 = vpop.permute.xlu0 %1237 }
 0x33a   : > { %8021 = vmatmul.msk.f32.gmra.mxu0 %vm1358_vm3, %v1326_v2  ;;  %v9948_v2 = vld [vmem:[#allocation2 + $0x191] sm:$0xff]  ;;  %14990 = vst [vmem:[#allocation13_spill] sm:$0xff] %v9963_v58  ;;  %v1298_v58 = vsel %vm455_vm1, %v14994_v24, %v9733_v25  ;;  %v1299_v25 = vsel %vm455_vm1, %v9498_v60, %v9719_v39 }
 0x33b   : > { %v1330_v49 = vsel %vm994_vm4, %v1298_v58, %v1210_v20  ;;  %v1331_v20 = vsel %vm994_vm4, %v1299_v25, %v1212_v19  ;;  %v10021_v58 = vld [vmem:[#allocation2 + $0x209] sm:$0xff] }
 0x33e   : > { %1892 = vrot.lane.b32.xlu1 %v9931_v12, %s8896_s14  ;;  %1882 = vrot.lane.b32.xlu2 %v9933_v5, %s8896_s14 }
 0x340   : > { %v1216_v45 = vpop.permute.xlu1 %1215  ;;  %v9944_v44 = vpop.permute.xlu2 %1223 }
 0x341   : > { %v9985_v50 = vpop.permute.xlu0 %1243 }
 0x342   : > { %8022 = vmatmul.msk.f32.gmra.mxu0 %vm1358_vm3, %v1327_v8  ;;  %v9967_v8 = vld [vmem:[#allocation2 + $0x1c9] sm:$0xff]  ;;  %14992 = vst [vmem:[#allocation5_spill] sm:$0xff] %v9985_v50  ;;  %v10006_v50 = vld [vmem:[#allocation2 + $0x1d1] sm:$0xff] }
 0x343   : > { %14991 = vst [vmem:[#allocation12_spill] sm:$0xff] %v9967_v8 }
 0x344   : > { %14997 = vst [vmem:[#allocation39_spill] sm:$0xff] %v10006_v50 }
 0x346   : > { %1898 = vrot.lane.b32.xlu1 %v9948_v2, %s8896_s14  ;;  %1888 = vrot.lane.b32.xlu2 %v9950_v0, %s8896_s14 }
 0x348   : > { %v9959_v14 = vpop.permute.xlu1 %1221  ;;  %v9961_v28 = vpop.permute.xlu2 %1229 }
 0x34a   : > { %8023 = vmatmul.msk.f32.gmra.mxu0 %vm1358_vm3, %v1328_v38  ;;  %v9987_v38 = vld [vmem:[#allocation2 + $0x1f1] sm:$0xff] }
 0x34b   : > { %14993 = vst [vmem:[#allocation37_spill] sm:$0xff] %v9987_v38 }
 0x34e   : > { %1904 = vrot.lane.b32.xlu1 %v9967_v8, %s8896_s14  ;;  %1894 = vrot.lane.b32.xlu2 %v9969_v40, %s8896_s14 }
 0x350   : > { %v9978_v7 = vpop.permute.xlu1 %1227  ;;  %v9980_v32 = vpop.permute.xlu2 %1235 }
 0x352   : > { %8024 = vmatmul.msk.f32.gmra.mxu0 %vm1358_vm3, %v1329_v23  ;;  %v10004_v23 = vpop.permute.xlu0 %1249 }
 0x353   : > { %14996 = vst [vmem:[#allocation38_spill] sm:$0xff] %v10004_v23 }
 0x356   : > { %1910 = vrot.lane.b32.xlu1 %v9987_v38, %s8896_s14  ;;  %1900 = vrot.lane.b32.xlu2 %v9989_v56, %s8896_s14 }
 0x358   : > { %v9998_v41 = vpop.permute.xlu1 %1233  ;;  %v10000_v1 = vpop.permute.xlu2 %1241 }
 0x359   : > { %14995 = vst [vmem:[#allocation6_spill] sm:$0xff] %v10000_v1 }
 0x35a   : > { %8025 = vmatmul.msk.f32.gmra.mxu0 %vm1358_vm3, %v1330_v49  ;;  %v1300_v49 = vsel %vm455_vm1, %v9480_v54, %v9749_v62  ;;  %v10030_v60 = vpop.permute.xlu0 %1255  ;;  %v1301_v54 = vsel %vm455_vm1, %v9251_v9, %v9735_v33  ;;  %v1302_v9 = vsel %vm455_vm1, %v9496_v46, %v9765_v18 }
 0x35b   : > { %v1332_v19 = vsel %vm994_vm4, %v1300_v49, %v9885_v29  ;;  %v1333_v29 = vsel %vm994_vm4, %v1301_v54, %v1216_v45  ;;  %v1303_v54 = vsel %vm455_vm1, %v9524_v55, %v9751_v37  ;;  %v14998_v55 = vld [vmem:[#allocation7_spill] sm:$0xff] }
 0x35c   : > { %v1304_v37 = vsel %vm455_vm1, %v14998_v55, %v9781_v63  ;;  %v1305_v63 = vsel %vm455_vm1, %v9541_v13, %v9767_v61 }
 0x35e   : > { %1950 = vrot.lane.b32.xlu1 %v9851_v30, %s8897_s15  ;;  %1906 = vrot.lane.b32.xlu2 %v10006_v50, %s8896_s14 }
 0x360   : > { %v10015_v24 = vpop.permute.xlu1 %1239  ;;  %v10017_v1 = vpop.permute.xlu2 %1247 }
 0x362   : > { %8026 = vmatmul.msk.f32.gmra.mxu0 %vm1358_vm3, %v1331_v20  ;;  %v10050_v20 = vpop.permute.xlu0 %1854 }
 0x366   : > { %1956 = vrot.lane.b32.xlu1 %v9861_v51, %s8897_s15  ;;  %1912 = vrot.lane.b32.xlu2 %v10021_v58, %s8896_s14 }
 0x368   : > { %v10032_v39 = vpop.permute.xlu1 %1245  ;;  %v10034_v23 = vpop.permute.xlu2 %1253 }
 0x36a   : > { %8027 = vmatmul.msk.f32.gmra.mxu0 %vm1358_vm3, %v1332_v19  ;;  %v1334_v19 = vsel %vm994_vm4, %v1302_v9, %v9927_v34  ;;  %v10068_v45 = vpop.permute.xlu0 %1860  ;;  %v1335_v34 = vsel %vm994_vm4, %v1303_v54, %v9899_v11  ;;  %v1336_v11 = vsel %vm994_vm4, %v1304_v37, %v9959_v14  ;;  %v1337_v14 = vsel %vm994_vm4, %v1305_v63, %v9944_v44 }
 0x36b   : > { %v1306_v37 = vsel %vm455_vm1, %v9522_v59, %v9797_v48  ;;  %v1307_v59 = vsel %vm455_vm1, %v9280_v22, %v9783_v52  ;;  %v1308_v22 = vsel %vm455_vm1, %v9539_v57, %v9811_v6  ;;  %v8084_v57 = vld [vmem:[%s14889_s2 + $0x28] sm:$0x1]  ;;  %v8083_v6 = vld [vmem:[%s14889_s2 + $0x20] sm:$0xff] }
 0x36c   : > { %v1339_v63 = vsel %vm994_vm4, %v1307_v59, %v9978_v7  ;;  %v1340_v7 = vsel %vm994_vm4, %v1308_v22, %v9961_v28  ;;  %v1309_v59 = vsel %vm455_vm1, %v9579_v53, %v9799_v35  ;;  %8085 = vmatpush.msk.msra.mxu2 %vm1455_vm2, %v8084_v57  ;;  %v8812_v22 = vld [vmem:[#allocation2 + $0x130] sm:$0xff] }
 0x36d   : > { %v1341_v53 = vsel %vm994_vm4, %v1309_v59, %v9939_v16  ;;  %v1819_v16 = vld [vmem:[#allocation2 + $0x231] sm:$0xff] }
 0x36e   : > { %1962 = vrot.lane.b32.xlu1 %v9875_v31, %s8897_s15  ;;  %1952 = vrot.lane.b32.xlu2 %v9877_v10, %s8897_s15 }
 0x36f   : > { %2227 = vmatpush.msra.mxu2 %v8083_v6 }
 0x370   : > { %v10046_v62 = vpop.permute.xlu1 %1251  ;;  %v10048_v25 = vpop.permute.xlu2 %1852 }
 0x372   : > { %8028 = vmatmul.msk.f32.gmra.mxu0 %vm1358_vm3, %v1333_v29  ;;  %v10084_v29 = vpop.permute.xlu0 %1866 }
 0x376   : > { %1968 = vrot.lane.b32.xlu1 %v9887_v15, %s8897_s15  ;;  %1958 = vrot.lane.b32.xlu2 %v9889_v26, %s8897_s15 }
 0x378   : > { %v10061_v33 = vpop.permute.xlu1 %1257  ;;  %v10063_v49 = vpop.permute.xlu2 %1858 }
 0x37a   : > { %8029 = vmatmul.msk.f32.gmra.mxu0 %vm1358_vm3, %v1334_v19  ;;  %v10104_v54 = vpop.permute.xlu0 %1872 }
 0x37e   : > { %1974 = vrot.lane.b32.xlu1 %v9901_v36, %s8897_s15  ;;  %1964 = vrot.lane.b32.xlu2 %v9903_v3, %s8897_s15 }
 0x380   : > { %v10077_v46 = vpop.permute.xlu1 %1856  ;;  %v10079_v18 = vpop.permute.xlu2 %1864 }
 0x382   : > { %8030 = vmatmul.msk.f32.gmra.mxu0 %vm1358_vm3, %v1335_v34  ;;  %v10125_v61 = vpop.permute.xlu0 %1878 }
 0x386   : > { %1980 = vrot.lane.b32.xlu1 %v9916_v27, %s8897_s15  ;;  %1970 = vrot.lane.b32.xlu2 %v9918_v21, %s8897_s15 }
 0x388   : > { %v10093_v9 = vpop.permute.xlu1 %1862  ;;  %v10095_v19 = vpop.permute.xlu2 %1870 }
 0x38a   : > { %8031 = vmatmul.msk.f32.gmra.mxu0 %vm1358_vm3, %v1336_v11  ;;  %v1338_v11 = vsel %vm994_vm4, %v1306_v37, %v9914_v4  ;;  %v10144_v4 = vpop.permute.xlu0 %1884  ;;  %v1818_v37 = vld [vmem:[#allocation2 + $0x229] sm:$0xff] }
 0x38e   : > { %1986 = vrot.lane.b32.xlu1 %v9931_v12, %s8897_s15  ;;  %1976 = vrot.lane.b32.xlu2 %v9933_v5, %s8897_s15 }
 0x390   : > { %v10109_v34 = vpop.permute.xlu1 %1868  ;;  %v10111_v55 = vpop.permute.xlu2 %1876 }
 0x392   : > { %8032 = vmatmul.msk.f32.gmra.mxu0 %vm1358_vm3, %v1337_v14 }
 0x396   : > { %1992 = vrot.lane.b32.xlu1 %v9948_v2, %s8897_s15  ;;  %1982 = vrot.lane.b32.xlu2 %v9950_v0, %s8897_s15 }
 0x398   : > { %v10123_v13 = vpop.permute.xlu1 %1874  ;;  %v10129_v44 = vpop.permute.xlu2 %1882 }
 0x39a   : > { %8033 = vmatmul.msk.f32.gmra.mxu0 %vm1358_vm3, %v1338_v11  ;;  %v10160_v11 = vpop.permute.xlu0 %1890 }
 0x39e   : > { %1998 = vrot.lane.b32.xlu1 %v9967_v8, %s8897_s15  ;;  %1988 = vrot.lane.b32.xlu2 %v9969_v40, %s8897_s15 }
 0x3a0   : > { %v10139_v48 = vpop.permute.xlu1 %1880  ;;  %v10146_v14 = vpop.permute.xlu2 %1888 }
 0x3a2   : > { %8034 = vmatmul.msk.f32.gmra.mxu0 %vm1358_vm3, %v1339_v63  ;;  %v10184_v35 = vpop.permute.xlu0 %1896 }
 0x3a6   : > { %2004 = vrot.lane.b32.xlu1 %v9987_v38, %s8897_s15  ;;  %1994 = vrot.lane.b32.xlu2 %v9989_v56, %s8897_s15 }
 0x3a8   : > { %v10155_v52 = vpop.permute.xlu1 %1886  ;;  %v10165_v63 = vpop.permute.xlu2 %1894 }
 0x3aa   : > { %8035 = vmatmul.msk.f32.gmra.mxu0 %vm1358_vm3, %v1340_v7  ;;  %v1310_v7 = vsel %vm455_vm1, %v8812_v22, %v9827_v43  ;;  %v10201_v6 = vpop.permute.xlu0 %1902 }
 0x3ab   : > { %v1342_v38 = vsel %vm994_vm4, %v1310_v7, %v9998_v41  ;;  %v14999_v41 = vld [vmem:[#allocation16_spill] sm:$0xff]  ;;  %v15001_v7 = vld [vmem:[#allocation13_spill] sm:$0xff] }
 0x3ae   : > { %2010 = vrot.lane.b32.xlu1 %v1818_v37, %s8897_s15  ;;  %2000 = vrot.lane.b32.xlu2 %v10006_v50, %s8897_s15  ;;  %v15003_v50 = vld [vmem:[#allocation14_spill] sm:$0xff] }
 0x3b0   : > { %v10173_v28 = vpop.permute.xlu1 %1892  ;;  %v10188_v37 = vpop.permute.xlu2 %1900 }
 0x3b2   : > { %8036 = vmatmul.msk.f32.gmra.mxu0 %vm1358_vm3, %v1341_v53 }
 0x3b6   : > { %2006 = vrot.lane.b32.xlu2 %v10021_v58, %s8897_s15  ;;  %v1311_v58 = vsel %vm455_vm1, %v9598_v17, %v9813_v42  ;;  %v10216_v42 = vpop.permute.xlu0 %1908 }
 0x3b7   : > { %v1343_v43 = vsel %vm994_vm4, %v1311_v58, %v9980_v32  ;;  %v1784_v32 = vld [vmem:[#allocation2 + $0x9] sm:$0xff] }
 0x3b8   : > { %v10190_v57 = vpop.permute.xlu1 %1898  ;;  %v10205_v53 = vpop.permute.xlu2 %1906  ;;  %v8813_v58 = vld [vmem:[#allocation2 + $0x168] sm:$0xff]  ;;  %v2046_v8 = vsel %vm455_vm1, %v1784_v32, %v10048_v25  ;;  %v15006_v32 = vld [vmem:[#allocation17_spill] sm:$0xff] }
 0x3b9   : > { %v15005_v25 = vld [vmem:[#allocation10_spill] sm:$0xff] }
 0x3ba   : > { %8037 = vmatmul.msk.f32.gmra.mxu0 %vm1358_vm3, %v1342_v38  ;;  %v1312_v38 = vsel %vm455_vm1, %v14999_v41, %v9840_v47 }
 0x3bb   : > { %v1344_v17 = vsel %vm994_vm4, %v1312_v38, %v15001_v7  ;;  %v1785_v7 = vld [vmem:[#allocation2 + $0x11] sm:$0xff] }
 0x3be   : > { %2012 = vrot.lane.b32.xlu2 %v1819_v16, %s8897_s15  ;;  %s454_s15 = scalar_lea.vmem %s14900_s13, %s8537_s27 }
 0x3c0   : > { %v10199_v59 = vpop.permute.xlu1 %1904  ;;  %v10218_v16 = vpop.permute.xlu2 %1912 }
 0x3c1   : > { %15002 = vst [vmem:[#allocation16_spill] sm:$0xff] %v10218_v16  ;;  %v10231_v16 = vpop.f32.mrf.mxu0 }
 0x3c2   : > { %8038 = vmatmul.msk.f32.gmra.mxu0 %vm1358_vm3, %v1343_v43  ;;  %v1313_v43 = vsel %vm455_vm1, %v8813_v58, %v15003_v50  ;;  %v2047_v50 = vsel %vm455_vm1, %v1785_v7, %v10050_v20  ;;  %v1314_v58 = vsel %vm455_vm1, %v15006_v32, %v15005_v25  ;;  %v15011_v32 = vld [vmem:[#allocation5_spill] sm:$0xff] }
 0x3c3   : > { %v1345_v41 = vsel %vm994_vm4, %v1313_v43, %v10015_v24  ;;  %v15007_v24 = vld [vmem:[#allocation6_spill] sm:$0xff] }
 0x3c8   : > { %v10211_v22 = vpop.permute.xlu1 %1910 }
 0x3c9   : > { %15000 = vst [vmem:[#allocation7_spill] sm:$0xff] %v10211_v22  ;;  %v1953_v22 = vpop.permute.xlu2 %1952  ;;  %v10249_v7 = vpop.f32.mrf.mxu0 }
 0x3ca   : > { %8039 = vmatmul.msk.f32.gmra.mxu0 %vm1358_vm3, %v1344_v17  ;;  %v10229_v17 = vpop.permute.xlu0 %1914  ;;  %v2079_v43 = vsel %vm994_vm4, %v2047_v50, %v1953_v22 }
 0x3cb   : > { %15004 = vst [vmem:[#allocation13_spill] sm:$0xff] %v10229_v17  ;;  %v15010_v17 = vld [vmem:[#allocation33_spill] sm:$0xff] }
 0x3cc   : > { %v2048_v20 = vsel %vm455_vm1, %v15010_v17, %v10077_v46 }
 0x3d0   : > { %v1951_v47 = vpop.permute.xlu1 %1950 }
 0x3d1   : > { %v2078_v38 = vsel %vm994_vm4, %v2046_v8, %v1951_v47  ;;  %v1346_v8 = vsel %vm994_vm4, %v1314_v58, %v15007_v24  ;;  %v15008_v47 = vld [vmem:[#allocation15_spill] sm:$0xff]  ;;  %v10261_v17 = vpop.f32.mrf.mxu0 }
 0x3d2   : > { %8040 = vmatmul.msk.f32.gmra.mxu0 %vm1358_vm3, %v1345_v41  ;;  %8086 = vmatmul.msk.f32.vlgmr.msra.gmra.mxu2 %vm1358_vm3, %v2078_v38  ;;  %v15009_v41 = vld [vmem:[#allocation20_spill] sm:$0xff]  ;;  %v1955_v25 = vpop.permute.xlu0 %1954  ;;  %v8814_v24 = vld [vmem:[#allocation2 + $0x190] sm:$0xff] }
 0x3d3   : > { %v1315_v38 = vsel %vm455_vm1, %v15009_v41, %v15008_v47  ;;  %v2080_v22 = vsel %vm994_vm4, %v2048_v20, %v1955_v25  ;;  %v15013_v47 = vld [vmem:[#allocation11_spill] sm:$0xff]  ;;  %v1959_v20 = vpop.permute.xlu2 %1958  ;;  %v2050_v25 = vsel %vm455_vm1, %v9851_v30, %v10068_v45  ;;  %v2051_v30 = vsel %vm455_vm1, %v9877_v10, %v10093_v9 }
 0x3d4   : > { %v1347_v58 = vsel %vm994_vm4, %v1315_v38, %v15011_v32  ;;  %v2049_v46 = vsel %vm455_vm1, %v15013_v47, %v10063_v49  ;;  %v15014_v32 = vld [vmem:[#allocation30_spill] sm:$0xff] }
 0x3d5   : > { %v15018_v47 = vld [vmem:[#allocation38_spill] sm:$0xff] }
 0x3d8   : > { %v1957_v50 = vpop.permute.xlu1 %1956 }
 0x3d9   : > { %v2081_v38 = vsel %vm994_vm4, %v2049_v46, %v1957_v50  ;;  %v15016_v50 = vld [vmem:[#allocation34_spill] sm:$0xff] }
 0x3da   : > { %8041 = vmatmul.msk.f32.gmra.mxu0 %vm1358_vm3, %v1346_v8  ;;  %8087 = vmatmul.msk.f32.gmra.mxu2 %vm1358_vm3, %v2079_v43  ;;  %v15012_v8 = vld [vmem:[#allocation31_spill] sm:$0xff]  ;;  %v1961_v45 = vpop.permute.xlu0 %1960 }
 0x3db   : > { %v1316_v43 = vsel %vm455_vm1, %v8814_v24, %v15012_v8  ;;  %v10277_v24 = vpop.f32.mrf.mxu0  ;;  %v15017_v8 = vld [vmem:[#allocation19_spill] sm:$0xff]  ;;  %v2083_v46 = vsel %vm994_vm4, %v2051_v30, %v1961_v45  ;;  %v15022_v45 = vld [vmem:[#allocation36_spill] sm:$0xff] }
 0x3dc   : > { %v1348_v41 = vsel %vm994_vm4, %v1316_v43, %v10032_v39  ;;  %v2082_v39 = vsel %vm994_vm4, %v2050_v25, %v1959_v20  ;;  %v1318_v43 = vsel %vm455_vm1, %v15017_v8, %v15016_v50  ;;  %v8815_v20 = vld [vmem:[#allocation2 + $0x1c8] sm:$0xff]  ;;  %v15019_v25 = vld [vmem:[#allocation32_spill] sm:$0xff]  ;;  %v15021_v8 = vld [vmem:[#allocation21_spill] sm:$0xff] }
 0x3dd   : > { %v15020_v50 = vld [vmem:[#allocation18_spill] sm:$0xff] }
 0x3e2   : > { %8042 = vmatmul.msk.f32.gmra.mxu0 %vm1358_vm3, %v1347_v58  ;;  %8088 = vmatmul.msk.f32.gmra.mxu2 %vm1358_vm3, %v2080_v22  ;;  %v15015_v58 = vld [vmem:[#allocation22_spill] sm:$0xff] }
 0x3e3   : > { %v1317_v49 = vsel %vm455_vm1, %v15015_v58, %v15014_v32  ;;  %v1319_v32 = vsel %vm455_vm1, %v8815_v20, %v15019_v25  ;;  %v8816_v58 = vld [vmem:[#allocation2 + $0x69] sm:$0xff] }
 0x3e4   : > { %v1349_v22 = vsel %vm994_vm4, %v1317_v49, %v10017_v1  ;;  %v1350_v1 = vsel %vm994_vm4, %v1318_v43, %v15018_v47  ;;  %v2052_v10 = vsel %vm455_vm1, %v8816_v58, %v10079_v18  ;;  %v1351_v9 = vsel %vm994_vm4, %v1319_v32, %v10046_v62  ;;  %v15023_v47 = vld [vmem:[#allocation23_spill] sm:$0xff] }
 0x3e5   : > { %v1320_v43 = vsel %vm455_vm1, %v15021_v8, %v15020_v50  ;;  %v2053_v18 = vsel %vm455_vm1, %v9861_v51, %v10084_v29  ;;  %v8817_v25 = vld [vmem:[#allocation2 + $0x1f0] sm:$0xff] }
 0x3e6   : > { %v1352_v62 = vsel %vm994_vm4, %v1320_v43, %v10034_v23  ;;  %v15024_v32 = vld [vmem:[#allocation35_spill] sm:$0xff] }
 0x3e7   : > { %v1322_v58 = vsel %vm455_vm1, %v8817_v25, %v15024_v32 }
 0x3ea   : > { %8043 = vmatmul.msk.f32.gmra.mxu0 %vm1358_vm3, %v1348_v41  ;;  %8089 = vmatmul.msk.f32.gmra.mxu2 %vm1358_vm3, %v2081_v38  ;;  %v10292_v41 = vpop.f32.mrf.mxu0  ;;  %v1963_v38 = vpop.permute.xlu1 %1962 }
 0x3eb   : > { %v2084_v49 = vsel %vm994_vm4, %v2052_v10, %v1963_v38  ;;  %v1967_v38 = vpop.permute.xlu0 %1966  ;;  %v8818_v10 = vld [vmem:[#allocation2 + $0x91] sm:$0xff] }
 0x3f2   : > { %8044 = vmatmul.msk.f32.gmra.mxu0 %vm1358_vm3, %v1349_v22  ;;  %8090 = vmatmul.msk.f32.gmra.mxu2 %vm1358_vm3, %v2082_v39  ;;  %v10303_v22 = vpop.f32.mrf.mxu0  ;;  %v1965_v39 = vpop.permute.xlu2 %1964 }
 0x3f3   : > { %v2085_v30 = vsel %vm994_vm4, %v2053_v18, %v1965_v39  ;;  %v1969_v29 = vpop.permute.xlu1 %1968  ;;  %v2056_v39 = vsel %vm455_vm1, %v9875_v31, %v10104_v54  ;;  %v8819_v18 = vld [vmem:[#allocation2 + $0xc9] sm:$0xff]  ;;  %v15025_v54 = vmov 0.0  }
 0x3f4   : > { %503 = vst.msk [vmem:[#allocation3] sm:$0xff] %vm502_vm5, %v15025_v54 }
 0x3f5   : > { %504 = vst.msk [vmem:[#allocation3 + $0x8] sm:$0xff] %vm502_vm5, %v15025_v54 }
 0x3f6   : > { %505 = vst.msk [vmem:[#allocation3 + $0x10] sm:$0xff] %vm502_vm5, %v15025_v54 }
 0x3f7   : > { %506 = vst.msk [vmem:[#allocation3 + $0x18] sm:$0xff] %vm502_vm5, %v15025_v54 }
 0x3f8   : > { %508 = vst.msk [vmem:[#allocation3 + $0x220] sm:$0xff] %vm502_vm5, %v15025_v54 }
 0x3f9   : > { %509 = vst.msk [vmem:[#allocation3 + $0x228] sm:$0xff] %vm502_vm5, %v15025_v54 }
 0x3fa   : > { %8045 = vmatmul.msk.f32.gmra.mxu0 %vm1358_vm3, %v1350_v1  ;;  %8091 = vmatmul.msk.f32.gmra.mxu2 %vm1358_vm3, %v2083_v46  ;;  %v1321_v1 = vsel %vm455_vm1, %v15023_v47, %v15022_v45  ;;  %v2054_v46 = vsel %vm455_vm1, %v9889_v26, %v10109_v34  ;;  %v10322_v20 = vpop.f32.mrf.mxu0  ;;  %v2055_v26 = vsel %vm455_vm1, %v8818_v10, %v10095_v19  ;;  %v1973_v19 = vpop.permute.xlu0 %1972 }
 0x3fb   : > { %v1353_v51 = vsel %vm994_vm4, %v1321_v1, %v10030_v60  ;;  %v2086_v23 = vsel %vm994_vm4, %v2054_v46, %v1967_v38  ;;  %v1354_v34 = vsel %vm994_vm4, %v1322_v58, %v10061_v33  ;;  %v2087_v60 = vsel %vm994_vm4, %v2055_v26, %v1969_v29  ;;  %v1975_v43 = vpop.permute.xlu1 %1974  ;;  %510 = vst.msk [vmem:[#allocation3 + $0x230] sm:$0xff] %vm502_vm5, %v15025_v54  ;;  %v15026_v38 = vld [vmem:[#allocation24_spill] sm:$0xff] }
 0x3fc   : > { %v2057_v33 = vsel %vm455_vm1, %v9903_v3, %v10123_v13  ;;  %511 = vst.msk [vmem:[#allocation3 + $0x238] sm:$0xff] %vm502_vm5, %v15025_v54  ;;  %v2062_v1 = vsel %vm455_vm1, %v9901_v36, %v10144_v4  ;;  %v10440_v36 = vld [vmem:[%s14890_s3] ss:$0 sm:$0xff] }
 0x3fd   : > { %v2089_v8 = vsel %vm994_vm4, %v2057_v33, %v1973_v19  ;;  %514 = vst.msk [vmem:[#allocation3 + $0x27] sm:$0x1] %vm512_vm6, %v15025_v54 }
 0x3fe   : > { %513 = vst.msk [vmem:[#allocation3 + $0x7] sm:$0x1] %vm512_vm6, %v15025_v54 }
 0x3ff   : > { %515 = vst.msk [vmem:[#allocation3 + $0x47] sm:$0x1] %vm512_vm6, %v15025_v54 }
 0x400   : > { %516 = vst.msk [vmem:[#allocation3 + $0x67] sm:$0x1] %vm512_vm6, %v15025_v54 }
 0x401   : > { %517 = vst.msk [vmem:[#allocation3 + $0x87] sm:$0x1] %vm512_vm6, %v15025_v54 }
 0x402   : > { %8046 = vmatmul.msk.f32.gmra.mxu0 %vm1358_vm3, %v1351_v9  ;;  %8092 = vmatmul.msk.f32.gmra.mxu2 %vm1358_vm3, %v2084_v49  ;;  %v10336_v9 = vpop.f32.mrf.mxu0  ;;  %v1971_v49 = vpop.permute.xlu2 %1970  ;;  %518 = vst.msk [vmem:[#allocation3 + $0xa7] sm:$0x1] %vm512_vm6, %v15025_v54 }
 0x403   : > { %v2088_v50 = vsel %vm994_vm4, %v2056_v39, %v1971_v49  ;;  %519 = vst.msk [vmem:[#allocation3 + $0xc7] sm:$0x1] %vm512_vm6, %v15025_v54 }
 0x404   : > { %520 = vst.msk [vmem:[#allocation3 + $0xe7] sm:$0x1] %vm512_vm6, %v15025_v54 }
 0x405   : > { %521 = vst.msk [vmem:[#allocation3 + $0x107] sm:$0x1] %vm512_vm6, %v15025_v54 }
 0x406   : > { %522 = vst.msk [vmem:[#allocation3 + $0x127] sm:$0x1] %vm512_vm6, %v15025_v54 }
 0x407   : > { %523 = vst.msk [vmem:[#allocation3 + $0x147] sm:$0x1] %vm512_vm6, %v15025_v54 }
 0x408   : > { %524 = vst.msk [vmem:[#allocation3 + $0x167] sm:$0x1] %vm512_vm6, %v15025_v54 }
 0x409   : > { %525 = vst.msk [vmem:[#allocation3 + $0x187] sm:$0x1] %vm512_vm6, %v15025_v54 }
 0x40a   : > { %8047 = vmatmul.msk.f32.gmra.mxu0 %vm1358_vm3, %v1352_v62  ;;  %8093 = vmatmul.msk.f32.gmra.mxu2 %vm1358_vm3, %v2085_v30  ;;  %v2058_v62 = vsel %vm455_vm1, %v8819_v18, %v10111_v55  ;;  %v1977_v3 = vpop.permute.xlu2 %1976  ;;  %v2059_v55 = vsel %vm455_vm1, %v9887_v15, %v10125_v61  ;;  %v2060_v15 = vsel %vm455_vm1, %v9918_v21, %v10139_v48  ;;  %v1979_v61 = vpop.permute.xlu0 %1978  ;;  %v8820_v48 = vld [vmem:[#allocation2 + $0xf1] sm:$0xff] }
 0x40b   : > { %v2090_v31 = vsel %vm994_vm4, %v2058_v62, %v1975_v43  ;;  %v2091_v13 = vsel %vm994_vm4, %v2059_v55, %v1977_v3  ;;  %v2092_v30 = vsel %vm994_vm4, %v2060_v15, %v1979_v61  ;;  %v1981_v21 = vpop.permute.xlu1 %1980  ;;  %v2061_v45 = vsel %vm455_vm1, %v8820_v48, %v10129_v44  ;;  %526 = vst.msk [vmem:[#allocation3 + $0x1a7] sm:$0x1] %vm512_vm6, %v15025_v54  ;;  %v10482_v33 = vpop.f32.mrf.mxu0  ;;  %v15029_v61 = vld [vmem:[#allocation27_spill] sm:$0xff] }
 0x40c   : > { %v2093_v47 = vsel %vm994_vm4, %v2061_v45, %v1981_v21  ;;  %527 = vst.msk [vmem:[#allocation3 + $0x1c7] sm:$0x1] %vm512_vm6, %v15025_v54  ;;  %v2066_v21 = vsel %vm455_vm1, %v9950_v0, %v10173_v28 }
 0x40d   : > { %528 = vst.msk [vmem:[#allocation3 + $0x1e7] sm:$0x1] %vm512_vm6, %v15025_v54 }
 0x40e   : > { %529 = vst.msk [vmem:[#allocation3 + $0x207] sm:$0x1] %vm512_vm6, %v15025_v54 }
 0x40f   : > { %530 = vst.msk [vmem:[#allocation3 + $0x227] sm:$0x1] %vm512_vm6, %v15025_v54 }
 0x410   : > { %531 = vst.msk [vmem:[#allocation3 + $0x18] sm:$0x1] %vm512_vm6, %v15025_v54 }
 0x411   : > { %532 = vst.msk [vmem:[#allocation3 + $0x38] sm:$0x1] %vm512_vm6, %v15025_v54 }
 0x412   : > { %8048 = vmatmul.msk.f32.gmra.mxu0 %vm1358_vm3, %v1353_v51  ;;  %8094 = vmatmul.msk.f32.gmra.mxu2 %vm1358_vm3, %v2086_v23  ;;  %v1983_v44 = vpop.permute.xlu2 %1982  ;;  %533 = vst.msk [vmem:[#allocation3 + $0x58] sm:$0x1] %vm512_vm6, %v15025_v54  ;;  %v1689_v51 = vadd.f32 %v15026_v38, %v10231_v16  ;;  %v2063_v23 = vsel %vm455_vm1, %v9933_v5, %v10155_v52  ;;  %v1985_v16 = vpop.permute.xlu0 %1984  ;;  %v15027_v5 = vld [vmem:[#allocation25_spill] sm:$0xff]  ;;  %v15030_v38 = vld [vmem:[#allocation28_spill] sm:$0xff] }
 0x413   : > { %v2094_v46 = vsel %vm994_vm4, %v2062_v1, %v1983_v44  ;;  %534 = vst.msk [vmem:[#allocation3 + $0x78] sm:$0x1] %vm512_vm6, %v15025_v54  ;;  %v2095_v32 = vsel %vm994_vm4, %v2063_v23, %v1985_v16  ;;  %v1692_v52 = vadd.f32 %v15027_v5, %v10249_v7  ;;  %v1987_v26 = vpop.permute.xlu1 %1986  ;;  %v15031_v5 = vld [vmem:[#allocation29_spill] sm:$0xff] }
 0x414   : > { %535 = vst.msk [vmem:[#allocation3 + $0x98] sm:$0x1] %vm512_vm6, %v15025_v54 }
 0x415   : > { %536 = vst.msk [vmem:[#allocation3 + $0xb8] sm:$0x1] %vm512_vm6, %v15025_v54 }
 0x416   : > { %537 = vst.msk [vmem:[#allocation3 + $0xd8] sm:$0x1] %vm512_vm6, %v15025_v54 }
 0x417   : > { %538 = vst.msk [vmem:[#allocation3 + $0xf8] sm:$0x1] %vm512_vm6, %v15025_v54 }
 0x418   : > { %539 = vst.msk [vmem:[#allocation3 + $0x118] sm:$0x1] %vm512_vm6, %v15025_v54 }
 0x419   : > { %540 = vst.msk [vmem:[#allocation3 + $0x138] sm:$0x1] %vm512_vm6, %v15025_v54 }
 0x41a   : > { %8049 = vmatmul.msk.f32.gmra.mxu0 %vm1358_vm3, %v1354_v34  ;;  %8095 = vmatmul.msk.f32.gmra.mxu2 %vm1358_vm3, %v2087_v60  ;;  %541 = vst.msk [vmem:[#allocation3 + $0x158] sm:$0x1] %vm512_vm6, %v15025_v54  ;;  %v8821_v60 = vld [vmem:[#allocation2 + $0x129] sm:$0xff]  ;;  %v1989_v18 = vpop.permute.xlu2 %1988  ;;  %v1991_v45 = vpop.permute.xlu0 %1990 }
 0x41b   : > { %542 = vst.msk [vmem:[#allocation3 + $0x178] sm:$0x1] %vm512_vm6, %v15025_v54  ;;  %v2064_v49 = vsel %vm455_vm1, %v8821_v60, %v10146_v14  ;;  %v2098_v44 = vsel %vm994_vm4, %v2066_v21, %v1991_v45  ;;  %v1993_v28 = vpop.permute.xlu1 %1992  ;;  %v2068_v60 = vsel %vm455_vm1, %v9931_v12, %v10184_v35 }
 0x41c   : > { %543 = vst.msk [vmem:[#allocation3 + $0x198] sm:$0x1] %vm512_vm6, %v15025_v54  ;;  %v2096_v39 = vsel %vm994_vm4, %v2064_v49, %v1987_v26 }
 0x41d   : > { %544 = vst.msk [vmem:[#allocation3 + $0x1b8] sm:$0x1] %vm512_vm6, %v15025_v54 }
 0x41e   : > { %545 = vst.msk [vmem:[#allocation3 + $0x1d8] sm:$0x1] %vm512_vm6, %v15025_v54 }
 0x41f   : > { %546 = vst.msk [vmem:[#allocation3 + $0x1f8] sm:$0x1] %vm512_vm6, %v15025_v54 }
 0x420   : > { %547 = vst.msk [vmem:[#allocation3 + $0x218] sm:$0x1] %vm512_vm6, %v15025_v54 }
 0x421   : > { %548 = vst.msk [vmem:[#allocation3 + $0x238] sm:$0x1] %vm512_vm6, %v15025_v54 }
 0x422   : > { %8096 = vmatmul.msk.f32.gmra.mxu2 %vm1358_vm3, %v2088_v50  ;;  %v1995_v26 = vpop.permute.xlu2 %1994  ;;  %550 = vst.msk [vmem:[#allocation4] sm:$0xff] %vm549_vm7, %v15025_v54 }
 0x423   : > { %551 = vst.msk [vmem:[#allocation4 + $0x8] sm:$0xff] %vm549_vm7, %v15025_v54 }
 0x424   : > { %552 = vst.msk [vmem:[#allocation4 + $0x10] sm:$0xff] %vm549_vm7, %v15025_v54 }
 0x425   : > { %553 = vst.msk [vmem:[#allocation4 + $0x18] sm:$0xff] %vm549_vm7, %v15025_v54 }
 0x426   : > { %555 = vst.msk [vmem:[#allocation4 + $0x220] sm:$0xff] %vm549_vm7, %v15025_v54 }
 0x427   : > { %556 = vst.msk [vmem:[#allocation4 + $0x228] sm:$0xff] %vm549_vm7, %v15025_v54 }
 0x428   : > { %557 = vst.msk [vmem:[#allocation4 + $0x230] sm:$0xff] %vm549_vm7, %v15025_v54 }
 0x429   : > { %558 = vst.msk [vmem:[#allocation4 + $0x238] sm:$0xff] %vm549_vm7, %v15025_v54 }
 0x42a   : > { %8097 = vmatmul.msk.f32.gmra.mxu2 %vm1358_vm3, %v2089_v8  ;;  %v15028_v8 = vld [vmem:[#allocation26_spill] sm:$0xff] }
 0x42b   : > { %v1695_v14 = vadd.f32 %v15028_v8, %v10261_v17  ;;  %v10497_v17 = vpop.f32.mrf.mxu1  ;;  %v15032_v8 = vld [vmem:[#allocation9_spill] sm:$0xff] }
 0x432   : > { %8098 = vmatmul.msk.f32.gmra.mxu2 %vm1358_vm3, %v2090_v31  ;;  %v2065_v31 = vsel %vm455_vm1, %v9916_v27, %v10160_v11  ;;  %v10506_v27 = vpop.f32.mrf.mxu0 }
 0x433   : > { %v2097_v55 = vsel %vm994_vm4, %v2065_v31, %v1989_v18 }
 0x43a   : > { %8099 = vmatmul.msk.f32.gmra.mxu2 %vm1358_vm3, %v2091_v13  ;;  %v10523_v23 = vpop.f32.mrf.mxu0 }
 0x442   : > { %8100 = vmatmul.msk.f32.gmra.mxu2 %vm1358_vm3, %v2092_v30  ;;  %v1698_v30 = vadd.f32 %v15029_v61, %v10277_v24  ;;  %v10514_v24 = vpop.f32.mrf.mxu1  ;;  %v15033_v61 = vld [vmem:[#allocation8_spill] sm:$0xff] }
 0x44a   : > { %8101 = vmatmul.msk.f32.gmra.mxu2 %vm1358_vm3, %v2093_v47 }
 0x452   : > { %8102 = vmatmul.msk.f32.gmra.mxu2 %vm1358_vm3, %v2094_v46 }
 0x455   : > { %v2229_v4 = vpop.f32.mrf.mxu2 }
 0x456   : > { %v2325_v29 = vadd.f32 %v2229_v4, %v1689_v51  ;;  %v1701_v51 = vadd.f32 %v15030_v38, %v10292_v41  ;;  %v1713_v38 = vadd.f32 %v10497_v17, %v10482_v33 }
 0x458   : > { %v2361_v25 = vadd.f32 %v10440_v36, %v2325_v29  ;;  %v8822_v29 = vld [vmem:[#allocation2 + $0x151] sm:$0xff] }
 0x459   : > { %v2067_v16 = vsel %vm455_vm1, %v8822_v29, %v10165_v63  ;;  %v2071_v29 = vsel %vm455_vm1, %v9948_v2, %v10201_v6  ;;  %v2072_v2 = vsel %vm455_vm1, %v9989_v56, %v10199_v59 }
 0x45a   : > { %v2393_v58 = vmax.f32 %v2361_v25, 0.0  ;;  %8103 = vmatmul.msk.f32.gmra.mxu2 %vm1358_vm3, %v2095_v32  ;;  %v2099_v32 = vsel %vm994_vm4, %v2067_v16, %v1993_v28 }
 0x45c   : > { %2426 = vst.msk [vmem:[#allocation3 + $0x28] sm:$0xff] %vm502_vm5, %v2393_v58 }
 0x45d   : > { %v2232_v10 = vpop.f32.mrf.mxu2 }
 0x45e   : > { %v2326_v34 = vadd.f32 %v2232_v10, %v1692_v52  ;;  %v1704_v52 = vadd.f32 %v15031_v5, %v10303_v22  ;;  %v10537_v10 = vpop.f32.mrf.mxu1  ;;  %v2100_v22 = vsel %vm994_vm4, %v2068_v60, %v1995_v26 }
 0x45f   : > { %v1719_v60 = vadd.f32 %v10537_v10, %v10523_v23 }
 0x460   : > { %v2362_v7 = vadd.f32 %v10440_v36, %v2326_v34 }
 0x462   : > { %v2394_v50 = vmax.f32 %v2362_v7, 0.0  ;;  %8104 = vmatmul.msk.f32.gmra.mxu2 %vm1358_vm3, %v2096_v39  ;;  %v10543_v7 = vpop.f32.mrf.mxu0 }
 0x463   : > { %v10484_v19 = vld [vmem:[#allocation3 + $0x27] sm:$0xff] }
 0x464   : > { %2427 = vst.msk [vmem:[#allocation3 + $0x30] sm:$0xff] %vm502_vm5, %v2394_v50  ;;  %2526 = vrot.lane.b32.xlu0 %v10484_v19, %s8898_s16 }
 0x465   : > { %v2235_v43 = vpop.f32.mrf.mxu2 }
 0x466   : > { %v2327_v62 = vadd.f32 %v2235_v43, %v1695_v14  ;;  %v1707_v14 = vadd.f32 %v15032_v8, %v10322_v20  ;;  %v10554_v12 = vpop.f32.mrf.mxu1  ;;  %v2069_v43 = vsel %vm455_vm1, %v9969_v40, %v10190_v57  ;;  %v1999_v57 = vpop.permute.xlu1 %1998 }
 0x468   : > { %v2363_v3 = vadd.f32 %v10440_v36, %v2327_v62  ;;  %v1997_v62 = vpop.permute.xlu0 %1996 }
 0x46a   : > { %v2395_v13 = vmax.f32 %v2363_v3, 0.0  ;;  %8105 = vmatmul.msk.f32.gmra.mxu2 %vm1358_vm3, %v2097_v55  ;;  %v2101_v3 = vsel %vm994_vm4, %v2069_v43, %v1997_v62  ;;  %v10562_v20 = vpop.f32.mrf.mxu0 }
 0x46b   : > { %v10499_v15 = vld [vmem:[#allocation3 + $0x2f] sm:$0xff] }
 0x46c   : > { %2428 = vst.msk [vmem:[#allocation3 + $0x48] sm:$0xff] %vm502_vm5, %v2395_v13  ;;  %2528 = vrot.lane.b32.xlu1 %v10499_v15, %s8898_s16 }
 0x46d   : > { %v2238_v11 = vpop.f32.mrf.mxu2 }
 0x46e   : > { %v2328_v48 = vadd.f32 %v2238_v11, %v1698_v30  ;;  %v1710_v30 = vadd.f32 %v15033_v61, %v10336_v9  ;;  %v10571_v21 = vpop.f32.mrf.mxu1  ;;  %v2005_v59 = vpop.permute.xlu1 %2004 }
 0x470   : > { %v2364_v47 = vadd.f32 %v10440_v36, %v2328_v48  ;;  %v8823_v48 = vld [vmem:[#allocation2 + $0x189] sm:$0xff] }
 0x471   : > { %v2070_v45 = vsel %vm455_vm1, %v8823_v48, %v10188_v37  ;;  %v15035_v48 = vld [vmem:[#allocation7_spill] sm:$0xff] }
 0x472   : > { %v2396_v1 = vmax.f32 %v2364_v47, 0.0  ;;  %8106 = vmatmul.msk.f32.gmra.mxu2 %vm1358_vm3, %v2098_v44  ;;  %v2102_v44 = vsel %vm994_vm4, %v2070_v45, %v1999_v57  ;;  %v1725_v57 = vadd.f32 %v10571_v21, %v10562_v20  ;;  %v15036_v45 = vld [vmem:[#allocation39_spill] sm:$0xff] }
 0x473   : > { %v10516_v46 = vld [vmem:[#allocation3 + $0x47] sm:$0xff] }
 0x474   : > { %2429 = vst.msk [vmem:[#allocation3 + $0x50] sm:$0xff] %vm502_vm5, %v2396_v1  ;;  %2530 = vrot.lane.b32.xlu2 %v10516_v46, %s8898_s16 }
 0x475   : > { %v2241_v0 = vpop.f32.mrf.mxu2 }
 0x476   : > { %v2329_v4 = vadd.f32 %v2241_v0, %v1701_v51  ;;  %v10585_v51 = vpop.f32.mrf.mxu0  ;;  %v2001_v0 = vpop.permute.xlu2 %2000 }
 0x478   : > { %v2365_v25 = vadd.f32 %v10440_v36, %v2329_v4  ;;  %v1727_v4 = vpop.f32.mrf.mxu1 }
 0x479   : > { %v1728_v21 = vadd.f32 %v1727_v4, %v10585_v51 }
 0x47a   : > { %v2397_v58 = vmax.f32 %v2365_v25, 0.0  ;;  %8107 = vmatmul.msk.f32.gmra.mxu2 %vm1358_vm3, %v2099_v32  ;;  %v2103_v25 = vsel %vm994_vm4, %v2071_v29, %v2001_v0  ;;  %v1716_v32 = vadd.f32 %v10514_v24, %v10506_v27 }
 0x47b   : > { %v10530_v41 = vld [vmem:[#allocation3 + $0x4f] sm:$0xff] }
 0x47c   : > { %2430 = vst.msk [vmem:[#allocation3 + $0x68] sm:$0xff] %vm502_vm5, %v2397_v58  ;;  %2532 = vrot.lane.b32.xlu0 %v10530_v41, %s8898_s16 }
 0x47d   : > { %v2244_v63 = vpop.f32.mrf.mxu2 }
 0x47e   : > { %v2330_v34 = vadd.f32 %v2244_v63, %v1704_v52  ;;  %v10603_v5 = vpop.f32.mrf.mxu0  ;;  %v2003_v52 = vpop.permute.xlu0 %2002 }
 0x47f   : > { %v2007_v62 = vpop.permute.xlu2 %2006 }
 0x480   : > { %v2366_v49 = vadd.f32 %v10440_v36, %v2330_v34  ;;  %v1730_v26 = vpop.f32.mrf.mxu1  ;;  %v2104_v34 = vsel %vm994_vm4, %v2072_v2, %v2003_v52 }
 0x481   : > { %v1731_v4 = vadd.f32 %v1730_v26, %v10603_v5 }
 0x482   : > { %v2398_v39 = vmax.f32 %v2366_v49, 0.0  ;;  %8108 = vmatmul.msk.f32.gmra.mxu2 %vm1358_vm3, %v2100_v22  ;;  %v8824_v22 = vld [vmem:[#allocation2 + $0x1b1] sm:$0xff] }
 0x483   : > { %v10547_v50 = vld [vmem:[#allocation3 + $0x67] sm:$0xff] }
 0x484   : > { %2431 = vst.msk [vmem:[#allocation3 + $0x70] sm:$0xff] %vm502_vm5, %v2398_v39  ;;  %2534 = vrot.lane.b32.xlu1 %v10547_v50, %s8898_s16  ;;  %v2073_v39 = vsel %vm455_vm1, %v8824_v22, %v10205_v53 }
 0x485   : > { %v2247_v35 = vpop.f32.mrf.mxu2 }
 0x486   : > { %v2331_v18 = vadd.f32 %v2247_v35, %v1707_v14  ;;  %v1521_v14 = vpop.f32.mrf.mxu0  ;;  %v2105_v35 = vsel %vm994_vm4, %v2073_v39, %v2005_v59  ;;  %v15038_v59 = vld [vmem:[#allocation13_spill] sm:$0xff] }
 0x488   : > { %v2367_v31 = vadd.f32 %v10440_v36, %v2331_v18  ;;  %v1733_v23 = vpop.f32.mrf.mxu1  ;;  %v1722_v18 = vadd.f32 %v10554_v12, %v10543_v7 }
 0x489   : > { %v1734_v26 = vadd.f32 %v1733_v23, %v1521_v14 }
 0x48a   : > { %v2399_v55 = vmax.f32 %v2367_v31, 0.0  ;;  %8109 = vmatmul.msk.f32.gmra.mxu2 %vm1358_vm3, %v2101_v3  ;;  %v15034_v3 = vld [vmem:[#allocation12_spill] sm:$0xff] }
 0x48b   : > { %v10564_v13 = vld [vmem:[#allocation3 + $0x6f] sm:$0xff] }
 0x48c   : > { %2432 = vst.msk [vmem:[#allocation3 + $0x88] sm:$0xff] %vm502_vm5, %v2399_v55  ;;  %2536 = vrot.lane.b32.xlu2 %v10564_v13, %s8898_s16  ;;  %v2074_v55 = vsel %vm455_vm1, %v15034_v3, %v10216_v42 }
 0x48d   : > { %v2250_v40 = vpop.f32.mrf.mxu2 }
 0x48e   : > { %v2332_v11 = vadd.f32 %v2250_v40, %v1710_v30  ;;  %v2106_v30 = vsel %vm994_vm4, %v2074_v55, %v2007_v62  ;;  %v1524_v7 = vpop.f32.mrf.mxu0 }
 0x490   : > { %v2368_v47 = vadd.f32 %v10440_v36, %v2332_v11  ;;  %v1736_v11 = vpop.f32.mrf.mxu1 }
 0x492   : > { %v2400_v1 = vmax.f32 %v2368_v47, 0.0  ;;  %8110 = vmatmul.msk.f32.gmra.mxu2 %vm1358_vm3, %v2102_v44  ;;  %v2075_v47 = vsel %vm455_vm1, %v15036_v45, %v15035_v48 }
 0x493   : > { %v10578_v9 = vld [vmem:[#allocation3 + $0x87] sm:$0xff] }
 0x494   : > { %2433 = vst.msk [vmem:[#allocation3 + $0x90] sm:$0xff] %vm502_vm5, %v2400_v1  ;;  %2538 = vrot.lane.b32.xlu0 %v10578_v9, %s8898_s16  ;;  %v2009_v1 = vpop.permute.xlu0 %2008 }
 0x495   : > { %v2253_v37 = vpop.f32.mrf.mxu2 }
 0x496   : > { %v2333_v28 = vadd.f32 %v2253_v37, %v1713_v38  ;;  %v2107_v37 = vsel %vm994_vm4, %v2075_v47, %v2009_v1 }
 0x498   : > { %v2369_v16 = vadd.f32 %v10440_v36, %v2333_v28  ;;  %v1527_v28 = vpop.f32.mrf.mxu0 }
 0x49a   : > { %v2401_v33 = vmax.f32 %v2369_v16, 0.0  ;;  %8111 = vmatmul.msk.f32.gmra.mxu2 %vm1358_vm3, %v2103_v25  ;;  %v2011_v16 = vpop.permute.xlu1 %2010 }
 0x49b   : > { %v10593_v17 = vld [vmem:[#allocation3 + $0x8f] sm:$0xff] }
 0x49c   : > { %2434 = vst.msk [vmem:[#allocation3 + $0xa8] sm:$0xff] %vm502_vm5, %v2401_v33  ;;  %2540 = vrot.lane.b32.xlu1 %v10593_v17, %s8898_s16  ;;  %v1739_v33 = vpop.f32.mrf.mxu1 }
 0x49d   : > { %v2256_v58 = vpop.f32.mrf.mxu2  ;;  %v1740_v45 = vadd.f32 %v1739_v33, %v1527_v28 }
 0x49e   : > { %v2334_v6 = vadd.f32 %v2256_v58, %v1716_v32  ;;  %v8825_v32 = vld [vmem:[#allocation2 + $0x1e9] sm:$0xff]  ;;  %v15037_v58 = vld [vmem:[#allocation16_spill] sm:$0xff] }
 0x49f   : > { %v2076_v2 = vsel %vm455_vm1, %v8825_v32, %v15037_v58 }
 0x4a0   : > { %v2370_v63 = vadd.f32 %v10440_v36, %v2334_v6  ;;  %v2108_v52 = vsel %vm994_vm4, %v2076_v2, %v2011_v16 }
 0x4a2   : > { %v2402_v27 = vmax.f32 %v2370_v63, 0.0  ;;  %8112 = vmatmul.msk.f32.gmra.mxu2 %vm1358_vm3, %v2104_v34 }
 0x4a3   : > { %v10608_v24 = vld [vmem:[#allocation3 + $0xa7] sm:$0xff] }
 0x4a4   : > { %2435 = vst.msk [vmem:[#allocation3 + $0xb0] sm:$0xff] %vm502_vm5, %v2402_v27  ;;  %2542 = vrot.lane.b32.xlu2 %v10608_v24, %s8898_s16  ;;  %v2013_v27 = vpop.permute.xlu2 %2012 }
 0x4a5   : > { %v2259_v56 = vpop.f32.mrf.mxu2 }
 0x4a6   : > { %v2335_v49 = vadd.f32 %v2259_v56, %v1719_v60  ;;  %v1530_v56 = vpop.f32.mrf.mxu0 }
 0x4a8   : > { %v2371_v8 = vadd.f32 %v10440_v36, %v2335_v49  ;;  %v15039_v49 = vld [vmem:[#allocation37_spill] sm:$0xff] }
 0x4a9   : > { %v2077_v22 = vsel %vm455_vm1, %v15039_v49, %v15038_v59 }
 0x4aa   : > { %v2403_v43 = vmax.f32 %v2371_v8, 0.0  ;;  %8113 = vmatmul.msk.f32.gmra.mxu2 %vm1358_vm3, %v2105_v35  ;;  %v1742_v8 = vpop.f32.mrf.mxu1  ;;  %v2109_v35 = vsel %vm994_vm4, %v2077_v22, %v2013_v27 }
 0x4ab   : > { %v10620_v10 = vld [vmem:[#allocation3 + $0xaf] sm:$0xff] }
 0x4ac   : > { %2436 = vst.msk [vmem:[#allocation3 + $0xc8] sm:$0xff] %vm502_vm5, %v2403_v43  ;;  %2544 = vrot.lane.b32.xlu0 %v10620_v10, %s8898_s16 }
 0x4ad   : > { %v2262_v53 = vpop.f32.mrf.mxu2 }
 0x4ae   : > { %v2336_v31 = vadd.f32 %v2262_v53, %v1722_v18 }
 0x4b0   : > { %v2372_v61 = vadd.f32 %v10440_v36, %v2336_v31  ;;  %v1533_v31 = vpop.f32.mrf.mxu0 }
 0x4b2   : > { %v2404_v40 = vmax.f32 %v2372_v61, 0.0  ;;  %8114 = vmatmul.msk.f32.gmra.mxu2 %vm1358_vm3, %v2106_v30  ;;  %v1745_v55 = vpop.f32.mrf.mxu1  ;;  %v1737_v30 = vadd.f32 %v1736_v11, %v1524_v7 }
 0x4b3   : > { %v10633_v12 = vld [vmem:[#allocation3 + $0xc7] sm:$0xff]  ;;  %v1746_v32 = vadd.f32 %v1745_v55, %v1533_v31 }
 0x4b4   : > { %2437 = vst.msk [vmem:[#allocation3 + $0xd0] sm:$0xff] %vm502_vm5, %v2404_v40  ;;  %2546 = vrot.lane.b32.xlu1 %v10633_v12, %s8898_s16 }
 0x4b5   : > { %v2265_v42 = vpop.f32.mrf.mxu2 }
 0x4b6   : > { %v2337_v44 = vadd.f32 %v2265_v42, %v1725_v57 }
 0x4b8   : > { %v2373_v38 = vadd.f32 %v10440_v36, %v2337_v44  ;;  %v1536_v42 = vpop.f32.mrf.mxu0 }
 0x4ba   : > { %v2405_v0 = vmax.f32 %v2373_v38, 0.0  ;;  %8115 = vmatmul.msk.f32.gmra.mxu2 %vm1358_vm3, %v2107_v37  ;;  %v1748_v7 = vpop.f32.mrf.mxu1  ;;  %v1743_v37 = vadd.f32 %v1742_v8, %v1530_v56 }
 0x4bb   : > { %v10646_v20 = vld [vmem:[#allocation3 + $0xcf] sm:$0xff]  ;;  %v1749_v27 = vadd.f32 %v1748_v7, %v1536_v42 }
 0x4bc   : > { %2438 = vst.msk [vmem:[#allocation3 + $0xe8] sm:$0xff] %vm502_vm5, %v2405_v0  ;;  %2548 = vrot.lane.b32.xlu2 %v10646_v20, %s8898_s16 }
 0x4bd   : > { %v2268_v29 = vpop.f32.mrf.mxu2 }
 0x4be   : > { %v2338_v25 = vadd.f32 %v2268_v29, %v1728_v21 }
 0x4c0   : > { %v2374_v6 = vadd.f32 %v10440_v36, %v2338_v25  ;;  %v1539_v0 = vpop.f32.mrf.mxu0 }
 0x4c2   : > { %v2406_v63 = vmax.f32 %v2374_v6, 0.0  ;;  %8116 = vmatmul.msk.f32.gmra.mxu2 %vm1358_vm3, %v2108_v52  ;;  %v1751_v29 = vpop.f32.mrf.mxu1 }
 0x4c3   : > { %v10657_v51 = vld [vmem:[#allocation3 + $0xe7] sm:$0xff] }
 0x4c4   : > { %2439 = vst.msk [vmem:[#allocation3 + $0xf0] sm:$0xff] %vm502_vm5, %v2406_v63  ;;  %2550 = vrot.lane.b32.xlu0 %v10657_v51, %s8898_s16 }
 0x4c5   : > { %v2271_v34 = vpop.f32.mrf.mxu2 }
 0x4c6   : > { %v2339_v60 = vadd.f32 %v2271_v34, %v1731_v4 }
 0x4c8   : > { %v2375_v39 = vadd.f32 %v10440_v36, %v2339_v60  ;;  %v1542_v6 = vpop.f32.mrf.mxu0 }
 0x4ca   : > { %v2407_v43 = vmax.f32 %v2375_v39, 0.0  ;;  %8117 = vmatmul.msk.f32.gmra.mxu2 %vm1358_vm3, %v2109_v35  ;;  %v1754_v63 = vpop.f32.mrf.mxu1  ;;  %v1752_v35 = vadd.f32 %v1751_v29, %v1539_v0 }
 0x4cb   : > { %v10669_v5 = vld [vmem:[#allocation3 + $0xef] sm:$0xff] }
 0x4cc   : > { %2440 = vst.msk [vmem:[#allocation3 + $0x108] sm:$0xff] %vm502_vm5, %v2407_v43  ;;  %2552 = vrot.lane.b32.xlu1 %v10669_v5, %s8898_s16 }
 0x4cd   : > { %v2274_v18 = vpop.f32.mrf.mxu2 }
 0x4ce   : > { %v2340_v53 = vadd.f32 %v2274_v18, %v1734_v26 }
 0x4d0   : > { %v2376_v62 = vadd.f32 %v10440_v36, %v2340_v53  ;;  %v1545_v49 = vpop.f32.mrf.mxu0 }
 0x4d2   : > { %v2408_v3 = vmax.f32 %v2376_v62, 0.0  ;;  %v1757_v39 = vpop.f32.mrf.mxu1 }
 0x4d3   : > { %v10675_v61 = vld [vmem:[#allocation3 + $0x107] sm:$0xff]  ;;  %v1758_v42 = vadd.f32 %v1757_v39, %v1545_v49 }
 0x4d4   : > { %2441 = vst.msk [vmem:[#allocation3 + $0x110] sm:$0xff] %vm502_vm5, %v2408_v3  ;;  %2554 = vrot.lane.b32.xlu2 %v10675_v61, %s8898_s16  ;;  %v1755_v3 = vadd.f32 %v1754_v63, %v1542_v6 }
 0x4d5   : > { %v2277_v14 = vpop.f32.mrf.mxu2 }
 0x4d6   : > { %v2341_v23 = vadd.f32 %v2277_v14, %v1737_v30 }
 0x4d8   : > { %v2377_v40 = vadd.f32 %v10440_v36, %v2341_v23  ;;  %v1548_v62 = vpop.f32.mrf.mxu0 }
 0x4da   : > { %v2409_v57 = vmax.f32 %v2377_v40, 0.0  ;;  %v1760_v55 = vpop.f32.mrf.mxu1 }
 0x4db   : > { %v10681_v48 = vld [vmem:[#allocation3 + $0x10f] sm:$0xff]  ;;  %v1761_v0 = vadd.f32 %v1760_v55, %v1548_v62 }
 0x4dc   : > { %2442 = vst.msk [vmem:[#allocation3 + $0x128] sm:$0xff] %vm502_vm5, %v2409_v57  ;;  %2556 = vrot.lane.b32.xlu0 %v10681_v48, %s8898_s16 }
 0x4dd   : > { %v2280_v11 = vpop.f32.mrf.mxu2 }
 0x4de   : > { %v2342_v47 = vadd.f32 %v2280_v11, %v1740_v45 }
 0x4e0   : > { %v2378_v44 = vadd.f32 %v10440_v36, %v2342_v47  ;;  %v1551_v45 = vpop.f32.mrf.mxu0 }
 0x4e2   : > { %v2410_v1 = vmax.f32 %v2378_v44, 0.0  ;;  %v1763_v47 = vpop.f32.mrf.mxu1 }
 0x4e3   : > { %v10687_v38 = vld [vmem:[#allocation3 + $0x127] sm:$0xff] }
 0x4e4   : > { %2443 = vst.msk [vmem:[#allocation3 + $0x130] sm:$0xff] %vm502_vm5, %v2410_v1  ;;  %2558 = vrot.lane.b32.xlu1 %v10687_v38, %s8898_s16 }
 0x4e5   : > { %v2283_v21 = vpop.f32.mrf.mxu2 }
 0x4e6   : > { %v2343_v28 = vadd.f32 %v2283_v21, %v1743_v37 }
 0x4e8   : > { %v2379_v16 = vadd.f32 %v10440_v36, %v2343_v28  ;;  %v1554_v29 = vpop.f32.mrf.mxu0 }
 0x4ea   : > { %v2411_v25 = vmax.f32 %v2379_v16, 0.0 }
 0x4eb   : > { %v10693_v33 = vld [vmem:[#allocation3 + $0x12f] sm:$0xff] }
 0x4ec   : > { %2444 = vst.msk [vmem:[#allocation3 + $0x148] sm:$0xff] %vm502_vm5, %v2411_v25  ;;  %2560 = vrot.lane.b32.xlu2 %v10693_v33, %s8898_s16  ;;  %v1766_v25 = vpop.f32.mrf.mxu1 }
 0x4ed   : > { %v2286_v58 = vpop.f32.mrf.mxu2 }
 0x4ee   : > { %v2344_v2 = vadd.f32 %v2286_v58, %v1746_v32 }
 0x4f0   : > { %v2380_v52 = vadd.f32 %v10440_v36, %v2344_v2  ;;  %v1764_v2 = vadd.f32 %v1763_v47, %v1551_v45 }
 0x4f2   : > { %v2412_v4 = vmax.f32 %v2380_v52, 0.0 }
 0x4f3   : > { %v10699_v34 = vld [vmem:[#allocation3 + $0x147] sm:$0xff] }
 0x4f4   : > { %2445 = vst.msk [vmem:[#allocation3 + $0x150] sm:$0xff] %vm502_vm5, %v2412_v4  ;;  %2562 = vrot.lane.b32.xlu0 %v10699_v34, %s8898_s16  ;;  %v1557_v4 = vpop.f32.mrf.mxu0 }
 0x4f5   : > { %v2289_v60 = vpop.f32.mrf.mxu2 }
 0x4f6   : > { %v2345_v56 = vadd.f32 %v2289_v60, %v1749_v27  ;;  %v1769_v60 = vpop.f32.mrf.mxu1 }
 0x4f8   : > { %v2381_v59 = vadd.f32 %v10440_v36, %v2345_v56 }
 0x4fa   : > { %v2413_v22 = vmax.f32 %v2381_v59, 0.0  ;;  %v1767_v59 = vadd.f32 %v1766_v25, %v1554_v29 }
 0x4fb   : > { %v10705_v8 = vld [vmem:[#allocation3 + $0x14f] sm:$0xff] }
 0x4fc   : > { %2446 = vst.msk [vmem:[#allocation3 + $0x168] sm:$0xff] %vm502_vm5, %v2413_v22  ;;  %2564 = vrot.lane.b32.xlu1 %v10705_v8, %s8898_s16 }
 0x4fd   : > { %v2292_v43 = vpop.f32.mrf.mxu2 }
 0x4fe   : > { %v2346_v26 = vadd.f32 %v2292_v43, %v1752_v35  ;;  %v1560_v43 = vpop.f32.mrf.mxu0 }
 0x500   : > { %v2382_v18 = vadd.f32 %v10440_v36, %v2346_v26 }
 0x502   : > { %v2414_v53 = vmax.f32 %v2382_v18, 0.0  ;;  %v1770_v18 = vadd.f32 %v1769_v60, %v1557_v4 }
 0x503   : > { %v10711_v31 = vld [vmem:[#allocation3 + $0x167] sm:$0xff] }
 0x504   : > { %2447 = vst.msk [vmem:[#allocation3 + $0x170] sm:$0xff] %vm502_vm5, %v2414_v53  ;;  %2566 = vrot.lane.b32.xlu2 %v10711_v31, %s8898_s16  ;;  %v1772_v53 = vpop.f32.mrf.mxu1 }
 0x505   : > { %v2295_v30 = vpop.f32.mrf.mxu2 }
 0x506   : > { %v2347_v14 = vadd.f32 %v2295_v30, %v1755_v3 }
 0x508   : > { %v2383_v23 = vadd.f32 %v10440_v36, %v2347_v14 }
 0x50a   : > { %v2415_v40 = vmax.f32 %v2383_v23, 0.0  ;;  %v1773_v23 = vadd.f32 %v1772_v53, %v1560_v43 }
 0x50b   : > { %v10717_v57 = vld [vmem:[#allocation3 + $0x16f] sm:$0xff] }
 0x50c   : > { %2448 = vst.msk [vmem:[#allocation3 + $0x188] sm:$0xff] %vm502_vm5, %v2415_v40  ;;  %2568 = vrot.lane.b32.xlu0 %v10717_v57, %s8898_s16  ;;  %v1563_v40 = vpop.f32.mrf.mxu0 }
 0x50d   : > { %v2298_v7 = vpop.f32.mrf.mxu2 }
 0x50e   : > { %v2348_v11 = vadd.f32 %v2298_v7, %v1758_v42  ;;  %v1775_v7 = vpop.f32.mrf.mxu1 }
 0x510   : > { %v2384_v44 = vadd.f32 %v10440_v36, %v2348_v11 }
 0x512   : > { %v2416_v1 = vmax.f32 %v2384_v44, 0.0 }
 0x513   : > { %v10723_v37 = vld [vmem:[#allocation3 + $0x187] sm:$0xff] }
 0x514   : > { %2449 = vst.msk [vmem:[#allocation3 + $0x190] sm:$0xff] %vm502_vm5, %v2416_v1  ;;  %2570 = vrot.lane.b32.xlu1 %v10723_v37, %s8898_s16  ;;  %v1776_v1 = vadd.f32 %v1775_v7, %v1563_v40 }
 0x515   : > { %v2301_v21 = vpop.f32.mrf.mxu2 }
 0x516   : > { %v2349_v28 = vadd.f32 %v2301_v21, %v1761_v0 }
 0x518   : > { %v2385_v16 = vadd.f32 %v10440_v36, %v2349_v28  ;;  %v1566_v28 = vpop.f32.mrf.mxu0 }
 0x51a   : > { %v2417_v32 = vmax.f32 %v2385_v16, 0.0  ;;  %v1778_v16 = vpop.f32.mrf.mxu1 }
 0x51b   : > { %v10729_v58 = vld [vmem:[#allocation3 + $0x18f] sm:$0xff] }
 0x51c   : > { %2450 = vst.msk [vmem:[#allocation3 + $0x1a8] sm:$0xff] %vm502_vm5, %v2417_v32  ;;  %2572 = vrot.lane.b32.xlu2 %v10729_v58, %s8898_s16 }
 0x51d   : > { %v2304_v6 = vpop.f32.mrf.mxu2 }
 0x51e   : > { %v2350_v52 = vadd.f32 %v2304_v6, %v1764_v2  ;;  %v1779_v2 = vadd.f32 %v1778_v16, %v1566_v28  ;;  %v2785_v16 = vld [vmem:[%s14891_s4 + $0x8] sm:$0xff] }
 0x520   : > { %v2386_v63 = vadd.f32 %v10440_v36, %v2350_v52  ;;  %v1569_v4 = vpop.f32.mrf.mxu0 }
 0x522   : > { %v2418_v27 = vmax.f32 %v2386_v63, 0.0  ;;  %v1781_v60 = vpop.f32.mrf.mxu1 }
 0x523   : > { %v10735_v56 = vld [vmem:[#allocation3 + $0x1a7] sm:$0xff] }
 0x524   : > { %2451 = vst.msk [vmem:[#allocation3 + $0x1b0] sm:$0xff] %vm502_vm5, %v2418_v27  ;;  %2574 = vrot.lane.b32.xlu0 %v10735_v56, %s8898_s16 }
 0x525   : > { %v2307_v49 = vpop.f32.mrf.mxu2 }
 0x526   : > { %v2351_v22 = vadd.f32 %v2307_v49, %v1767_v59  ;;  %v1782_v49 = vadd.f32 %v1781_v60, %v1569_v4  ;;  %v2492_v4 = vld [vmem:[#allocation3 + $0x227] sm:$0xff]  ;;  %v2493_v60 = vld [vmem:[#allocation3 + $0x22f] sm:$0xff] }
 0x528   : > { %v2387_v39 = vadd.f32 %v10440_v36, %v2351_v22 }
 0x52a   : > { %v2419_v35 = vmax.f32 %v2387_v39, 0.0 }
 0x52b   : > { %v10741_v26 = vld [vmem:[#allocation3 + $0x1af] sm:$0xff] }
 0x52c   : > { %2452 = vst.msk [vmem:[#allocation3 + $0x1c8] sm:$0xff] %vm502_vm5, %v2419_v35  ;;  %2576 = vrot.lane.b32.xlu1 %v10741_v26, %s8898_s16 }
 0x52d   : > { %v2310_v62 = vpop.f32.mrf.mxu2 }
 0x52e   : > { %v2352_v3 = vadd.f32 %v2310_v62, %v1770_v18  ;;  %v2795_v62 = vld [vmem:[%s14891_s4 + $0x58] sm:$0xff] }
 0x52f   : > { %3445 = vmatpush.msrb.mxu0 %v2795_v62  ;;  %v10966_v62 = vld [vmem:[#allocation3 + $0x48] sm:$0xff] }
 0x530   : > { %v2388_v55 = vadd.f32 %v10440_v36, %v2352_v3  ;;  %v8205_v3 = vld [vmem:[%s14891_s4 + $0x118] sm:$0xff] }
 0x531   : > { %3993 = vmatpush.msrb.mxu1 %v8205_v3 }
 0x532   : > { %v2420_v30 = vmax.f32 %v2388_v55, 0.0 }
 0x533   : > { %v10747_v14 = vld [vmem:[#allocation3 + $0x1c7] sm:$0xff] }
 0x534   : > { %2453 = vst.msk [vmem:[#allocation3 + $0x1d0] sm:$0xff] %vm502_vm5, %v2420_v30  ;;  %2578 = vrot.lane.b32.xlu2 %v10747_v14, %s8898_s16 }
 0x535   : > { %v2313_v42 = vpop.f32.mrf.mxu2 }
 0x536   : > { %v2353_v45 = vadd.f32 %v2313_v42, %v1773_v23  ;;  %v10819_v23 = vpop.permute.xlu0 %2526  ;;  %v8204_v42 = vld [vmem:[%s14891_s4 + $0x110] sm:$0xff] }
 0x537   : > { %3994 = vmatpush.msrb.mxu1 %v8204_v42  ;;  %v8201_v42 = vld [vmem:[%s14891_s4 + $0xf8] sm:$0xff] }
 0x538   : > { %v2389_v11 = vadd.f32 %v10440_v36, %v2353_v45 }
 0x53a   : > { %v2421_v47 = vmax.f32 %v2389_v11, 0.0  ;;  %v10839_v11 = vpop.permute.xlu1 %2528 }
 0x53b   : > { %v10753_v44 = vld [vmem:[#allocation3 + $0x1cf] sm:$0xff] }
 0x53c   : > { %2454 = vst.msk [vmem:[#allocation3 + $0x1e8] sm:$0xff] %vm502_vm5, %v2421_v47  ;;  %2580 = vrot.lane.b32.xlu0 %v10753_v44, %s8898_s16  ;;  %v2790_v47 = vld [vmem:[%s14891_s4 + $0x30] sm:$0xff] }
 0x53d   : > { %v2316_v0 = vpop.f32.mrf.mxu2 }
 0x53e   : > { %v2354_v21 = vadd.f32 %v2316_v0, %v1776_v1  ;;  %v10835_v45 = vpop.permute.xlu0 %2532  ;;  %v2789_v1 = vld [vmem:[%s14891_s4 + $0x28] sm:$0xff] }
 0x540   : > { %v2390_v29 = vadd.f32 %v10440_v36, %v2354_v21 }
 0x542   : > { %v2422_v25 = vmax.f32 %v2390_v29, 0.0  ;;  %v10863_v28 = vpop.permute.xlu1 %2534  ;;  %v2786_v29 = vld [vmem:[%s14891_s4 + $0x10] sm:$0xff] }
 0x543   : > { %v10759_v32 = vld [vmem:[#allocation3 + $0x1e7] sm:$0xff] }
 0x544   : > { %2455 = vst.msk [vmem:[#allocation3 + $0x1f0] sm:$0xff] %vm502_vm5, %v2422_v25  ;;  %2582 = vrot.lane.b32.xlu1 %v10759_v32, %s8898_s16 }
 0x545   : > { %v2319_v6 = vpop.f32.mrf.mxu2 }
 0x546   : > { %v2355_v52 = vadd.f32 %v2319_v6, %v1779_v2  ;;  %v10859_v0 = vpop.permute.xlu0 %2538 }
 0x548   : > { %v2391_v63 = vadd.f32 %v10440_v36, %v2355_v52 }
 0x54a   : > { %v2423_v27 = vmax.f32 %v2391_v63, 0.0  ;;  %v8202_v63 = vld [vmem:[%s14891_s4 + $0x100] sm:$0xff] }
 0x54b   : > { %v10765_v59 = vld [vmem:[#allocation3 + $0x1ef] sm:$0xff] }
 0x54c   : > { %2456 = vst.msk [vmem:[#allocation3 + $0x208] sm:$0xff] %vm502_vm5, %v2423_v27  ;;  %2584 = vrot.lane.b32.xlu2 %v10765_v59, %s8898_s16 }
 0x54d   : > { %v2322_v22 = vpop.f32.mrf.mxu2 }
 0x54e   : > { %v2356_v39 = vadd.f32 %v2322_v22, %v1782_v49  ;;  %v10886_v25 = vpop.permute.xlu0 %2544  ;;  %v10949_v49 = vld [vmem:[#allocation3 + $0x30] sm:$0xff] }
 0x54f   : > { %15043 = vst [vmem:[#allocation6_spill] sm:$0xff] %v10949_v49 }
 0x550   : > { %v2392_v35 = vadd.f32 %v10440_v36, %v2356_v39  ;;  %v10786_v36 = vpop.permute.xlu2 %2530 }
 0x552   : > { %v2424_v43 = vmax.f32 %v2392_v35, 0.0 }
 0x553   : > { %v10771_v18 = vld [vmem:[#allocation3 + $0x207] sm:$0xff] }
 0x554   : > { %2457 = vst.msk [vmem:[#allocation3 + $0x210] sm:$0xff] %vm502_vm5, %v2424_v43  ;;  %2624 = vrot.lane.b32.xlu2 %v10516_v46, %s8899_s17  ;;  %2586 = vrot.lane.b32.xlu0 %v10771_v18, %s8898_s16 }
 0x558   : > { %v10800_v55 = vpop.permute.xlu2 %2536 }
 0x55b   : > { %v10778_v53 = vld [vmem:[#allocation3 + $0x20f] sm:$0xff] }
 0x55c   : > { %2630 = vrot.lane.b32.xlu2 %v10564_v13, %s8899_s17  ;;  %2626 = vrot.lane.b32.xlu0 %v10530_v41, %s8899_s17 }
 0x55d   : > { %2588 = vrot.lane.b32.xlu1 %v10778_v53, %s8898_s16 }
 0x560   : > { %v10808_v30 = vpop.permute.xlu2 %2542 }
 0x564   : > { %2636 = vrot.lane.b32.xlu2 %v10608_v24, %s8899_s17  ;;  %2632 = vrot.lane.b32.xlu0 %v10578_v9, %s8899_s17 }
 0x565   : > { %2628 = vrot.lane.b32.xlu1 %v10547_v50, %s8899_s17 }
 0x568   : > { %v10821_v40 = vpop.permute.xlu2 %2548 }
 0x56c   : > { %2642 = vrot.lane.b32.xlu2 %v10646_v20, %s8899_s17  ;;  %2638 = vrot.lane.b32.xlu0 %v10620_v10, %s8899_s17  ;;  %v2794_v20 = vld [vmem:[%s14891_s4 + $0x50] sm:$0xff] }
 0x56d   : > { %2634 = vrot.lane.b32.xlu1 %v10593_v17, %s8899_s17  ;;  %3446 = vmatpush.msrb.mxu0 %v2794_v20 }
 0x570   : > { %v10837_v7 = vpop.permute.xlu2 %2554 }
 0x574   : > { %2648 = vrot.lane.b32.xlu2 %v10675_v61, %s8899_s17  ;;  %2644 = vrot.lane.b32.xlu0 %v10657_v51, %s8899_s17 }
 0x575   : > { %2640 = vrot.lane.b32.xlu1 %v10633_v12, %s8899_s17  ;;  %v2793_v12 = vld [vmem:[%s14891_s4 + $0x48] sm:$0xff] }
 0x576   : > { %3447 = vmatpush.msrb.mxu0 %v2793_v12  ;;  %v10983_v12 = vld [vmem:[#allocation3 + $0x90] sm:$0xff] }
 0x578   : > { %v10861_v21 = vpop.permute.xlu2 %2560 }
 0x57c   : > { %2654 = vrot.lane.b32.xlu2 %v10693_v33, %s8899_s17  ;;  %2650 = vrot.lane.b32.xlu0 %v10681_v48, %s8899_s17  ;;  %v2792_v33 = vld [vmem:[%s14891_s4 + $0x40] sm:$0xff]  ;;  %v2791_v48 = vld [vmem:[%s14891_s4 + $0x38] sm:$0xff] }
 0x57d   : > { %2646 = vrot.lane.b32.xlu1 %v10669_v5, %s8899_s17  ;;  %3448 = vmatpush.msrb.mxu0 %v2792_v33  ;;  %v10985_v33 = vld [vmem:[#allocation3 + $0x70] sm:$0xff] }
 0x57e   : > { %15045 = vst [vmem:[#allocation20_spill] sm:$0xff] %v10985_v33 }
 0x57f   : > { %3449 = vmatpush.msrb.mxu0 %v2791_v48  ;;  %v10991_v48 = vld [vmem:[#allocation3 + $0x50] sm:$0xff] }
 0x580   : > { %v10888_v2 = vpop.permute.xlu2 %2566 }
 0x581   : > { %3450 = vmatpush.msrb.mxu0 %v2790_v47 }
 0x583   : > { %3451 = vmatpush.msrb.mxu0 %v2789_v1 }
 0x584   : > { %2660 = vrot.lane.b32.xlu2 %v10711_v31, %s8899_s17  ;;  %2656 = vrot.lane.b32.xlu0 %v10699_v34, %s8899_s17  ;;  %v2788_v31 = vld [vmem:[%s14891_s4 + $0x20] sm:$0xff]  ;;  %v8203_v34 = vld [vmem:[%s14891_s4 + $0x108] sm:$0xff] }
 0x585   : > { %2652 = vrot.lane.b32.xlu1 %v10687_v38, %s8899_s17  ;;  %v2787_v38 = vld [vmem:[%s14891_s4 + $0x18] sm:$0xff]  ;;  %3452 = vmatpush.msrb.mxu0 %v2788_v31 }
 0x586   : > { %3995 = vmatpush.msrb.mxu1 %v8203_v34  ;;  %v11003_v34 = vld [vmem:[#allocation3 + $0xa8] sm:$0xff] }
 0x587   : > { %3453 = vmatpush.msrb.mxu0 %v2787_v38  ;;  %v11001_v38 = vld [vmem:[#allocation3 + $0xc8] sm:$0xff] }
 0x588   : > { %v10919_v6 = vpop.permute.xlu2 %2572  ;;  %3996 = vmatpush.msrb.mxu1 %v8202_v63 }
 0x589   : > { %3454 = vmatpush.msrb.mxu0 %v2786_v29  ;;  %15040 = vst [vmem:[#allocation14_spill] sm:$0xff] %v10919_v6  ;;  %v11009_v29 = vld [vmem:[#allocation3 + $0x88] sm:$0xff] }
 0x58a   : > { %3997 = vmatpush.msrb.mxu1 %v8201_v42  ;;  %v11086_v6 = vld [vmem:[#allocation3 + $0x188] sm:$0xff] }
 0x58b   : > { %3455 = vmatpush.msrb.mxu0 %v2785_v16  ;;  %15052 = vst [vmem:[#allocation34_spill] sm:$0xff] %v11086_v6 }
 0x58c   : > { %2666 = vrot.lane.b32.xlu2 %v10729_v58, %s8899_s17  ;;  %2662 = vrot.lane.b32.xlu0 %v10717_v57, %s8899_s17  ;;  %v10892_v58 = vpop.permute.xlu1 %2540  ;;  %v10917_v57 = vpop.permute.xlu0 %2550 }
 0x58d   : > { %2658 = vrot.lane.b32.xlu1 %v10705_v8, %s8899_s17  ;;  %v2784_v8 = vld [vmem:[%s14891_s4] sm:$0xff] }
 0x58e   : > { %3456 = vmatpush.msrb.mxu0 %v2784_v8 }
 0x594   : > { %2672 = vrot.lane.b32.xlu2 %v10747_v14, %s8899_s17  ;;  %2668 = vrot.lane.b32.xlu0 %v10735_v56, %s8899_s17  ;;  %v10921_v52 = vpop.permute.xlu1 %2546  ;;  %v10929_v56 = vpop.permute.xlu0 %2556 }
 0x595   : > { %2664 = vrot.lane.b32.xlu1 %v10723_v37, %s8899_s17  ;;  %v10931_v37 = vpop.permute.xlu2 %2578 }
 0x596   : > { %15041 = vst [vmem:[#allocation10_spill] sm:$0xff] %v10931_v37  ;;  %v11063_v37 = vld [vmem:[#allocation3 + $0x130] sm:$0xff] }
 0x59c   : > { %2678 = vrot.lane.b32.xlu2 %v10765_v59, %s8899_s17  ;;  %2674 = vrot.lane.b32.xlu0 %v10753_v44, %s8899_s17  ;;  %v10933_v14 = vpop.permute.xlu1 %2552  ;;  %v2458_v59 = vld [vmem:[#allocation3 + $0x7] sm:$0xff] }
 0x59d   : > { %2670 = vrot.lane.b32.xlu1 %v10741_v26, %s8899_s17  ;;  %v10943_v26 = vpop.permute.xlu0 %2562 }
 0x5a4   : > { %2684 = vrot.lane.b32.xlu2 %v2492_v4, %s8899_s17  ;;  %2680 = vrot.lane.b32.xlu0 %v10771_v18, %s8899_s17  ;;  %v10947_v27 = vpop.permute.xlu1 %2558  ;;  %v10964_v18 = vld [vmem:[#allocation3 + $0x68] sm:$0xff] }
 0x5a5   : > { %2676 = vrot.lane.b32.xlu1 %v10759_v32, %s8899_s17  ;;  %v2720_v32 = vsel %vm502_vm5, %v2458_v59, %v10819_v23  ;;  %v10958_v22 = vpop.permute.xlu0 %2568  ;;  %v8200_v4 = vld [vmem:[%s14891_s4 + $0xf0] sm:$0xff]  ;;  %v11022_v59 = vld [vmem:[#allocation3 + $0xf0] sm:$0xff] }
 0x5a6   : > { %v10945_v44 = vpop.permute.xlu2 %2584  ;;  %3998 = vmatpush.msrb.mxu1 %v8200_v4 }
 0x5a7   : > { %15042 = vst [vmem:[#allocation17_spill] sm:$0xff] %v10945_v44  ;;  %v11042_v44 = vld [vmem:[#allocation3 + $0x128] sm:$0xff] }
 0x5ac   : > { %2866 = vrot.lane.b32.xlu2 %v10949_v49, %s8898_s16  ;;  %2686 = vrot.lane.b32.xlu0 %v2493_v60, %s8899_s17  ;;  %v10960_v35 = vpop.permute.xlu1 %2564  ;;  %v2459_v60 = vld [vmem:[#allocation3 + $0xf] sm:$0xff]  ;;  %v8199_v49 = vld [vmem:[%s14891_s4 + $0xe8] sm:$0xff] }
 0x5ad   : > { %2682 = vrot.lane.b32.xlu1 %v10778_v53, %s8899_s17  ;;  %v10972_v53 = vld [vmem:[#allocation3 + $0x28] sm:$0xff]  ;;  %v10976_v3 = vpop.permute.xlu0 %2574  ;;  %3999 = vmatpush.msrb.mxu1 %v8199_v49  ;;  %v2724_v49 = vsel %vm502_vm5, %v10516_v46, %v10863_v28  ;;  %v2725_v28 = vsel %vm502_vm5, %v10530_v41, %v10800_v55 }
 0x5ae   : > { %v2625_v39 = vpop.permute.xlu2 %2624  ;;  %15044 = vst [vmem:[#allocation15_spill] sm:$0xff] %v10976_v3 }
 0x5af   : > { %v2752_v43 = vsel %vm549_vm7, %v2720_v32, %v2625_v39  ;;  %v11024_v32 = vld [vmem:[#allocation3 + $0xd0] sm:$0xff] }
 0x5b0   : > { %8162 = vmatmul.msk.f32.vlgmr.msrb.gmra.mxu0 %vm3135_vm8, %v2752_v43  ;;  %v11030_v39 = vld [vmem:[#allocation3 + $0xb0] sm:$0xff]  ;;  %v2721_v43 = vsel %vm502_vm5, %v2459_v60, %v10839_v11  ;;  %v11050_v11 = vld [vmem:[#allocation3 + $0xe8] sm:$0xff] }
 0x5b4   : > { %2872 = vrot.lane.b32.xlu2 %v10964_v18, %s8898_s16  ;;  %2868 = vrot.lane.b32.xlu0 %v10966_v62, %s8898_s16  ;;  %v10978_v23 = vpop.permute.xlu1 %2570 }
 0x5b5   : > { %2864 = vrot.lane.b32.xlu1 %v10972_v53, %s8898_s16  ;;  %v10995_v47 = vpop.permute.xlu0 %2580 }
 0x5b6   : > { %v2631_v20 = vpop.permute.xlu2 %2630  ;;  %15046 = vst [vmem:[#allocation33_spill] sm:$0xff] %v10995_v47  ;;  %v11061_v47 = vld [vmem:[#allocation3 + $0x150] sm:$0xff] }
 0x5b7   : > { %15051 = vst [vmem:[#allocation22_spill] sm:$0xff] %v11061_v47 }
 0x5bc   : > { %2878 = vrot.lane.b32.xlu2 %v10983_v12, %s8898_s16  ;;  %2874 = vrot.lane.b32.xlu0 %v10985_v33, %s8898_s16  ;;  %v10999_v31 = vpop.permute.xlu1 %2576 }
 0x5bd   : > { %2870 = vrot.lane.b32.xlu1 %v10991_v48, %s8898_s16  ;;  %15047 = vst [vmem:[#allocation5_spill] sm:$0xff] %v10999_v31  ;;  %v11069_v31 = vld [vmem:[#allocation3 + $0x110] sm:$0xff] }
 0x5be   : > { %v10997_v1 = vpop.permute.xlu2 %2636 }
 0x5c4   : > { %2884 = vrot.lane.b32.xlu2 %v11001_v38, %s8898_s16  ;;  %2880 = vrot.lane.b32.xlu0 %v11003_v34, %s8898_s16  ;;  %v11017_v63 = vpop.permute.xlu1 %2582 }
 0x5c5   : > { %2876 = vrot.lane.b32.xlu1 %v11009_v29, %s8898_s16  ;;  %15049 = vst [vmem:[#allocation11_spill] sm:$0xff] %v11017_v63  ;;  %v11044_v63 = vld [vmem:[#allocation3 + $0x108] sm:$0xff] }
 0x5c6   : > { %v11013_v16 = vpop.permute.xlu2 %2642  ;;  %v11015_v8 = vpop.permute.xlu0 %2586 }
 0x5c7   : > { %15048 = vst [vmem:[#allocation31_spill] sm:$0xff] %v11015_v8 }
 0x5cc   : > { %2890 = vrot.lane.b32.xlu2 %v11022_v59, %s8898_s16  ;;  %2886 = vrot.lane.b32.xlu0 %v11024_v32, %s8898_s16 }
 0x5cd   : > { %2882 = vrot.lane.b32.xlu1 %v11030_v39, %s8898_s16 }
 0x5ce   : > { %v11036_v42 = vpop.permute.xlu2 %2648  ;;  %v2627_v4 = vpop.permute.xlu0 %2626 }
 0x5cf   : > { %v11038_v54 = vpop.permute.xlu1 %2588  ;;  %v2753_v8 = vsel %vm549_vm7, %v2721_v43, %v2627_v4 }
 0x5d0   : > { %15050 = vst [vmem:[#allocation30_spill] sm:$0xff] %v11038_v54  ;;  %8163 = vmatmul.msk.f32.gmra.mxu0 %vm3135_vm8, %v2753_v8  ;;  %v2722_v8 = vsel %vm502_vm5, %v10484_v19, %v10786_v36  ;;  %v4210_v19 = vld [vmem:[%s14894_s7 + $0x38] sm:$0xff] }
 0x5d1   : > { %4223 = vmatpush.msrb.mxu2 %v4210_v19 }
 0x5d4   : > { %2896 = vrot.lane.b32.xlu2 %v11042_v44, %s8898_s16  ;;  %2892 = vrot.lane.b32.xlu0 %v11044_v63, %s8898_s16 }
 0x5d5   : > { %2888 = vrot.lane.b32.xlu1 %v11050_v11, %s8898_s16 }
 0x5d6   : > { %v11054_v60 = vpop.permute.xlu2 %2654  ;;  %v2633_v43 = vpop.permute.xlu0 %2632 }
 0x5d7   : > { %v2629_v4 = vpop.permute.xlu1 %2628  ;;  %v2756_v19 = vsel %vm549_vm7, %v2724_v49, %v2633_v43 }
 0x5d8   : > { %v2754_v54 = vsel %vm549_vm7, %v2722_v8, %v2629_v4  ;;  %v2723_v8 = vsel %vm502_vm5, %v10499_v15, %v10835_v45  ;;  %v11094_v15 = vld [vmem:[#allocation3 + $0x148] sm:$0xff] }
 0x5d9   : > { %8164 = vmatmul.msk.f32.gmra.mxu0 %vm3135_vm8, %v2754_v54  ;;  %v2755_v3 = vsel %vm549_vm7, %v2723_v8, %v2631_v20  ;;  %v11107_v8 = vld [vmem:[#allocation3 + $0x190] sm:$0xff] }
 0x5da   : > { %15054 = vst [vmem:[#allocation38_spill] sm:$0xff] %v11107_v8 }
 0x5dc   : > { %2902 = vrot.lane.b32.xlu2 %v11061_v47, %s8898_s16  ;;  %2898 = vrot.lane.b32.xlu0 %v11063_v37, %s8898_s16  ;;  %v11088_v47 = vld [vmem:[#allocation3 + $0x168] sm:$0xff] }
 0x5dd   : > { %2894 = vrot.lane.b32.xlu1 %v11069_v31, %s8898_s16  ;;  %15053 = vst [vmem:[#allocation19_spill] sm:$0xff] %v11088_v47 }
 0x5de   : > { %v11076_v54 = vpop.permute.xlu2 %2660  ;;  %v2639_v36 = vpop.permute.xlu0 %2638 }
 0x5df   : > { %v2635_v4 = vpop.permute.xlu1 %2634 }
 0x5e0   : > { %v2757_v49 = vsel %vm549_vm7, %v2725_v28, %v2635_v4  ;;  %v2726_v4 = vsel %vm502_vm5, %v10547_v50, %v10859_v0  ;;  %v11161_v50 = vld [vmem:[#allocation3 + $0x1c8] sm:$0xff] }
 0x5e1   : > { %8165 = vmatmul.msk.f32.gmra.mxu0 %vm3135_vm8, %v2755_v3  ;;  %15059 = vst [vmem:[#allocation23_spill] sm:$0xff] %v11161_v50  ;;  %v4209_v0 = vld [vmem:[%s14894_s7 + $0x30] sm:$0xff] }
 0x5e2   : > { %4224 = vmatpush.msrb.mxu2 %v4209_v0 }
 0x5e4   : > { %2908 = vrot.lane.b32.xlu2 %v11086_v6, %s8898_s16  ;;  %2904 = vrot.lane.b32.xlu0 %v11088_v47, %s8898_s16  ;;  %v11113_v6 = vld [vmem:[#allocation3 + $0x170] sm:$0xff] }
 0x5e5   : > { %2900 = vrot.lane.b32.xlu1 %v11094_v15, %s8898_s16  ;;  %15055 = vst [vmem:[#allocation32_spill] sm:$0xff] %v11113_v6 }
 0x5e6   : > { %v11098_v45 = vpop.permute.xlu2 %2666  ;;  %v11100_v3 = vpop.permute.xlu0 %2644 }
 0x5e7   : > { %v2641_v20 = vpop.permute.xlu1 %2640 }
 0x5e9   : > { %8166 = vmatmul.msk.f32.gmra.mxu0 %vm3135_vm8, %v2756_v19  ;;  %v11128_v19 = vld [vmem:[#allocation3 + $0x29] sm:$0xff] }
 0x5ec   : > { %2962 = vrot.lane.b32.xlu2 %v10966_v62, %s8899_s17  ;;  %2910 = vrot.lane.b32.xlu0 %v11107_v8, %s8898_s16  ;;  %v11130_v8 = vld [vmem:[#allocation3 + $0x1b0] sm:$0xff] }
 0x5ed   : > { %2906 = vrot.lane.b32.xlu1 %v11113_v6, %s8898_s16  ;;  %15056 = vst [vmem:[#allocation18_spill] sm:$0xff] %v11130_v8  ;;  %v11136_v6 = vld [vmem:[#allocation3 + $0x1a8] sm:$0xff] }
 0x5ee   : > { %v11117_v47 = vpop.permute.xlu2 %2672  ;;  %v11119_v46 = vpop.permute.xlu0 %2650  ;;  %15057 = vst [vmem:[#allocation21_spill] sm:$0xff] %v11136_v6 }
 0x5ef   : > { %v11124_v43 = vpop.permute.xlu1 %2646 }
 0x5f1   : > { %8167 = vmatmul.msk.f32.gmra.mxu0 %vm3135_vm8, %v2757_v49  ;;  %v2758_v49 = vsel %vm549_vm7, %v2726_v4, %v10997_v1  ;;  %v2727_v4 = vsel %vm502_vm5, %v10564_v13, %v10892_v58  ;;  %v2728_v58 = vsel %vm502_vm5, %v10578_v9, %v10808_v30 }
 0x5f4   : > { %3622 = vrot.lane.b32.xlu2 %v11128_v19, %s8898_s16  ;;  %2914 = vrot.lane.b32.xlu0 %v11130_v8, %s8898_s16  ;;  %v8198_v8 = vld [vmem:[%s14891_s4 + $0xe0] sm:$0xff] }
 0x5f5   : > { %2912 = vrot.lane.b32.xlu1 %v11136_v6, %s8898_s16  ;;  %4000 = vmatpush.msrb.mxu1 %v8198_v8  ;;  %v11155_v6 = vld [vmem:[#allocation3 + $0x31] sm:$0xff] }
 0x5f6   : > { %v11140_v41 = vpop.permute.xlu2 %2678  ;;  %v11142_v55 = vpop.permute.xlu0 %2656 }
 0x5f7   : > { %15058 = vst [vmem:[#allocation36_spill] sm:$0xff] %v11140_v41  ;;  %v11147_v28 = vpop.permute.xlu1 %2652  ;;  %v2759_v41 = vsel %vm549_vm7, %v2727_v4, %v2639_v36  ;;  %v8197_v4 = vld [vmem:[%s14891_s4 + $0xd8] sm:$0xff] }
 0x5f8   : > { %4001 = vmatpush.msrb.mxu1 %v8197_v4  ;;  %v8129_v4 = vld [vmem:[%s14891_s4 + $0xb8] sm:$0xff] }
 0x5f9   : > { %8168 = vmatmul.msk.f32.gmra.mxu0 %vm3135_vm8, %v2758_v49  ;;  %3236 = vmatpush.msra.mxu3 %v8129_v4  ;;  %v8126_v4 = vld [vmem:[%s14891_s4 + $0xa0] sm:$0xff] }
 0x5fc   : > { %3624 = vrot.lane.b32.xlu2 %v11155_v6, %s8898_s16  ;;  %2964 = vrot.lane.b32.xlu0 %v10991_v48, %s8899_s17 }
 0x5fd   : > { %2916 = vrot.lane.b32.xlu1 %v11161_v50, %s8898_s16  ;;  %v11179_v50 = vld [vmem:[#allocation3 + $0x49] sm:$0xff] }
 0x5fe   : > { %v11168_v1 = vpop.permute.xlu2 %2684  ;;  %v11170_v8 = vpop.permute.xlu0 %2662 }
 0x5ff   : > { %15060 = vst [vmem:[#allocation35_spill] sm:$0xff] %v11168_v1  ;;  %v11175_v49 = vpop.permute.xlu1 %2658  ;;  %v11201_v1 = vld [vmem:[#allocation3 + $0x51] sm:$0xff] }
 0x600   : > { %15061 = vst [vmem:[#allocation24_spill] sm:$0xff] %v11201_v1 }
 0x601   : > { %8169 = vmatmul.msk.f32.gmra.mxu0 %vm3135_vm8, %v2759_v41  ;;  %v2760_v41 = vsel %vm549_vm7, %v2728_v58, %v2641_v20  ;;  %v2729_v20 = vsel %vm502_vm5, %v10593_v17, %v10886_v25  ;;  %v8127_v17 = vld [vmem:[%s14891_s4 + $0xa8] sm:$0xff] }
 0x604   : > { %3626 = vrot.lane.b32.xlu2 %v11179_v50, %s8898_s16  ;;  %2966 = vrot.lane.b32.xlu0 %v10964_v18, %s8899_s17 }
 0x605   : > { %3720 = vrot.lane.b32.xlu1 %v11179_v50, %s8899_s17 }
 0x606   : > { %v11187_v0 = vpop.permute.xlu2 %2866  ;;  %v11189_v13 = vpop.permute.xlu0 %2668 }
 0x607   : > { %v11194_v36 = vpop.permute.xlu1 %2664 }
 0x609   : > { %8170 = vmatmul.msk.f32.gmra.mxu0 %vm3135_vm8, %v2760_v41  ;;  %v2761_v41 = vsel %vm549_vm7, %v2729_v20, %v11013_v16  ;;  %v2730_v20 = vsel %vm502_vm5, %v10608_v24, %v10921_v52  ;;  %v8124_v24 = vld [vmem:[%s14891_s4 + $0x90] sm:$0xff]  ;;  %v11259_v52 = vld [vmem:[#allocation3 + $0x71] sm:$0xff] }
 0x60a   : > { %15063 = vst [vmem:[#allocation26_spill] sm:$0xff] %v11259_v52 }
 0x60c   : > { %3628 = vrot.lane.b32.xlu2 %v11201_v1, %s8898_s16  ;;  %2968 = vrot.lane.b32.xlu0 %v10985_v33, %s8899_s17  ;;  %v11227_v33 = vld [vmem:[#allocation3 + $0x69] sm:$0xff] }
 0x60d   : > { %3722 = vrot.lane.b32.xlu1 %v11201_v1, %s8899_s17  ;;  %v8128_v1 = vld [vmem:[%s14891_s4 + $0xb0] sm:$0xff] }
 0x60e   : > { %v11209_v9 = vpop.permute.xlu2 %2872  ;;  %v11211_v30 = vpop.permute.xlu0 %2674  ;;  %3237 = vmatpush.msra.mxu3 %v8128_v1  ;;  %v2762_v1 = vsel %vm549_vm7, %v2730_v20, %v11100_v3  ;;  %v8123_v3 = vld [vmem:[%s14891_s4 + $0x88] sm:$0xff] }
 0x60f   : > { %v11216_v58 = vpop.permute.xlu1 %2670 }
 0x610   : > { %3238 = vmatpush.msra.mxu3 %v8127_v17  ;;  %v4208_v17 = vld [vmem:[%s14894_s7 + $0x28] sm:$0xff] }
 0x611   : > { %8171 = vmatmul.msk.f32.gmra.mxu0 %vm3135_vm8, %v2761_v41  ;;  %4225 = vmatpush.msrb.mxu2 %v4208_v17  ;;  %v8121_v17 = vld [vmem:[%s14891_s4 + $0x78] sm:$0xff] }
 0x612   : > { %3239 = vmatpush.msra.mxu3 %v8126_v4  ;;  %v2731_v4 = vsel %vm502_vm5, %v10620_v10, %v10821_v40  ;;  %v8196_v10 = vld [vmem:[%s14891_s4 + $0xd0] sm:$0xff] }
 0x613   : > { %4002 = vmatpush.msrb.mxu1 %v8196_v10  ;;  %v8120_v40 = vld [vmem:[%s14891_s4 + $0x70] sm:$0xff] }
 0x614   : > { %3630 = vrot.lane.b32.xlu2 %v11227_v33, %s8898_s16  ;;  %2970 = vrot.lane.b32.xlu0 %v11009_v29, %s8899_s17 }
 0x615   : > { %3724 = vrot.lane.b32.xlu1 %v11227_v33, %s8899_s17 }
 0x616   : > { %v11238_v25 = vpop.permute.xlu2 %2878  ;;  %v11240_v16 = vpop.permute.xlu0 %2680 }
 0x617   : > { %15062 = vst [vmem:[#allocation25_spill] sm:$0xff] %v11240_v16  ;;  %v11245_v41 = vpop.permute.xlu1 %2676  ;;  %v8125_v16 = vld [vmem:[%s14891_s4 + $0x98] sm:$0xff] }
 0x618   : > { %3240 = vmatpush.msra.mxu3 %v8125_v16 }
 0x619   : > { %8172 = vmatmul.msk.f32.gmra.mxu0 %vm3135_vm8, %v2762_v1 }
 0x61a   : > { %3241 = vmatpush.msra.mxu3 %v8124_v24  ;;  %v8122_v24 = vld [vmem:[%s14891_s4 + $0x80] sm:$0xff] }
 0x61c   : > { %3632 = vrot.lane.b32.xlu2 %v11259_v52, %s8898_s16  ;;  %2972 = vrot.lane.b32.xlu0 %v10983_v12, %s8899_s17 }
 0x61d   : > { %3726 = vrot.lane.b32.xlu1 %v11259_v52, %s8899_s17  ;;  %3242 = vmatpush.msra.mxu3 %v8123_v3  ;;  %v2763_v52 = vsel %vm549_vm7, %v2731_v4, %v11124_v43  ;;  %v11297_v3 = vld [vmem:[#allocation3 + $0x89] sm:$0xff]  ;;  %v8119_v43 = vld [vmem:[%s14891_s4 + $0x68] sm:$0xff] }
 0x61e   : > { %v11273_v20 = vpop.permute.xlu2 %2884  ;;  %v11275_v16 = vpop.permute.xlu0 %2686  ;;  %15065 = vst [vmem:[#allocation28_spill] sm:$0xff] %v11297_v3 }
 0x61f   : > { %15064 = vst [vmem:[#allocation27_spill] sm:$0xff] %v11275_v16  ;;  %v11280_v1 = vpop.permute.xlu1 %2682  ;;  %3243 = vmatpush.msra.mxu3 %v8122_v24  ;;  %v8826_v24 = vld [vmem:[#allocation3 + $0xc7] sm:$0xff]  ;;  %v8118_v16 = vld [vmem:[%s14891_s4 + $0x60] sm:$0xff] }
 0x621   : > { %8173 = vmatmul.msk.f32.gmra.mxu0 %vm3135_vm8, %v2763_v52  ;;  %3244 = vmatpush.msra.mxu3 %v8121_v17  ;;  %v2732_v17 = vsel %vm502_vm5, %v8826_v24, %v10917_v57  ;;  %v8827_v24 = vld [vmem:[#allocation3 + $0xcf] sm:$0xff] }
 0x623   : > { %3245 = vmatpush.msra.mxu3 %v8120_v40  ;;  %v2764_v40 = vsel %vm549_vm7, %v2732_v17, %v11036_v42  ;;  %v2733_v42 = vsel %vm502_vm5, %v8827_v24, %v10933_v14 }
 0x624   : > { %3634 = vrot.lane.b32.xlu2 %v11297_v3, %s8898_s16  ;;  %2974 = vrot.lane.b32.xlu0 %v11003_v34, %s8899_s17  ;;  %v2765_v17 = vsel %vm549_vm7, %v2733_v42, %v11119_v46  ;;  %v2734_v46 = vsel %vm502_vm5, %v10657_v51, %v10837_v7 }
 0x625   : > { %3728 = vrot.lane.b32.xlu1 %v11297_v3, %s8899_s17  ;;  %3246 = vmatpush.msra.mxu3 %v8119_v43  ;;  %v11320_v3 = vld [vmem:[#allocation3 + $0x91] sm:$0xff]  ;;  %v2766_v42 = vsel %vm549_vm7, %v2734_v46, %v11147_v28  ;;  %v2735_v46 = vsel %vm502_vm5, %v10669_v5, %v10929_v56 }
 0x626   : > { %v11308_v52 = vpop.permute.xlu2 %2890  ;;  %v11310_v4 = vpop.permute.xlu0 %2868  ;;  %v4207_v28 = vld [vmem:[%s14894_s7 + $0x20] sm:$0xff] }
 0x627   : > { %15066 = vst [vmem:[#allocation29_spill] sm:$0xff] %v11308_v52  ;;  %v2865_v10 = vpop.permute.xlu1 %2864  ;;  %3247 = vmatpush.msra.mxu3 %v8118_v16  ;;  %v11362_v52 = vld [vmem:[#allocation3 + $0xb1] sm:$0xff]  ;;  %4226 = vmatpush.msrb.mxu2 %v4207_v28 }
 0x628   : > { %15069 = vst [vmem:[#allocation12_spill] sm:$0xff] %v11362_v52 }
 0x629   : > { %8174 = vmatmul.msk.f32.gmra.mxu0 %vm3135_vm8, %v2764_v40  ;;  %v11339_v40 = vld [vmem:[#allocation3 + $0xa9] sm:$0xff] }
 0x62c   : > { %3636 = vrot.lane.b32.xlu2 %v11320_v3, %s8898_s16  ;;  %2976 = vrot.lane.b32.xlu0 %v11030_v39, %s8899_s17 }
 0x62d   : > { %3730 = vrot.lane.b32.xlu1 %v11320_v3, %s8899_s17 }
 0x62e   : > { %v11328_v57 = vpop.permute.xlu2 %2896  ;;  %v11330_v43 = vpop.permute.xlu0 %2874 }
 0x62f   : > { %15067 = vst [vmem:[#allocation9_spill] sm:$0xff] %v11328_v57  ;;  %v11334_v16 = vpop.permute.xlu1 %2870 }
 0x631   : > { %8175 = vmatmul.msk.f32.gmra.mxu0 %vm3135_vm8, %v2765_v17  ;;  %v8195_v17 = vld [vmem:[%s14891_s4 + $0xc8] sm:$0xff] }
 0x632   : > { %4003 = vmatpush.msrb.mxu1 %v8195_v17  ;;  %v2767_v17 = vsel %vm549_vm7, %v2735_v46, %v11054_v60  ;;  %v2736_v60 = vsel %vm502_vm5, %v10675_v61, %v10947_v27 }
 0x634   : > { %3638 = vrot.lane.b32.xlu2 %v11339_v40, %s8898_s16  ;;  %2978 = vrot.lane.b32.xlu0 %v11001_v38, %s8899_s17 }
 0x635   : > { %3732 = vrot.lane.b32.xlu1 %v11339_v40, %s8899_s17 }
 0x636   : > { %v11347_v57 = vpop.permute.xlu2 %2902  ;;  %v11349_v14 = vpop.permute.xlu0 %2880 }
 0x637   : > { %15068 = vst [vmem:[#allocation8_spill] sm:$0xff] %v11347_v57  ;;  %v11354_v24 = vpop.permute.xlu1 %2876  ;;  %v2796_v57 = vld [vmem:[#allocation3 + $0x8] sm:$0xff] }
 0x638   : > { %v3058_v5 = vsel %vm502_vm5, %v2796_v57, %v2865_v10  ;;  %v8194_v10 = vld [vmem:[%s14891_s4 + $0xc0] sm:$0xff] }
 0x639   : > { %8176 = vmatmul.msk.f32.gmra.mxu0 %vm3135_vm8, %v2766_v42  ;;  %4004 = vmatpush.msrb.mxu1 %v8194_v10  ;;  %v11409_v57 = vld [vmem:[#allocation3 + $0xd1] sm:$0xff] }
 0x63c   : > { %3640 = vrot.lane.b32.xlu2 %v11362_v52, %s8898_s16  ;;  %2980 = vrot.lane.b32.xlu0 %v11024_v32, %s8899_s17 }
 0x63d   : > { %3734 = vrot.lane.b32.xlu1 %v11362_v52, %s8899_s17  ;;  %v2768_v52 = vsel %vm549_vm7, %v2736_v60, %v11142_v55  ;;  %v8828_v55 = vld [vmem:[#allocation3 + $0x10f] sm:$0xff] }
 0x63e   : > { %v11370_v51 = vpop.permute.xlu2 %2908  ;;  %v11372_v7 = vpop.permute.xlu0 %2886  ;;  %v11428_v60 = vld [vmem:[#allocation3 + $0xe9] sm:$0xff] }
 0x63f   : > { %15070 = vst [vmem:[#allocation7_spill] sm:$0xff] %v11370_v51  ;;  %v11380_v42 = vpop.permute.xlu1 %2882  ;;  %v11385_v51 = vld [vmem:[#allocation3 + $0xc9] sm:$0xff] }
 0x641   : > { %8177 = vmatmul.msk.f32.gmra.mxu0 %vm3135_vm8, %v2767_v17 }
 0x644   : > { %3642 = vrot.lane.b32.xlu2 %v11385_v51, %s8898_s16  ;;  %2982 = vrot.lane.b32.xlu0 %v11050_v11, %s8899_s17 }
 0x645   : > { %3736 = vrot.lane.b32.xlu1 %v11385_v51, %s8899_s17 }
 0x646   : > { %v2963_v56 = vpop.permute.xlu2 %2962  ;;  %v11394_v28 = vpop.permute.xlu0 %2892 }
 0x647   : > { %v11399_v46 = vpop.permute.xlu1 %2888  ;;  %v3090_v17 = vsel %vm549_vm7, %v3058_v5, %v2963_v56 }
 0x648   : > { %8130 = vmatmul.msk.f32.vlgmr.msra.gmra.mxu3 %vm3135_vm8, %v3090_v17 }
 0x649   : > { %8178 = vmatmul.msk.f32.gmra.mxu0 %vm3135_vm8, %v2768_v52  ;;  %v2737_v52 = vsel %vm502_vm5, %v8828_v55, %v10861_v21  ;;  %v8829_v21 = vld [vmem:[#allocation3 + $0x127] sm:$0xff] }
 0x64a   : > { %v2769_v56 = vsel %vm549_vm7, %v2737_v52, %v11175_v49  ;;  %v2738_v17 = vsel %vm502_vm5, %v8829_v21, %v10943_v26  ;;  %v11447_v52 = vld [vmem:[#allocation3 + $0xf1] sm:$0xff] }
 0x64b   : > { %v2770_v55 = vsel %vm549_vm7, %v2738_v17, %v11076_v54  ;;  %v8830_v54 = vld [vmem:[#allocation3 + $0x12f] sm:$0xff] }
 0x64c   : > { %3644 = vrot.lane.b32.xlu2 %v11409_v57, %s8898_s16  ;;  %2984 = vrot.lane.b32.xlu0 %v11022_v59, %s8899_s17 }
 0x64d   : > { %3738 = vrot.lane.b32.xlu1 %v11409_v57, %s8899_s17 }
 0x64e   : > { %v11417_v61 = vpop.permute.xlu2 %3622  ;;  %v11419_v27 = vpop.permute.xlu0 %2898 }
 0x64f   : > { %v11423_v5 = vpop.permute.xlu1 %2894 }
 0x651   : > { %8179 = vmatmul.msk.f32.gmra.mxu0 %vm3135_vm8, %v2769_v56  ;;  %v2739_v56 = vsel %vm502_vm5, %v8830_v54, %v10960_v35  ;;  %v8831_v54 = vld [vmem:[#allocation3 + $0x147] sm:$0xff] }
 0x654   : > { %3646 = vrot.lane.b32.xlu2 %v11428_v60, %s8898_s16  ;;  %2986 = vrot.lane.b32.xlu0 %v11044_v63, %s8899_s17  ;;  %v4206_v63 = vld [vmem:[%s14894_s7 + $0x18] sm:$0xff] }
 0x655   : > { %3740 = vrot.lane.b32.xlu1 %v11428_v60, %s8899_s17  ;;  %4227 = vmatpush.msrb.mxu2 %v4206_v63  ;;  %v2740_v63 = vsel %vm502_vm5, %v8831_v54, %v10888_v2  ;;  %v8832_v54 = vld [vmem:[#allocation3 + $0x14f] sm:$0xff] }
 0x656   : > { %v11436_v59 = vpop.permute.xlu2 %3624  ;;  %v11442_v10 = vpop.permute.xlu0 %2904 }
 0x657   : > { %v11440_v49 = vpop.permute.xlu1 %2900  ;;  %15071 = vst [vmem:[#allocation39_spill] sm:$0xff] %v11442_v10  ;;  %v3554_v10 = vld [vmem:[#allocation3 + $0x9] sm:$0xff] }
 0x659   : > { %8180 = vmatmul.msk.f32.gmra.mxu0 %vm3135_vm8, %v2770_v55  ;;  %v11469_v55 = vld [vmem:[#allocation3 + $0x109] sm:$0xff] }
 0x65c   : > { %3648 = vrot.lane.b32.xlu2 %v11447_v52, %s8898_s16  ;;  %2988 = vrot.lane.b32.xlu0 %v11069_v31, %s8899_s17  ;;  %v2771_v31 = vsel %vm549_vm7, %v2739_v56, %v11170_v8 }
 0x65d   : > { %3742 = vrot.lane.b32.xlu1 %v11447_v52, %s8899_s17 }
 0x65e   : > { %v11455_v26 = vpop.permute.xlu2 %3626  ;;  %v11464_v17 = vpop.permute.xlu0 %2910 }
 0x65f   : > { %v11462_v21 = vpop.permute.xlu1 %2906  ;;  %15073 = vst [vmem:[#allocation13_spill] sm:$0xff] %v11464_v17  ;;  %v11488_v17 = vld [vmem:[#allocation3 + $0x111] sm:$0xff] }
 0x660   : > { %15072 = vst [vmem:[#allocation16_spill] sm:$0xff] %v11462_v21  ;;  %v11509_v21 = vld [vmem:[#allocation3 + $0x129] sm:$0xff] }
 0x661   : > { %8181 = vmatmul.msk.f32.gmra.mxu0 %vm3135_vm8, %v2771_v31  ;;  %v2772_v31 = vsel %vm549_vm7, %v2740_v63, %v11194_v36  ;;  %v2741_v36 = vsel %vm502_vm5, %v8832_v54, %v10958_v22 }
 0x664   : > { %3650 = vrot.lane.b32.xlu2 %v11469_v55, %s8898_s16  ;;  %2990 = vrot.lane.b32.xlu0 %v11042_v44, %s8899_s17  ;;  %v2797_v44 = vld [vmem:[#allocation3 + $0x10] sm:$0xff] }
 0x665   : > { %3744 = vrot.lane.b32.xlu1 %v11469_v55, %s8899_s17  ;;  %v3059_v63 = vsel %vm502_vm5, %v2797_v44, %v11187_v0 }
 0x666   : > { %v11477_v35 = vpop.permute.xlu2 %3628  ;;  %v11483_v56 = vpop.permute.xlu0 %2914 }
 0x667   : > { %v11481_v8 = vpop.permute.xlu1 %2912  ;;  %15075 = vst [vmem:[#allocation40_spill] sm:$0xff] %v11483_v56 }
 0x668   : > { %15074 = vst [vmem:[#allocation37_spill] sm:$0xff] %v11481_v8  ;;  %v2773_v8 = vsel %vm549_vm7, %v2741_v36, %v11098_v45  ;;  %v8833_v45 = vld [vmem:[#allocation3 + $0x167] sm:$0xff] }
 0x669   : > { %8182 = vmatmul.msk.f32.gmra.mxu0 %vm3135_vm8, %v2772_v31  ;;  %v2742_v0 = vsel %vm502_vm5, %v8833_v45, %v10978_v23  ;;  %v11533_v23 = vld [vmem:[#allocation3 + $0x131] sm:$0xff]  ;;  %v15077_v45 = vld [vmem:[#allocation14_spill] sm:$0xff] }
 0x66c   : > { %3652 = vrot.lane.b32.xlu2 %v11488_v17, %s8898_s16  ;;  %2992 = vrot.lane.b32.xlu0 %v11063_v37, %s8899_s17 }
 0x66d   : > { %3746 = vrot.lane.b32.xlu1 %v11488_v17, %s8899_s17 }
 0x66e   : > { %v11496_v2 = vpop.permute.xlu2 %3630  ;;  %v2965_v56 = vpop.permute.xlu0 %2964 }
 0x66f   : > { %v11502_v31 = vpop.permute.xlu1 %2916  ;;  %v3091_v37 = vsel %vm549_vm7, %v3059_v63, %v2965_v56  ;;  %v3816_v56 = vsel %vm502_vm5, %v3554_v10, %v11417_v61  ;;  %v4205_v10 = vld [vmem:[%s14894_s7 + $0x10] sm:$0xff] }
 0x670   : > { %8131 = vmatmul.msk.f32.gmra.mxu3 %vm3135_vm8, %v3091_v37  ;;  %v8834_v37 = vld [vmem:[#allocation3 + $0x16f] sm:$0xff]  ;;  %4228 = vmatpush.msrb.mxu2 %v4205_v10 }
 0x671   : > { %8183 = vmatmul.msk.f32.gmra.mxu0 %vm3135_vm8, %v2773_v8  ;;  %v3060_v8 = vsel %vm502_vm5, %v10972_v53, %v11310_v4  ;;  %v11535_v53 = vpop.f32.mrf.mxu0  ;;  %v3555_v4 = vld [vmem:[#allocation3 + $0x11] sm:$0xff] }
 0x672   : > { %v15080_v10 = vld [vmem:[#allocation15_spill] sm:$0xff] }
 0x674   : > { %3654 = vrot.lane.b32.xlu2 %v11509_v21, %s8898_s16  ;;  %2994 = vrot.lane.b32.xlu0 %v11094_v15, %s8899_s17  ;;  %v2774_v15 = vsel %vm549_vm7, %v2742_v0, %v11189_v13  ;;  %v15076_v13 = vld [vmem:[#allocation22_spill] sm:$0xff]  ;;  %v2743_v0 = vsel %vm502_vm5, %v8834_v37, %v15077_v45 }
 0x675   : > { %3748 = vrot.lane.b32.xlu1 %v11509_v21, %s8899_s17 }
 0x676   : > { %v11517_v22 = vpop.permute.xlu2 %3632  ;;  %v2967_v54 = vpop.permute.xlu0 %2966 }
 0x677   : > { %v3721_v44 = vpop.permute.xlu1 %3720  ;;  %v3092_v63 = vsel %vm549_vm7, %v3060_v8, %v2967_v54  ;;  %v15078_v8 = vld [vmem:[#allocation6_spill] sm:$0xff] }
 0x678   : > { %v3848_v36 = vsel %vm549_vm7, %v3816_v56, %v3721_v44  ;;  %8132 = vmatmul.msk.f32.gmra.mxu3 %vm3135_vm8, %v3092_v63  ;;  %v3061_v56 = vsel %vm502_vm5, %v15078_v8, %v11334_v16  ;;  %v3817_v44 = vsel %vm502_vm5, %v3555_v4, %v11436_v59  ;;  %v11562_v16 = vld [vmem:[#allocation3 + $0x149] sm:$0xff]  ;;  %v3818_v8 = vsel %vm502_vm5, %v11128_v19, %v11455_v26  ;;  %v15081_v19 = vld [vmem:[#allocation32_spill] sm:$0xff] }
 0x679   : > { %8184 = vmatmul.msk.f32.gmra.mxu0 %vm3135_vm8, %v2774_v15  ;;  %8206 = vmatmul.msk.f32.vlgmr.msrb.gmra.mxu1 %vm3135_vm8, %v3848_v36  ;;  %v2775_v36 = vsel %vm549_vm7, %v2743_v0, %v11216_v58  ;;  %v11564_v37 = vpop.f32.mrf.mxu0  ;;  %v15079_v59 = vld [vmem:[#allocation19_spill] sm:$0xff]  ;;  %v8835_v4 = vld [vmem:[#allocation3 + $0x187] sm:$0xff]  ;;  %v3062_v0 = vsel %vm502_vm5, %v10966_v62, %v11209_v9 }
 0x67a   : > { %v2744_v45 = vsel %vm502_vm5, %v8835_v4, %v15080_v10  ;;  %v11589_v62 = vld [vmem:[#allocation3 + $0x151] sm:$0xff]  ;;  %v3819_v4 = vsel %vm502_vm5, %v11155_v6, %v11477_v35  ;;  %v15083_v6 = vld [vmem:[#allocation34_spill] sm:$0xff] }
 0x67b   : > { %v8836_v26 = vld [vmem:[#allocation3 + $0x18f] sm:$0xff] }
 0x67c   : > { %3656 = vrot.lane.b32.xlu2 %v11533_v23, %s8898_s16  ;;  %2996 = vrot.lane.b32.xlu0 %v15076_v13, %s8899_s17  ;;  %v15084_v35 = vld [vmem:[#allocation10_spill] sm:$0xff] }
 0x67d   : > { %3750 = vrot.lane.b32.xlu1 %v11533_v23, %s8899_s17 }
 0x67e   : > { %v11543_v61 = vpop.permute.xlu2 %3634  ;;  %v2969_v15 = vpop.permute.xlu0 %2968 }
 0x67f   : > { %v3723_v54 = vpop.permute.xlu1 %3722  ;;  %v3093_v13 = vsel %vm549_vm7, %v3061_v56, %v2969_v15 }
 0x680   : > { %v3849_v63 = vsel %vm549_vm7, %v3817_v44, %v3723_v54  ;;  %8133 = vmatmul.msk.f32.gmra.mxu3 %vm3135_vm8, %v3093_v13  ;;  %v2776_v54 = vsel %vm549_vm7, %v2744_v45, %v11117_v47 }
 0x681   : > { %8185 = vmatmul.msk.f32.gmra.mxu0 %vm3135_vm8, %v2775_v36  ;;  %8207 = vmatmul.msk.f32.gmra.mxu1 %vm3135_vm8, %v3849_v63  ;;  %v11597_v47 = vpop.f32.mrf.mxu0  ;;  %v15082_v63 = vld [vmem:[#allocation5_spill] sm:$0xff] }
 0x682   : > { %v2745_v13 = vsel %vm502_vm5, %v8836_v26, %v15082_v63 }
 0x684   : > { %3658 = vrot.lane.b32.xlu2 %v11562_v16, %s8898_s16  ;;  %2998 = vrot.lane.b32.xlu0 %v15079_v59, %s8899_s17  ;;  %v3063_v59 = vsel %vm502_vm5, %v10991_v48, %v11330_v43  ;;  %v11616_v48 = vld [vmem:[#allocation3 + $0x169] sm:$0xff] }
 0x685   : > { %3752 = vrot.lane.b32.xlu1 %v11562_v16, %s8899_s17  ;;  %v8837_v43 = vld [vmem:[#allocation3 + $0x1a7] sm:$0xff] }
 0x686   : > { %v11572_v58 = vpop.permute.xlu2 %3636  ;;  %v2971_v44 = vpop.permute.xlu0 %2970 }
 0x687   : > { %v3725_v56 = vpop.permute.xlu1 %3724  ;;  %v3094_v36 = vsel %vm549_vm7, %v3062_v0, %v2971_v44  ;;  %v2777_v0 = vsel %vm549_vm7, %v2745_v13, %v11211_v30  ;;  %v2746_v44 = vsel %vm502_vm5, %v8837_v43, %v15084_v35  ;;  %v15089_v35 = vld [vmem:[#allocation36_spill] sm:$0xff] }
 0x688   : > { %v3850_v15 = vsel %vm549_vm7, %v3818_v8, %v3725_v56  ;;  %8134 = vmatmul.msk.f32.gmra.mxu3 %vm3135_vm8, %v3094_v36  ;;  %v2778_v26 = vsel %vm549_vm7, %v2746_v44, %v11245_v41 }
 0x689   : > { %8186 = vmatmul.msk.f32.gmra.mxu0 %vm3135_vm8, %v2776_v54  ;;  %8208 = vmatmul.msk.f32.gmra.mxu1 %vm3135_vm8, %v3850_v15  ;;  %v3064_v54 = vsel %vm502_vm5, %v10964_v18, %v11354_v24  ;;  %v3820_v15 = vsel %vm502_vm5, %v11179_v50, %v11496_v2  ;;  %v11636_v63 = vpop.f32.mrf.mxu0  ;;  %v11643_v18 = vld [vmem:[#allocation3 + $0x171] sm:$0xff]  ;;  %v15085_v50 = vld [vmem:[#allocation38_spill] sm:$0xff]  ;;  %v4204_v24 = vld [vmem:[%s14894_s7 + $0x8] sm:$0xff] }
 0x68a   : > { %v8838_v2 = vld [vmem:[#allocation3 + $0x1af] sm:$0xff]  ;;  %4229 = vmatpush.msrb.mxu2 %v4204_v24  ;;  %v3822_v24 = vsel %vm502_vm5, %v11227_v33, %v11543_v61 }
 0x68b   : > { %v15093_v33 = vld [vmem:[#allocation18_spill] sm:$0xff] }
 0x68c   : > { %3660 = vrot.lane.b32.xlu2 %v11589_v62, %s8898_s16  ;;  %3000 = vrot.lane.b32.xlu0 %v15081_v19, %s8899_s17 }
 0x68d   : > { %3754 = vrot.lane.b32.xlu1 %v11589_v62, %s8899_s17 }
 0x68e   : > { %v11599_v9 = vpop.permute.xlu2 %3638  ;;  %v2973_v45 = vpop.permute.xlu0 %2972 }
 0x68f   : > { %v3727_v10 = vpop.permute.xlu1 %3726  ;;  %v3095_v56 = vsel %vm549_vm7, %v3063_v59, %v2973_v45  ;;  %v15087_v45 = vld [vmem:[#allocation20_spill] sm:$0xff] }
 0x690   : > { %v3851_v8 = vsel %vm549_vm7, %v3819_v4, %v3727_v10  ;;  %8135 = vmatmul.msk.f32.gmra.mxu3 %vm3135_vm8, %v3095_v56  ;;  %v15086_v4 = vld [vmem:[#allocation33_spill] sm:$0xff] }
 0x691   : > { %8187 = vmatmul.msk.f32.gmra.mxu0 %vm3135_vm8, %v2777_v0  ;;  %8209 = vmatmul.msk.f32.gmra.mxu1 %vm3135_vm8, %v3851_v8  ;;  %v2747_v10 = vsel %vm502_vm5, %v8838_v2, %v15086_v4  ;;  %v3065_v0 = vsel %vm502_vm5, %v15087_v45, %v11238_v25  ;;  %v15088_v8 = vld [vmem:[#allocation24_spill] sm:$0xff]  ;;  %v11673_v25 = vld [vmem:[#allocation3 + $0x189] sm:$0xff] }
 0x692   : > { %v3821_v56 = vsel %vm502_vm5, %v15088_v8, %v11517_v22  ;;  %v2779_v44 = vsel %vm549_vm7, %v2747_v10, %v15089_v35  ;;  %v15090_v22 = vld [vmem:[#allocation21_spill] sm:$0xff]  ;;  %v3067_v35 = vsel %vm502_vm5, %v10983_v12, %v11380_v42  ;;  %v11725_v12 = vld [vmem:[#allocation3 + $0x1a9] sm:$0xff] }
 0x693   : > { %v15092_v10 = vld [vmem:[#allocation25_spill] sm:$0xff]  ;;  %v15096_v42 = vld [vmem:[#allocation23_spill] sm:$0xff] }
 0x694   : > { %3662 = vrot.lane.b32.xlu2 %v11616_v48, %s8898_s16  ;;  %3002 = vrot.lane.b32.xlu0 %v15083_v6, %s8899_s17 }
 0x695   : > { %3756 = vrot.lane.b32.xlu1 %v11616_v48, %s8899_s17 }
 0x696   : > { %v11624_v30 = vpop.permute.xlu2 %3640  ;;  %v2975_v19 = vpop.permute.xlu0 %2974 }
 0x697   : > { %v3729_v36 = vpop.permute.xlu1 %3728  ;;  %v3096_v59 = vsel %vm549_vm7, %v3064_v54, %v2975_v19 }
 0x698   : > { %v3852_v13 = vsel %vm549_vm7, %v3820_v15, %v3729_v36  ;;  %8136 = vmatmul.msk.f32.gmra.mxu3 %vm3135_vm8, %v3096_v59  ;;  %v11670_v36 = vpop.f32.mrf.mxu0 }
 0x699   : > { %8188 = vmatmul.msk.f32.gmra.mxu0 %vm3135_vm8, %v2778_v26  ;;  %8210 = vmatmul.msk.f32.gmra.mxu1 %vm3135_vm8, %v3852_v13  ;;  %v8839_v26 = vld [vmem:[#allocation3 + $0x1c7] sm:$0xff]  ;;  %v15091_v13 = vld [vmem:[#allocation11_spill] sm:$0xff] }
 0x69a   : > { %v2748_v59 = vsel %vm502_vm5, %v8839_v26, %v15091_v13 }
 0x69b   : > { %v2780_v45 = vsel %vm549_vm7, %v2748_v59, %v15092_v10  ;;  %v15098_v10 = vld [vmem:[#allocation28_spill] sm:$0xff] }
 0x69c   : > { %3664 = vrot.lane.b32.xlu2 %v11643_v18, %s8898_s16  ;;  %3004 = vrot.lane.b32.xlu0 %v15085_v50, %s8899_s17  ;;  %v3066_v50 = vsel %vm502_vm5, %v11009_v29, %v11349_v14  ;;  %v11698_v29 = vld [vmem:[#allocation3 + $0x191] sm:$0xff] }
 0x69d   : > { %3758 = vrot.lane.b32.xlu1 %v11643_v18, %s8899_s17 }
 0x69e   : > { %v11651_v41 = vpop.permute.xlu2 %3642  ;;  %v2977_v43 = vpop.permute.xlu0 %2976 }
 0x69f   : > { %v3731_v6 = vpop.permute.xlu1 %3730  ;;  %v3097_v15 = vsel %vm549_vm7, %v3065_v0, %v2977_v43 }
 0x6a0   : > { %v3853_v54 = vsel %vm549_vm7, %v3821_v56, %v3731_v6  ;;  %8137 = vmatmul.msk.f32.gmra.mxu3 %vm3135_vm8, %v3097_v15  ;;  %v11700_v14 = vpop.f32.mrf.mxu0  ;;  %v8840_v56 = vld [vmem:[#allocation3 + $0x1cf] sm:$0xff]  ;;  %v15094_v6 = vld [vmem:[#allocation17_spill] sm:$0xff] }
 0x6a1   : > { %8189 = vmatmul.msk.f32.gmra.mxu0 %vm3135_vm8, %v2779_v44  ;;  %8211 = vmatmul.msk.f32.gmra.mxu1 %vm3135_vm8, %v3853_v54  ;;  %v2749_v43 = vsel %vm502_vm5, %v8840_v56, %v15094_v6  ;;  %v15095_v44 = vld [vmem:[#allocation26_spill] sm:$0xff] }
 0x6a2   : > { %v3823_v54 = vsel %vm502_vm5, %v15095_v44, %v11572_v58  ;;  %v2781_v26 = vsel %vm549_vm7, %v2749_v43, %v11280_v1  ;;  %v8842_v44 = vld [vmem:[#allocation3 + $0x1ef] sm:$0xff] }
 0x6a4   : > { %3666 = vrot.lane.b32.xlu2 %v11673_v25, %s8898_s16  ;;  %3006 = vrot.lane.b32.xlu0 %v15090_v22, %s8899_s17 }
 0x6a5   : > { %3760 = vrot.lane.b32.xlu1 %v11673_v25, %s8899_s17 }
 0x6a6   : > { %v11681_v19 = vpop.permute.xlu2 %3644  ;;  %v2979_v4 = vpop.permute.xlu0 %2978 }
 0x6a7   : > { %v3733_v2 = vpop.permute.xlu1 %3732  ;;  %v3098_v8 = vsel %vm549_vm7, %v3066_v50, %v2979_v4  ;;  %v8841_v50 = vld [vmem:[#allocation3 + $0x1e7] sm:$0xff]  ;;  %v3068_v4 = vsel %vm502_vm5, %v11003_v34, %v11273_v20  ;;  %v11752_v34 = vld [vmem:[#allocation3 + $0x1b1] sm:$0xff] }
 0x6a8   : > { %v3854_v0 = vsel %vm549_vm7, %v3822_v24, %v3733_v2  ;;  %8138 = vmatmul.msk.f32.gmra.mxu3 %vm3135_vm8, %v3098_v8  ;;  %v11733_v1 = vpop.f32.mrf.mxu0  ;;  %v15097_v24 = vld [vmem:[#allocation31_spill] sm:$0xff] }
 0x6a9   : > { %8190 = vmatmul.msk.f32.gmra.mxu0 %vm3135_vm8, %v2780_v45  ;;  %8212 = vmatmul.msk.f32.gmra.mxu1 %vm3135_vm8, %v3854_v0  ;;  %v2750_v2 = vsel %vm502_vm5, %v8841_v50, %v15097_v24  ;;  %v3824_v45 = vsel %vm502_vm5, %v15098_v10, %v11599_v9  ;;  %v11754_v20 = vld [vmem:[#allocation3 + $0x1d0] sm:$0xff]  ;;  %v3826_v10 = vsel %vm502_vm5, %v11339_v40, %v11651_v41  ;;  %v15102_v41 = vld [vmem:[#allocation29_spill] sm:$0xff] }
 0x6ac   : > { %3668 = vrot.lane.b32.xlu2 %v11698_v29, %s8898_s16  ;;  %3008 = vrot.lane.b32.xlu0 %v15093_v33, %s8899_s17  ;;  %v15099_v33 = vld [vmem:[#allocation35_spill] sm:$0xff] }
 0x6ad   : > { %3762 = vrot.lane.b32.xlu1 %v11698_v29, %s8899_s17  ;;  %v2782_v56 = vsel %vm549_vm7, %v2750_v2, %v15099_v33 }
 0x6ae   : > { %v11708_v61 = vpop.permute.xlu2 %3646  ;;  %v2981_v22 = vpop.permute.xlu0 %2980 }
 0x6af   : > { %v3735_v15 = vpop.permute.xlu1 %3734  ;;  %v3099_v59 = vsel %vm549_vm7, %v3067_v35, %v2981_v22  ;;  %v4203_v35 = vld [vmem:[%s14894_s7] sm:$0xff]  ;;  %v3069_v22 = vsel %vm502_vm5, %v11030_v39, %v11372_v7  ;;  %v11784_v39 = vld [vmem:[#allocation3 + $0x1e8] sm:$0xff] }
 0x6b0   : > { %v3855_v13 = vsel %vm549_vm7, %v3823_v54, %v3735_v15  ;;  %8139 = vmatmul.msk.f32.gmra.mxu3 %vm3135_vm8, %v3099_v59  ;;  %v15100_v54 = vld [vmem:[#allocation30_spill] sm:$0xff]  ;;  %4230 = vmatpush.msrb.mxu2 %v4203_v35 }
 0x6b1   : > { %8191 = vmatmul.msk.f32.gmra.mxu0 %vm3135_vm8, %v2781_v26  ;;  %8213 = vmatmul.msk.f32.gmra.mxu1 %vm3135_vm8, %v3855_v13  ;;  %v2751_v15 = vsel %vm502_vm5, %v8842_v44, %v15100_v54  ;;  %v3825_v26 = vsel %vm502_vm5, %v11320_v3, %v11624_v30  ;;  %v11788_v3 = vld [vmem:[#allocation3 + $0x1c9] sm:$0xff]  ;;  %v3070_v30 = vsel %vm502_vm5, %v11001_v38, %v11399_v46  ;;  %v11810_v38 = vld [vmem:[#allocation3 + $0x1d1] sm:$0xff] }
 0x6b2   : > { %v4242_v46 = vld [vmem:[%s14893_s6 + $0x38] sm:$0xff] }
 0x6b3   : > { %4348 = vmatpush.msra.mxu2 %v4242_v46 }
 0x6b4   : > { %3670 = vrot.lane.b32.xlu2 %v11725_v12, %s8898_s16  ;;  %3010 = vrot.lane.b32.xlu0 %v15096_v42, %s8899_s17  ;;  %v15101_v42 = vld [vmem:[#allocation27_spill] sm:$0xff] }
 0x6b5   : > { %3764 = vrot.lane.b32.xlu1 %v11725_v12, %s8899_s17  ;;  %v2783_v50 = vsel %vm549_vm7, %v2751_v15, %v15101_v42  ;;  %v4202_v42 = vld [vmem:[%s449_s18] sm:$0x1] }
 0x6b6   : > { %v11735_v58 = vpop.permute.xlu2 %3648  ;;  %v2983_v8 = vpop.permute.xlu0 %2982  ;;  %8238 = vmatmul.msk.f32.vlgmr.msrb.gmra.mxu2 %vm549_vm7, %v4202_v42 }
 0x6b7   : > { %v3737_v0 = vpop.permute.xlu1 %3736  ;;  %v3100_v43 = vsel %vm549_vm7, %v3068_v4, %v2983_v8  ;;  %v11779_v4 = vpop.f32.mrf.mxu0 }
 0x6b8   : > { %v3856_v6 = vsel %vm549_vm7, %v3824_v45, %v3737_v0  ;;  %8140 = vmatmul.msk.f32.gmra.mxu3 %vm3135_vm8, %v3100_v43  ;;  %v15103_v43 = vld [vmem:[#allocation12_spill] sm:$0xff] }
 0x6b9   : > { %8192 = vmatmul.msk.f32.gmra.mxu0 %vm3135_vm8, %v2782_v56  ;;  %8214 = vmatmul.msk.f32.gmra.mxu1 %vm3135_vm8, %v3856_v6  ;;  %v11806_v56 = vld [vmem:[#allocation3 + $0x1e9] sm:$0xff]  ;;  %v3071_v6 = vsel %vm502_vm5, %v11024_v32, %v15102_v41  ;;  %v3827_v35 = vsel %vm502_vm5, %v15103_v43, %v11681_v19  ;;  %v4240_v32 = vld [vmem:[%s14893_s6 + $0x28] sm:$0xff]  ;;  %v3829_v41 = vsel %vm502_vm5, %v11409_v57, %v11735_v58 }
 0x6ba   : > { %v2828_v19 = vld [vmem:[#allocation3 + $0x208] sm:$0xff] }
 0x6bb   : > { %v8844_v57 = vld [vmem:[#allocation3 + $0x108] sm:$0xff] }
 0x6bc   : > { %3672 = vrot.lane.b32.xlu2 %v11752_v34, %s8898_s16  ;;  %3012 = vrot.lane.b32.xlu0 %v11754_v20, %s8899_s17 }
 0x6bd   : > { %3766 = vrot.lane.b32.xlu1 %v11752_v34, %s8899_s17 }
 0x6be   : > { %v11762_v9 = vpop.permute.xlu2 %3650  ;;  %v2985_v59 = vpop.permute.xlu0 %2984 }
 0x6bf   : > { %v3739_v13 = vpop.permute.xlu1 %3738  ;;  %v3101_v2 = vsel %vm549_vm7, %v3069_v22, %v2985_v59  ;;  %v4239_v59 = vld [vmem:[%s14893_s6 + $0x20] sm:$0xff] }
 0x6c0   : > { %v3857_v24 = vsel %vm549_vm7, %v3825_v26, %v3739_v13  ;;  %8141 = vmatmul.msk.f32.gmra.mxu3 %vm3135_vm8, %v3101_v2  ;;  %v4241_v26 = vld [vmem:[%s14893_s6 + $0x30] sm:$0xff]  ;;  %v11842_v13 = vld [vmem:[#allocation3 + $0x1f0] sm:$0xff]  ;;  %v3828_v2 = vsel %vm502_vm5, %v11385_v51, %v11708_v61 }
 0x6c1   : > { %8193 = vmatmul.msk.f32.gmra.mxu0 %vm3135_vm8, %v2783_v50  ;;  %8215 = vmatmul.msk.f32.gmra.mxu1 %vm3135_vm8, %v3857_v24  ;;  %v4238_v50 = vld [vmem:[%s14893_s6 + $0x18] sm:$0xff]  ;;  %v3072_v24 = vsel %vm502_vm5, %v11050_v11, %v11394_v28  ;;  %v4236_v11 = vld [vmem:[%s14893_s6 + $0x8] sm:$0xff]  ;;  %v4235_v28 = vld [vmem:[%s14893_s6] sm:$0xff] }
 0x6c2   : > { %4349 = vmatpush.msra.mxu2 %v4241_v26  ;;  %v11873_v51 = vld [vmem:[#allocation3 + $0x1f1] sm:$0xff] }
 0x6c3   : > { %v8843_v61 = vld [vmem:[#allocation3 + $0xf0] sm:$0xff] }
 0x6c4   : > { %2918 = vrot.lane.b32.xlu2 %v11754_v20, %s8898_s16  ;;  %3014 = vrot.lane.b32.xlu0 %v11784_v39, %s8899_s17  ;;  %v3073_v46 = vsel %vm502_vm5, %v8843_v61, %v11423_v5  ;;  %v15104_v5 = vld [vmem:[#allocation9_spill] sm:$0xff] }
 0x6c5   : > { %3768 = vrot.lane.b32.xlu1 %v11788_v3, %s8899_s17  ;;  %4350 = vmatpush.msra.mxu2 %v4240_v32  ;;  %v3074_v58 = vsel %vm502_vm5, %v8844_v57, %v15104_v5  ;;  %v3588_v5 = vld [vmem:[#allocation3 + $0x229] sm:$0xff] }
 0x6c6   : > { %v11794_v7 = vpop.permute.xlu2 %3652  ;;  %v2987_v0 = vpop.permute.xlu0 %2986 }
 0x6c7   : > { %v3741_v45 = vpop.permute.xlu1 %3740  ;;  %v3102_v33 = vsel %vm549_vm7, %v3070_v30, %v2987_v0  ;;  %4351 = vmatpush.msra.mxu2 %v4239_v59 }
 0x6c8   : > { %v3858_v8 = vsel %vm549_vm7, %v3826_v10, %v3741_v45  ;;  %8142 = vmatmul.msk.f32.gmra.mxu3 %vm3135_vm8, %v3102_v33  ;;  %v4237_v33 = vld [vmem:[%s14893_s6 + $0x10] sm:$0xff] }
 0x6c9   : > { %8216 = vmatmul.msk.f32.gmra.mxu1 %vm3135_vm8, %v3858_v8  ;;  %4352 = vmatpush.msra.mxu2 %v4238_v50 }
 0x6cb   : > { %4353 = vmatpush.msra.mxu2 %v4237_v33  ;;  %v3249_v50 = vpop.f32.mrf.mxu3 }
 0x6cc   : > { %3772 = vrot.lane.b32.xlu2 %v11806_v56, %s8899_s17  ;;  %3674 = vrot.lane.b32.xlu0 %v11788_v3, %s8898_s16 }
 0x6cd   : > { %3770 = vrot.lane.b32.xlu1 %v11810_v38, %s8899_s17  ;;  %4354 = vmatpush.msra.mxu2 %v4236_v11  ;;  %v2831_v11 = vld [vmem:[#allocation3 + $0x230] sm:$0xff] }
 0x6ce   : > { %v11816_v40 = vpop.permute.xlu2 %3654  ;;  %v2989_v54 = vpop.permute.xlu0 %2988 }
 0x6cf   : > { %v3743_v44 = vpop.permute.xlu1 %3742  ;;  %v3103_v22 = vsel %vm549_vm7, %v3071_v6, %v2989_v54  ;;  %4355 = vmatpush.msra.mxu2 %v4235_v28  ;;  %v2830_v28 = vld [vmem:[#allocation3 + $0x228] sm:$0xff] }
 0x6d0   : > { %v3859_v15 = vsel %vm549_vm7, %v3827_v35, %v3743_v44  ;;  %8143 = vmatmul.msk.f32.gmra.mxu3 %vm3135_vm8, %v3103_v22  ;;  %v3830_v22 = vsel %vm502_vm5, %v11428_v60, %v11762_v9  ;;  %v8845_v60 = vld [vmem:[#allocation3 + $0x110] sm:$0xff] }
 0x6d1   : > { %8217 = vmatmul.msk.f32.gmra.mxu1 %vm3135_vm8, %v3859_v15  ;;  %v2829_v15 = vld [vmem:[#allocation3 + $0x210] sm:$0xff]  ;;  %v3075_v9 = vsel %vm502_vm5, %v8845_v60, %v11419_v27  ;;  %v3459_v27 = vadd.f32 %v11535_v53, %v3249_v50  ;;  %v15105_v50 = vld [vmem:[#allocation8_spill] sm:$0xff] }
 0x6d4   : > { %3018 = vrot.lane.b32.xlu2 %v2828_v19, %s8899_s17  ;;  %2920 = vrot.lane.b32.xlu0 %v11784_v39, %s8898_s16 }
 0x6d5   : > { %3016 = vrot.lane.b32.xlu1 %v11842_v13, %s8899_s17 }
 0x6d6   : > { %v2991_v10 = vpop.permute.xlu0 %2990  ;;  %v11861_v45 = vpop.permute.xlu2 %3656 }
 0x6d7   : > { %v3745_v30 = vpop.permute.xlu1 %3744  ;;  %v3104_v8 = vsel %vm549_vm7, %v3072_v24, %v2991_v10 }
 0x6d8   : > { %v3860_v0 = vsel %vm549_vm7, %v3828_v2, %v3745_v30  ;;  %8144 = vmatmul.msk.f32.gmra.mxu3 %vm3135_vm8, %v3104_v8  ;;  %v3586_v2 = vld [vmem:[#allocation3 + $0x209] sm:$0xff]  ;;  %v3831_v30 = vsel %vm502_vm5, %v11447_v52, %v11794_v7  ;;  %v11932_v7 = vld [vmem:[%s14892_s5] ss:$0 sm:$0xff] }
 0x6d9   : > { %8218 = vmatmul.msk.f32.gmra.mxu1 %vm3135_vm8, %v3860_v0 }
 0x6dc   : > { %3678 = vrot.lane.b32.xlu2 %v11806_v56, %s8898_s16  ;;  %3774 = vrot.lane.b32.xlu0 %v11873_v51, %s8899_s17 }
 0x6dd   : > { %3676 = vrot.lane.b32.xlu1 %v11810_v38, %s8898_s16 }
 0x6de   : > { %v2993_v43 = vpop.permute.xlu0 %2992  ;;  %v11892_v54 = vpop.permute.xlu2 %3658 }
 0x6df   : > { %v3747_v6 = vpop.permute.xlu1 %3746  ;;  %v3105_v44 = vsel %vm549_vm7, %v3073_v46, %v2993_v43  ;;  %v3832_v46 = vsel %vm502_vm5, %v11469_v55, %v11816_v40  ;;  %v8846_v43 = vld [vmem:[#allocation3 + $0x128] sm:$0xff] }
 0x6e0   : > { %v3861_v35 = vsel %vm549_vm7, %v3829_v41, %v3747_v6  ;;  %8145 = vmatmul.msk.f32.gmra.mxu3 %vm3135_vm8, %v3105_v44 }
 0x6e1   : > { %8219 = vmatmul.msk.f32.gmra.mxu1 %vm3135_vm8, %v3861_v35  ;;  %v3076_v35 = vsel %vm502_vm5, %v8846_v43, %v11440_v49 }
 0x6e4   : > { %2924 = vrot.lane.b32.xlu2 %v2828_v19, %s8898_s16  ;;  %3020 = vrot.lane.b32.xlu0 %v2829_v15, %s8899_s17  ;;  %v3587_v19 = vld [vmem:[#allocation3 + $0x211] sm:$0xff] }
 0x6e5   : > { %2922 = vrot.lane.b32.xlu1 %v11842_v13, %s8898_s16 }
 0x6e6   : > { %v2995_v32 = vpop.permute.xlu0 %2994  ;;  %v11908_v24 = vpop.permute.xlu2 %3660 }
 0x6e7   : > { %v3749_v26 = vpop.permute.xlu1 %3748  ;;  %v3106_v42 = vsel %vm549_vm7, %v3074_v58, %v2995_v32 }
 0x6e8   : > { %v3862_v59 = vsel %vm549_vm7, %v3830_v22, %v3749_v26  ;;  %8146 = vmatmul.msk.f32.gmra.mxu3 %vm3135_vm8, %v3106_v42  ;;  %v3589_v22 = vld [vmem:[#allocation3 + $0x231] sm:$0xff]  ;;  %v3833_v26 = vsel %vm502_vm5, %v11488_v17, %v11861_v45 }
 0x6e9   : > { %8220 = vmatmul.msk.f32.gmra.mxu1 %vm3135_vm8, %v3862_v59  ;;  %v8847_v42 = vld [vmem:[#allocation3 + $0x130] sm:$0xff] }
 0x6ea   : > { %v3077_v60 = vsel %vm502_vm5, %v8847_v42, %v15105_v50 }
 0x6ec   : > { %3778 = vrot.lane.b32.xlu2 %v3587_v19, %s8899_s17  ;;  %3680 = vrot.lane.b32.xlu0 %v11873_v51, %s8898_s16 }
 0x6ed   : > { %3776 = vrot.lane.b32.xlu1 %v3586_v2, %s8899_s17 }
 0x6ee   : > { %v2997_v0 = vpop.permute.xlu0 %2996  ;;  %v11927_v52 = vpop.permute.xlu2 %3662 }
 0x6ef   : > { %v3751_v10 = vpop.permute.xlu1 %3750  ;;  %v3107_v33 = vsel %vm549_vm7, %v3075_v9, %v2997_v0  ;;  %v3836_v50 = vsel %vm502_vm5, %v11562_v16, %v11927_v52 }
 0x6f0   : > { %v3863_v8 = vsel %vm549_vm7, %v3831_v30, %v3751_v10  ;;  %8147 = vmatmul.msk.f32.gmra.mxu3 %vm3135_vm8, %v3107_v33  ;;  %v3834_v33 = vsel %vm502_vm5, %v11509_v21, %v11892_v54 }
 0x6f1   : > { %8221 = vmatmul.msk.f32.gmra.mxu1 %vm3135_vm8, %v3863_v8 }
 0x6f3   : > { %v3252_v61 = vpop.f32.mrf.mxu3 }
 0x6f4   : > { %2926 = vrot.lane.b32.xlu0 %v2829_v15, %s8898_s16  ;;  %3024 = vrot.lane.b32.xlu2 %v2831_v11, %s8899_s17  ;;  %v3462_v49 = vadd.f32 %v11564_v37, %v3252_v61  ;;  %v8848_v61 = vld [vmem:[#allocation3 + $0x148] sm:$0xff] }
 0x6f5   : > { %3022 = vrot.lane.b32.xlu1 %v2830_v28, %s8899_s17 }
 0x6f6   : > { %v4006_v41 = vpop.f32.mrf.mxu1  ;;  %v2999_v15 = vpop.permute.xlu0 %2998 }
 0x6f7   : > { %v3753_v6 = vpop.permute.xlu1 %3752  ;;  %v4102_v44 = vadd.f32 %v4006_v41, %v3459_v27  ;;  %v3108_v57 = vsel %vm549_vm7, %v3076_v35, %v2999_v15  ;;  %v11954_v9 = vpop.permute.xlu2 %3664  ;;  %v15106_v27 = vld [vmem:[#allocation39_spill] sm:$0xff]  ;;  %v3835_v15 = vsel %vm502_vm5, %v11533_v23, %v11908_v24 }
 0x6f8   : > { %v3864_v53 = vsel %vm549_vm7, %v3832_v46, %v3753_v6  ;;  %8148 = vmatmul.msk.f32.gmra.mxu3 %vm3135_vm8, %v3108_v57  ;;  %v3078_v46 = vsel %vm502_vm5, %v8848_v61, %v15106_v27  ;;  %v3837_v61 = vsel %vm502_vm5, %v11589_v62, %v11954_v9 }
 0x6f9   : > { %v4138_v58 = vadd.f32 %v11932_v7, %v4102_v44  ;;  %8222 = vmatmul.msk.f32.gmra.mxu1 %vm3135_vm8, %v3864_v53  ;;  %v11974_v44 = vpop.f32.mrf.mxu0 }
 0x6fb   : > { %v4170_v55 = vmax.f32 %v4138_v58, 0.0  ;;  %v3255_v40 = vpop.f32.mrf.mxu3  ;;  %v8849_v58 = vld [vmem:[#allocation3 + $0x150] sm:$0xff] }
 0x6fc   : > { %3780 = vrot.lane.b32.xlu0 %v3588_v5, %s8899_s17  ;;  %3782 = vrot.lane.b32.xlu2 %v3589_v22, %s8899_s17  ;;  %v3465_v8 = vadd.f32 %v11597_v47, %v3255_v40 }
 0x6fd   : > { %3682 = vrot.lane.b32.xlu1 %v3586_v2, %s8898_s16  ;;  %8239 = vmatmul.msk.f32.vlgmr.msra.gmra.mxu2 %vm549_vm7, %v4170_v55  ;;  %v15107_v55 = vld [vmem:[#allocation16_spill] sm:$0xff] }
 0x6fe   : > { %v4009_v32 = vpop.f32.mrf.mxu1  ;;  %v3001_v30 = vpop.permute.xlu0 %3000  ;;  %v3079_v40 = vsel %vm502_vm5, %v8849_v58, %v15107_v55  ;;  %v8852_v55 = vld [vmem:[#allocation3 + $0x188] sm:$0xff] }
 0x6ff   : > { %v3755_v59 = vpop.permute.xlu1 %3754  ;;  %v4103_v2 = vadd.f32 %v4009_v32, %v3462_v49  ;;  %v3109_v10 = vsel %vm549_vm7, %v3077_v60, %v3001_v30  ;;  %v3667_v35 = vpop.permute.xlu2 %3666  ;;  %v15108_v30 = vld [vmem:[#allocation7_spill] sm:$0xff] }
 0x700   : > { %v3865_v37 = vsel %vm549_vm7, %v3833_v26, %v3755_v59  ;;  %8149 = vmatmul.msk.f32.gmra.mxu3 %vm3135_vm8, %v3109_v10 }
 0x701   : > { %v4139_v0 = vadd.f32 %v11932_v7, %v4103_v2  ;;  %8223 = vmatmul.msk.f32.gmra.mxu1 %vm3135_vm8, %v3865_v37  ;;  %v8850_v37 = vld [vmem:[#allocation3 + $0x168] sm:$0xff] }
 0x702   : > { %v3080_v10 = vsel %vm502_vm5, %v8850_v37, %v15108_v30  ;;  %v8853_v37 = vld [vmem:[#allocation3 + $0x190] sm:$0xff]  ;;  %v15111_v30 = vld [vmem:[#allocation40_spill] sm:$0xff] }
 0x703   : > { %v4171_v17 = vmax.f32 %v4139_v0, 0.0  ;;  %v3258_v45 = vpop.f32.mrf.mxu3  ;;  %v11995_v0 = vpop.f32.mrf.mxu0 }
 0x704   : > { %v3468_v53 = vadd.f32 %v11636_v63, %v3258_v45 }
 0x705   : > { %3684 = vrot.lane.b32.xlu1 %v3587_v19, %s8898_s16  ;;  %8240 = vmatmul.msk.f32.gmra.mxu2 %vm549_vm7, %v4171_v17 }
 0x706   : > { %v4012_v11 = vpop.f32.mrf.mxu1  ;;  %v3003_v43 = vpop.permute.xlu0 %3002 }
 0x707   : > { %v3757_v28 = vpop.permute.xlu1 %3756  ;;  %v4104_v41 = vadd.f32 %v4012_v11, %v3465_v8  ;;  %v3110_v19 = vsel %vm549_vm7, %v3078_v46, %v3003_v43  ;;  %v3669_v59 = vpop.permute.xlu2 %3668 }
 0x708   : > { %v3866_v6 = vsel %vm549_vm7, %v3834_v33, %v3757_v28  ;;  %8150 = vmatmul.msk.f32.gmra.mxu3 %vm3135_vm8, %v3110_v19 }
 0x709   : > { %v4140_v47 = vadd.f32 %v11932_v7, %v4104_v41  ;;  %8224 = vmatmul.msk.f32.gmra.mxu1 %vm3135_vm8, %v3866_v6  ;;  %v8851_v41 = vld [vmem:[#allocation3 + $0x170] sm:$0xff]  ;;  %v15109_v6 = vld [vmem:[#allocation13_spill] sm:$0xff] }
 0x70a   : > { %v3081_v43 = vsel %vm502_vm5, %v8851_v41, %v15109_v6 }
 0x70b   : > { %v4172_v21 = vmax.f32 %v4140_v47, 0.0  ;;  %v3261_v54 = vpop.f32.mrf.mxu3 }
 0x70c   : > { %v3471_v42 = vadd.f32 %v11670_v36, %v3261_v54 }
 0x70d   : > { %8241 = vmatmul.msk.f32.gmra.mxu2 %vm549_vm7, %v4172_v21 }
 0x70e   : > { %v4015_v57 = vpop.f32.mrf.mxu1  ;;  %v3005_v26 = vpop.permute.xlu0 %3004 }
 0x70f   : > { %v3759_v5 = vpop.permute.xlu1 %3758  ;;  %v4105_v49 = vadd.f32 %v4015_v57, %v3468_v53  ;;  %v3111_v32 = vsel %vm549_vm7, %v3079_v40, %v3005_v26  ;;  %v3671_v11 = vpop.permute.xlu2 %3670  ;;  %v3838_v57 = vsel %vm502_vm5, %v11616_v48, %v3667_v35  ;;  %v15110_v40 = vld [vmem:[#allocation37_spill] sm:$0xff] }
 0x710   : > { %v3867_v22 = vsel %vm549_vm7, %v3835_v15, %v3759_v5  ;;  %8151 = vmatmul.msk.f32.gmra.mxu3 %vm3135_vm8, %v3111_v32  ;;  %v12011_v53 = vpop.f32.mrf.mxu0 }
 0x711   : > { %v4141_v63 = vadd.f32 %v11932_v7, %v4105_v49  ;;  %8225 = vmatmul.msk.f32.gmra.mxu1 %vm3135_vm8, %v3867_v22  ;;  %v3082_v49 = vsel %vm502_vm5, %v8852_v55, %v15110_v40 }
 0x713   : > { %v4173_v23 = vmax.f32 %v4141_v63, 0.0  ;;  %v3264_v24 = vpop.f32.mrf.mxu3 }
 0x714   : > { %v3474_v28 = vadd.f32 %v11700_v14, %v3264_v24 }
 0x715   : > { %8242 = vmatmul.msk.f32.gmra.mxu2 %vm549_vm7, %v4173_v23 }
 0x716   : > { %v4018_v60 = vpop.f32.mrf.mxu1  ;;  %v3007_v8 = vpop.permute.xlu0 %3006 }
 0x717   : > { %v3761_v2 = vpop.permute.xlu1 %3760  ;;  %v4106_v17 = vadd.f32 %v4018_v60, %v3471_v42  ;;  %v3112_v36 = vsel %vm549_vm7, %v3080_v10, %v3007_v8  ;;  %v3673_v22 = vpop.permute.xlu2 %3672  ;;  %v3083_v10 = vsel %vm502_vm5, %v8853_v37, %v15111_v30 }
 0x718   : > { %v3868_v45 = vsel %vm549_vm7, %v3836_v50, %v3761_v2  ;;  %8152 = vmatmul.msk.f32.gmra.mxu3 %vm3135_vm8, %v3112_v36  ;;  %v12027_v48 = vpop.f32.mrf.mxu0  ;;  %v3839_v50 = vsel %vm502_vm5, %v11643_v18, %v3669_v59 }
 0x719   : > { %v4142_v33 = vadd.f32 %v11932_v7, %v4106_v17  ;;  %8226 = vmatmul.msk.f32.gmra.mxu1 %vm3135_vm8, %v3868_v45 }
 0x71b   : > { %v4174_v16 = vmax.f32 %v4142_v33, 0.0  ;;  %v3267_v52 = vpop.f32.mrf.mxu3 }
 0x71c   : > { %v3477_v15 = vadd.f32 %v11733_v1, %v3267_v52 }
 0x71d   : > { %8243 = vmatmul.msk.f32.gmra.mxu2 %vm549_vm7, %v4174_v16 }
 0x71e   : > { %v4021_v27 = vpop.f32.mrf.mxu1  ;;  %v3009_v21 = vpop.permute.xlu0 %3008 }
 0x71f   : > { %v3763_v46 = vpop.permute.xlu1 %3762  ;;  %v4107_v19 = vadd.f32 %v4021_v27, %v3474_v28  ;;  %v3113_v54 = vsel %vm549_vm7, %v3081_v43, %v3009_v21  ;;  %v2919_v33 = vpop.permute.xlu2 %2918  ;;  %v3840_v28 = vsel %vm502_vm5, %v11673_v25, %v3671_v11 }
 0x720   : > { %v3869_v47 = vsel %vm549_vm7, %v3837_v61, %v3763_v46  ;;  %8153 = vmatmul.msk.f32.gmra.mxu3 %vm3135_vm8, %v3113_v54  ;;  %v12040_v16 = vpop.f32.mrf.mxu0  ;;  %v8854_v46 = vld [vmem:[#allocation3 + $0x1a8] sm:$0xff] }
 0x721   : > { %v4143_v14 = vadd.f32 %v11932_v7, %v4107_v19  ;;  %8227 = vmatmul.msk.f32.gmra.mxu1 %vm3135_vm8, %v3869_v47  ;;  %v3084_v41 = vsel %vm502_vm5, %v8854_v46, %v11502_v31  ;;  %v3841_v31 = vsel %vm502_vm5, %v11698_v29, %v3673_v22  ;;  %v8855_v29 = vld [vmem:[#allocation3 + $0x1b0] sm:$0xff] }
 0x722   : > { %v3085_v22 = vsel %vm502_vm5, %v8855_v29, %v2919_v33 }
 0x723   : > { %v4175_v62 = vmax.f32 %v4143_v14, 0.0  ;;  %v3270_v9 = vpop.f32.mrf.mxu3 }
 0x724   : > { %v3480_v42 = vadd.f32 %v11779_v4, %v3270_v9 }
 0x725   : > { %8244 = vmatmul.msk.f32.gmra.mxu2 %vm549_vm7, %v4175_v62 }
 0x726   : > { %v4024_v5 = vpop.f32.mrf.mxu1  ;;  %v3011_v63 = vpop.permute.xlu0 %3010 }
 0x727   : > { %v3765_v58 = vpop.permute.xlu1 %3764  ;;  %v4108_v26 = vadd.f32 %v4024_v5, %v3477_v15  ;;  %v3114_v23 = vsel %vm549_vm7, %v3082_v49, %v3011_v63 }
 0x728   : > { %v3870_v32 = vsel %vm549_vm7, %v3838_v57, %v3765_v58  ;;  %8154 = vmatmul.msk.f32.gmra.mxu3 %vm3135_vm8, %v3114_v23  ;;  %v3497_v9 = vpop.f32.mrf.mxu0 }
 0x729   : > { %v4144_v1 = vadd.f32 %v11932_v7, %v4108_v26  ;;  %8228 = vmatmul.msk.f32.gmra.mxu1 %vm3135_vm8, %v3870_v32 }
 0x72b   : > { %v4176_v35 = vmax.f32 %v4144_v1, 0.0  ;;  %v3273_v24 = vpop.f32.mrf.mxu3 }
 0x72c   : > { %v3483_v52 = vadd.f32 %v11974_v44, %v3273_v24  ;;  %v3773_v44 = vpop.permute.xlu2 %3772 }
 0x72d   : > { %8245 = vmatmul.msk.f32.gmra.mxu2 %vm549_vm7, %v4176_v35 }
 0x72e   : > { %v4027_v60 = vpop.f32.mrf.mxu1  ;;  %v3013_v8 = vpop.permute.xlu0 %3012 }
 0x72f   : > { %v3767_v2 = vpop.permute.xlu1 %3766  ;;  %v4109_v17 = vadd.f32 %v4027_v60, %v3480_v42  ;;  %v3115_v36 = vsel %vm549_vm7, %v3083_v10, %v3013_v8  ;;  %v8856_v60 = vld [vmem:[#allocation3 + $0x1c8] sm:$0xff] }
 0x730   : > { %v3871_v45 = vsel %vm549_vm7, %v3839_v50, %v3767_v2  ;;  %8155 = vmatmul.msk.f32.gmra.mxu3 %vm3135_vm8, %v3115_v36  ;;  %v3500_v42 = vpop.f32.mrf.mxu0 }
 0x731   : > { %v4145_v4 = vadd.f32 %v11932_v7, %v4109_v17  ;;  %8229 = vmatmul.msk.f32.gmra.mxu1 %vm3135_vm8, %v3871_v45 }
 0x733   : > { %v4177_v18 = vmax.f32 %v4145_v4, 0.0  ;;  %v3276_v59 = vpop.f32.mrf.mxu3 }
 0x734   : > { %v3486_v54 = vadd.f32 %v11995_v0, %v3276_v59  ;;  %v3019_v49 = vpop.permute.xlu2 %3018 }
 0x735   : > { %8246 = vmatmul.msk.f32.gmra.mxu2 %vm549_vm7, %v4177_v18 }
 0x736   : > { %v4030_v61 = vpop.f32.mrf.mxu1  ;;  %v3015_v19 = vpop.permute.xlu0 %3014 }
 0x737   : > { %v3769_v27 = vpop.permute.xlu1 %3768  ;;  %v4110_v6 = vadd.f32 %v4030_v61, %v3483_v52  ;;  %v3116_v47 = vsel %vm549_vm7, %v3084_v41, %v3015_v19 }
 0x738   : > { %v3872_v43 = vsel %vm549_vm7, %v3840_v28, %v3769_v27  ;;  %8156 = vmatmul.msk.f32.gmra.mxu3 %vm3135_vm8, %v3116_v47 }
 0x739   : > { %v4146_v21 = vadd.f32 %v11932_v7, %v4110_v6  ;;  %8230 = vmatmul.msk.f32.gmra.mxu1 %vm3135_vm8, %v3872_v43 }
 0x73b   : > { %v4178_v25 = vmax.f32 %v4146_v21, 0.0  ;;  %v3279_v11 = vpop.f32.mrf.mxu3 }
 0x73c   : > { %v3489_v0 = vadd.f32 %v12011_v53, %v3279_v11  ;;  %v3679_v33 = vpop.permute.xlu2 %3678 }
 0x73d   : > { %8247 = vmatmul.msk.f32.gmra.mxu2 %vm549_vm7, %v4178_v25  ;;  %v8286_v25 = vld [vmem:[%s14896_s9 + $0x138] sm:$0xff] }
 0x73e   : > { %v4033_v14 = vpop.f32.mrf.mxu1  ;;  %v3675_v5 = vpop.permute.xlu0 %3674  ;;  %4993 = vmatpush.msrb.mxu3 %v8286_v25 }
 0x73f   : > { %v3771_v62 = vpop.permute.xlu1 %3770  ;;  %v4111_v15 = vadd.f32 %v4033_v14, %v3486_v54  ;;  %v3842_v26 = vsel %vm502_vm5, %v11725_v12, %v3675_v5  ;;  %v8294_v5 = vld [vmem:[%s14896_s9 + $0x178] sm:$0xff] }
 0x740   : > { %v3873_v57 = vsel %vm549_vm7, %v3841_v31, %v3771_v62  ;;  %v3874_v24 = vsel %vm549_vm7, %v3842_v26, %v3773_v44  ;;  %5114 = vmatpush.msra.mxu0 %v8294_v5 }
 0x741   : > { %v4147_v58 = vadd.f32 %v11932_v7, %v4111_v15  ;;  %8231 = vmatmul.msk.f32.gmra.mxu1 %vm3135_vm8, %v3873_v57 }
 0x743   : > { %v4179_v55 = vmax.f32 %v4147_v58, 0.0  ;;  %v3282_v40 = vpop.f32.mrf.mxu3  ;;  %v15112_v58 = vmov 0.0  }
 0x744   : > { %v3492_v37 = vadd.f32 %v12027_v48, %v3282_v40  ;;  %v12080_v48 = vpop.f32.mrf.mxu0  ;;  %v2925_v19 = vpop.permute.xlu2 %2924  ;;  %561 = vst.msk [vmem:[#allocation4 + $0x27] sm:$0x1] %vm559_vm9, %v15112_v58 }
 0x745   : > { %8248 = vmatmul.msk.f32.gmra.mxu2 %vm549_vm7, %v4179_v55  ;;  %560 = vst.msk [vmem:[#allocation4 + $0x7] sm:$0x1] %vm559_vm9, %v15112_v58 }
 0x746   : > { %v4036_v32 = vpop.f32.mrf.mxu1  ;;  %v2921_v35 = vpop.permute.xlu0 %2920  ;;  %562 = vst.msk [vmem:[#allocation4 + $0x47] sm:$0x1] %vm559_vm9, %v15112_v58 }
 0x747   : > { %v3017_v63 = vpop.permute.xlu1 %3016  ;;  %v4112_v23 = vadd.f32 %v4036_v32, %v3489_v0  ;;  %v3086_v2 = vsel %vm502_vm5, %v8856_v60, %v2921_v35  ;;  %563 = vst.msk [vmem:[#allocation4 + $0x67] sm:$0x1] %vm559_vm9, %v15112_v58 }
 0x748   : > { %v3117_v1 = vsel %vm549_vm7, %v3085_v22, %v3017_v63  ;;  %v3118_v36 = vsel %vm549_vm7, %v3086_v2, %v3019_v49  ;;  %v3088_v49 = vsel %vm502_vm5, %v11784_v39, %v2925_v19  ;;  %564 = vst.msk [vmem:[#allocation4 + $0x87] sm:$0x1] %vm559_vm9, %v15112_v58 }
 0x749   : > { %8157 = vmatmul.msk.f32.gmra.mxu3 %vm3135_vm8, %v3117_v1  ;;  %v4148_v53 = vadd.f32 %v11932_v7, %v4112_v23  ;;  %8232 = vmatmul.msk.f32.gmra.mxu1 %vm3135_vm8, %v3874_v24  ;;  %565 = vst.msk [vmem:[#allocation4 + $0xa7] sm:$0x1] %vm559_vm9, %v15112_v58 }
 0x74a   : > { %566 = vst.msk [vmem:[#allocation4 + $0xc7] sm:$0x1] %vm559_vm9, %v15112_v58 }
 0x74b   : > { %v4180_v12 = vmax.f32 %v4148_v53, 0.0  ;;  %v3285_v50 = vpop.f32.mrf.mxu3  ;;  %567 = vst.msk [vmem:[#allocation4 + $0xe7] sm:$0x1] %vm559_vm9, %v15112_v58  ;;  %v8285_v53 = vld [vmem:[%s14896_s9 + $0x130] sm:$0xff] }
 0x74c   : > { %v3495_v28 = vadd.f32 %v12040_v16, %v3285_v50  ;;  %v12089_v44 = vpop.f32.mrf.mxu0  ;;  %568 = vst.msk [vmem:[#allocation4 + $0x107] sm:$0x1] %vm559_vm9, %v15112_v58  ;;  %4994 = vmatpush.msrb.mxu3 %v8285_v53 }
 0x74d   : > { %8249 = vmatmul.msk.f32.gmra.mxu2 %vm549_vm7, %v4180_v12  ;;  %569 = vst.msk [vmem:[#allocation4 + $0x127] sm:$0x1] %vm559_vm9, %v15112_v58  ;;  %v8293_v12 = vld [vmem:[%s14896_s9 + $0x170] sm:$0xff] }
 0x74e   : > { %v4039_v30 = vpop.f32.mrf.mxu1  ;;  %v3775_v8 = vpop.permute.xlu0 %3774  ;;  %570 = vst.msk [vmem:[#allocation4 + $0x147] sm:$0x1] %vm559_vm9, %v15112_v58  ;;  %5115 = vmatpush.msra.mxu0 %v8293_v12 }
 0x74f   : > { %v3677_v10 = vpop.permute.xlu1 %3676  ;;  %v4113_v17 = vadd.f32 %v4039_v30, %v3492_v37  ;;  %571 = vst.msk [vmem:[#allocation4 + $0x167] sm:$0x1] %vm559_vm9, %v15112_v58 }
 0x750   : > { %v3843_v45 = vsel %vm502_vm5, %v11752_v34, %v3677_v10  ;;  %v8292_v10 = vld [vmem:[%s14896_s9 + $0x168] sm:$0xff]  ;;  %572 = vst.msk [vmem:[#allocation4 + $0x187] sm:$0x1] %vm559_vm9, %v15112_v58 }
 0x751   : > { %v3875_v4 = vsel %vm549_vm7, %v3843_v45, %v3775_v8  ;;  %8158 = vmatmul.msk.f32.gmra.mxu3 %vm3135_vm8, %v3118_v36  ;;  %v4149_v18 = vadd.f32 %v11932_v7, %v4113_v17  ;;  %5116 = vmatpush.msra.mxu0 %v8292_v10  ;;  %573 = vst.msk [vmem:[#allocation4 + $0x1a7] sm:$0x1] %vm559_vm9, %v15112_v58  ;;  %v8291_v8 = vld [vmem:[%s14896_s9 + $0x160] sm:$0xff] }
 0x752   : > { %8233 = vmatmul.msk.f32.gmra.mxu1 %vm3135_vm8, %v3875_v4  ;;  %574 = vst.msk [vmem:[#allocation4 + $0x1c7] sm:$0x1] %vm559_vm9, %v15112_v58  ;;  %v8290_v4 = vld [vmem:[%s14896_s9 + $0x158] sm:$0xff] }
 0x753   : > { %v4181_v59 = vmax.f32 %v4149_v18, 0.0  ;;  %v3288_v52 = vpop.f32.mrf.mxu3  ;;  %5117 = vmatpush.msra.mxu0 %v8291_v8  ;;  %575 = vst.msk [vmem:[#allocation4 + $0x1e7] sm:$0x1] %vm559_vm9, %v15112_v58 }
 0x754   : > { %v3498_v16 = vadd.f32 %v3497_v9, %v3288_v52  ;;  %v12116_v29 = vpop.f32.mrf.mxu0  ;;  %576 = vst.msk [vmem:[#allocation4 + $0x207] sm:$0x1] %vm559_vm9, %v15112_v58  ;;  %v8289_v52 = vld [vmem:[%s14896_s9 + $0x150] sm:$0xff] }
 0x755   : > { %8250 = vmatmul.msk.f32.gmra.mxu2 %vm549_vm7, %v4181_v59  ;;  %5118 = vmatpush.msra.mxu0 %v8290_v4  ;;  %577 = vst.msk [vmem:[#allocation4 + $0x227] sm:$0x1] %vm559_vm9, %v15112_v58 }
 0x756   : > { %v4042_v34 = vpop.f32.mrf.mxu1  ;;  %v3021_v41 = vpop.permute.xlu0 %3020  ;;  %578 = vst.msk [vmem:[#allocation4 + $0x18] sm:$0x1] %vm559_vm9, %v15112_v58 }
 0x757   : > { %v2923_v61 = vpop.permute.xlu1 %2922  ;;  %v4114_v27 = vadd.f32 %v4042_v34, %v3495_v28  ;;  %579 = vst.msk [vmem:[#allocation4 + $0x38] sm:$0x1] %vm559_vm9, %v15112_v58  ;;  %5119 = vmatpush.msra.mxu0 %v8289_v52 }
 0x758   : > { %v3087_v46 = vsel %vm502_vm5, %v11754_v20, %v2923_v61  ;;  %v3844_v20 = vsel %vm502_vm5, %v11788_v3, %v3679_v33  ;;  %v3779_v3 = vpop.permute.xlu2 %3778  ;;  %v4211_v61 = vld [vmem:[%s14895_s8] sm:$0x1]  ;;  %580 = vst.msk [vmem:[#allocation4 + $0x58] sm:$0x1] %vm559_vm9, %v15112_v58 }
 0x759   : > { %v3119_v6 = vsel %vm549_vm7, %v3087_v46, %v3021_v41  ;;  %v4150_v43 = vadd.f32 %v11932_v7, %v4114_v27  ;;  %v8288_v41 = vld [vmem:[%s14896_s9 + $0x148] sm:$0xff]  ;;  %581 = vst.msk [vmem:[#allocation4 + $0x78] sm:$0x1] %vm559_vm9, %v15112_v58 }
 0x75a   : > { %8159 = vmatmul.msk.f32.gmra.mxu3 %vm3135_vm8, %v3119_v6  ;;  %5120 = vmatpush.msra.mxu0 %v8288_v41  ;;  %582 = vst.msk [vmem:[#allocation4 + $0x98] sm:$0x1] %vm559_vm9, %v15112_v58 }
 0x75b   : > { %v4182_v47 = vmax.f32 %v4150_v43, 0.0  ;;  %v3291_v21 = vpop.f32.mrf.mxu3  ;;  %583 = vst.msk [vmem:[#allocation4 + $0xb8] sm:$0x1] %vm559_vm9, %v15112_v58 }
 0x75c   : > { %v3501_v40 = vadd.f32 %v3500_v42, %v3291_v21  ;;  %v12161_v45 = vpop.f32.mrf.mxu0  ;;  %584 = vst.msk [vmem:[#allocation4 + $0xd8] sm:$0x1] %vm559_vm9, %v15112_v58 }
 0x75d   : > { %8251 = vmatmul.msk.f32.gmra.mxu2 %vm549_vm7, %v4182_v47  ;;  %585 = vst.msk [vmem:[#allocation4 + $0xf8] sm:$0x1] %vm559_vm9, %v15112_v58 }
 0x75e   : > { %v4045_v11 = vpop.f32.mrf.mxu1  ;;  %v3681_v62 = vpop.permute.xlu0 %3680  ;;  %586 = vst.msk [vmem:[#allocation4 + $0x118] sm:$0x1] %vm559_vm9, %v15112_v58 }
 0x75f   : > { %v3777_v54 = vpop.permute.xlu1 %3776  ;;  %v4115_v31 = vadd.f32 %v4045_v11, %v3498_v16  ;;  %v3845_v55 = vsel %vm502_vm5, %v11810_v38, %v3681_v62  ;;  %587 = vst.msk [vmem:[#allocation4 + $0x138] sm:$0x1] %vm559_vm9, %v15112_v58 }
 0x760   : > { %v3876_v14 = vsel %vm549_vm7, %v3844_v20, %v3777_v54  ;;  %v3877_v63 = vsel %vm549_vm7, %v3845_v55, %v3779_v3  ;;  %v3025_v24 = vpop.permute.xlu2 %3024  ;;  %v8284_v20 = vld [vmem:[%s14896_s9 + $0x128] sm:$0xff]  ;;  %588 = vst.msk [vmem:[#allocation4 + $0x158] sm:$0x1] %vm559_vm9, %v15112_v58 }
 0x761   : > { %8234 = vmatmul.msk.f32.gmra.mxu1 %vm3135_vm8, %v3876_v14  ;;  %v4151_v9 = vadd.f32 %v11932_v7, %v4115_v31  ;;  %4995 = vmatpush.msrb.mxu3 %v8284_v20  ;;  %589 = vst.msk [vmem:[#allocation4 + $0x178] sm:$0x1] %vm559_vm9, %v15112_v58 }
 0x762   : > { %590 = vst.msk [vmem:[#allocation4 + $0x198] sm:$0x1] %vm559_vm9, %v15112_v58 }
 0x763   : > { %v4183_v15 = vmax.f32 %v4151_v9, 0.0  ;;  %v3294_v57 = vpop.f32.mrf.mxu3  ;;  %591 = vst.msk [vmem:[#allocation4 + $0x1b8] sm:$0x1] %vm559_vm9, %v15112_v58 }
 0x764   : > { %v3504_v42 = vadd.f32 %v12080_v48, %v3294_v57  ;;  %v4232_v48 = vpop.f32.mrf.mxu2  ;;  %v3515_v47 = vpop.f32.mrf.mxu0  ;;  %592 = vst.msk [vmem:[#allocation4 + $0x1d8] sm:$0x1] %vm559_vm9, %v15112_v58 }
 0x765   : > { %8252 = vmatmul.msk.f32.gmra.mxu2 %vm549_vm7, %v4183_v15  ;;  %v4233_v19 = vadd.f32 %v4232_v48, %v4211_v61  ;;  %593 = vst.msk [vmem:[#allocation4 + $0x1f8] sm:$0x1] %vm559_vm9, %v15112_v58 }
 0x766   : > { %v4048_v0 = vpop.f32.mrf.mxu1  ;;  %v2927_v32 = vpop.permute.xlu0 %2926  ;;  %594 = vst.msk [vmem:[#allocation4 + $0x218] sm:$0x1] %vm559_vm9, %v15112_v58 }
 0x767   : > { %v3023_v26 = vpop.permute.xlu1 %3022  ;;  %v4116_v38 = vadd.f32 %v4048_v0, %v3501_v40  ;;  %v3089_v35 = vsel %vm502_vm5, %v11842_v13, %v2927_v32  ;;  %v12215_v25 = vperm.slane %v4233_v19, 0  ;;  %595 = vst.msk [vmem:[#allocation4 + $0x238] sm:$0x1] %vm559_vm9, %v15112_v58 }
 0x768   : > { %v3120_v22 = vsel %vm549_vm7, %v3088_v49, %v3023_v26  ;;  %v3121_v60 = vsel %vm549_vm7, %v3089_v35, %v3025_v24  ;;  %v3783_v59 = vpop.permute.xlu2 %3782 }
 0x769   : > { %8160 = vmatmul.msk.f32.gmra.mxu3 %vm3135_vm8, %v3120_v22  ;;  %8235 = vmatmul.msk.f32.gmra.mxu1 %vm3135_vm8, %v3877_v63  ;;  %v4152_v39 = vadd.f32 %v11932_v7, %v4116_v38  ;;  %v8283_v22 = vld [vmem:[%s14896_s9 + $0x120] sm:$0xff] }
 0x76a   : > { %4996 = vmatpush.msrb.mxu3 %v8283_v22 }
 0x76b   : > { %v4184_v23 = vmax.f32 %v4152_v39, 0.0  ;;  %v3297_v1 = vpop.f32.mrf.mxu3 }
 0x76c   : > { %v3507_v18 = vadd.f32 %v12089_v44, %v3297_v1  ;;  %v3518_v57 = vpop.f32.mrf.mxu0 }
 0x76d   : > { %8253 = vmatmul.msk.f32.gmra.mxu2 %vm549_vm7, %v4184_v23 }
 0x76e   : > { %v4051_v13 = vpop.f32.mrf.mxu1  ;;  %v3781_v30 = vpop.permute.xlu0 %3780 }
 0x76f   : > { %v3683_v50 = vpop.permute.xlu1 %3682  ;;  %v4117_v2 = vadd.f32 %v4051_v13, %v3504_v42 }
 0x770   : > { %v3846_v37 = vsel %vm502_vm5, %v11806_v56, %v3683_v50 }
 0x771   : > { %v3878_v17 = vsel %vm549_vm7, %v3846_v37, %v3781_v30  ;;  %8161 = vmatmul.msk.f32.gmra.mxu3 %vm3135_vm8, %v3121_v60  ;;  %v4153_v56 = vadd.f32 %v11932_v7, %v4117_v2 }
 0x772   : > { %8236 = vmatmul.msk.f32.gmra.mxu1 %vm3135_vm8, %v3878_v17 }
 0x773   : > { %v4185_v36 = vmax.f32 %v4153_v56, 0.0  ;;  %v3300_v33 = vpop.f32.mrf.mxu3 }
 0x774   : > { %v3510_v16 = vadd.f32 %v12116_v29, %v3300_v33  ;;  %v3521_v63 = vpop.f32.mrf.mxu0 }
 0x775   : > { %8254 = vmatmul.msk.f32.gmra.mxu2 %vm549_vm7, %v4185_v36  ;;  %v8282_v36 = vld [vmem:[%s14896_s9 + $0x118] sm:$0xff] }
 0x776   : > { %v4054_v28 = vpop.f32.mrf.mxu1  ;;  %4997 = vmatpush.msrb.mxu3 %v8282_v36 }
 0x777   : > { %v3685_v34 = vpop.permute.xlu1 %3684  ;;  %v4118_v27 = vadd.f32 %v4054_v28, %v3507_v18 }
 0x778   : > { %v3847_v46 = vsel %vm502_vm5, %v11873_v51, %v3685_v34  ;;  %v8287_v51 = vld [vmem:[%s14896_s9 + $0x140] sm:$0xff] }
 0x779   : > { %v3879_v6 = vsel %vm549_vm7, %v3847_v46, %v3783_v59  ;;  %v4154_v43 = vadd.f32 %v11932_v7, %v4118_v27  ;;  %5121 = vmatpush.msra.mxu0 %v8287_v51 }
 0x77a   : > { %8237 = vmatmul.msk.f32.gmra.mxu1 %vm3135_vm8, %v3879_v6 }
 0x77b   : > { %v4186_v21 = vmax.f32 %v4154_v43, 0.0  ;;  %v3303_v44 = vpop.f32.mrf.mxu3 }
 0x77c   : > { %v3513_v5 = vadd.f32 %v12161_v45, %v3303_v44  ;;  %v3524_v37 = vpop.f32.mrf.mxu0 }
 0x77d   : > { %8255 = vmatmul.msk.f32.gmra.mxu2 %vm549_vm7, %v4186_v21 }
 0x77e   : > { %v4057_v11 = vpop.f32.mrf.mxu1 }
 0x77f   : > { %v4119_v54 = vadd.f32 %v4057_v11, %v3510_v16 }
 0x780   : > { %v4357_v31 = vpop.f32.mrf.mxu2 }
 0x781   : > { %v4155_v14 = vadd.f32 %v11932_v7, %v4119_v54  ;;  %v4358_v62 = vadd.f32 %v4357_v31, %v12215_v25  ;;  %v8281_v31 = vld [vmem:[%s14896_s9 + $0x110] sm:$0xff] }
 0x782   : > { %4998 = vmatpush.msrb.mxu3 %v8281_v31  ;;  %v4696_v31 = vld [vmem:[%s14896_s9 + $0x70] sm:$0xff] }
 0x783   : > { %v4187_v9 = vmax.f32 %v4155_v14, 0.0  ;;  %4454 = vst.msk [vmem:[#allocation4 + $0x28] sm:$0xff] %vm549_vm7, %v4358_v62  ;;  %v3306_v15 = vpop.f32.mrf.mxu3 }
 0x784   : > { %v3516_v38 = vadd.f32 %v3515_v47, %v3306_v15  ;;  %v3527_v61 = vpop.f32.mrf.mxu0 }
 0x785   : > { %8256 = vmatmul.msk.f32.gmra.mxu2 %vm549_vm7, %v4187_v9 }
 0x786   : > { %v4060_v3 = vpop.f32.mrf.mxu1 }
 0x787   : > { %v4120_v55 = vadd.f32 %v4060_v3, %v3513_v5 }
 0x788   : > { %v4360_v40 = vpop.f32.mrf.mxu2 }
 0x789   : > { %v4156_v49 = vadd.f32 %v11932_v7, %v4120_v55  ;;  %v4361_v0 = vadd.f32 %v4360_v40, %v12215_v25 }
 0x78a   : > { %v12255_v35 = vld [vmem:[#allocation4 + $0x27] sm:$0xff] }
 0x78b   : > { %v4188_v26 = vmax.f32 %v4156_v49, 0.0  ;;  %4455 = vst.msk [vmem:[#allocation4 + $0x30] sm:$0xff] %vm549_vm7, %v4361_v0  ;;  %v3309_v29 = vpop.f32.mrf.mxu3  ;;  %v12296_v20 = vld [vmem:[#allocation4 + $0x28] sm:$0xff] }
 0x78c   : > { %v3519_v13 = vadd.f32 %v3518_v57, %v3309_v29  ;;  %v3530_v14 = vpop.f32.mrf.mxu0 }
 0x78d   : > { %8257 = vmatmul.msk.f32.gmra.mxu2 %vm549_vm7, %v4188_v26 }
 0x78e   : > { %v4063_v32 = vpop.f32.mrf.mxu1 }
 0x78f   : > { %v4121_v58 = vadd.f32 %v4063_v32, %v3516_v38 }
 0x790   : > { %v4363_v39 = vpop.f32.mrf.mxu2 }
 0x791   : > { %v4157_v23 = vadd.f32 %v11932_v7, %v4121_v58  ;;  %v4364_v1 = vadd.f32 %v4363_v39, %v12215_v25 }
 0x792   : > { %v12257_v24 = vld [vmem:[#allocation4 + $0x2f] sm:$0xff] }
 0x793   : > { %v4189_v42 = vmax.f32 %v4157_v23, 0.0  ;;  %4456 = vst.msk [vmem:[#allocation4 + $0x48] sm:$0xff] %vm549_vm7, %v4364_v1  ;;  %v8564_v53 = vpack.i.bf16 %v12257_v24, %v12255_v35  ;;  %v3312_v12 = vpop.f32.mrf.mxu3  ;;  %v12314_v0 = vld [vmem:[#allocation4 + $0x30] sm:$0xff] }
 0x794   : > { %v3522_v8 = vadd.f32 %v3521_v63, %v3312_v12  ;;  %v3533_v32 = vpop.f32.mrf.mxu0  ;;  %v8280_v12 = vld [vmem:[%s14896_s9 + $0x108] sm:$0xff] }
 0x795   : > { %8565 = vrot.lane.b32.xlu0 %v8564_v53, %s8899_s17  ;;  %8258 = vmatmul.msk.f32.gmra.mxu2 %vm549_vm7, %v4189_v42 }
 0x796   : > { %v4066_v50 = vpop.f32.mrf.mxu1  ;;  %4999 = vmatpush.msrb.mxu3 %v8280_v12  ;;  %v4690_v12 = vld [vmem:[%s14896_s9 + $0x40] sm:$0xff] }
 0x797   : > { %v4122_v60 = vadd.f32 %v4066_v50, %v3519_v13 }
 0x798   : > { %v4366_v2 = vpop.f32.mrf.mxu2 }
 0x799   : > { %v4158_v30 = vadd.f32 %v11932_v7, %v4122_v60  ;;  %v4367_v10 = vadd.f32 %v4366_v2, %v12215_v25 }
 0x79a   : > { %v12266_v17 = vld [vmem:[#allocation4 + $0x48] sm:$0xff] }
 0x79b   : > { %v4190_v45 = vmax.f32 %v4158_v30, 0.0  ;;  %4457 = vst.msk [vmem:[#allocation4 + $0x50] sm:$0xff] %vm549_vm7, %v4367_v10  ;;  %8295 = vmatmul.msk.f32.vlgmr.msra.gmra.mxu0 %vm549_vm7, %v12266_v17  ;;  %v3315_v56 = vpop.f32.mrf.mxu3  ;;  %v12279_v28 = vld [vmem:[#allocation4 + $0x47] sm:$0xff] }
 0x79c   : > { %v3525_v6 = vadd.f32 %v3524_v37, %v3315_v56  ;;  %v3536_v37 = vpop.f32.mrf.mxu0 }
 0x79d   : > { %8259 = vmatmul.msk.f32.gmra.mxu2 %vm549_vm7, %v4190_v45 }
 0x79e   : > { %v4069_v33 = vpop.f32.mrf.mxu1 }
 0x79f   : > { %v4123_v4 = vadd.f32 %v4069_v33, %v3522_v8 }
 0x7a0   : > { %v4369_v18 = vpop.f32.mrf.mxu2 }
 0x7a1   : > { %v4159_v48 = vadd.f32 %v11932_v7, %v4123_v4  ;;  %v4370_v59 = vadd.f32 %v4369_v18, %v12215_v25 }
 0x7a2   : > { %v12277_v52 = vld [vmem:[#allocation4 + $0x50] sm:$0xff] }
 0x7a3   : > { %v12281_v34 = vld [vmem:[#allocation4 + $0x4f] sm:$0xff]  ;;  %v4191_v27 = vmax.f32 %v4159_v48, 0.0  ;;  %4458 = vst.msk [vmem:[#allocation4 + $0x68] sm:$0xff] %vm549_vm7, %v4370_v59  ;;  %8296 = vmatmul.msk.f32.gmra.mxu0 %vm549_vm7, %v12277_v52  ;;  %v3318_v41 = vpop.f32.mrf.mxu3 }
 0x7a4   : > { %v8569_v46 = vpack.i.bf16 %v12281_v34, %v12279_v28  ;;  %v3528_v62 = vadd.f32 %v3527_v61, %v3318_v41 }
 0x7a5   : > { %8260 = vmatmul.msk.f32.gmra.mxu2 %vm549_vm7, %v4191_v27 }
 0x7a6   : > { %8570 = vrot.lane.b32.xlu1 %v8569_v46, %s8899_s17  ;;  %v4072_v43 = vpop.f32.mrf.mxu1 }
 0x7a7   : > { %v4124_v19 = vadd.f32 %v4072_v43, %v3525_v6  ;;  %v3539_v43 = vpop.f32.mrf.mxu0 }
 0x7a8   : > { %v4372_v51 = vpop.f32.mrf.mxu2 }
 0x7a9   : > { %v4160_v47 = vadd.f32 %v11932_v7, %v4124_v19  ;;  %v4373_v21 = vadd.f32 %v4372_v51, %v12215_v25 }
 0x7aa   : > { %v12292_v44 = vld [vmem:[#allocation4 + $0x68] sm:$0xff] }
 0x7ab   : > { %v12294_v16 = vld [vmem:[#allocation4 + $0x67] sm:$0xff]  ;;  %v4192_v11 = vmax.f32 %v4160_v47, 0.0  ;;  %4459 = vst.msk [vmem:[#allocation4 + $0x70] sm:$0xff] %vm549_vm7, %v4373_v21  ;;  %8297 = vmatmul.msk.f32.gmra.mxu0 %vm549_vm7, %v12292_v44  ;;  %v3321_v9 = vpop.f32.mrf.mxu3  ;;  %v4697_v21 = vld [vmem:[%s14896_s9 + $0x78] sm:$0xff] }
 0x7ac   : > { %v8574_v54 = vpack.i.bf16 %v12296_v20, %v12294_v16  ;;  %v3531_v38 = vadd.f32 %v3530_v14, %v3321_v9  ;;  %5285 = vmatpush.msra.mxu1 %v4697_v21  ;;  %v4695_v9 = vld [vmem:[%s14896_s9 + $0x68] sm:$0xff] }
 0x7ad   : > { %8261 = vmatmul.msk.f32.gmra.mxu2 %vm549_vm7, %v4192_v11 }
 0x7ae   : > { %8575 = vrot.lane.b32.xlu2 %v8574_v54, %s8899_s17  ;;  %v4075_v15 = vpop.f32.mrf.mxu1  ;;  %v8279_v54 = vld [vmem:[%s14896_s9 + $0x100] sm:$0xff]  ;;  %5286 = vmatpush.msra.mxu1 %v4696_v31 }
 0x7af   : > { %v4125_v57 = vadd.f32 %v4075_v15, %v3528_v62  ;;  %5000 = vmatpush.msrb.mxu3 %v8279_v54  ;;  %v8275_v54 = vld [vmem:[%s14896_s9 + $0xe0] sm:$0xff] }
 0x7b0   : > { %v4375_v5 = vpop.f32.mrf.mxu2  ;;  %5287 = vmatpush.msra.mxu1 %v4695_v9  ;;  %v4686_v31 = vld [vmem:[%s14896_s9 + $0x20] sm:$0xff]  ;;  %v4699_v9 = vld [vmem:[%s14896_s9 + $0x88] sm:$0xff] }
 0x7b1   : > { %v4161_v3 = vadd.f32 %v11932_v7, %v4125_v57  ;;  %v4376_v55 = vadd.f32 %v4375_v5, %v12215_v25 }
 0x7b2   : > { %v12310_v40 = vld [vmem:[#allocation4 + $0x70] sm:$0xff] }
 0x7b3   : > { %v12312_v49 = vld [vmem:[#allocation4 + $0x6f] sm:$0xff]  ;;  %v4193_v26 = vmax.f32 %v4161_v3, 0.0  ;;  %4460 = vst.msk [vmem:[#allocation4 + $0x88] sm:$0xff] %vm549_vm7, %v4376_v55  ;;  %8298 = vmatmul.msk.f32.gmra.mxu0 %vm549_vm7, %v12310_v40  ;;  %v3324_v58 = vpop.f32.mrf.mxu3  ;;  %v4694_v3 = vld [vmem:[%s14896_s9 + $0x60] sm:$0xff] }
 0x7b4   : > { %v8579_v29 = vpack.i.bf16 %v12314_v0, %v12312_v49  ;;  %v3534_v13 = vadd.f32 %v3533_v32, %v3324_v58  ;;  %5288 = vmatpush.msra.mxu1 %v4694_v3  ;;  %v4692_v32 = vld [vmem:[%s14896_s9 + $0x50] sm:$0xff] }
 0x7b5   : > { %8262 = vmatmul.msk.f32.gmra.mxu2 %vm549_vm7, %v4193_v26 }
 0x7b6   : > { %8580 = vrot.lane.b32.xlu0 %v8579_v29, %s8899_s17  ;;  %v4078_v22 = vpop.f32.mrf.mxu1 }
 0x7b7   : > { %v4126_v63 = vadd.f32 %v4078_v22, %v3531_v38  ;;  %v4693_v38 = vld [vmem:[%s14896_s9 + $0x58] sm:$0xff]  ;;  %v3542_v22 = vpop.f32.mrf.mxu0 }
 0x7b8   : > { %v4378_v39 = vpop.f32.mrf.mxu2  ;;  %5289 = vmatpush.msra.mxu1 %v4693_v38  ;;  %v4684_v38 = vld [vmem:[%s14896_s9 + $0x10] sm:$0xff] }
 0x7b9   : > { %v4162_v23 = vadd.f32 %v11932_v7, %v4126_v63  ;;  %v4379_v1 = vadd.f32 %v4378_v39, %v12215_v25  ;;  %v4705_v63 = vld [vmem:[%s14896_s9 + $0xb8] sm:$0xff]  ;;  %v4691_v39 = vld [vmem:[%s14896_s9 + $0x48] sm:$0xff] }
 0x7ba   : > { %v12325_v42 = vld [vmem:[#allocation4 + $0x88] sm:$0xff]  ;;  %5290 = vmatpush.msra.mxu1 %v4692_v32  ;;  %5406 = vmatpush.msrb.mxu2 %v4705_v63  ;;  %v8272_v32 = vld [vmem:[%s14896_s9 + $0xc8] sm:$0xff] }
 0x7bb   : > { %v4194_v53 = vmax.f32 %v4162_v23, 0.0  ;;  %4461 = vst.msk [vmem:[#allocation4 + $0x90] sm:$0xff] %vm549_vm7, %v4379_v1  ;;  %8299 = vmatmul.msk.f32.gmra.mxu0 %vm549_vm7, %v12325_v42  ;;  %v3327_v45 = vpop.f32.mrf.mxu3  ;;  %v12338_v8 = vld [vmem:[#allocation4 + $0x87] sm:$0xff] }
 0x7bc   : > { %v3537_v18 = vadd.f32 %v3536_v37, %v3327_v45  ;;  %5291 = vmatpush.msra.mxu1 %v4691_v39  ;;  %v4704_v1 = vld [vmem:[%s14896_s9 + $0xb0] sm:$0xff]  ;;  %v8278_v37 = vld [vmem:[%s14896_s9 + $0xf8] sm:$0xff]  ;;  %v4683_v63 = vld [vmem:[%s14896_s9 + $0x8] sm:$0xff] }
 0x7bd   : > { %8263 = vmatmul.msk.f32.gmra.mxu2 %vm549_vm7, %v4194_v53  ;;  %5001 = vmatpush.msrb.mxu3 %v8278_v37 }
 0x7be   : > { %v4081_v50 = vpop.f32.mrf.mxu1  ;;  %5407 = vmatpush.msrb.mxu2 %v4704_v1  ;;  %5292 = vmatpush.msra.mxu1 %v4690_v12  ;;  %v4682_v12 = vld [vmem:[%s14896_s9] sm:$0xff] }
 0x7bf   : > { %v4127_v60 = vadd.f32 %v4081_v50, %v3534_v13 }
 0x7c0   : > { %v4381_v2 = vpop.f32.mrf.mxu2 }
 0x7c1   : > { %v4163_v30 = vadd.f32 %v11932_v7, %v4127_v60  ;;  %v4382_v10 = vadd.f32 %v4381_v2, %v12215_v25  ;;  %v4703_v60 = vld [vmem:[%s14896_s9 + $0xa8] sm:$0xff] }
 0x7c2   : > { %v12336_v56 = vld [vmem:[#allocation4 + $0x90] sm:$0xff]  ;;  %5408 = vmatpush.msrb.mxu2 %v4703_v60 }
 0x7c3   : > { %v12340_v36 = vld [vmem:[#allocation4 + $0x8f] sm:$0xff]  ;;  %v4195_v33 = vmax.f32 %v4163_v30, 0.0  ;;  %4462 = vst.msk [vmem:[#allocation4 + $0xa8] sm:$0xff] %vm549_vm7, %v4382_v10  ;;  %8300 = vmatmul.msk.f32.gmra.mxu0 %vm549_vm7, %v12336_v56  ;;  %v4702_v10 = vld [vmem:[%s14896_s9 + $0xa0] sm:$0xff] }
 0x7c4   : > { %v8584_v4 = vpack.i.bf16 %v12340_v36, %v12338_v8  ;;  %v4689_v30 = vld [vmem:[%s14896_s9 + $0x38] sm:$0xff]  ;;  %5409 = vmatpush.msrb.mxu2 %v4702_v10 }
 0x7c5   : > { %8264 = vmatmul.msk.f32.gmra.mxu2 %vm549_vm7, %v4195_v33  ;;  %5293 = vmatpush.msra.mxu1 %v4689_v30 }
 0x7c6   : > { %8585 = vrot.lane.b32.xlu1 %v8584_v4, %s8899_s17  ;;  %v4084_v48 = vpop.f32.mrf.mxu1  ;;  %v8277_v4 = vld [vmem:[%s14896_s9 + $0xf0] sm:$0xff] }
 0x7c7   : > { %v4128_v59 = vadd.f32 %v4084_v48, %v3537_v18  ;;  %v4688_v18 = vld [vmem:[%s14896_s9 + $0x30] sm:$0xff]  ;;  %v4701_v48 = vld [vmem:[%s14896_s9 + $0x98] sm:$0xff]  ;;  %5002 = vmatpush.msrb.mxu3 %v8277_v4 }
 0x7c8   : > { %v4384_v61 = vpop.f32.mrf.mxu2  ;;  %5294 = vmatpush.msra.mxu1 %v4688_v18  ;;  %5410 = vmatpush.msrb.mxu2 %v4701_v48 }
 0x7c9   : > { %v4164_v27 = vadd.f32 %v11932_v7, %v4128_v59  ;;  %v4385_v46 = vadd.f32 %v4384_v61, %v12215_v25  ;;  %v3545_v61 = vpop.f32.mrf.mxu0 }
 0x7ca   : > { %v12351_v41 = vld [vmem:[#allocation4 + $0xa8] sm:$0xff] }
 0x7cb   : > { %v12353_v6 = vld [vmem:[#allocation4 + $0xa7] sm:$0xff]  ;;  %v4196_v19 = vmax.f32 %v4164_v27, 0.0  ;;  %4463 = vst.msk [vmem:[#allocation4 + $0xb0] sm:$0xff] %vm549_vm7, %v4385_v46  ;;  %8301 = vmatmul.msk.f32.gmra.mxu0 %vm549_vm7, %v12351_v41 }
 0x7cc   : > { %v3330_v51 = vpop.f32.mrf.mxu3  ;;  %v8589_v47 = vpack.i.bf16 %v12353_v6, %v12266_v17  ;;  %v8276_v27 = vld [vmem:[%s14896_s9 + $0xe8] sm:$0xff] }
 0x7cd   : > { %v3540_v11 = vadd.f32 %v3539_v43, %v3330_v51  ;;  %8265 = vmatmul.msk.f32.gmra.mxu2 %vm549_vm7, %v4196_v19  ;;  %v4687_v46 = vld [vmem:[%s14896_s9 + $0x28] sm:$0xff]  ;;  %v12449_v43 = vld [vmem:[%s14892_s5] ss:$0 sm:$0xff]  ;;  %5003 = vmatpush.msrb.mxu3 %v8276_v27 }
 0x7ce   : > { %8590 = vrot.lane.b32.xlu2 %v8589_v47, %s8899_s17  ;;  %5295 = vmatpush.msra.mxu1 %v4687_v46  ;;  %v4700_v47 = vld [vmem:[%s14896_s9 + $0x90] sm:$0xff] }
 0x7cf   : > { %v4087_v14 = vpop.f32.mrf.mxu1  ;;  %5411 = vmatpush.msrb.mxu2 %v4700_v47  ;;  %5004 = vmatpush.msrb.mxu3 %v8275_v54 }
 0x7d0   : > { %v4129_v62 = vadd.f32 %v4087_v14, %v3540_v11  ;;  %v4387_v15 = vpop.f32.mrf.mxu2  ;;  %5296 = vmatpush.msra.mxu1 %v4686_v31 }
 0x7d1   : > { %v4388_v5 = vadd.f32 %v4387_v15, %v12215_v25  ;;  %5412 = vmatpush.msrb.mxu2 %v4699_v9  ;;  %v8274_v15 = vld [vmem:[%s14896_s9 + $0xd8] sm:$0xff] }
 0x7d2   : > { %v4165_v57 = vadd.f32 %v11932_v7, %v4129_v62  ;;  %v12379_v55 = vld [vmem:[#allocation4 + $0xb0] sm:$0xff]  ;;  %5005 = vmatpush.msrb.mxu3 %v8274_v15 }
 0x7d3   : > { %v12381_v26 = vld [vmem:[#allocation4 + $0xaf] sm:$0xff]  ;;  %4464 = vst.msk [vmem:[#allocation4 + $0xc8] sm:$0xff] %vm549_vm7, %v4388_v5  ;;  %8302 = vmatmul.msk.f32.gmra.mxu0 %vm549_vm7, %v12379_v55  ;;  %v4698_v5 = vld [vmem:[%s14896_s9 + $0x80] sm:$0xff] }
 0x7d4   : > { %v4197_v29 = vmax.f32 %v4165_v57, 0.0  ;;  %v8594_v7 = vpack.i.bf16 %v12277_v52, %v12381_v26  ;;  %v3333_v58 = vpop.f32.mrf.mxu3  ;;  %v4685_v57 = vld [vmem:[%s14896_s9 + $0x18] sm:$0xff]  ;;  %5413 = vmatpush.msrb.mxu2 %v4698_v5 }
 0x7d5   : > { %v3543_v45 = vadd.f32 %v3542_v22, %v3333_v58  ;;  %5297 = vmatpush.msra.mxu1 %v4685_v57 }
 0x7d6   : > { %8595 = vrot.lane.b32.xlu0 %v8594_v7, %s8899_s17  ;;  %8266 = vmatmul.msk.f32.gmra.mxu2 %vm549_vm7, %v4197_v29  ;;  %v8273_v7 = vld [vmem:[%s14896_s9 + $0xd0] sm:$0xff] }
 0x7d7   : > { %5006 = vmatpush.msrb.mxu3 %v8273_v7  ;;  %5298 = vmatpush.msra.mxu1 %v4684_v38 }
 0x7d8   : > { %v4390_v23 = vpop.f32.mrf.mxu2 }
 0x7d9   : > { %v4391_v53 = vadd.f32 %v4390_v23, %v12215_v25  ;;  %5007 = vmatpush.msrb.mxu3 %v8272_v32  ;;  %v3548_v23 = vpop.f32.mrf.mxu0  ;;  %5299 = vmatpush.msra.mxu1 %v4683_v63 }
 0x7da   : > { %v12409_v13 = vld [vmem:[#allocation4 + $0xc8] sm:$0xff] }
 0x7db   : > { %v12411_v50 = vld [vmem:[#allocation4 + $0xc7] sm:$0xff]  ;;  %4465 = vst.msk [vmem:[#allocation4 + $0xd0] sm:$0xff] %vm549_vm7, %v4391_v53  ;;  %8303 = vmatmul.msk.f32.gmra.mxu0 %vm549_vm7, %v12409_v13  ;;  %v8271_v53 = vld [vmem:[%s14896_s9 + $0xc0] sm:$0xff]  ;;  %5300 = vmatpush.msra.mxu1 %v4682_v12 }
 0x7dc   : > { %v8599_v2 = vpack.i.bf16 %v12292_v44, %v12411_v50  ;;  %5008 = vmatpush.msrb.mxu3 %v8271_v53 }
 0x7dd   : > { %v3336_v21 = vpop.f32.mrf.mxu3 }
 0x7de   : > { %8600 = vrot.lane.b32.xlu1 %v8599_v2, %s8899_s17  ;;  %v4090_v33 = vpop.f32.mrf.mxu1  ;;  %v3546_v3 = vadd.f32 %v3545_v61, %v3336_v21 }
 0x7df   : > { %v4130_v59 = vadd.f32 %v4090_v33, %v3543_v45 }
 0x7e0   : > { %v4393_v51 = vpop.f32.mrf.mxu2 }
 0x7e1   : > { %v4166_v19 = vadd.f32 %v12449_v43, %v4130_v59  ;;  %v4394_v11 = vadd.f32 %v4393_v51, %v12215_v25 }
 0x7e2   : > { %v12462_v62 = vld [vmem:[#allocation4 + $0xd0] sm:$0xff] }
 0x7e3   : > { %v4198_v14 = vmax.f32 %v4166_v19, 0.0  ;;  %4466 = vst.msk [vmem:[#allocation4 + $0xe8] sm:$0xff] %vm549_vm7, %v4394_v11  ;;  %8304 = vmatmul.msk.f32.gmra.mxu0 %vm549_vm7, %v12462_v62  ;;  %v12502_v37 = vld [vmem:[#allocation4 + $0xcf] sm:$0xff]  ;;  %v3551_v19 = vpop.f32.mrf.mxu0 }
 0x7e5   : > { %8267 = vmatmul.msk.f32.gmra.mxu2 %vm549_vm7, %v4198_v14 }
 0x7e6   : > { %v4093_v29 = vpop.f32.mrf.mxu1 }
 0x7e7   : > { %v4131_v22 = vadd.f32 %v4093_v29, %v3546_v3 }
 0x7e8   : > { %v4396_v39 = vpop.f32.mrf.mxu2 }
 0x7e9   : > { %v4167_v58 = vadd.f32 %v12449_v43, %v4131_v22  ;;  %v4397_v1 = vadd.f32 %v4396_v39, %v12215_v25  ;;  %v4706_v39 = vld [vmem:[#allocation4 + $0x8] sm:$0xff] }
 0x7ea   : > { %v12500_v2 = vld [vmem:[#allocation4 + $0xe8] sm:$0xff] }
 0x7eb   : > { %v4199_v60 = vmax.f32 %v4167_v58, 0.0  ;;  %v12504_v30 = vld [vmem:[#allocation4 + $0xe7] sm:$0xff]  ;;  %4467 = vst.msk [vmem:[#allocation4 + $0xf0] sm:$0xff] %vm549_vm7, %v4397_v1  ;;  %8305 = vmatmul.msk.f32.gmra.mxu0 %vm549_vm7, %v12500_v2 }
 0x7ec   : > { %v3339_v10 = vpop.f32.mrf.mxu3  ;;  %v8604_v45 = vpack.i.bf16 %v12504_v30, %v12502_v37 }
 0x7ed   : > { %v3549_v33 = vadd.f32 %v3548_v23, %v3339_v10  ;;  %8268 = vmatmul.msk.f32.gmra.mxu2 %vm549_vm7, %v4199_v60  ;;  %v4486_v23 = vld [vmem:[#allocation4 + $0x7] sm:$0xff] }
 0x7ee   : > { %8605 = vrot.lane.b32.xlu2 %v8604_v45, %s8899_s17 }
 0x7ef   : > { %v4096_v4 = vpop.f32.mrf.mxu1 }
 0x7f0   : > { %v4132_v18 = vadd.f32 %v4096_v4, %v3549_v33  ;;  %v4399_v48 = vpop.f32.mrf.mxu2 }
 0x7f1   : > { %v4400_v61 = vadd.f32 %v4399_v48, %v12215_v25  ;;  %v4487_v48 = vld [vmem:[#allocation4 + $0xf] sm:$0xff] }
 0x7f2   : > { %v4168_v59 = vadd.f32 %v12449_v43, %v4132_v18  ;;  %v12515_v27 = vld [vmem:[#allocation4 + $0xf0] sm:$0xff] }
 0x7f3   : > { %v12517_v46 = vld [vmem:[#allocation4 + $0xef] sm:$0xff]  ;;  %4468 = vst.msk [vmem:[#allocation4 + $0x108] sm:$0xff] %vm549_vm7, %v4400_v61  ;;  %8306 = vmatmul.msk.f32.gmra.mxu0 %vm549_vm7, %v12515_v27 }
 0x7f4   : > { %v4200_v51 = vmax.f32 %v4168_v59, 0.0  ;;  %v3342_v47 = vpop.f32.mrf.mxu3  ;;  %v8609_v21 = vpack.i.bf16 %v12517_v46, %v12310_v40 }
 0x7f5   : > { %v3552_v11 = vadd.f32 %v3551_v19, %v3342_v47 }
 0x7f6   : > { %8610 = vrot.lane.b32.xlu0 %v8609_v21, %s8899_s17  ;;  %8269 = vmatmul.msk.f32.gmra.mxu2 %vm549_vm7, %v4200_v51 }
 0x7f7   : > { %v4099_v54 = vpop.f32.mrf.mxu1 }
 0x7f8   : > { %v4133_v31 = vadd.f32 %v4099_v54, %v3552_v11  ;;  %v4402_v14 = vpop.f32.mrf.mxu2 }
 0x7f9   : > { %v4403_v15 = vadd.f32 %v4402_v14, %v12215_v25 }
 0x7fa   : > { %v4169_v9 = vadd.f32 %v12449_v43, %v4133_v31  ;;  %v12528_v57 = vld [vmem:[#allocation4 + $0x108] sm:$0xff] }
 0x7fb   : > { %v12530_v5 = vld [vmem:[#allocation4 + $0x107] sm:$0xff]  ;;  %4469 = vst.msk [vmem:[#allocation4 + $0x110] sm:$0xff] %vm549_vm7, %v4403_v15  ;;  %8307 = vmatmul.msk.f32.gmra.mxu0 %vm549_vm7, %v12528_v57 }
 0x7fc   : > { %v4201_v3 = vmax.f32 %v4169_v9, 0.0  ;;  %v8614_v29 = vpack.i.bf16 %v12325_v42, %v12530_v5 }
 0x7fe   : > { %8615 = vrot.lane.b32.xlu1 %v8614_v29, %s8899_s17  ;;  %8270 = vmatmul.msk.f32.gmra.mxu2 %vm549_vm7, %v4201_v3 }
 0x800   : > { %v4405_v43 = vpop.f32.mrf.mxu2 }
 0x801   : > { %v4406_v7 = vadd.f32 %v4405_v43, %v12215_v25 }
 0x802   : > { %v12540_v38 = vld [vmem:[#allocation4 + $0x110] sm:$0xff] }
 0x803   : > { %v12542_v22 = vld [vmem:[#allocation4 + $0x10f] sm:$0xff]  ;;  %4470 = vst.msk [vmem:[#allocation4 + $0x128] sm:$0xff] %vm549_vm7, %v4406_v7  ;;  %8308 = vmatmul.msk.f32.gmra.mxu0 %vm549_vm7, %v12540_v38 }
 0x804   : > { %v8619_v32 = vpack.i.bf16 %v12336_v56, %v12542_v22 }
 0x806   : > { %8620 = vrot.lane.b32.xlu2 %v8619_v32, %s8899_s17  ;;  %8327 = vmatmul.msk.f32.vlgmr.msrb.gmra.mxu2 %vm549_vm7, %v12279_v28 }
 0x807   : > { %v8566_v58 = vpop.permute.xlu0 %8565 }
 0x808   : > { %v12552_v63 = vpop.permute.xlu2 %8575  ;;  %v8567_v53 = vunpack.i.l.bf16 %v8566_v58  ;;  %v4408_v12 = vpop.f32.mrf.mxu2  ;;  %v8568_v4 = vunpack.i.h.bf16 %v8566_v58 }
 0x809   : > { %v8578_v1 = vunpack.i.h.bf16 %v12552_v63  ;;  %v4409_v60 = vadd.f32 %v4408_v12, %v12215_v25  ;;  %v8577_v12 = vunpack.i.l.bf16 %v12552_v63 }
 0x80a   : > { %v12557_v45 = vld [vmem:[#allocation4 + $0x128] sm:$0xff]  ;;  %v4650_v33 = vsel %vm549_vm7, %v4486_v23, %v8567_v53  ;;  %v4651_v47 = vsel %vm549_vm7, %v4487_v48, %v8568_v4 }
 0x80b   : > { %v4870_v10 = vsel %vm549_vm7, %v4706_v39, %v8578_v1  ;;  %4471 = vst.msk [vmem:[#allocation4 + $0x130] sm:$0xff] %vm549_vm7, %v4409_v60  ;;  %8309 = vmatmul.msk.f32.gmra.mxu0 %vm549_vm7, %v12557_v45  ;;  %5301 = vmatmul.f32.vlgmr.msra.gmra.mxu1 %v4650_v33  ;;  %v12568_v19 = vld [vmem:[#allocation4 + $0x127] sm:$0xff]  ;;  %v4654_v63 = vsel %vm549_vm7, %v12279_v28, %v8577_v12 }
 0x80c   : > { %5009 = vmatmul.f32.vlgmr.msrb.gmra.mxu3 %v4870_v10  ;;  %v4707_v10 = vld [vmem:[#allocation4 + $0x10] sm:$0xff] }
 0x80e   : > { %8328 = vmatmul.msk.f32.gmra.mxu2 %vm549_vm7, %v12281_v34 }
 0x810   : > { %v4411_v18 = vpop.f32.mrf.mxu2 }
 0x811   : > { %v4412_v59 = vadd.f32 %v4411_v18, %v12215_v25 }
 0x812   : > { %v12566_v61 = vld [vmem:[#allocation4 + $0x130] sm:$0xff] }
 0x813   : > { %v12570_v51 = vld [vmem:[#allocation4 + $0x12f] sm:$0xff]  ;;  %4472 = vst.msk [vmem:[#allocation4 + $0x148] sm:$0xff] %vm549_vm7, %v4412_v59  ;;  %8310 = vmatmul.msk.f32.gmra.mxu0 %vm549_vm7, %v12566_v61  ;;  %5304 = vmatmul.f32.gmra.mxu1 %v4651_v47 }
 0x814   : > { %v8624_v21 = vpack.i.bf16 %v12570_v51, %v12568_v19 }
 0x816   : > { %8625 = vrot.lane.b32.xlu0 %v8624_v21, %s8899_s17  ;;  %8329 = vmatmul.msk.f32.gmra.mxu2 %vm549_vm7, %v12294_v16 }
 0x818   : > { %v8571_v11 = vpop.permute.xlu1 %8570  ;;  %v4414_v31 = vpop.f32.mrf.mxu2 }
 0x819   : > { %v8572_v54 = vunpack.i.l.bf16 %v8571_v11  ;;  %v4415_v14 = vadd.f32 %v4414_v31, %v12215_v25  ;;  %v12589_v29 = vpop.f32.mrf.mxu0  ;;  %v8573_v7 = vunpack.i.h.bf16 %v8571_v11 }
 0x81a   : > { %v12582_v9 = vld [vmem:[#allocation4 + $0x148] sm:$0xff] }
 0x81b   : > { %v4652_v15 = vsel %vm549_vm7, %v12255_v35, %v8572_v54  ;;  %v12586_v3 = vld [vmem:[#allocation4 + $0x147] sm:$0xff]  ;;  %4473 = vst.msk [vmem:[#allocation4 + $0x150] sm:$0xff] %vm549_vm7, %v4415_v14  ;;  %8311 = vmatmul.msk.f32.gmra.mxu0 %vm549_vm7, %v12582_v9  ;;  %v4653_v23 = vsel %vm549_vm7, %v12257_v24, %v8573_v7 }
 0x81c   : > { %v8629_v43 = vpack.i.bf16 %v12586_v3, %v12351_v41  ;;  %5307 = vmatmul.f32.gmra.mxu1 %v4652_v15 }
 0x81e   : > { %8630 = vrot.lane.b32.xlu1 %v8629_v43, %s8899_s17  ;;  %8330 = vmatmul.msk.f32.gmra.mxu2 %vm549_vm7, %v12312_v49 }
 0x820   : > { %v4417_v35 = vpop.f32.mrf.mxu2 }
 0x821   : > { %v4418_v32 = vadd.f32 %v4417_v35, %v12215_v25  ;;  %v12610_v53 = vpop.f32.mrf.mxu0 }
 0x822   : > { %v12599_v58 = vld [vmem:[#allocation4 + $0x150] sm:$0xff] }
 0x823   : > { %v12601_v39 = vld [vmem:[#allocation4 + $0x14f] sm:$0xff]  ;;  %4474 = vst.msk [vmem:[#allocation4 + $0x168] sm:$0xff] %vm549_vm7, %v4418_v32  ;;  %8312 = vmatmul.msk.f32.gmra.mxu0 %vm549_vm7, %v12599_v58 }
 0x824   : > { %v8634_v1 = vpack.i.bf16 %v12379_v55, %v12601_v39  ;;  %5310 = vmatmul.f32.gmra.mxu1 %v4653_v23 }
 0x826   : > { %8635 = vrot.lane.b32.xlu2 %v8634_v1, %s8899_s17  ;;  %8331 = vmatmul.msk.f32.gmra.mxu2 %vm549_vm7, %v12338_v8 }
 0x828   : > { %v8581_v60 = vpop.permute.xlu0 %8580  ;;  %v4420_v4 = vpop.f32.mrf.mxu2 }
 0x829   : > { %v8583_v33 = vunpack.i.h.bf16 %v8581_v60  ;;  %v4421_v18 = vadd.f32 %v4420_v4, %v12215_v25  ;;  %v12622_v47 = vpop.permute.xlu2 %8590  ;;  %v8582_v54 = vunpack.i.l.bf16 %v8581_v60  ;;  %v12635_v31 = vpop.f32.mrf.mxu0 }
 0x82a   : > { %v12618_v48 = vld [vmem:[#allocation4 + $0x168] sm:$0xff]  ;;  %v8592_v11 = vunpack.i.l.bf16 %v12622_v47 }
 0x82b   : > { %v4871_v24 = vsel %vm549_vm7, %v4707_v10, %v8583_v33  ;;  %v12620_v59 = vld [vmem:[#allocation4 + $0x167] sm:$0xff]  ;;  %4475 = vst.msk [vmem:[#allocation4 + $0x170] sm:$0xff] %vm549_vm7, %v4421_v18  ;;  %8313 = vmatmul.msk.f32.gmra.mxu0 %vm549_vm7, %v12618_v48 }
 0x82c   : > { %5012 = vmatmul.f32.gmra.mxu3 %v4871_v24  ;;  %v8639_v21 = vpack.i.bf16 %v12409_v13, %v12620_v59  ;;  %5313 = vmatmul.f32.gmra.mxu1 %v4654_v63  ;;  %v4872_v28 = vsel %vm549_vm7, %v12296_v20, %v8592_v11  ;;  %v4655_v13 = vsel %vm549_vm7, %v12281_v34, %v8582_v54  ;;  %v8593_v54 = vunpack.i.h.bf16 %v12622_v47 }
 0x82e   : > { %8640 = vrot.lane.b32.xlu0 %v8639_v21, %s8899_s17  ;;  %8332 = vmatmul.msk.f32.gmra.mxu2 %vm549_vm7, %v12340_v36 }
 0x830   : > { %v4423_v14 = vpop.f32.mrf.mxu2 }
 0x831   : > { %v4424_v15 = vadd.f32 %v4423_v14, %v12215_v25  ;;  %v12649_v23 = vpop.f32.mrf.mxu0 }
 0x832   : > { %v12640_v43 = vld [vmem:[#allocation4 + $0x170] sm:$0xff] }
 0x833   : > { %4476 = vst.msk [vmem:[#allocation4 + $0x188] sm:$0xff] %vm549_vm7, %v4424_v15  ;;  %8314 = vmatmul.msk.f32.gmra.mxu0 %vm549_vm7, %v12640_v43  ;;  %v12656_v60 = vld [vmem:[#allocation4 + $0x16f] sm:$0xff] }
 0x834   : > { %5015 = vmatmul.f32.gmra.mxu3 %v4872_v28  ;;  %5316 = vmatmul.f32.gmra.mxu1 %v4655_v13 }
 0x836   : > { %8333 = vmatmul.msk.f32.gmra.mxu2 %vm549_vm7, %v12353_v6 }
 0x838   : > { %v8586_v7 = vpop.permute.xlu1 %8585  ;;  %v4426_v32 = vpop.f32.mrf.mxu2 }
 0x839   : > { %v8587_v35 = vunpack.i.l.bf16 %v8586_v7  ;;  %v4427_v20 = vadd.f32 %v4426_v32, %v12215_v25  ;;  %v8588_v33 = vunpack.i.h.bf16 %v8586_v7  ;;  %v12673_v63 = vpop.f32.mrf.mxu0 }
 0x83a   : > { %v12652_v1 = vld [vmem:[#allocation4 + $0x188] sm:$0xff] }
 0x83b   : > { %v4656_v12 = vsel %vm549_vm7, %v12294_v16, %v8587_v35  ;;  %v12658_v10 = vld [vmem:[#allocation4 + $0x187] sm:$0xff]  ;;  %4477 = vst.msk [vmem:[#allocation4 + $0x190] sm:$0xff] %vm549_vm7, %v4427_v20  ;;  %8315 = vmatmul.msk.f32.gmra.mxu0 %vm549_vm7, %v12652_v1  ;;  %v4657_v21 = vsel %vm549_vm7, %v12312_v49, %v8588_v33 }
 0x83c   : > { %v8644_v34 = vpack.i.bf16 %v12658_v10, %v12656_v60  ;;  %5319 = vmatmul.f32.gmra.mxu1 %v4656_v12 }
 0x83e   : > { %8645 = vrot.lane.b32.xlu1 %v8644_v34, %s8899_s17  ;;  %8334 = vmatmul.msk.f32.gmra.mxu2 %vm549_vm7, %v12381_v26 }
 0x840   : > { %v4429_v16 = vpop.f32.mrf.mxu2 }
 0x841   : > { %v4430_v4 = vadd.f32 %v4429_v16, %v12215_v25  ;;  %v12700_v32 = vpop.f32.mrf.mxu0 }
 0x842   : > { %v12669_v18 = vld [vmem:[#allocation4 + $0x190] sm:$0xff] }
 0x843   : > { %v12671_v24 = vld [vmem:[#allocation4 + $0x18f] sm:$0xff]  ;;  %4478 = vst.msk [vmem:[#allocation4 + $0x1a8] sm:$0xff] %vm549_vm7, %v4430_v4  ;;  %8316 = vmatmul.msk.f32.gmra.mxu0 %vm549_vm7, %v12669_v18 }
 0x844   : > { %v8649_v11 = vpack.i.bf16 %v12671_v24, %v12462_v62  ;;  %5322 = vmatmul.f32.gmra.mxu1 %v4657_v21  ;;  %v4658_v62 = vsel %vm549_vm7, %v12338_v8, %v8593_v54 }
 0x846   : > { %8650 = vrot.lane.b32.xlu2 %v8649_v11, %s8899_s17  ;;  %8335 = vmatmul.msk.f32.gmra.mxu2 %vm549_vm7, %v12411_v50 }
 0x848   : > { %v8596_v14 = vpop.permute.xlu0 %8595  ;;  %v4432_v28 = vpop.f32.mrf.mxu2 }
 0x849   : > { %v8598_v15 = vunpack.i.h.bf16 %v8596_v14  ;;  %v4433_v13 = vadd.f32 %v4432_v28, %v12215_v25  ;;  %v8374_v28 = vld [vmem:[%s14896_s9 + $0x1f8] sm:$0xff] }
 0x84a   : > { %v12689_v49 = vld [vmem:[#allocation4 + $0x1a8] sm:$0xff]  ;;  %5798 = vmatpush.msra.mxu3 %v8374_v28 }
 0x84b   : > { %v4873_v7 = vsel %vm549_vm7, %v12314_v0, %v8598_v15  ;;  %v12691_v35 = vld [vmem:[#allocation4 + $0x1a7] sm:$0xff]  ;;  %4479 = vst.msk [vmem:[#allocation4 + $0x1b0] sm:$0xff] %vm549_vm7, %v4433_v13  ;;  %8317 = vmatmul.msk.f32.gmra.mxu0 %vm549_vm7, %v12689_v49  ;;  %v8597_v0 = vunpack.i.l.bf16 %v8596_v14 }
 0x84c   : > { %5018 = vmatmul.f32.gmra.mxu3 %v4873_v7  ;;  %v8654_v47 = vpack.i.bf16 %v12500_v2, %v12691_v35  ;;  %5325 = vmatmul.f32.gmra.mxu1 %v4658_v62 }
 0x84d   : > { %v4659_v4 = vsel %vm549_vm7, %v12340_v36, %v8597_v0 }
 0x84e   : > { %8655 = vrot.lane.b32.xlu0 %v8654_v47, %s8899_s17  ;;  %8336 = vmatmul.msk.f32.gmra.mxu2 %vm549_vm7, %v12502_v37 }
 0x850   : > { %v8601_v20 = vpop.permute.xlu1 %8600  ;;  %v4435_v34 = vpop.f32.mrf.mxu2 }
 0x851   : > { %v8603_v12 = vunpack.i.h.bf16 %v8601_v20  ;;  %v4436_v33 = vadd.f32 %v4435_v34, %v12215_v25  ;;  %v8602_v11 = vunpack.i.l.bf16 %v8601_v20 }
 0x852   : > { %v12708_v16 = vld [vmem:[#allocation4 + $0x1b0] sm:$0xff] }
 0x853   : > { %v4874_v8 = vsel %vm549_vm7, %v12266_v17, %v8603_v12  ;;  %v12710_v2 = vld [vmem:[#allocation4 + $0x1af] sm:$0xff]  ;;  %4480 = vst.msk [vmem:[#allocation4 + $0x1c8] sm:$0xff] %vm549_vm7, %v4436_v33  ;;  %8318 = vmatmul.msk.f32.gmra.mxu0 %vm549_vm7, %v12708_v16  ;;  %v12722_v17 = vpop.f32.mrf.mxu0  ;;  %v4660_v36 = vsel %vm549_vm7, %v12353_v6, %v8602_v11 }
 0x854   : > { %5021 = vmatmul.f32.gmra.mxu3 %v4874_v8  ;;  %v8659_v21 = vpack.i.bf16 %v12515_v27, %v12710_v2  ;;  %5328 = vmatmul.f32.gmra.mxu1 %v4659_v4  ;;  %15113 = vst [vmem:[#allocation22_spill] sm:$0xff] %v12722_v17  ;;  %v8606_v27 = vpop.permute.xlu2 %8605  ;;  %v8382_v12 = vld [vmem:[%s14896_s9 + $0x238] sm:$0xff] }
 0x855   : > { %v8607_v13 = vunpack.i.l.bf16 %v8606_v27  ;;  %5919 = vmatpush.msrb.mxu0 %v8382_v12  ;;  %v8608_v34 = vunpack.i.h.bf16 %v8606_v27  ;;  %v12993_v17 = vld [vmem:[#allocation4 + $0x109] sm:$0xff] }
 0x856   : > { %8660 = vrot.lane.b32.xlu1 %v8659_v21, %s8899_s17  ;;  %8337 = vmatmul.msk.f32.gmra.mxu2 %vm549_vm7, %v12504_v30 }
 0x857   : > { %v4661_v6 = vsel %vm549_vm7, %v12381_v26, %v8607_v13 }
 0x859   : > { %v4438_v54 = vpop.f32.mrf.mxu2 }
 0x85a   : > { %v4439_v14 = vadd.f32 %v4438_v54, %v12215_v25  ;;  %v12725_v15 = vld [vmem:[#allocation4 + $0x1c8] sm:$0xff]  ;;  %v4662_v54 = vsel %vm549_vm7, %v12411_v50, %v8608_v34 }
 0x85b   : > { %8319 = vmatmul.msk.f32.gmra.mxu0 %vm549_vm7, %v12725_v15  ;;  %v12737_v7 = vpop.f32.mrf.mxu0  ;;  %v12741_v47 = vld [vmem:[#allocation4 + $0x1c7] sm:$0xff] }
 0x85c   : > { %4481 = vst.msk [vmem:[#allocation4 + $0x1d0] sm:$0xff] %vm549_vm7, %v4439_v14  ;;  %5331 = vmatmul.f32.gmra.mxu1 %v4660_v36  ;;  %v8373_v14 = vld [vmem:[%s14896_s9 + $0x1f0] sm:$0xff] }
 0x85d   : > { %15114 = vst [vmem:[#allocation14_spill] sm:$0xff] %v12737_v7  ;;  %5799 = vmatpush.msra.mxu3 %v8373_v14  ;;  %v8380_v14 = vld [vmem:[%s14896_s9 + $0x228] sm:$0xff] }
 0x85e   : > { %8338 = vmatmul.msk.f32.gmra.mxu2 %vm549_vm7, %v12517_v46 }
 0x860   : > { %v8621_v34 = vpop.permute.xlu2 %8620 }
 0x863   : > { %v12739_v62 = vld [vmem:[#allocation4 + $0x1d0] sm:$0xff]  ;;  %v12761_v11 = vpop.f32.mrf.mxu0 }
 0x864   : > { %v12743_v0 = vld [vmem:[#allocation4 + $0x1cf] sm:$0xff]  ;;  %8320 = vmatmul.msk.f32.gmra.mxu0 %vm549_vm7, %v12739_v62  ;;  %5334 = vmatmul.f32.gmra.mxu1 %v4661_v6  ;;  %15115 = vst [vmem:[#allocation6_spill] sm:$0xff] %v12761_v11 }
 0x865   : > { %v8664_v20 = vpack.i.bf16 %v12743_v0, %v12741_v47 }
 0x866   : > { %8339 = vmatmul.msk.f32.gmra.mxu2 %vm549_vm7, %v12530_v5 }
 0x867   : > { %8665 = vrot.lane.b32.xlu2 %v8664_v20, %s8899_s17 }
 0x868   : > { %v8611_v33 = vpop.permute.xlu0 %8610  ;;  %v4441_v26 = vpop.f32.mrf.mxu2 }
 0x869   : > { %v8612_v8 = vunpack.i.l.bf16 %v8611_v33  ;;  %v4442_v4 = vadd.f32 %v4441_v26, %v12215_v25  ;;  %v8613_v36 = vunpack.i.h.bf16 %v8611_v33 }
 0x86b   : > { %4482 = vst.msk [vmem:[#allocation4 + $0x1e8] sm:$0xff] %vm549_vm7, %v4442_v4  ;;  %v4875_v21 = vsel %vm549_vm7, %v12277_v52, %v8612_v8  ;;  %v4663_v33 = vsel %vm549_vm7, %v12502_v37, %v8613_v36  ;;  %v12785_v26 = vpop.f32.mrf.mxu0  ;;  %v8381_v8 = vld [vmem:[%s14896_s9 + $0x230] sm:$0xff] }
 0x86c   : > { %5024 = vmatmul.f32.gmra.mxu3 %v4875_v21  ;;  %5337 = vmatmul.f32.gmra.mxu1 %v4662_v54  ;;  %15116 = vst [vmem:[#allocation19_spill] sm:$0xff] %v12785_v26  ;;  %v12987_v26 = vld [vmem:[#allocation4 + $0x149] sm:$0xff] }
 0x86d   : > { %5920 = vmatpush.msrb.mxu0 %v8381_v8 }
 0x86e   : > { %8340 = vmatmul.msk.f32.gmra.mxu2 %vm549_vm7, %v12542_v22 }
 0x86f   : > { %5921 = vmatpush.msrb.mxu0 %v8380_v14 }
 0x870   : > { %v8616_v27 = vpop.permute.xlu1 %8615  ;;  %v4444_v28 = vpop.f32.mrf.mxu2 }
 0x871   : > { %v8618_v13 = vunpack.i.h.bf16 %v8616_v27  ;;  %v4445_v52 = vadd.f32 %v4444_v28, %v12215_v25  ;;  %v8617_v4 = vunpack.i.l.bf16 %v8616_v27 }
 0x872   : > { %v12771_v6 = vld [vmem:[#allocation4 + $0x1e8] sm:$0xff] }
 0x873   : > { %v12773_v20 = vld [vmem:[#allocation4 + $0x1e7] sm:$0xff]  ;;  %4483 = vst.msk [vmem:[#allocation4 + $0x1f0] sm:$0xff] %vm549_vm7, %v4445_v52  ;;  %v4876_v50 = vsel %vm549_vm7, %v12292_v44, %v8618_v13  ;;  %8321 = vmatmul.msk.f32.gmra.mxu0 %vm549_vm7, %v12771_v6  ;;  %v8623_v44 = vunpack.i.h.bf16 %v8621_v34  ;;  %v4664_v28 = vsel %vm549_vm7, %v12504_v30, %v8617_v4  ;;  %v8379_v13 = vld [vmem:[%s14896_s9 + $0x220] sm:$0xff]  ;;  %v8622_v52 = vunpack.i.l.bf16 %v8621_v34 }
 0x874   : > { %v8669_v12 = vpack.i.bf16 %v12773_v20, %v12528_v57  ;;  %5027 = vmatmul.f32.gmra.mxu3 %v4876_v50  ;;  %5340 = vmatmul.f32.gmra.mxu1 %v4663_v33  ;;  %v8377_v30 = vld [vmem:[%s14896_s9 + $0x210] sm:$0xff]  ;;  %v12824_v50 = vpop.f32.mrf.mxu0 }
 0x875   : > { %v4877_v36 = vsel %vm549_vm7, %v12310_v40, %v8623_v44  ;;  %v8372_v40 = vld [vmem:[%s14896_s9 + $0x1e8] sm:$0xff]  ;;  %5922 = vmatpush.msrb.mxu0 %v8379_v13  ;;  %15117 = vst [vmem:[#allocation15_spill] sm:$0xff] %v12824_v50  ;;  %v8689_v44 = vpack.i.bf16 %v12599_v58, %v12582_v9 }
 0x876   : > { %8670 = vrot.lane.b32.xlu0 %v8669_v12, %s8899_s17  ;;  %8341 = vmatmul.msk.f32.gmra.mxu2 %vm549_vm7, %v12568_v19 }
 0x877   : > { %5800 = vmatpush.msra.mxu3 %v8372_v40  ;;  %v8694_v40 = vpack.i.bf16 %v12640_v43, %v12618_v48 }
 0x879   : > { %v4447_v57 = vpop.f32.mrf.mxu2 }
 0x87a   : > { %v4448_v21 = vadd.f32 %v4447_v57, %v12215_v25  ;;  %v12793_v54 = vld [vmem:[#allocation4 + $0x1f0] sm:$0xff]  ;;  %v4665_v57 = vsel %vm549_vm7, %v12517_v46, %v8622_v52  ;;  %v8375_v46 = vld [vmem:[%s14896_s9 + $0x200] sm:$0xff] }
 0x87b   : > { %v12795_v37 = vld [vmem:[#allocation4 + $0x1ef] sm:$0xff]  ;;  %8322 = vmatmul.msk.f32.gmra.mxu0 %vm549_vm7, %v12793_v54 }
 0x87c   : > { %v8674_v27 = vpack.i.bf16 %v12540_v38, %v12795_v37  ;;  %4484 = vst.msk [vmem:[#allocation4 + $0x208] sm:$0xff] %vm549_vm7, %v4448_v21  ;;  %5030 = vmatmul.f32.gmra.mxu3 %v4877_v36  ;;  %5343 = vmatmul.f32.gmra.mxu1 %v4664_v28  ;;  %v8378_v38 = vld [vmem:[%s14896_s9 + $0x218] sm:$0xff]  ;;  %v8704_v36 = vpack.i.bf16 %v12708_v16, %v12689_v49 }
 0x87d   : > { %5923 = vmatpush.msrb.mxu0 %v8378_v38 }
 0x87e   : > { %8675 = vrot.lane.b32.xlu1 %v8674_v27, %s8899_s17  ;;  %8342 = vmatmul.msk.f32.gmra.mxu2 %vm549_vm7, %v12570_v51 }
 0x87f   : > { %5924 = vmatpush.msrb.mxu0 %v8377_v30  ;;  %v8371_v30 = vld [vmem:[%s14896_s9 + $0x1e0] sm:$0xff] }
 0x880   : > { %5801 = vmatpush.msra.mxu3 %v8371_v30  ;;  %v12889_v30 = vld [vmem:[#allocation4 + $0x71] sm:$0xff] }
 0x881   : > { %v4450_v12 = vpop.f32.mrf.mxu2  ;;  %15122 = vst [vmem:[#allocation38_spill] sm:$0xff] %v12889_v30 }
 0x882   : > { %v4451_v33 = vadd.f32 %v4450_v12, %v12215_v25  ;;  %v8376_v25 = vld [vmem:[%s14896_s9 + $0x208] sm:$0xff] }
 0x883   : > { %v4738_v8 = vld [vmem:[#allocation4 + $0x208] sm:$0xff]  ;;  %5925 = vmatpush.msrb.mxu0 %v8376_v25 }
 0x884   : > { %v12829_v4 = vld [vmem:[#allocation4 + $0x207] sm:$0xff]  ;;  %4485 = vst.msk [vmem:[#allocation4 + $0x210] sm:$0xff] %vm549_vm7, %v4451_v33  ;;  %8323 = vmatmul.msk.f32.gmra.mxu0 %vm549_vm7, %v4738_v8  ;;  %5346 = vmatmul.f32.gmra.mxu1 %v4665_v57 }
 0x885   : > { %v8679_v34 = vpack.i.bf16 %v12557_v45, %v12829_v4  ;;  %5926 = vmatpush.msrb.mxu0 %v8375_v46  ;;  %v12847_v45 = vpop.f32.mrf.mxu0 }
 0x886   : > { %8690 = vrot.lane.b32.xlu1 %v8689_v44, %s8899_s17  ;;  %8343 = vmatmul.msk.f32.gmra.mxu2 %vm549_vm7, %v12586_v3  ;;  %15118 = vst [vmem:[#allocation32_spill] sm:$0xff] %v12847_v45 }
 0x887   : > { %8680 = vrot.lane.b32.xlu2 %v8679_v34, %s8899_s17  ;;  %v4740_v34 = vld [vmem:[#allocation4 + $0x228] sm:$0xff] }
 0x888   : > { %v8626_v21 = vpop.permute.xlu0 %8625  ;;  %v5302_v44 = vpop.f32.mrf.mxu1 }
 0x889   : > { %v8627_v14 = vunpack.i.l.bf16 %v8626_v21  ;;  %v8628_v52 = vunpack.i.h.bf16 %v8626_v21  ;;  %v5415_v46 = vpop.f32.mrf.mxu2 }
 0x88b   : > { %v4666_v27 = vsel %vm549_vm7, %v12530_v5, %v8627_v14  ;;  %v4739_v28 = vld [vmem:[#allocation4 + $0x210] sm:$0xff] }
 0x88c   : > { %v12853_v13 = vld [vmem:[#allocation4 + $0x20f] sm:$0xff]  ;;  %8324 = vmatmul.msk.f32.gmra.mxu0 %vm549_vm7, %v4739_v28  ;;  %5349 = vmatmul.f32.gmra.mxu1 %v4666_v27  ;;  %v8719_v14 = vpack.i.bf16 %v4739_v28, %v4738_v8  ;;  %v8709_v27 = vpack.i.bf16 %v12739_v62, %v12725_v15  ;;  %v8699_v8 = vpack.i.bf16 %v12669_v18, %v12652_v1 }
 0x88d   : > { %v8684_v38 = vpack.i.bf16 %v12566_v61, %v12853_v13 }
 0x88e   : > { %8705 = vrot.lane.b32.xlu1 %v8704_v36, %s8899_s17  ;;  %8344 = vmatmul.msk.f32.gmra.mxu2 %vm549_vm7, %v12601_v39 }
 0x88f   : > { %8695 = vrot.lane.b32.xlu2 %v8694_v40, %s8899_s17  ;;  %v5010_v5 = vpop.f32.mrf.mxu3  ;;  %8685 = vrot.lane.b32.xlu0 %v8684_v38, %s8899_s17  ;;  %v12873_v40 = vpop.f32.mrf.mxu0 }
 0x890   : > { %v5124_v12 = vadd.f32 %v12589_v29, %v5010_v5  ;;  %v8631_v33 = vpop.permute.xlu1 %8630  ;;  %15119 = vst [vmem:[#allocation5_spill] sm:$0xff] %v12873_v40  ;;  %v8636_v38 = vpop.permute.xlu2 %8635  ;;  %v4667_v29 = vsel %vm549_vm7, %v12542_v22, %v8628_v52  ;;  %v12887_v22 = vld [vmem:[#allocation4 + $0x69] sm:$0xff] }
 0x891   : > { %v8632_v57 = vunpack.i.l.bf16 %v8631_v33  ;;  %v8633_v28 = vunpack.i.h.bf16 %v8631_v33  ;;  %15121 = vst [vmem:[#allocation10_spill] sm:$0xff] %v12887_v22  ;;  %v4741_v5 = vld [vmem:[#allocation4 + $0x230] sm:$0xff]  ;;  %v5418_v45 = vpop.f32.mrf.mxu2 }
 0x892   : > { %v5303_v25 = vadd.f32 %v5302_v44, %v5124_v12  ;;  %v12891_v52 = vld [vmem:[#allocation4 + $0x29] sm:$0xff]  ;;  %v12893_v12 = vld [vmem:[#allocation4 + $0x31] sm:$0xff] }
 0x893   : > { %v4878_v36 = vsel %vm549_vm7, %v12325_v42, %v8632_v57  ;;  %v8638_v42 = vunpack.i.h.bf16 %v8636_v38  ;;  %v8734_v57 = vpack.i.bf16 %v12889_v30, %v12887_v22  ;;  %v8724_v33 = vpack.i.bf16 %v12893_v12, %v12891_v52 }
 0x894   : > { %5033 = vmatmul.f32.gmra.mxu3 %v4878_v36  ;;  %8325 = vmatmul.msk.f32.gmra.mxu0 %vm549_vm7, %v4740_v34  ;;  %v12878_v21 = vadd.f32 %v5415_v46, %v5303_v25  ;;  %v4668_v34 = vsel %vm549_vm7, %v12568_v19, %v8633_v28  ;;  %v8714_v25 = vpack.i.bf16 %v12793_v54, %v12771_v6  ;;  %v8637_v19 = vunpack.i.l.bf16 %v8636_v38  ;;  %v12916_v36 = vld [vmem:[#allocation4 + $0xc9] sm:$0xff] }
 0x895   : > { %5352 = vmatmul.f32.gmra.mxu1 %v4667_v29  ;;  %v4879_v44 = vsel %vm549_vm7, %v12336_v56, %v8638_v42  ;;  %v8370_v56 = vld [vmem:[%s14896_s9 + $0x1d8] sm:$0xff] }
 0x896   : > { %15120 = vst [vmem:[#allocation34_spill] sm:$0xff] %v12878_v21  ;;  %8720 = vrot.lane.b32.xlu1 %v8719_v14, %s8899_s17  ;;  %8345 = vmatmul.msk.f32.gmra.mxu2 %vm549_vm7, %v12620_v59  ;;  %v12922_v42 = vld [vmem:[#allocation4 + $0x91] sm:$0xff]  ;;  %v12924_v28 = vld [vmem:[#allocation4 + $0x49] sm:$0xff] }
 0x897   : > { %8710 = vrot.lane.b32.xlu2 %v8709_v27, %s8899_s17  ;;  %8700 = vrot.lane.b32.xlu0 %v8699_v8, %s8899_s17  ;;  %v12910_v46 = vpop.f32.mrf.mxu0  ;;  %v12918_v27 = vld [vmem:[#allocation4 + $0xd1] sm:$0xff]  ;;  %v12920_v8 = vld [vmem:[#allocation4 + $0x89] sm:$0xff]  ;;  %15124 = vst [vmem:[#allocation20_spill] sm:$0xff] %v12922_v42 }
 0x898   : > { %15123 = vst [vmem:[#allocation33_spill] sm:$0xff] %v12910_v46  ;;  %5802 = vmatpush.msra.mxu3 %v8370_v56  ;;  %v8749_v38 = vpack.i.bf16 %v12918_v27, %v12916_v36 }
 0x899   : > { %15125 = vst [vmem:[#allocation24_spill] sm:$0xff] %v12924_v28 }
 0x89c   : > { %5036 = vmatmul.f32.gmra.mxu3 %v4879_v44  ;;  %8326 = vmatmul.msk.f32.gmra.mxu0 %vm549_vm7, %v4741_v5  ;;  %v12926_v5 = vld [vmem:[#allocation4 + $0x51] sm:$0xff] }
 0x89d   : > { %5355 = vmatmul.f32.gmra.mxu1 %v4668_v34  ;;  %15126 = vst [vmem:[#allocation36_spill] sm:$0xff] %v12926_v5  ;;  %v4669_v34 = vsel %vm549_vm7, %v12570_v51, %v8637_v19  ;;  %v12950_v19 = vld [vmem:[#allocation4 + $0x129] sm:$0xff] }
 0x89e   : > { %8735 = vrot.lane.b32.xlu1 %v8734_v57, %s8899_s17  ;;  %8346 = vmatmul.msk.f32.gmra.mxu2 %vm549_vm7, %v12656_v60 }
 0x89f   : > { %8725 = vrot.lane.b32.xlu2 %v8724_v33, %s8899_s17  ;;  %8715 = vrot.lane.b32.xlu0 %v8714_v25, %s8899_s17  ;;  %v8739_v33 = vpack.i.bf16 %v12922_v42, %v12920_v8  ;;  %v12948_v51 = vpop.f32.mrf.mxu0 }
 0x8a0   : > { %v8641_v14 = vpop.permute.xlu0 %8640  ;;  %v12932_v57 = vpop.permute.xlu2 %8650  ;;  %15127 = vst [vmem:[#allocation21_spill] sm:$0xff] %v12948_v51 }
 0x8a1   : > { %v8643_v29 = vunpack.i.h.bf16 %v8641_v14  ;;  %v8652_v25 = vunpack.i.l.bf16 %v12932_v57  ;;  %v8642_v56 = vunpack.i.l.bf16 %v8641_v14 }
 0x8a3   : > { %v4880_v44 = vsel %vm549_vm7, %v12351_v41, %v8643_v29  ;;  %v8729_v41 = vpack.i.bf16 %v12926_v5, %v12924_v28  ;;  %v12952_v29 = vld [vmem:[#allocation4 + $0x131] sm:$0xff]  ;;  %v4881_v46 = vsel %vm549_vm7, %v12379_v55, %v8652_v25  ;;  %v4670_v14 = vsel %vm549_vm7, %v12586_v3, %v8642_v56  ;;  %v8369_v55 = vld [vmem:[%s14896_s9 + $0x1d0] sm:$0xff]  ;;  %v5305_v3 = vpop.f32.mrf.mxu1 }
 0x8a4   : > { %5039 = vmatmul.f32.gmra.mxu3 %v4880_v44  ;;  %8383 = vmatmul.msk.f32.vlgmr.msrb.gmra.mxu0 %vm549_vm7, %v12924_v28  ;;  %v12954_v44 = vld [vmem:[#allocation4 + $0xe9] sm:$0xff] }
 0x8a5   : > { %5358 = vmatmul.f32.gmra.mxu1 %v4669_v34  ;;  %v12958_v34 = vld [vmem:[#allocation4 + $0xa9] sm:$0xff]  ;;  %5803 = vmatpush.msra.mxu3 %v8369_v55 }
 0x8a6   : > { %8750 = vrot.lane.b32.xlu1 %v8749_v38, %s8899_s17  ;;  %8347 = vmatmul.msk.f32.gmra.mxu2 %vm549_vm7, %v12658_v10  ;;  %v12956_v38 = vld [vmem:[#allocation4 + $0xf1] sm:$0xff] }
 0x8a7   : > { %8740 = vrot.lane.b32.xlu2 %v8739_v33, %s8899_s17  ;;  %8730 = vrot.lane.b32.xlu0 %v8729_v41, %s8899_s17  ;;  %v12960_v33 = vld [vmem:[#allocation4 + $0xb1] sm:$0xff]  ;;  %v8764_v41 = vpack.i.bf16 %v12952_v29, %v12950_v19  ;;  %v8754_v51 = vpack.i.bf16 %v12956_v38, %v12954_v44  ;;  %v12991_v11 = vpop.f32.mrf.mxu0 }
 0x8a8   : > { %v8744_v40 = vpack.i.bf16 %v12960_v33, %v12958_v34  ;;  %15128 = vst [vmem:[#allocation11_spill] sm:$0xff] %v12991_v11  ;;  %v13015_v11 = vld [vmem:[#allocation4 + $0x1e9] sm:$0xff] }
 0x8ac   : > { %5042 = vmatmul.f32.gmra.mxu3 %v4881_v46  ;;  %8384 = vmatmul.msk.f32.gmra.mxu0 %vm549_vm7, %v12926_v5  ;;  %v5421_v5 = vpop.f32.mrf.mxu2 }
 0x8ad   : > { %5361 = vmatmul.f32.gmra.mxu1 %v4670_v14  ;;  %v12985_v14 = vld [vmem:[#allocation4 + $0x191] sm:$0xff] }
 0x8ae   : > { %8765 = vrot.lane.b32.xlu1 %v8764_v41, %s8899_s17  ;;  %8348 = vmatmul.msk.f32.gmra.mxu2 %vm549_vm7, %v12671_v24  ;;  %v12983_v41 = vld [vmem:[#allocation4 + $0x189] sm:$0xff] }
 0x8af   : > { %8755 = vrot.lane.b32.xlu2 %v8754_v51, %s8899_s17  ;;  %8745 = vrot.lane.b32.xlu0 %v8744_v40, %s8899_s17  ;;  %v5013_v46 = vpop.f32.mrf.mxu3  ;;  %v12989_v51 = vld [vmem:[#allocation4 + $0x151] sm:$0xff]  ;;  %v8779_v55 = vpack.i.bf16 %v12985_v14, %v12983_v41 }
 0x8b0   : > { %v5127_v25 = vadd.f32 %v12610_v53, %v5013_v46  ;;  %v8646_v56 = vpop.permute.xlu1 %8645  ;;  %v12995_v40 = vld [vmem:[#allocation4 + $0x111] sm:$0xff]  ;;  %v8769_v46 = vpack.i.bf16 %v12989_v51, %v12987_v26 }
 0x8b1   : > { %v8647_v50 = vunpack.i.l.bf16 %v8646_v56 }
 0x8b2   : > { %v5306_v7 = vadd.f32 %v5305_v3, %v5127_v25  ;;  %v8759_v3 = vpack.i.bf16 %v12995_v40, %v12993_v17 }
 0x8b3   : > { %v4671_v53 = vsel %vm549_vm7, %v12601_v39, %v8647_v50  ;;  %v8648_v50 = vunpack.i.h.bf16 %v8646_v56 }
 0x8b4   : > { %8385 = vmatmul.msk.f32.gmra.mxu0 %vm549_vm7, %v12887_v22  ;;  %v13005_v21 = vadd.f32 %v5418_v45, %v5306_v7  ;;  %v13017_v7 = vld [vmem:[#allocation4 + $0x1f1] sm:$0xff]  ;;  %v5308_v45 = vpop.f32.mrf.mxu1 }
 0x8b5   : > { %5364 = vmatmul.f32.gmra.mxu1 %v4671_v53  ;;  %v13019_v53 = vld [vmem:[#allocation4 + $0x1a9] sm:$0xff]  ;;  %v13025_v22 = vld [vmem:[#allocation4 + $0x171] sm:$0xff]  ;;  %v8794_v56 = vpack.i.bf16 %v13017_v7, %v13015_v11 }
 0x8b6   : > { %15129 = vst [vmem:[#allocation25_spill] sm:$0xff] %v13005_v21  ;;  %8780 = vrot.lane.b32.xlu1 %v8779_v55, %s8899_s17  ;;  %8349 = vmatmul.msk.f32.gmra.mxu2 %vm549_vm7, %v12691_v35  ;;  %v13021_v55 = vld [vmem:[#allocation4 + $0x1b1] sm:$0xff] }
 0x8b7   : > { %8770 = vrot.lane.b32.xlu2 %v8769_v46, %s8899_s17  ;;  %8760 = vrot.lane.b32.xlu0 %v8759_v3, %s8899_s17  ;;  %v5016_v39 = vpop.f32.mrf.mxu3  ;;  %v13023_v46 = vld [vmem:[#allocation4 + $0x169] sm:$0xff]  ;;  %v13029_v3 = vpop.f32.mrf.mxu0 }
 0x8b8   : > { %v5130_v25 = vadd.f32 %v12635_v31, %v5016_v39  ;;  %15130 = vst [vmem:[#allocation18_spill] sm:$0xff] %v13029_v3  ;;  %v4672_v31 = vsel %vm549_vm7, %v12620_v59, %v8648_v50  ;;  %v8784_v39 = vpack.i.bf16 %v13021_v55, %v13019_v53  ;;  %v8368_v3 = vld [vmem:[%s14896_s9 + $0x1c8] sm:$0xff]  ;;  %v8653_v59 = vunpack.i.h.bf16 %v12932_v57  ;;  %v13050_v50 = vld [vmem:[#allocation4 + $0x209] sm:$0xff] }
 0x8b9   : > { %5804 = vmatpush.msra.mxu3 %v8368_v3 }
 0x8ba   : > { %v5309_v21 = vadd.f32 %v5308_v45, %v5130_v25  ;;  %v8774_v45 = vpack.i.bf16 %v13025_v22, %v13023_v46 }
 0x8bc   : > { %8386 = vmatmul.msk.f32.gmra.mxu0 %vm549_vm7, %v12889_v30  ;;  %v13037_v25 = vadd.f32 %v5421_v5, %v5309_v21  ;;  %v8858_v30 = vld [vmem:[#allocation4 + $0xc8] sm:$0xff] }
 0x8bd   : > { %5367 = vmatmul.f32.gmra.mxu1 %v4672_v31  ;;  %v13054_v31 = vld [vmem:[#allocation4 + $0x1c9] sm:$0xff] }
 0x8be   : > { %15131 = vst [vmem:[#allocation17_spill] sm:$0xff] %v13037_v25  ;;  %8795 = vrot.lane.b32.xlu1 %v8794_v56, %s8899_s17  ;;  %8350 = vmatmul.msk.f32.gmra.mxu2 %vm549_vm7, %v12710_v2  ;;  %v13052_v56 = vld [vmem:[#allocation4 + $0x211] sm:$0xff] }
 0x8bf   : > { %8785 = vrot.lane.b32.xlu2 %v8784_v39, %s8899_s17  ;;  %8775 = vrot.lane.b32.xlu0 %v8774_v45, %s8899_s17  ;;  %v13056_v25 = vld [vmem:[#allocation4 + $0x1d1] sm:$0xff]  ;;  %v4673_v45 = vsel %vm549_vm7, %v12656_v60, %v8653_v59  ;;  %v8799_v57 = vpack.i.bf16 %v13052_v56, %v13050_v50  ;;  %v13067_v28 = vpop.f32.mrf.mxu0 }
 0x8c0   : > { %v8656_v21 = vpop.permute.xlu0 %8655  ;;  %v8789_v3 = vpack.i.bf16 %v13056_v25, %v13054_v31  ;;  %15132 = vst [vmem:[#allocation26_spill] sm:$0xff] %v13067_v28 }
 0x8c1   : > { %v8658_v5 = vunpack.i.h.bf16 %v8656_v21  ;;  %v8657_v60 = vunpack.i.l.bf16 %v8656_v21  ;;  %v5311_v21 = vpop.f32.mrf.mxu1 }
 0x8c3   : > { %v4882_v39 = vsel %vm549_vm7, %v8858_v30, %v8658_v5  ;;  %v8859_v5 = vld [vmem:[#allocation4 + $0xd0] sm:$0xff] }
 0x8c4   : > { %5045 = vmatmul.f32.gmra.mxu3 %v4882_v39  ;;  %8387 = vmatmul.msk.f32.gmra.mxu0 %vm549_vm7, %v12920_v8 }
 0x8c5   : > { %5370 = vmatmul.f32.gmra.mxu1 %v4673_v45  ;;  %v4674_v45 = vsel %vm549_vm7, %v12658_v10, %v8657_v60  ;;  %v5424_v10 = vpop.f32.mrf.mxu2 }
 0x8c6   : > { %8351 = vmatmul.msk.f32.gmra.mxu2 %vm549_vm7, %v12741_v47 }
 0x8c7   : > { %8800 = vrot.lane.b32.xlu2 %v8799_v57, %s8899_s17  ;;  %8790 = vrot.lane.b32.xlu0 %v8789_v3, %s8899_s17  ;;  %v8367_v57 = vld [vmem:[%s14896_s9 + $0x1c0] sm:$0xff]  ;;  %v13083_v28 = vpop.f32.mrf.mxu0 }
 0x8c8   : > { %v8661_v30 = vpop.permute.xlu1 %8660  ;;  %5805 = vmatpush.msra.mxu3 %v8367_v57  ;;  %15133 = vst [vmem:[#allocation23_spill] sm:$0xff] %v13083_v28 }
 0x8c9   : > { %v8663_v59 = vunpack.i.h.bf16 %v8661_v30 }
 0x8cb   : > { %v4883_v39 = vsel %vm549_vm7, %v8859_v5, %v8663_v59  ;;  %v8662_v59 = vunpack.i.l.bf16 %v8661_v30 }
 0x8cc   : > { %5048 = vmatmul.f32.gmra.mxu3 %v4883_v39  ;;  %8388 = vmatmul.msk.f32.gmra.mxu0 %vm549_vm7, %v12922_v42  ;;  %v8666_v42 = vpop.permute.xlu2 %8665 }
 0x8cd   : > { %5373 = vmatmul.f32.gmra.mxu1 %v4674_v45  ;;  %v4675_v39 = vsel %vm549_vm7, %v12671_v24, %v8662_v59  ;;  %v8667_v28 = vunpack.i.l.bf16 %v8666_v42 }
 0x8ce   : > { %8352 = vmatmul.msk.f32.gmra.mxu2 %vm549_vm7, %v12743_v0 }
 0x8cf   : > { %v5019_v3 = vpop.f32.mrf.mxu3  ;;  %v4676_v24 = vsel %vm549_vm7, %v12691_v35, %v8667_v28 }
 0x8d0   : > { %v5133_v5 = vadd.f32 %v12649_v23, %v5019_v3  ;;  %v5314_v23 = vpop.f32.mrf.mxu1  ;;  %v13095_v3 = vpop.f32.mrf.mxu0 }
 0x8d2   : > { %v5312_v60 = vadd.f32 %v5311_v21, %v5133_v5  ;;  %v5427_v5 = vpop.f32.mrf.mxu2 }
 0x8d4   : > { %8389 = vmatmul.msk.f32.gmra.mxu0 %vm549_vm7, %v12958_v34  ;;  %v13090_v45 = vadd.f32 %v5424_v10, %v5312_v60  ;;  %v8366_v10 = vld [vmem:[%s14896_s9 + $0x1b8] sm:$0xff] }
 0x8d5   : > { %5376 = vmatmul.f32.gmra.mxu1 %v4675_v39  ;;  %5806 = vmatpush.msra.mxu3 %v8366_v10 }
 0x8d6   : > { %8353 = vmatmul.msk.f32.gmra.mxu2 %vm549_vm7, %v12773_v20 }
 0x8d7   : > { %v5022_v57 = vpop.f32.mrf.mxu3 }
 0x8d8   : > { %v5136_v30 = vadd.f32 %v12673_v63, %v5022_v57  ;;  %v8668_v63 = vunpack.i.h.bf16 %v8666_v42  ;;  %v13108_v60 = vpop.f32.mrf.mxu0 }
 0x8d9   : > { %15134 = vst [vmem:[#allocation31_spill] sm:$0xff] %v13108_v60 }
 0x8da   : > { %v5315_v21 = vadd.f32 %v5314_v23, %v5136_v30  ;;  %v4677_v35 = vsel %vm549_vm7, %v12710_v2, %v8668_v63  ;;  %v8860_v30 = vld [vmem:[#allocation4 + $0xe8] sm:$0xff] }
 0x8db   : > { %v8365_v2 = vld [vmem:[%s14896_s9 + $0x1b0] sm:$0xff] }
 0x8dc   : > { %8390 = vmatmul.msk.f32.gmra.mxu0 %vm549_vm7, %v12960_v33  ;;  %v13101_v59 = vadd.f32 %v5427_v5, %v5315_v21  ;;  %v5430_v21 = vpop.f32.mrf.mxu2  ;;  %5807 = vmatpush.msra.mxu3 %v8365_v2 }
 0x8dd   : > { %5379 = vmatmul.f32.gmra.mxu1 %v4676_v24 }
 0x8de   : > { %8354 = vmatmul.msk.f32.gmra.mxu2 %vm549_vm7, %v12795_v37 }
 0x8e4   : > { %8391 = vmatmul.msk.f32.gmra.mxu0 %vm549_vm7, %v12916_v36 }
 0x8e5   : > { %5382 = vmatmul.f32.gmra.mxu1 %v4677_v35  ;;  %v5317_v35 = vpop.f32.mrf.mxu1 }
 0x8e6   : > { %8355 = vmatmul.msk.f32.gmra.mxu2 %vm549_vm7, %v12829_v4  ;;  %v13124_v4 = vpop.f32.mrf.mxu0 }
 0x8e7   : > { %15135 = vst [vmem:[#allocation28_spill] sm:$0xff] %v13124_v4 }
 0x8e8   : > { %v8671_v28 = vpop.permute.xlu0 %8670 }
 0x8e9   : > { %v8673_v39 = vunpack.i.h.bf16 %v8671_v28  ;;  %v8672_v57 = vunpack.i.l.bf16 %v8671_v28 }
 0x8eb   : > { %v4884_v23 = vsel %vm549_vm7, %v8860_v30, %v8672_v57  ;;  %v4678_v42 = vsel %vm549_vm7, %v12741_v47, %v8673_v39  ;;  %v8861_v39 = vld [vmem:[#allocation4 + $0xf0] sm:$0xff] }
 0x8ec   : > { %5051 = vmatmul.f32.gmra.mxu3 %v4884_v23  ;;  %8392 = vmatmul.msk.f32.gmra.mxu0 %vm549_vm7, %v12918_v27  ;;  %v8681_v23 = vpop.permute.xlu2 %8680 }
 0x8ed   : > { %5385 = vmatmul.f32.gmra.mxu1 %v4678_v42  ;;  %v8683_v42 = vunpack.i.h.bf16 %v8681_v23  ;;  %v8682_v2 = vunpack.i.l.bf16 %v8681_v23 }
 0x8ee   : > { %8356 = vmatmul.msk.f32.gmra.mxu2 %vm549_vm7, %v12853_v13 }
 0x8ef   : > { %v5025_v5 = vpop.f32.mrf.mxu3 }
 0x8f0   : > { %v8676_v24 = vpop.permute.xlu1 %8675  ;;  %v5139_v47 = vadd.f32 %v12700_v32, %v5025_v5  ;;  %v13136_v32 = vpop.f32.mrf.mxu0  ;;  %v8862_v5 = vld [vmem:[#allocation4 + $0x108] sm:$0xff] }
 0x8f1   : > { %v8678_v10 = vunpack.i.h.bf16 %v8676_v24  ;;  %v8677_v63 = vunpack.i.l.bf16 %v8676_v24  ;;  %15136 = vst [vmem:[#allocation35_spill] sm:$0xff] %v13136_v32  ;;  %v4886_v24 = vsel %vm549_vm7, %v8862_v5, %v8683_v42  ;;  %v8864_v5 = vld [vmem:[#allocation4 + $0x128] sm:$0xff] }
 0x8f2   : > { %v5318_v28 = vadd.f32 %v5317_v35, %v5139_v47  ;;  %v13139_v47 = vpop.f32.mrf.mxu1 }
 0x8f3   : > { %v4885_v57 = vsel %vm549_vm7, %v8861_v39, %v8678_v10  ;;  %v4679_v30 = vsel %vm549_vm7, %v12743_v0, %v8677_v63  ;;  %v4680_v0 = vsel %vm549_vm7, %v12773_v20, %v8682_v2  ;;  %v8863_v39 = vld [vmem:[#allocation4 + $0x110] sm:$0xff] }
 0x8f4   : > { %5054 = vmatmul.f32.gmra.mxu3 %v4885_v57  ;;  %8393 = vmatmul.msk.f32.gmra.mxu0 %vm549_vm7, %v12954_v44  ;;  %v13134_v13 = vadd.f32 %v5430_v21, %v5318_v28  ;;  %v8364_v21 = vld [vmem:[%s14896_s9 + $0x1a8] sm:$0xff] }
 0x8f5   : > { %5388 = vmatmul.f32.gmra.mxu1 %v4679_v30  ;;  %5808 = vmatpush.msra.mxu3 %v8364_v21 }
 0x8f8   : > { %v13148_v63 = vpop.f32.mrf.mxu0  ;;  %v8691_v23 = vpop.permute.xlu1 %8690 }
 0x8f9   : > { %15137 = vst [vmem:[#allocation30_spill] sm:$0xff] %v13148_v63  ;;  %v8692_v42 = vunpack.i.l.bf16 %v8691_v23 }
 0x8fa   : > { %v13155_v30 = vpop.f32.mrf.mxu1 }
 0x8fc   : > { %5057 = vmatmul.f32.gmra.mxu3 %v4886_v24  ;;  %8394 = vmatmul.msk.f32.gmra.mxu0 %vm549_vm7, %v12956_v38  ;;  %v4888_v24 = vsel %vm549_vm7, %v8864_v5, %v8692_v42 }
 0x8fd   : > { %5391 = vmatmul.f32.gmra.mxu1 %v4680_v0  ;;  %v8693_v0 = vunpack.i.h.bf16 %v8691_v23  ;;  %v13180_v23 = vpop.f32.mrf.mxu3 }
 0x8ff   : > { %v4889_v21 = vsel %vm549_vm7, %v12566_v61, %v8693_v0  ;;  %v8361_v0 = vld [vmem:[%s14896_s9 + $0x190] sm:$0xff] }
 0x900   : > { %v13157_v2 = vpop.f32.mrf.mxu0 }
 0x901   : > { %v8686_v10 = vpop.permute.xlu0 %8685  ;;  %15138 = vst [vmem:[#allocation27_spill] sm:$0xff] %v13157_v2 }
 0x902   : > { %v8688_v35 = vunpack.i.h.bf16 %v8686_v10  ;;  %v8687_v28 = vunpack.i.l.bf16 %v8686_v10  ;;  %v8696_v10 = vpop.permute.xlu2 %8695 }
 0x904   : > { %v4887_v57 = vsel %vm549_vm7, %v8863_v39, %v8688_v35  ;;  %v4681_v20 = vsel %vm549_vm7, %v12795_v37, %v8687_v28  ;;  %8395 = vmatmul.msk.f32.gmra.mxu0 %vm549_vm7, %v12993_v17  ;;  %v8363_v37 = vld [vmem:[%s14896_s9 + $0x1a0] sm:$0xff]  ;;  %v8697_v28 = vunpack.i.l.bf16 %v8696_v10 }
 0x905   : > { %5060 = vmatmul.f32.gmra.mxu3 %v4887_v57  ;;  %5394 = vmatmul.f32.gmra.mxu1 %v4681_v20  ;;  %v8362_v57 = vld [vmem:[%s14896_s9 + $0x198] sm:$0xff]  ;;  %v8698_v20 = vunpack.i.h.bf16 %v8696_v10 }
 0x906   : > { %5809 = vmatpush.msra.mxu3 %v8363_v37  ;;  %v4890_v39 = vsel %vm549_vm7, %v12582_v9, %v8697_v28 }
 0x907   : > { %v4891_v42 = vsel %vm549_vm7, %v12599_v58, %v8698_v20  ;;  %v13195_v58 = vpop.f32.mrf.mxu3 }
 0x908   : > { %v13169_v35 = vpop.f32.mrf.mxu0  ;;  %5810 = vmatpush.msra.mxu3 %v8362_v57 }
 0x909   : > { %15139 = vst [vmem:[#allocation29_spill] sm:$0xff] %v13169_v35  ;;  %v8701_v9 = vpop.permute.xlu0 %8700 }
 0x90a   : > { %5811 = vmatpush.msra.mxu3 %v8361_v0  ;;  %v8711_v0 = vpop.permute.xlu2 %8710 }
 0x90c   : > { %8396 = vmatmul.msk.f32.gmra.mxu0 %vm549_vm7, %v12995_v40 }
 0x90d   : > { %5063 = vmatmul.f32.gmra.mxu3 %v4888_v24  ;;  %v8702_v24 = vunpack.i.l.bf16 %v8701_v9 }
 0x90f   : > { %v4892_v37 = vsel %vm549_vm7, %v12618_v48, %v8702_v24  ;;  %v8706_v48 = vpop.permute.xlu1 %8705 }
 0x910   : > { %v13178_v61 = vpop.f32.mrf.mxu0  ;;  %v8707_v57 = vunpack.i.l.bf16 %v8706_v48 }
 0x911   : > { %15140 = vst [vmem:[#allocation12_spill] sm:$0xff] %v13178_v61 }
 0x914   : > { %8397 = vmatmul.msk.f32.gmra.mxu0 %vm549_vm7, %v12950_v19 }
 0x915   : > { %5066 = vmatmul.f32.gmra.mxu3 %v4889_v21  ;;  %v8703_v21 = vunpack.i.h.bf16 %v8701_v9  ;;  %v8708_v9 = vunpack.i.h.bf16 %v8706_v48  ;;  %v8713_v48 = vunpack.i.h.bf16 %v8711_v0 }
 0x917   : > { %v4893_v28 = vsel %vm549_vm7, %v12640_v43, %v8703_v21  ;;  %v8360_v43 = vld [vmem:[%s14896_s9 + $0x188] sm:$0xff]  ;;  %v8712_v21 = vunpack.i.l.bf16 %v8711_v0  ;;  %v4521_v0 = vld [vmem:[#allocation4 + $0x22f] sm:$0xff] }
 0x918   : > { %v13186_v5 = vpop.f32.mrf.mxu0  ;;  %5812 = vmatpush.msra.mxu3 %v8360_v43  ;;  %v13233_v43 = vpop.f32.mrf.mxu2 }
 0x919   : > { %15141 = vst [vmem:[#allocation9_spill] sm:$0xff] %v13186_v5 }
 0x91c   : > { %8398 = vmatmul.msk.f32.gmra.mxu0 %vm549_vm7, %v12952_v29 }
 0x91d   : > { %5069 = vmatmul.f32.gmra.mxu3 %v4890_v39  ;;  %v13203_v39 = vpop.f32.mrf.mxu3 }
 0x920   : > { %v13197_v10 = vpop.f32.mrf.mxu0 }
 0x921   : > { %15142 = vst [vmem:[#allocation8_spill] sm:$0xff] %v13197_v10 }
 0x924   : > { %8399 = vmatmul.msk.f32.gmra.mxu0 %vm549_vm7, %v12987_v26 }
 0x925   : > { %5072 = vmatmul.f32.gmra.mxu3 %v4891_v42  ;;  %v4894_v42 = vsel %vm549_vm7, %v12652_v1, %v8707_v57  ;;  %v13214_v24 = vpop.f32.mrf.mxu3  ;;  %v4896_v57 = vsel %vm549_vm7, %v12689_v49, %v8712_v21  ;;  %v4897_v49 = vsel %vm549_vm7, %v12708_v16, %v8713_v48  ;;  %v8716_v21 = vpop.permute.xlu0 %8715 }
 0x926   : > { %v8718_v16 = vunpack.i.h.bf16 %v8716_v21 }
 0x928   : > { %v13205_v20 = vpop.f32.mrf.mxu0 }
 0x929   : > { %15143 = vst [vmem:[#allocation39_spill] sm:$0xff] %v13205_v20  ;;  %v8721_v20 = vpop.permute.xlu1 %8720 }
 0x92a   : > { %v8722_v10 = vunpack.i.l.bf16 %v8721_v20 }
 0x92c   : > { %8400 = vmatmul.msk.f32.gmra.mxu0 %vm549_vm7, %v12989_v51 }
 0x92d   : > { %5075 = vmatmul.f32.gmra.mxu3 %v4892_v37  ;;  %v4895_v37 = vsel %vm549_vm7, %v12669_v18, %v8708_v9  ;;  %v8359_v18 = vld [vmem:[%s14896_s9 + $0x180] sm:$0xff]  ;;  %v4520_v9 = vld [vmem:[#allocation4 + $0x227] sm:$0xff] }
 0x92e   : > { %5813 = vmatpush.msra.mxu3 %v8359_v18  ;;  %8357 = vmatmul.msk.f32.gmra.mxu2 %vm549_vm7, %v4520_v9 }
 0x930   : > { %v13220_v1 = vpop.f32.mrf.mxu0 }
 0x931   : > { %15144 = vst [vmem:[#allocation16_spill] sm:$0xff] %v13220_v1 }
 0x934   : > { %8401 = vmatmul.msk.f32.gmra.mxu0 %vm549_vm7, %v13023_v46 }
 0x935   : > { %5078 = vmatmul.f32.gmra.mxu3 %v4893_v28  ;;  %v13222_v28 = vpop.f32.mrf.mxu3 }
 0x93c   : > { %8402 = vmatmul.msk.f32.gmra.mxu0 %vm549_vm7, %v13025_v22 }
 0x93d   : > { %5081 = vmatmul.f32.gmra.mxu3 %v4894_v42  ;;  %v13231_v42 = vpop.f32.mrf.mxu0 }
 0x93e   : > { %15145 = vst [vmem:[#allocation7_spill] sm:$0xff] %v13231_v42  ;;  %v13244_v42 = vpop.f32.mrf.mxu2  ;;  %8358 = vmatmul.msk.f32.gmra.mxu2 %vm549_vm7, %v4521_v0 }
 0x944   : > { %8403 = vmatmul.msk.f32.gmra.mxu0 %vm549_vm7, %v12983_v41 }
 0x945   : > { %5084 = vmatmul.f32.gmra.mxu3 %v4895_v37  ;;  %v13236_v37 = vpop.f32.mrf.mxu3  ;;  %v13242_v18 = vpop.f32.mrf.mxu0 }
 0x94c   : > { %8404 = vmatmul.msk.f32.gmra.mxu0 %vm549_vm7, %v12985_v14 }
 0x94d   : > { %5087 = vmatmul.f32.gmra.mxu3 %v4896_v57  ;;  %v8717_v57 = vunpack.i.l.bf16 %v8716_v21  ;;  %v13247_v1 = vpop.f32.mrf.mxu3  ;;  %v13253_v48 = vpop.f32.mrf.mxu0 }
 0x94f   : > { %v4898_v9 = vsel %vm549_vm7, %v12725_v15, %v8717_v57  ;;  %v4900_v15 = vsel %vm549_vm7, %v12771_v6, %v8722_v10 }
 0x954   : > { %8405 = vmatmul.msk.f32.gmra.mxu0 %vm549_vm7, %v13019_v53 }
 0x955   : > { %5090 = vmatmul.f32.gmra.mxu3 %v4897_v49  ;;  %v4899_v49 = vsel %vm549_vm7, %v12739_v62, %v8718_v16  ;;  %v13259_v0 = vpop.f32.mrf.mxu3  ;;  %v13265_v21 = vpop.f32.mrf.mxu0  ;;  %v8723_v62 = vunpack.i.h.bf16 %v8721_v20 }
 0x956   : > { %v8726_v16 = vpop.permute.xlu2 %8725 }
 0x957   : > { %v8727_v6 = vunpack.i.l.bf16 %v8726_v16 }
 0x95c   : > { %8406 = vmatmul.msk.f32.gmra.mxu0 %vm549_vm7, %v13021_v55 }
 0x95d   : > { %5093 = vmatmul.f32.gmra.mxu3 %v4898_v9  ;;  %v4901_v9 = vsel %vm549_vm7, %v12793_v54, %v8723_v62  ;;  %v13275_v10 = vpop.f32.mrf.mxu0  ;;  %v8728_v54 = vunpack.i.h.bf16 %v8726_v16  ;;  %v5512_v62 = vld [vmem:[#allocation4 + $0x11] sm:$0xff] }
 0x964   : > { %8407 = vmatmul.msk.f32.gmra.mxu0 %vm549_vm7, %v13054_v31 }
 0x965   : > { %5096 = vmatmul.f32.gmra.mxu3 %v4899_v49  ;;  %v13282_v5 = vpop.f32.mrf.mxu0 }
 0x96c   : > { %8408 = vmatmul.msk.f32.gmra.mxu0 %vm549_vm7, %v13056_v25  ;;  %v5511_v25 = vld [vmem:[#allocation4 + $0x9] sm:$0xff] }
 0x96d   : > { %5099 = vmatmul.f32.gmra.mxu3 %v4900_v15  ;;  %v5675_v15 = vsel %vm549_vm7, %v5511_v25, %v8727_v6  ;;  %v13289_v6 = vpop.f32.mrf.mxu0 }
 0x96f   : > { %v13267_v57 = vpop.f32.mrf.mxu3 }
 0x974   : > { %8409 = vmatmul.msk.f32.gmra.mxu0 %vm549_vm7, %v13015_v11  ;;  %v5676_v11 = vsel %vm549_vm7, %v5512_v62, %v8728_v54 }
 0x975   : > { %5102 = vmatmul.f32.gmra.mxu3 %v4901_v9  ;;  %v8731_v9 = vpop.permute.xlu0 %8730 }
 0x976   : > { %v8732_v61 = vunpack.i.l.bf16 %v8731_v9  ;;  %v8733_v16 = vunpack.i.h.bf16 %v8731_v9 }
 0x977   : > { %v13273_v49 = vpop.f32.mrf.mxu3 }
 0x97c   : > { %8410 = vmatmul.msk.f32.gmra.mxu0 %vm549_vm7, %v13017_v7  ;;  %v5677_v7 = vsel %vm549_vm7, %v12891_v52, %v8732_v61 }
 0x97d   : > { %5814 = vmatmul.f32.vlgmr.msra.gmra.mxu3 %v5675_v15  ;;  %v8736_v15 = vpop.permute.xlu1 %8735 }
 0x97e   : > { %v8737_v54 = vunpack.i.l.bf16 %v8736_v15  ;;  %v8738_v52 = vunpack.i.h.bf16 %v8736_v15  ;;  %v8746_v15 = vpop.permute.xlu0 %8745 }
 0x97f   : > { %v13280_v20 = vpop.f32.mrf.mxu3 }
 0x984   : > { %8411 = vmatmul.msk.f32.gmra.mxu0 %vm549_vm7, %v13050_v50  ;;  %v5678_v50 = vsel %vm549_vm7, %v12893_v12, %v8733_v16  ;;  %v15148_v12 = vld [vmem:[#allocation10_spill] sm:$0xff] }
 0x985   : > { %5817 = vmatmul.f32.gmra.mxu3 %v5676_v11  ;;  %v15146_v11 = vld [vmem:[#allocation24_spill] sm:$0xff] }
 0x986   : > { %v5679_v2 = vsel %vm549_vm7, %v15146_v11, %v8737_v54  ;;  %v15150_v54 = vld [vmem:[#allocation38_spill] sm:$0xff]  ;;  %v8747_v11 = vunpack.i.l.bf16 %v8746_v15 }
 0x988   : > { %v13287_v35 = vpop.f32.mrf.mxu3 }
 0x98c   : > { %8412 = vmatmul.msk.f32.gmra.mxu0 %vm549_vm7, %v13052_v56  ;;  %v15147_v56 = vld [vmem:[#allocation36_spill] sm:$0xff] }
 0x98d   : > { %5820 = vmatmul.f32.gmra.mxu3 %v5677_v7  ;;  %v5680_v9 = vsel %vm549_vm7, %v15147_v56, %v8738_v52  ;;  %v8741_v7 = vpop.permute.xlu2 %8740  ;;  %v5683_v52 = vsel %vm549_vm7, %v12920_v8, %v8747_v11  ;;  %v8748_v56 = vunpack.i.h.bf16 %v8746_v15 }
 0x98e   : > { %v8742_v63 = vunpack.i.l.bf16 %v8741_v7 }
 0x990   : > { %v13295_v25 = vpop.f32.mrf.mxu3  ;;  %v5681_v16 = vsel %vm549_vm7, %v15148_v12, %v8742_v63  ;;  %v15151_v63 = vld [vmem:[#allocation20_spill] sm:$0xff]  ;;  %v8751_v12 = vpop.permute.xlu1 %8750 }
 0x995   : > { %5823 = vmatmul.f32.gmra.mxu3 %v5678_v50  ;;  %v8743_v50 = vunpack.i.h.bf16 %v8741_v7  ;;  %v5684_v7 = vsel %vm549_vm7, %v15151_v63, %v8748_v56  ;;  %v8756_v15 = vpop.permute.xlu2 %8755 }
 0x996   : > { %v8757_v11 = vunpack.i.l.bf16 %v8756_v15  ;;  %v8758_v63 = vunpack.i.h.bf16 %v8756_v15  ;;  %v6190_v15 = vld [vmem:[#allocation3 + $0x227] sm:$0xff] }
 0x997   : > { %6382 = vrot.lane.b32.xlu2 %v6190_v15, %s8899_s17 }
 0x998   : > { %v13299_v62 = vpop.f32.mrf.mxu3  ;;  %v5687_v56 = vsel %vm549_vm7, %v12916_v36, %v8757_v11  ;;  %v8766_v11 = vpop.permute.xlu1 %8765 }
 0x99d   : > { %5826 = vmatmul.f32.gmra.mxu3 %v5679_v2  ;;  %v5682_v2 = vsel %vm549_vm7, %v15150_v54, %v8743_v50  ;;  %v8753_v54 = vunpack.i.h.bf16 %v8751_v12 }
 0x99f   : > { %v5686_v8 = vsel %vm549_vm7, %v12960_v33, %v8753_v54  ;;  %v6191_v33 = vld [vmem:[#allocation3 + $0x22f] sm:$0xff] }
 0x9a0   : > { %v13303_v61 = vpop.f32.mrf.mxu3  ;;  %6384 = vrot.lane.b32.xlu0 %v6191_v33, %s8899_s17 }
 0x9a5   : > { %5829 = vmatmul.f32.gmra.mxu3 %v5680_v9 }
 0x9a8   : > { %v13307_v32 = vpop.f32.mrf.mxu3 }
 0x9ad   : > { %5832 = vmatmul.f32.gmra.mxu3 %v5681_v16  ;;  %v8752_v16 = vunpack.i.l.bf16 %v8751_v12  ;;  %v8761_v12 = vpop.permute.xlu0 %8760 }
 0x9ae   : > { %v8763_v36 = vunpack.i.h.bf16 %v8761_v12 }
 0x9af   : > { %v5685_v50 = vsel %vm549_vm7, %v12958_v34, %v8752_v16  ;;  %v5688_v34 = vsel %vm549_vm7, %v12918_v27, %v8758_v63  ;;  %v8762_v16 = vunpack.i.l.bf16 %v8761_v12  ;;  %v8768_v12 = vunpack.i.h.bf16 %v8766_v11 }
 0x9b0   : > { %v13311_v4 = vpop.f32.mrf.mxu3  ;;  %v5690_v27 = vsel %vm549_vm7, %v12956_v38, %v8763_v36  ;;  %v15157_v38 = vld [vmem:[#allocation34_spill] sm:$0xff] }
 0x9b1   : > { %15149 = vst [vmem:[#allocation13_spill] sm:$0xff] %v13311_v4  ;;  %v5689_v54 = vsel %vm549_vm7, %v12954_v44, %v8762_v16  ;;  %v13353_v44 = vpop.f32.mrf.mxu0  ;;  %v5692_v15 = vsel %vm549_vm7, %v12995_v40, %v8768_v12  ;;  %v13373_v12 = vpop.f32.mrf.mxu1 }
 0x9b5   : > { %5835 = vmatmul.f32.gmra.mxu3 %v5682_v2 }
 0x9b8   : > { %v13315_v60 = vpop.f32.mrf.mxu3 }
 0x9bd   : > { %5838 = vmatmul.f32.gmra.mxu3 %v5683_v52 }
 0x9c0   : > { %v13319_v9 = vpop.f32.mrf.mxu3 }
 0x9c5   : > { %5841 = vmatmul.f32.gmra.mxu3 %v5684_v7 }
 0x9c8   : > { %v13323_v4 = vpop.f32.mrf.mxu3 }
 0x9cd   : > { %5844 = vmatmul.f32.gmra.mxu3 %v5685_v50 }
 0x9d0   : > { %v13327_v2 = vpop.f32.mrf.mxu3 }
 0x9d5   : > { %5847 = vmatmul.f32.gmra.mxu3 %v5686_v8 }
 0x9d8   : > { %v13331_v52 = vpop.f32.mrf.mxu3 }
 0x9d9   : > { %15152 = vst [vmem:[#allocation37_spill] sm:$0xff] %v13331_v52 }
 0x9dd   : > { %5850 = vmatmul.f32.gmra.mxu3 %v5687_v56  ;;  %v8767_v56 = vunpack.i.l.bf16 %v8766_v11  ;;  %v13365_v11 = vpop.f32.mrf.mxu0 }
 0x9e0   : > { %v13335_v7 = vpop.f32.mrf.mxu3 }
 0x9e1   : > { %15153 = vst [vmem:[#allocation40_spill] sm:$0xff] %v13335_v7 }
 0x9e5   : > { %5853 = vmatmul.f32.gmra.mxu3 %v5688_v34  ;;  %v5691_v34 = vsel %vm549_vm7, %v12993_v17, %v8767_v56 }
 0x9e8   : > { %v13339_v50 = vpop.f32.mrf.mxu3 }
 0x9e9   : > { %15154 = vst [vmem:[#allocation24_spill] sm:$0xff] %v13339_v50 }
 0x9ed   : > { %5856 = vmatmul.f32.gmra.mxu3 %v5689_v54  ;;  %v13359_v54 = vld [vmem:[%s14897_s10] ss:$0 sm:$0xff] }
 0x9f0   : > { %v13344_v8 = vpop.f32.mrf.mxu3 }
 0x9f1   : > { %15155 = vst [vmem:[#allocation36_spill] sm:$0xff] %v13344_v8 }
 0x9f5   : > { %5859 = vmatmul.f32.gmra.mxu3 %v5690_v27  ;;  %v8771_v27 = vpop.permute.xlu2 %8770 }
 0x9f8   : > { %v13349_v63 = vpop.f32.mrf.mxu3 }
 0x9f9   : > { %15156 = vst [vmem:[#allocation10_spill] sm:$0xff] %v13349_v63 }
 0x9fd   : > { %5862 = vmatmul.f32.gmra.mxu3 %v5691_v34  ;;  %v8772_v34 = vunpack.i.l.bf16 %v8771_v27 }
 0xa00   : > { %v5815_v16 = vpop.f32.mrf.mxu3 }
 0xa01   : > { %v5929_v33 = vadd.f32 %v13242_v18, %v5815_v16  ;;  %v15158_v16 = vld [vmem:[#allocation25_spill] sm:$0xff] }
 0xa03   : > { %v6024_v36 = vadd.f32 %v5929_v33, %v15157_v38  ;;  %v5693_v33 = vsel %vm549_vm7, %v12950_v19, %v8772_v34  ;;  %v13384_v19 = vpop.f32.mrf.mxu0 }
 0xa05   : > { %v6060_v17 = vadd.f32 %v13359_v54, %v6024_v36  ;;  %5865 = vmatmul.f32.gmra.mxu3 %v5692_v15  ;;  %v13375_v36 = vpop.f32.mrf.mxu2  ;;  %v8773_v15 = vunpack.i.h.bf16 %v8771_v27 }
 0xa07   : > { %v6092_v56 = vmax.f32 %v6060_v17, 0.0  ;;  %v5694_v27 = vsel %vm549_vm7, %v12952_v29, %v8773_v15 }
 0xa08   : > { %v5818_v63 = vpop.f32.mrf.mxu3 }
 0xa09   : > { %6124 = vst.msk [vmem:[#allocation3 + $0x28] sm:$0xff] %vm502_vm5, %v6092_v56  ;;  %v5932_v18 = vadd.f32 %v13253_v48, %v5818_v63  ;;  %v8776_v56 = vpop.permute.xlu0 %8775 }
 0xa0b   : > { %v6025_v8 = vadd.f32 %v5932_v18, %v15158_v16  ;;  %v13390_v16 = vpop.f32.mrf.mxu1 }
 0xa0d   : > { %v6061_v40 = vadd.f32 %v13359_v54, %v6025_v8  ;;  %5868 = vmatmul.f32.gmra.mxu3 %v5693_v33  ;;  %v15159_v8 = vld [vmem:[#allocation17_spill] sm:$0xff]  ;;  %v13399_v29 = vpop.f32.mrf.mxu2 }
 0xa0f   : > { %v6093_v38 = vmax.f32 %v6061_v40, 0.0 }
 0xa10   : > { %v5821_v17 = vpop.f32.mrf.mxu3  ;;  %v6496_v50 = vld [vmem:[#allocation3 + $0x28] sm:$0xff] }
 0xa11   : > { %v13377_v7 = vld [vmem:[#allocation3 + $0x27] sm:$0xff]  ;;  %6125 = vst.msk [vmem:[#allocation3 + $0x30] sm:$0xff] %vm502_vm5, %v6093_v38  ;;  %v5935_v48 = vadd.f32 %v13265_v21, %v5821_v17  ;;  %6562 = vrot.lane.b32.xlu1 %v6496_v50, %s8898_s16  ;;  %v8777_v21 = vunpack.i.l.bf16 %v8776_v56  ;;  %v13402_v17 = vpop.f32.mrf.mxu0 }
 0xa12   : > { %6224 = vrot.lane.b32.xlu0 %v13377_v7, %s8898_s16 }
 0xa13   : > { %v6026_v63 = vadd.f32 %v5935_v48, %v15159_v8  ;;  %v5695_v48 = vsel %vm549_vm7, %v12987_v26, %v8777_v21  ;;  %v13414_v26 = vpop.f32.mrf.mxu1 }
 0xa15   : > { %v6062_v34 = vadd.f32 %v13359_v54, %v6026_v63  ;;  %5871 = vmatmul.f32.gmra.mxu3 %v5694_v27  ;;  %v8778_v27 = vunpack.i.h.bf16 %v8776_v56  ;;  %v13418_v56 = vpop.f32.mrf.mxu2 }
 0xa17   : > { %v6094_v18 = vmax.f32 %v6062_v34, 0.0  ;;  %v5696_v21 = vsel %vm549_vm7, %v12989_v51, %v8778_v27 }
 0xa18   : > { %v5824_v33 = vpop.f32.mrf.mxu3  ;;  %v6497_v50 = vld [vmem:[#allocation3 + $0x30] sm:$0xff] }
 0xa19   : > { %v13392_v40 = vld [vmem:[#allocation3 + $0x2f] sm:$0xff]  ;;  %6126 = vst.msk [vmem:[#allocation3 + $0x48] sm:$0xff] %vm502_vm5, %v6094_v18  ;;  %v5938_v38 = vadd.f32 %v13275_v10, %v5824_v33  ;;  %6564 = vrot.lane.b32.xlu2 %v6497_v50, %s8898_s16 }
 0xa1a   : > { %6226 = vrot.lane.b32.xlu1 %v13392_v40, %s8898_s16  ;;  %v7254_v18 = vld [vmem:[#allocation3 + $0x31] sm:$0xff] }
 0xa1b   : > { %v6027_v15 = vadd.f32 %v5938_v38, %v13090_v45  ;;  %v8781_v38 = vpop.permute.xlu1 %8780  ;;  %v13437_v27 = vpop.f32.mrf.mxu1 }
 0xa1d   : > { %v6063_v8 = vadd.f32 %v13359_v54, %v6027_v15  ;;  %5874 = vmatmul.f32.gmra.mxu3 %v5695_v48 }
 0xa1f   : > { %v6095_v63 = vmax.f32 %v6063_v8, 0.0  ;;  %v8782_v8 = vunpack.i.l.bf16 %v8781_v38 }
 0xa20   : > { %v5827_v10 = vpop.f32.mrf.mxu3  ;;  %v13407_v34 = vld [vmem:[#allocation3 + $0x47] sm:$0xff] }
 0xa21   : > { %v6498_v33 = vld [vmem:[#allocation3 + $0x48] sm:$0xff]  ;;  %6127 = vst.msk [vmem:[#allocation3 + $0x50] sm:$0xff] %vm502_vm5, %v6095_v63  ;;  %v5941_v50 = vadd.f32 %v13282_v5, %v5827_v10  ;;  %6228 = vrot.lane.b32.xlu2 %v13407_v34, %s8898_s16  ;;  %v13423_v5 = vpop.f32.mrf.mxu0 }
 0xa22   : > { %7321 = vrot.lane.b32.xlu1 %v7254_v18, %s8898_s16  ;;  %6566 = vrot.lane.b32.xlu0 %v6498_v33, %s8898_s16  ;;  %v15160_v18 = vld [vmem:[#allocation22_spill] sm:$0xff] }
 0xa23   : > { %v6028_v45 = vadd.f32 %v5941_v50, %v13101_v59  ;;  %v5142_v52 = vadd.f32 %v15160_v18, %v13180_v23  ;;  %v5697_v50 = vsel %vm549_vm7, %v13023_v46, %v8782_v8  ;;  %v15161_v18 = vld [vmem:[#allocation14_spill] sm:$0xff] }
 0xa25   : > { %v6064_v15 = vadd.f32 %v13359_v54, %v6028_v45  ;;  %5877 = vmatmul.f32.gmra.mxu3 %v5696_v21  ;;  %v5321_v23 = vadd.f32 %v13139_v47, %v5142_v52 }
 0xa27   : > { %v6096_v48 = vmax.f32 %v6064_v15, 0.0  ;;  %v8783_v15 = vunpack.i.h.bf16 %v8781_v38  ;;  %v5434_v46 = vadd.f32 %v13233_v43, %v5321_v23  ;;  %v8786_v43 = vpop.permute.xlu2 %8785 }
 0xa28   : > { %v5830_v63 = vpop.f32.mrf.mxu3  ;;  %v13425_v10 = vld [vmem:[#allocation3 + $0x50] sm:$0xff] }
 0xa29   : > { %6128 = vst.msk [vmem:[#allocation3 + $0x68] sm:$0xff] %vm502_vm5, %v6096_v48  ;;  %v5944_v59 = vadd.f32 %v13289_v6, %v5830_v63  ;;  %6322 = vrot.lane.b32.xlu2 %v13407_v34, %s8899_s17  ;;  %v13443_v6 = vpop.f32.mrf.mxu2  ;;  %v13445_v48 = vpop.f32.mrf.mxu0  ;;  %v13460_v52 = vld [vmem:[#allocation3 + $0x4f] sm:$0xff] }
 0xa2a   : > { %6568 = vrot.lane.b32.xlu1 %v13425_v10, %s8898_s16  ;;  %6660 = vrot.lane.b32.xlu0 %v6498_v33, %s8899_s17  ;;  %v13447_v33 = vld [vmem:[#allocation3 + $0x51] sm:$0xff] }
 0xa2b   : > { %v6029_v51 = vadd.f32 %v5944_v59, %v13134_v13  ;;  %v5145_v59 = vadd.f32 %v15161_v18, %v13195_v58  ;;  %v5698_v58 = vsel %vm549_vm7, %v13025_v22, %v8783_v15  ;;  %v15162_v18 = vld [vmem:[#allocation6_spill] sm:$0xff] }
 0xa2d   : > { %v6065_v45 = vadd.f32 %v13359_v54, %v6029_v51  ;;  %5880 = vmatmul.f32.gmra.mxu3 %v5697_v50  ;;  %v5324_v8 = vadd.f32 %v13155_v30, %v5145_v59  ;;  %v13468_v51 = vpop.f32.mrf.mxu1 }
 0xa2f   : > { %v6097_v21 = vmax.f32 %v6065_v45, 0.0  ;;  %v8787_v45 = vunpack.i.l.bf16 %v8786_v43  ;;  %v5437_v22 = vadd.f32 %v13244_v42, %v5324_v8 }
 0xa30   : > { %v5833_v63 = vpop.f32.mrf.mxu3  ;;  %v13449_v13 = vld [vmem:[#allocation3 + $0x67] sm:$0xff] }
 0xa31   : > { %6129 = vst.msk [vmem:[#allocation3 + $0x70] sm:$0xff] %vm502_vm5, %v6097_v21  ;;  %v5947_v47 = vadd.f32 %v13353_v44, %v5833_v63  ;;  %7419 = vrot.lane.b32.xlu2 %v13447_v33, %s8899_s17  ;;  %v13470_v23 = vpop.f32.mrf.mxu2  ;;  %v13472_v63 = vld [vmem:[#allocation3 + $0x68] sm:$0xff]  ;;  %v13483_v15 = vpop.f32.mrf.mxu0 }
 0xa32   : > { %6232 = vrot.lane.b32.xlu1 %v13449_v13, %s8898_s16  ;;  %6230 = vrot.lane.b32.xlu0 %v13460_v52, %s8898_s16 }
 0xa33   : > { %v6030_v38 = vadd.f32 %v5947_v47, %v5434_v46  ;;  %v5148_v46 = vadd.f32 %v15162_v18, %v13203_v39  ;;  %v5699_v39 = vsel %vm549_vm7, %v12983_v41, %v8787_v45 }
 0xa35   : > { %v6066_v44 = vadd.f32 %v13359_v54, %v6030_v38  ;;  %5883 = vmatmul.f32.gmra.mxu3 %v5698_v58  ;;  %v5327_v47 = vadd.f32 %v13373_v12, %v5148_v46  ;;  %v13491_v38 = vpop.f32.mrf.mxu1  ;;  %v8788_v58 = vunpack.i.h.bf16 %v8786_v43 }
 0xa37   : > { %v6098_v50 = vmax.f32 %v6066_v44, 0.0  ;;  %v5440_v41 = vadd.f32 %v13375_v36, %v5327_v47  ;;  %v5700_v36 = vsel %vm549_vm7, %v12985_v14, %v8788_v58 }
 0xa38   : > { %v5836_v21 = vpop.f32.mrf.mxu3  ;;  %v13493_v44 = vld [vmem:[#allocation3 + $0x6f] sm:$0xff] }
 0xa39   : > { %6130 = vst.msk [vmem:[#allocation3 + $0x88] sm:$0xff] %vm502_vm5, %v6098_v50  ;;  %v5950_v30 = vadd.f32 %v13365_v11, %v5836_v21  ;;  %6570 = vrot.lane.b32.xlu2 %v13472_v63, %s8898_s16  ;;  %v15163_v21 = vld [vmem:[#allocation19_spill] sm:$0xff]  ;;  %v13508_v45 = vpop.f32.mrf.mxu2  ;;  %v13512_v46 = vpop.f32.mrf.mxu0 }
 0xa3a   : > { %6326 = vrot.lane.b32.xlu1 %v13449_v13, %s8899_s17  ;;  %6324 = vrot.lane.b32.xlu0 %v13460_v52, %s8899_s17  ;;  %v5151_v18 = vadd.f32 %v15163_v21, %v13214_v24  ;;  %v13506_v43 = vld [vmem:[#allocation3 + $0x70] sm:$0xff] }
 0xa3b   : > { %v6031_v59 = vadd.f32 %v5950_v30, %v5437_v22  ;;  %v8791_v22 = vpop.permute.xlu0 %8790 }
 0xa3d   : > { %v6067_v42 = vadd.f32 %v13359_v54, %v6031_v59  ;;  %5886 = vmatmul.f32.gmra.mxu3 %v5699_v39  ;;  %v8792_v39 = vunpack.i.l.bf16 %v8791_v22 }
 0xa3f   : > { %v6099_v11 = vmax.f32 %v6067_v42, 0.0 }
 0xa40   : > { %v5839_v8 = vpop.f32.mrf.mxu3  ;;  %v13495_v50 = vld [vmem:[#allocation3 + $0x88] sm:$0xff] }
 0xa41   : > { %6131 = vst.msk [vmem:[#allocation3 + $0x90] sm:$0xff] %vm502_vm5, %v6099_v11  ;;  %v5953_v12 = vadd.f32 %v13384_v19, %v5839_v8  ;;  %6234 = vrot.lane.b32.xlu2 %v13493_v44, %s8898_s16  ;;  %v5330_v19 = vadd.f32 %v13390_v16, %v5151_v18  ;;  %v15164_v11 = vld [vmem:[#allocation15_spill] sm:$0xff]  ;;  %v13526_v14 = vld [vmem:[#allocation3 + $0x87] sm:$0xff]  ;;  %v13528_v16 = vpop.f32.mrf.mxu1 }
 0xa42   : > { %6574 = vrot.lane.b32.xlu1 %v13495_v50, %s8898_s16  ;;  %6572 = vrot.lane.b32.xlu0 %v13506_v43, %s8898_s16  ;;  %v5154_v8 = vadd.f32 %v15164_v11, %v13222_v28  ;;  %v13532_v28 = vpop.f32.mrf.mxu2 }
 0xa43   : > { %v6032_v24 = vadd.f32 %v5953_v12, %v5440_v41  ;;  %v5443_v21 = vadd.f32 %v13399_v29, %v5330_v19  ;;  %v5701_v29 = vsel %vm549_vm7, %v13019_v53, %v8792_v39  ;;  %v13538_v12 = vpop.f32.mrf.mxu0 }
 0xa45   : > { %v6068_v30 = vadd.f32 %v13359_v54, %v6032_v24  ;;  %5889 = vmatmul.f32.gmra.mxu3 %v5700_v36  ;;  %v8793_v36 = vunpack.i.h.bf16 %v8791_v22  ;;  %v6492_v22 = vld [vmem:[%s14898_s11 + $0x50] sm:$0xff] }
 0xa47   : > { %v6100_v59 = vmax.f32 %v6068_v30, 0.0 }
 0xa48   : > { %v5842_v47 = vpop.f32.mrf.mxu3  ;;  %v6165_v42 = vld [vmem:[#allocation3 + $0x8f] sm:$0xff] }
 0xa49   : > { %6132 = vst.msk [vmem:[#allocation3 + $0xa8] sm:$0xff] %vm502_vm5, %v6100_v59  ;;  %v5956_v41 = vadd.f32 %v13402_v17, %v5842_v47  ;;  %6328 = vrot.lane.b32.xlu2 %v13493_v44, %s8899_s17  ;;  %v5333_v17 = vadd.f32 %v13414_v26, %v5154_v8  ;;  %v13540_v30 = vld [vmem:[#allocation3 + $0x90] sm:$0xff]  ;;  %v15165_v47 = vld [vmem:[#allocation32_spill] sm:$0xff]  ;;  %v13558_v39 = vpop.f32.mrf.mxu1 }
 0xa4a   : > { %6238 = vrot.lane.b32.xlu1 %v6165_v42, %s8898_s16  ;;  %6236 = vrot.lane.b32.xlu0 %v13526_v14, %s8898_s16  ;;  %v6493_v59 = vld [vmem:[%s14898_s11 + $0x58] sm:$0xff]  ;;  %v5157_v11 = vadd.f32 %v15165_v47, %v13236_v37 }
 0xa4b   : > { %v6033_v58 = vadd.f32 %v5956_v41, %v5443_v21  ;;  %v5446_v53 = vadd.f32 %v13418_v56, %v5333_v17  ;;  %7142 = vmatpush.msra.mxu2 %v6493_v59  ;;  %v5702_v56 = vsel %vm549_vm7, %v13021_v55, %v8793_v36  ;;  %v13566_v21 = vpop.permute.xlu1 %8795  ;;  %v6490_v55 = vld [vmem:[%s14898_s11 + $0x40] sm:$0xff]  ;;  %v15166_v59 = vld [vmem:[#allocation5_spill] sm:$0xff] }
 0xa4c   : > { %v5336_v8 = vadd.f32 %v13437_v27, %v5157_v11  ;;  %v8797_v17 = vunpack.i.l.bf16 %v13566_v21  ;;  %v5160_v47 = vadd.f32 %v15166_v59, %v13247_v1 }
 0xa4d   : > { %v6069_v18 = vadd.f32 %v13359_v54, %v6033_v58  ;;  %5892 = vmatmul.f32.gmra.mxu3 %v5701_v29  ;;  %7143 = vmatpush.msra.mxu2 %v6492_v22  ;;  %v13570_v58 = vpop.f32.mrf.mxu2  ;;  %v6488_v22 = vld [vmem:[%s14898_s11 + $0x30] sm:$0xff] }
 0xa4e   : > { %v5449_v11 = vadd.f32 %v13443_v6, %v5336_v8  ;;  %v5546_v6 = vld [vmem:[#allocation4 + $0x231] sm:$0xff] }
 0xa4f   : > { %v6101_v24 = vmax.f32 %v6069_v18, 0.0  ;;  %v13576_v18 = vpop.f32.mrf.mxu0 }
 0xa50   : > { %v5845_v19 = vpop.f32.mrf.mxu3 }
 0xa51   : > { %6133 = vst.msk [vmem:[#allocation3 + $0xb0] sm:$0xff] %vm502_vm5, %v6101_v24  ;;  %v5959_v26 = vadd.f32 %v13423_v5, %v5845_v19  ;;  %6576 = vrot.lane.b32.xlu2 %v13540_v30, %s8898_s16  ;;  %v5545_v5 = vld [vmem:[#allocation4 + $0x229] sm:$0xff] }
 0xa52   : > { %6332 = vrot.lane.b32.xlu1 %v6165_v42, %s8899_s17  ;;  %6330 = vrot.lane.b32.xlu0 %v13526_v14, %s8899_s17  ;;  %v6491_v42 = vld [vmem:[%s14898_s11 + $0x48] sm:$0xff]  ;;  %v6489_v19 = vld [vmem:[%s14898_s11 + $0x38] sm:$0xff] }
 0xa53   : > { %v6034_v37 = vadd.f32 %v5959_v26, %v5446_v53  ;;  %8413 = vmatmul.msk.f32.gmra.mxu0 %vm549_vm7, %v5545_v5  ;;  %7144 = vmatpush.msra.mxu2 %v6491_v42  ;;  %v13578_v24 = vld [vmem:[#allocation3 + $0xa7] sm:$0xff]  ;;  %v13603_v42 = vpop.f32.mrf.mxu1 }
 0xa54   : > { %v6504_v26 = vld [vmem:[#allocation3 + $0xa8] sm:$0xff] }
 0xa55   : > { %v6070_v41 = vadd.f32 %v13359_v54, %v6034_v37  ;;  %5895 = vmatmul.f32.gmra.mxu3 %v5702_v56  ;;  %7145 = vmatpush.msra.mxu2 %v6490_v55  ;;  %v5703_v37 = vsel %vm549_vm7, %v13054_v31, %v8797_v17  ;;  %v5339_v56 = vadd.f32 %v13468_v51, %v5160_v47  ;;  %v6486_v31 = vld [vmem:[%s14898_s11 + $0x20] sm:$0xff]  ;;  %v8798_v55 = vunpack.i.h.bf16 %v13566_v21  ;;  %v6485_v51 = vld [vmem:[%s14898_s11 + $0x18] sm:$0xff] }
 0xa57   : > { %v6102_v29 = vmax.f32 %v6070_v41, 0.0  ;;  %7146 = vmatpush.msra.mxu2 %v6489_v19  ;;  %v13608_v41 = vpop.f32.mrf.mxu2  ;;  %v5452_v59 = vadd.f32 %v13470_v23, %v5339_v56  ;;  %v6482_v56 = vld [vmem:[%s14898_s11] sm:$0xff] }
 0xa58   : > { %v5848_v27 = vpop.f32.mrf.mxu3  ;;  %v6505_v36 = vld [vmem:[#allocation3 + $0xb0] sm:$0xff] }
 0xa59   : > { %6134 = vst.msk [vmem:[#allocation3 + $0xc8] sm:$0xff] %vm502_vm5, %v6102_v29  ;;  %v5962_v53 = vadd.f32 %v13445_v48, %v5848_v27  ;;  %6240 = vrot.lane.b32.xlu2 %v13578_v24, %s8898_s16  ;;  %7147 = vmatpush.msra.mxu2 %v6488_v22  ;;  %v6487_v48 = vld [vmem:[%s14898_s11 + $0x28] sm:$0xff]  ;;  %v13616_v27 = vpop.permute.xlu2 %8800  ;;  %v13627_v21 = vld [vmem:[#allocation3 + $0xaf] sm:$0xff] }
 0xa5a   : > { %6580 = vrot.lane.b32.xlu1 %v6505_v36, %s8898_s16  ;;  %6578 = vrot.lane.b32.xlu0 %v6504_v26, %s8898_s16  ;;  %v15167_v36 = vld [vmem:[#allocation33_spill] sm:$0xff]  ;;  %v8865_v26 = vld [vmem:[#allocation4 + $0x1d1] sm:$0xff] }
 0xa5b   : > { %v6035_v1 = vadd.f32 %v5962_v53, %v5449_v11  ;;  %8414 = vmatmul.msk.f32.gmra.mxu0 %vm549_vm7, %v5546_v6  ;;  %7148 = vmatpush.msra.mxu2 %v6487_v48  ;;  %v5163_v19 = vadd.f32 %v15167_v36, %v13259_v0  ;;  %v8502_v11 = vld [vmem:[%s14898_s11 + $0x118] sm:$0xff]  ;;  %v13632_v53 = vpop.f32.mrf.mxu0  ;;  %v6484_v0 = vld [vmem:[%s14898_s11 + $0x10] sm:$0xff]  ;;  %v5704_v22 = vsel %vm549_vm7, %v8865_v26, %v8798_v55  ;;  %v8500_v48 = vld [vmem:[%s14898_s11 + $0x108] sm:$0xff] }
 0xa5c   : > { %8539 = vmatpush.msrb.mxu3 %v8502_v11  ;;  %7690 = vmatpush.msra.mxu0 %v8502_v11  ;;  %v15168_v36 = vld [vmem:[#allocation21_spill] sm:$0xff]  ;;  %v8866_v26 = vld [vmem:[#allocation4 + $0x1e9] sm:$0xff] }
 0xa5d   : > { %v6071_v5 = vadd.f32 %v13359_v54, %v6035_v1  ;;  %5898 = vmatmul.f32.gmra.mxu3 %v5703_v37  ;;  %7149 = vmatpush.msra.mxu2 %v6486_v31  ;;  %v6483_v1 = vld [vmem:[%s14898_s11 + $0x8] sm:$0xff]  ;;  %v5342_v37 = vadd.f32 %v13491_v38, %v5163_v19  ;;  %v8499_v31 = vld [vmem:[%s14898_s11 + $0x100] sm:$0xff]  ;;  %v13657_v38 = vpop.f32.mrf.mxu1  ;;  %v5166_v19 = vadd.f32 %v15168_v36, %v13267_v57  ;;  %v8425_v57 = vld [vmem:[%s14898_s11 + $0xb0] sm:$0xff] }
 0xa5e   : > { %v15170_v36 = vld [vmem:[#allocation11_spill] sm:$0xff] }
 0xa5f   : > { %v6103_v8 = vmax.f32 %v6071_v5, 0.0  ;;  %7150 = vmatpush.msra.mxu2 %v6485_v51  ;;  %v8426_v51 = vld [vmem:[%s14898_s11 + $0xb8] sm:$0xff] }
 0xa60   : > { %v5851_v29 = vpop.f32.mrf.mxu3  ;;  %v13611_v17 = vld [vmem:[#allocation3 + $0xc7] sm:$0xff]  ;;  %6933 = vmatpush.msrb.mxu1 %v8426_v51  ;;  %v8495_v51 = vld [vmem:[%s14898_s11 + $0xe0] sm:$0xff] }
 0xa61   : > { %6135 = vst.msk [vmem:[#allocation3 + $0xd0] sm:$0xff] %vm502_vm5, %v6103_v8  ;;  %v5965_v47 = vadd.f32 %v13483_v15, %v5851_v29  ;;  %6334 = vrot.lane.b32.xlu2 %v13578_v24, %s8899_s17  ;;  %v8501_v15 = vld [vmem:[%s14898_s11 + $0x110] sm:$0xff]  ;;  %7151 = vmatpush.msra.mxu2 %v6484_v0  ;;  %v8802_v8 = vunpack.i.l.bf16 %v13616_v27  ;;  %v13674_v11 = vpop.permute.xlu2 %6382  ;;  %v8498_v0 = vld [vmem:[%s14898_s11 + $0xf8] sm:$0xff] }
 0xa62   : > { %6244 = vrot.lane.b32.xlu1 %v13611_v17, %s8898_s16  ;;  %6242 = vrot.lane.b32.xlu0 %v13627_v21, %s8898_s16  ;;  %v13660_v29 = vld [vmem:[#allocation3 + $0xc8] sm:$0xff]  ;;  %15169 = vst [vmem:[#allocation38_spill] sm:$0xff] %v13674_v11 }
 0xa63   : > { %v6036_v23 = vadd.f32 %v5965_v47, %v5452_v59  ;;  %7691 = vmatpush.msra.mxu0 %v8501_v15  ;;  %8540 = vmatpush.msrb.mxu3 %v8501_v15  ;;  %v5455_v59 = vadd.f32 %v13508_v45, %v5342_v37  ;;  %v13689_v15 = vpop.f32.mrf.mxu0  ;;  %v5345_v37 = vadd.f32 %v13528_v16, %v5166_v19 }
 0xa64   : > { %7152 = vmatpush.msra.mxu2 %v6483_v1  ;;  %v8424_v1 = vld [vmem:[%s14898_s11 + $0xa8] sm:$0xff]  ;;  %6934 = vmatpush.msrb.mxu1 %v8425_v57  ;;  %v5169_v19 = vadd.f32 %v15170_v36, %v13273_v49  ;;  %v8419_v36 = vld [vmem:[%s14898_s11 + $0x80] sm:$0xff] }
 0xa65   : > { %v6072_v6 = vadd.f32 %v13359_v54, %v6036_v23  ;;  %5901 = vmatmul.f32.gmra.mxu3 %v5704_v22  ;;  %7692 = vmatpush.msra.mxu0 %v8500_v48  ;;  %v13679_v23 = vpop.f32.mrf.mxu2  ;;  %v5705_v22 = vsel %vm549_vm7, %v8866_v26, %v8802_v8  ;;  %v13725_v57 = vpop.f32.mrf.mxu1  ;;  %v8867_v26 = vld [vmem:[#allocation4 + $0x1f1] sm:$0xff] }
 0xa66   : > { %8541 = vmatpush.msrb.mxu3 %v8500_v48  ;;  %7153 = vmatpush.msra.mxu2 %v6482_v56  ;;  %v8496_v48 = vld [vmem:[%s14898_s11 + $0xe8] sm:$0xff] }
 0xa67   : > { %v6104_v5 = vmax.f32 %v6072_v6, 0.0  ;;  %7693 = vmatpush.msra.mxu0 %v8499_v31  ;;  %6935 = vmatpush.msrb.mxu1 %v8424_v1  ;;  %v5348_v1 = vadd.f32 %v13558_v39, %v5169_v19  ;;  %v8492_v39 = vld [vmem:[%s14898_s11 + $0xc8] sm:$0xff] }
 0xa68   : > { %v5854_v55 = vpop.f32.mrf.mxu3  ;;  %8542 = vmatpush.msrb.mxu3 %v8499_v31  ;;  %v8803_v31 = vunpack.i.h.bf16 %v13616_v27  ;;  %v13704_v16 = vld [vmem:[#allocation3 + $0xcf] sm:$0xff] }
 0xa69   : > { %6136 = vst.msk [vmem:[#allocation3 + $0xe8] sm:$0xff] %vm502_vm5, %v6104_v5  ;;  %v5968_v47 = vadd.f32 %v13512_v46, %v5854_v55  ;;  %6582 = vrot.lane.b32.xlu2 %v13660_v29, %s8898_s16  ;;  %v8497_v46 = vld [vmem:[%s14898_s11 + $0xf0] sm:$0xff]  ;;  %7694 = vmatpush.msra.mxu0 %v8498_v0  ;;  %v8423_v5 = vld [vmem:[%s14898_s11 + $0xa0] sm:$0xff] }
 0xa6a   : > { %6338 = vrot.lane.b32.xlu1 %v13611_v17, %s8899_s17  ;;  %6336 = vrot.lane.b32.xlu0 %v13627_v21, %s8899_s17  ;;  %v13706_v55 = vld [vmem:[#allocation3 + $0x49] sm:$0xff] }
 0xa6b   : > { %v6037_v45 = vadd.f32 %v5968_v47, %v5455_v59  ;;  %8543 = vmatpush.msrb.mxu3 %v8498_v0  ;;  %7695 = vmatpush.msra.mxu0 %v8497_v46  ;;  %v5458_v59 = vadd.f32 %v13532_v28, %v5345_v37  ;;  %v13720_v47 = vld [vmem:[#allocation3 + $0xd0] sm:$0xff] }
 0xa6c   : > { %v8422_v0 = vld [vmem:[%s14898_s11 + $0x98] sm:$0xff]  ;;  %6936 = vmatpush.msrb.mxu1 %v8423_v5 }
 0xa6d   : > { %v6073_v6 = vadd.f32 %v13359_v54, %v6037_v45  ;;  %5904 = vmatmul.f32.gmra.mxu3 %v5705_v22  ;;  %v8421_v45 = vld [vmem:[%s14898_s11 + $0x90] sm:$0xff]  ;;  %7696 = vmatpush.msra.mxu0 %v8496_v48  ;;  %v5706_v22 = vsel %vm549_vm7, %v8867_v26, %v8803_v31 }
 0xa6e   : > { %8544 = vmatpush.msrb.mxu3 %v8497_v46  ;;  %v13737_v46 = vpop.f32.mrf.mxu2  ;;  %6937 = vmatpush.msrb.mxu1 %v8422_v0  ;;  %v8417_v26 = vld [vmem:[%s14898_s11 + $0x70] sm:$0xff] }
 0xa6f   : > { %v6105_v56 = vmax.f32 %v6073_v6, 0.0  ;;  %v8493_v6 = vld [vmem:[%s14898_s11 + $0xd0] sm:$0xff]  ;;  %7697 = vmatpush.msra.mxu0 %v8495_v51 }
 0xa70   : > { %v5857_v8 = vpop.f32.mrf.mxu3  ;;  %8545 = vmatpush.msrb.mxu3 %v8496_v48  ;;  %v13748_v48 = vpop.f32.mrf.mxu0  ;;  %6938 = vmatpush.msrb.mxu1 %v8421_v45  ;;  %v13767_v0 = vld [vmem:[#allocation3 + $0xe7] sm:$0xff] }
 0xa71   : > { %6137 = vst.msk [vmem:[#allocation3 + $0xf0] sm:$0xff] %vm502_vm5, %v6105_v56  ;;  %v5971_v27 = vadd.f32 %v13538_v12, %v5857_v8  ;;  %6246 = vrot.lane.b32.xlu2 %v13704_v16, %s8898_s16  ;;  %v8494_v12 = vld [vmem:[%s14898_s11 + $0xd8] sm:$0xff]  ;;  %v8420_v56 = vld [vmem:[%s14898_s11 + $0x88] sm:$0xff]  ;;  %v13753_v8 = vld [vmem:[#allocation3 + $0xe8] sm:$0xff]  ;;  %v13781_v45 = vpop.f32.mrf.mxu1 }
 0xa72   : > { %7323 = vrot.lane.b32.xlu1 %v13706_v55, %s8898_s16  ;;  %6584 = vrot.lane.b32.xlu0 %v13720_v47, %s8898_s16 }
 0xa73   : > { %v6038_v49 = vadd.f32 %v5971_v27, %v5458_v59  ;;  %v13729_v28 = vpop.permute.xlu2 %6564  ;;  %8546 = vmatpush.msrb.mxu3 %v8495_v51  ;;  %7698 = vmatpush.msra.mxu0 %v8494_v12  ;;  %v15171_v51 = vld [vmem:[#allocation18_spill] sm:$0xff]  ;;  %v5461_v59 = vadd.f32 %v13570_v58, %v5348_v1  ;;  %v8418_v58 = vld [vmem:[%s14898_s11 + $0x78] sm:$0xff] }
 0xa74   : > { %6939 = vmatpush.msrb.mxu1 %v8420_v56  ;;  %v5172_v19 = vadd.f32 %v15171_v51, %v13280_v20  ;;  %v13774_v20 = vpop.permute.xlu0 %6384 }
 0xa75   : > { %v6074_v37 = vadd.f32 %v13359_v54, %v6038_v49  ;;  %5907 = vmatmul.f32.gmra.mxu3 %v5706_v22  ;;  %v8491_v49 = vld [vmem:[%s14898_s11 + $0xc0] sm:$0xff]  ;;  %15172 = vst [vmem:[#allocation20_spill] sm:$0xff] %v13774_v20  ;;  %7699 = vmatpush.msra.mxu0 %v8493_v6  ;;  %v6157_v20 = vld [vmem:[#allocation3 + $0xf] sm:$0xff] }
 0xa76   : > { %8547 = vmatpush.msrb.mxu3 %v8494_v12  ;;  %6940 = vmatpush.msrb.mxu1 %v8419_v36  ;;  %v5351_v22 = vadd.f32 %v13603_v42, %v5172_v19  ;;  %v15173_v42 = vld [vmem:[#allocation26_spill] sm:$0xff] }
 0xa77   : > { %v6106_v5 = vmax.f32 %v6074_v37, 0.0  ;;  %7700 = vmatpush.msra.mxu0 %v8492_v39  ;;  %v13788_v37 = vpop.f32.mrf.mxu2  ;;  %v5175_v19 = vadd.f32 %v15173_v42, %v13287_v35  ;;  %v6156_v35 = vld [vmem:[#allocation3 + $0x7] sm:$0xff] }
 0xa78   : > { %v5860_v31 = vpop.f32.mrf.mxu3  ;;  %8548 = vmatpush.msrb.mxu3 %v8493_v6  ;;  %6941 = vmatpush.msrb.mxu1 %v8418_v58  ;;  %v8416_v6 = vld [vmem:[%s14898_s11 + $0x68] sm:$0xff]  ;;  %v13795_v36 = vld [vmem:[#allocation3 + $0xf0] sm:$0xff] }
 0xa79   : > { %6138 = vst.msk [vmem:[#allocation3 + $0x108] sm:$0xff] %vm502_vm5, %v6106_v5  ;;  %v5974_v27 = vadd.f32 %v13576_v18, %v5860_v31  ;;  %6340 = vrot.lane.b32.xlu2 %v13704_v16, %s8899_s17  ;;  %7701 = vmatpush.msra.mxu0 %v8491_v49  ;;  %v13793_v5 = vpop.f32.mrf.mxu0  ;;  %v13797_v51 = vld [vmem:[#allocation3 + $0xef] sm:$0xff] }
 0xa7a   : > { %6586 = vrot.lane.b32.xlu1 %v13753_v8, %s8898_s16  ;;  %6248 = vrot.lane.b32.xlu0 %v13767_v0, %s8898_s16 }
 0xa7b   : > { %8549 = vmatpush.msrb.mxu3 %v8492_v39  ;;  %v6039_v18 = vadd.f32 %v5974_v27, %v5461_v59  ;;  %v13779_v12 = vpop.permute.xlu2 %6228  ;;  %6942 = vmatpush.msrb.mxu1 %v8417_v26  ;;  %v5464_v39 = vadd.f32 %v13608_v41, %v5351_v22  ;;  %v8415_v27 = vld [vmem:[%s14898_s11 + $0x60] sm:$0xff] }
 0xa7d   : > { %8550 = vmatpush.msrb.mxu3 %v8491_v49  ;;  %v6075_v1 = vadd.f32 %v13359_v54, %v6039_v18  ;;  %6943 = vmatpush.msrb.mxu1 %v8416_v6  ;;  %v5354_v18 = vadd.f32 %v13657_v38, %v5175_v19 }
 0xa7f   : > { %v6107_v56 = vmax.f32 %v6075_v1, 0.0  ;;  %6944 = vmatpush.msrb.mxu1 %v8415_v27  ;;  %v5362_v1 = vpop.f32.mrf.mxu1  ;;  %v13820_v42 = vpop.f32.mrf.mxu2  ;;  %v5467_v38 = vadd.f32 %v13679_v23, %v5354_v18 }
 0xa80   : > { %v5863_v31 = vpop.f32.mrf.mxu3 }
 0xa81   : > { %6139 = vst.msk [vmem:[#allocation3 + $0x110] sm:$0xff] %vm502_vm5, %v6107_v56  ;;  %v5977_v59 = vadd.f32 %v13632_v53, %v5863_v31  ;;  %6588 = vrot.lane.b32.xlu2 %v13795_v36, %s8898_s16 }
 0xa82   : > { %6250 = vrot.lane.b32.xlu1 %v13797_v51, %s8898_s16  ;;  %6342 = vrot.lane.b32.xlu0 %v13767_v0, %s8899_s17 }
 0xa83   : > { %v6040_v49 = vadd.f32 %v5977_v59, %v5464_v39  ;;  %v6323_v58 = vpop.permute.xlu2 %6322  ;;  %v13813_v41 = vpop.permute.xlu1 %6562  ;;  %v13822_v39 = vld [vmem:[#allocation3 + $0x107] sm:$0xff]  ;;  %v15174_v59 = vld [vmem:[#allocation23_spill] sm:$0xff] }
 0xa84   : > { %v6225_v53 = vpop.permute.xlu0 %6224  ;;  %v5178_v27 = vadd.f32 %v15174_v59, %v13295_v25 }
 0xa85   : > { %v6076_v26 = vadd.f32 %v13359_v54, %v6040_v49  ;;  %v6418_v22 = vsel %vm502_vm5, %v6156_v35, %v6225_v53  ;;  %v5988_v35 = vpop.f32.mrf.mxu0 }
 0xa86   : > { %v6450_v56 = vsel %vm549_vm7, %v6418_v22, %v6323_v58  ;;  %v5357_v25 = vadd.f32 %v13725_v57, %v5178_v27  ;;  %v5181_v22 = vadd.f32 %v13095_v3, %v13299_v62 }
 0xa87   : > { %v6108_v31 = vmax.f32 %v6076_v26, 0.0  ;;  %8459 = vmatmul.msk.f32.vlgmr.msra.gmra.mxu2 %vm3135_vm8, %v6450_v56 }
 0xa88   : > { %v5866_v6 = vpop.f32.mrf.mxu3  ;;  %v5470_v56 = vadd.f32 %v13737_v46, %v5357_v25  ;;  %v13848_v57 = vld [vmem:[#allocation3 + $0x10f] sm:$0xff] }
 0xa89   : > { %6140 = vst.msk [vmem:[#allocation3 + $0x128] sm:$0xff] %vm502_vm5, %v6108_v31  ;;  %v5980_v19 = vadd.f32 %v13689_v15, %v5866_v6  ;;  %6252 = vrot.lane.b32.xlu2 %v13822_v39, %s8898_s16  ;;  %v5365_v15 = vpop.f32.mrf.mxu1  ;;  %v7252_v31 = vld [vmem:[#allocation3 + $0x11] sm:$0xff]  ;;  %v5478_v6 = vpop.f32.mrf.mxu2 }
 0xa8a   : > { %6344 = vrot.lane.b32.xlu1 %v13797_v51, %s8899_s17  ;;  %6662 = vrot.lane.b32.xlu0 %v13425_v10, %s8899_s17 }
 0xa8b   : > { %v6041_v49 = vadd.f32 %v5980_v19, %v5467_v38  ;;  %v7420_v58 = vpop.permute.xlu2 %7419  ;;  %v5360_v38 = vadd.f32 %v13781_v45, %v5181_v22 }
 0xa8c   : > { %v13835_v53 = vpop.permute.xlu1 %6226 }
 0xa8d   : > { %v6077_v23 = vadd.f32 %v13359_v54, %v6041_v49  ;;  %v5991_v46 = vpop.f32.mrf.mxu0  ;;  %v5473_v45 = vadd.f32 %v13788_v37, %v5360_v38 }
 0xa8f   : > { %v6109_v18 = vmax.f32 %v6077_v23, 0.0  ;;  %v13861_v23 = vld [vmem:[#allocation3 + $0x69] sm:$0xff] }
 0xa90   : > { %v5869_v26 = vpop.f32.mrf.mxu3  ;;  %15175 = vst [vmem:[#allocation34_spill] sm:$0xff] %v13861_v23 }
 0xa91   : > { %6141 = vst.msk [vmem:[#allocation3 + $0x130] sm:$0xff] %vm502_vm5, %v6109_v18  ;;  %v5983_v10 = vadd.f32 %v13748_v48, %v5869_v26  ;;  %6346 = vrot.lane.b32.xlu2 %v13822_v39, %s8899_s17  ;;  %v13863_v18 = vld [vmem:[#allocation3 + $0x127] sm:$0xff]  ;;  %v15176_v26 = vld [vmem:[#allocation31_spill] sm:$0xff] }
 0xa92   : > { %7325 = vrot.lane.b32.xlu1 %v13447_v33, %s8898_s16  ;;  %6254 = vrot.lane.b32.xlu0 %v13848_v57, %s8898_s16 }
 0xa93   : > { %v6042_v3 = vadd.f32 %v5983_v10, %v5470_v56  ;;  %v13852_v62 = vpop.permute.xlu2 %6570  ;;  %v5184_v56 = vadd.f32 %v15176_v26, %v13303_v61  ;;  %v6494_v10 = vld [vmem:[#allocation3 + $0x8] sm:$0xff] }
 0xa94   : > { %v7322_v59 = vpop.permute.xlu1 %7321  ;;  %v13855_v27 = vpop.permute.xlu0 %6566  ;;  %v6756_v37 = vsel %vm502_vm5, %v6494_v10, %v13813_v41 }
 0xa95   : > { %v7514_v48 = vsel %vm502_vm5, %v7252_v31, %v7322_v59  ;;  %v6078_v33 = vadd.f32 %v13359_v54, %v6042_v3  ;;  %v5481_v59 = vpop.f32.mrf.mxu2 }
 0xa96   : > { %v7546_v19 = vsel %vm549_vm7, %v7514_v48, %v7420_v58  ;;  %v5368_v58 = vpop.f32.mrf.mxu1  ;;  %v5363_v48 = vadd.f32 %v5362_v1, %v5184_v56 }
 0xa97   : > { %8504 = vmatmul.msk.f32.vlgmr.msrb.gmra.mxu3 %vm3135_vm8, %v7546_v19  ;;  %v6110_v49 = vmax.f32 %v6078_v33, 0.0  ;;  %v5994_v19 = vpop.f32.mrf.mxu0 }
 0xa98   : > { %v5872_v25 = vpop.f32.mrf.mxu3  ;;  %v13885_v26 = vld [vmem:[#allocation3 + $0x12f] sm:$0xff]  ;;  %v5476_v41 = vadd.f32 %v13820_v42, %v5363_v48 }
 0xa99   : > { %6142 = vst.msk [vmem:[#allocation3 + $0x148] sm:$0xff] %vm502_vm5, %v6110_v49  ;;  %v5986_v22 = vadd.f32 %v13793_v5, %v5872_v25  ;;  %7421 = vrot.lane.b32.xlu2 %v13861_v23, %s8899_s17 }
 0xa9a   : > { %6256 = vrot.lane.b32.xlu1 %v13863_v18, %s8898_s16  ;;  %6348 = vrot.lane.b32.xlu0 %v13848_v57, %s8899_s17 }
 0xa9b   : > { %v6043_v31 = vadd.f32 %v5986_v22, %v5473_v45  ;;  %v13876_v3 = vpop.permute.xlu2 %6234  ;;  %v15177_v45 = vld [vmem:[#allocation28_spill] sm:$0xff] }
 0xa9c   : > { %v13878_v61 = vpop.permute.xlu1 %6568  ;;  %v6661_v5 = vpop.permute.xlu0 %6660  ;;  %v5187_v22 = vadd.f32 %v15177_v45, %v13307_v32 }
 0xa9d   : > { %v6079_v38 = vadd.f32 %v13359_v54, %v6043_v31  ;;  %v6788_v33 = vsel %vm549_vm7, %v6756_v37, %v6661_v5 }
 0xa9e   : > { %8427 = vmatmul.msk.f32.vlgmr.msrb.gmra.mxu1 %vm3135_vm8, %v6788_v33  ;;  %v5371_v32 = vpop.f32.mrf.mxu1  ;;  %v5366_v5 = vadd.f32 %v5365_v15, %v5187_v22 }
 0xa9f   : > { %v6111_v49 = vmax.f32 %v6079_v38, 0.0  ;;  %v5997_v38 = vpop.f32.mrf.mxu0 }
 0xaa0   : > { %v5875_v25 = vpop.f32.mrf.mxu3  ;;  %v13909_v15 = vld [vmem:[#allocation3 + $0x147] sm:$0xff] }
 0xaa1   : > { %6143 = vst.msk [vmem:[#allocation3 + $0x150] sm:$0xff] %vm502_vm5, %v6111_v49  ;;  %v5989_v10 = vadd.f32 %v5988_v35, %v5875_v25  ;;  %6258 = vrot.lane.b32.xlu2 %v13885_v26, %s8898_s16  ;;  %v5484_v35 = vpop.f32.mrf.mxu2  ;;  %v15178_v49 = vld [vmem:[#allocation13_spill] sm:$0xff]  ;;  %v15179_v25 = vld [vmem:[#allocation35_spill] sm:$0xff] }
 0xaa2   : > { %6350 = vrot.lane.b32.xlu1 %v13863_v18, %s8899_s17  ;;  %6664 = vrot.lane.b32.xlu0 %v13472_v63, %s8899_s17  ;;  %v5190_v45 = vadd.f32 %v15179_v25, %v15178_v49  ;;  %v5479_v63 = vadd.f32 %v5478_v6, %v5366_v5 }
 0xaa3   : > { %v6044_v1 = vadd.f32 %v5989_v10, %v5476_v41  ;;  %v13897_v56 = vpop.permute.xlu2 %6328 }
 0xaa4   : > { %v13899_v31 = vpop.permute.xlu1 %6232  ;;  %v6231_v37 = vpop.permute.xlu0 %6230 }
 0xaa5   : > { %v6080_v42 = vadd.f32 %v13359_v54, %v6044_v1 }
 0xaa7   : > { %v6112_v48 = vmax.f32 %v6080_v42, 0.0  ;;  %v6419_v42 = vsel %vm502_vm5, %v6157_v20, %v13835_v53 }
 0xaa8   : > { %v5878_v33 = vpop.f32.mrf.mxu3 }
 0xaa9   : > { %6144 = vst.msk [vmem:[#allocation3 + $0x168] sm:$0xff] %vm502_vm5, %v6112_v48  ;;  %v5992_v41 = vadd.f32 %v5991_v46, %v5878_v33  ;;  %6352 = vrot.lane.b32.xlu2 %v13885_v26, %s8899_s17  ;;  %v5369_v46 = vadd.f32 %v5368_v58, %v5190_v45  ;;  %v5374_v33 = vpop.f32.mrf.mxu1  ;;  %v5487_v25 = vpop.f32.mrf.mxu2 }
 0xaaa   : > { %7327 = vrot.lane.b32.xlu1 %v13861_v23, %s8898_s16  ;;  %6260 = vrot.lane.b32.xlu0 %v13909_v15, %s8898_s16  ;;  %v13920_v23 = vld [vmem:[#allocation3 + $0x71] sm:$0xff] }
 0xaab   : > { %v6045_v22 = vadd.f32 %v5992_v41, %v5479_v63  ;;  %v13913_v10 = vpop.permute.xlu2 %6576  ;;  %v13922_v63 = vld [vmem:[#allocation3 + $0x14f] sm:$0xff]  ;;  %v5482_v20 = vadd.f32 %v5481_v59, %v5369_v46 }
 0xaac   : > { %15180 = vst [vmem:[#allocation25_spill] sm:$0xff] %v13913_v10  ;;  %v6327_v1 = vpop.permute.xlu1 %6326  ;;  %v6325_v6 = vpop.permute.xlu0 %6324  ;;  %v15181_v41 = vld [vmem:[#allocation30_spill] sm:$0xff] }
 0xaad   : > { %v6081_v5 = vadd.f32 %v13359_v54, %v6045_v22  ;;  %v6451_v48 = vsel %vm549_vm7, %v6419_v42, %v6325_v6  ;;  %v5193_v10 = vadd.f32 %v15181_v41, %v13315_v60  ;;  %v6000_v54 = vpop.f32.mrf.mxu0  ;;  %v6420_v60 = vsel %vm502_vm5, %v13377_v7, %v13779_v12  ;;  %v13946_v42 = vld [vmem:[%s14897_s10] ss:$0 sm:$0xff]  ;;  %v15182_v7 = vld [vmem:[#allocation27_spill] sm:$0xff] }
 0xaae   : > { %8460 = vmatmul.msk.f32.gmra.mxu2 %vm3135_vm8, %v6451_v48  ;;  %v5196_v12 = vadd.f32 %v15182_v7, %v13319_v9  ;;  %v6421_v41 = vsel %vm502_vm5, %v13392_v40, %v6231_v37  ;;  %v15183_v37 = vld [vmem:[#allocation29_spill] sm:$0xff] }
 0xaaf   : > { %v6113_v49 = vmax.f32 %v6081_v5, 0.0  ;;  %v5372_v59 = vadd.f32 %v5371_v32, %v5193_v10 }
 0xab0   : > { %v5881_v11 = vpop.f32.mrf.mxu3 }
 0xab1   : > { %6145 = vst.msk [vmem:[#allocation3 + $0x170] sm:$0xff] %vm502_vm5, %v6113_v49  ;;  %v5995_v53 = vadd.f32 %v5994_v19, %v5881_v11  ;;  %7423 = vrot.lane.b32.xlu2 %v13920_v23, %s8899_s17  ;;  %v6452_v19 = vsel %vm549_vm7, %v6420_v60, %v6327_v1  ;;  %v5377_v5 = vpop.f32.mrf.mxu1  ;;  %v13950_v49 = vld [vmem:[#allocation3 + $0x167] sm:$0xff]  ;;  %v5485_v32 = vadd.f32 %v5484_v35, %v5372_v59  ;;  %v5490_v1 = vpop.f32.mrf.mxu2 }
 0xab2   : > { %6262 = vrot.lane.b32.xlu1 %v13922_v63, %s8898_s16  ;;  %6354 = vrot.lane.b32.xlu0 %v13909_v15, %s8899_s17  ;;  %v6453_v59 = vsel %vm549_vm7, %v6421_v41, %v13897_v56 }
 0xab3   : > { %v6046_v58 = vadd.f32 %v5995_v53, %v5482_v20  ;;  %v13933_v45 = vpop.permute.xlu2 %6240 }
 0xab4   : > { %v13935_v22 = vpop.permute.xlu1 %6574  ;;  %v13940_v11 = vpop.permute.xlu0 %6572 }
 0xab5   : > { %v6082_v6 = vadd.f32 %v13946_v42, %v6046_v58  ;;  %v6003_v35 = vpop.f32.mrf.mxu0  ;;  %v5375_v58 = vadd.f32 %v5374_v33, %v5196_v12 }
 0xab6   : > { %8461 = vmatmul.msk.f32.gmra.mxu2 %vm3135_vm8, %v6452_v19 }
 0xab7   : > { %v6114_v46 = vmax.f32 %v6082_v6, 0.0  ;;  %v5488_v6 = vadd.f32 %v5487_v25, %v5375_v58  ;;  %v6422_v25 = vsel %vm502_vm5, %v13407_v34, %v13899_v31 }
 0xab8   : > { %v5884_v48 = vpop.f32.mrf.mxu3  ;;  %v13978_v33 = vld [vmem:[#allocation3 + $0x16f] sm:$0xff] }
 0xab9   : > { %6146 = vst.msk [vmem:[#allocation3 + $0x188] sm:$0xff] %vm502_vm5, %v6114_v46  ;;  %v5998_v10 = vadd.f32 %v5997_v38, %v5884_v48  ;;  %6264 = vrot.lane.b32.xlu2 %v13950_v49, %s8898_s16  ;;  %v5380_v56 = vpop.f32.mrf.mxu1  ;;  %v5493_v12 = vpop.f32.mrf.mxu2 }
 0xaba   : > { %6356 = vrot.lane.b32.xlu1 %v13922_v63, %s8899_s17  ;;  %6666 = vrot.lane.b32.xlu0 %v13506_v43, %s8899_s17  ;;  %v5199_v43 = vadd.f32 %v15183_v37, %v13323_v4 }
 0xabb   : > { %v6047_v20 = vadd.f32 %v5998_v10, %v5485_v32  ;;  %v13963_v53 = vpop.permute.xlu2 %6334 }
 0xabc   : > { %v13965_v9 = vpop.permute.xlu1 %6238  ;;  %v6237_v38 = vpop.permute.xlu0 %6236  ;;  %v5378_v32 = vadd.f32 %v5377_v5, %v5199_v43 }
 0xabd   : > { %v6083_v60 = vadd.f32 %v13946_v42, %v6047_v20  ;;  %v6006_v20 = vpop.f32.mrf.mxu0 }
 0xabe   : > { %8462 = vmatmul.msk.f32.gmra.mxu2 %vm3135_vm8, %v6453_v59  ;;  %v13990_v59 = vld [vmem:[#allocation3 + $0x89] sm:$0xff]  ;;  %v5491_v34 = vadd.f32 %v5490_v1, %v5378_v32 }
 0xabf   : > { %v6115_v19 = vmax.f32 %v6083_v60, 0.0 }
 0xac0   : > { %v5887_v40 = vpop.f32.mrf.mxu3 }
 0xac1   : > { %6147 = vst.msk [vmem:[#allocation3 + $0x190] sm:$0xff] %vm502_vm5, %v6115_v19  ;;  %v6001_v46 = vadd.f32 %v6000_v54, %v5887_v40  ;;  %6358 = vrot.lane.b32.xlu2 %v13950_v49, %s8899_s17  ;;  %v13992_v19 = vld [vmem:[#allocation3 + $0x187] sm:$0xff]  ;;  %v15184_v40 = vld [vmem:[#allocation12_spill] sm:$0xff] }
 0xac2   : > { %7329 = vrot.lane.b32.xlu1 %v13920_v23, %s8898_s16  ;;  %6266 = vrot.lane.b32.xlu0 %v13978_v33, %s8898_s16  ;;  %v5202_v37 = vadd.f32 %v15184_v40, %v13327_v2  ;;  %v6423_v2 = vsel %vm502_vm5, %v13460_v52, %v13876_v3  ;;  %v15186_v40 = vld [vmem:[#allocation9_spill] sm:$0xff] }
 0xac3   : > { %v6048_v48 = vadd.f32 %v6001_v46, %v5488_v6  ;;  %v13982_v7 = vpop.permute.xlu2 %6582  ;;  %v5383_v46 = vpop.f32.mrf.mxu1 }
 0xac4   : > { %v6333_v4 = vpop.permute.xlu1 %6332  ;;  %v6331_v54 = vpop.permute.xlu0 %6330 }
 0xac5   : > { %v6084_v10 = vadd.f32 %v13946_v42, %v6048_v48  ;;  %v6454_v41 = vsel %vm549_vm7, %v6422_v25, %v6331_v54  ;;  %v6455_v48 = vsel %vm549_vm7, %v6423_v2, %v6333_v4  ;;  %v5496_v54 = vpop.f32.mrf.mxu2 }
 0xac6   : > { %8463 = vmatmul.msk.f32.gmra.mxu2 %vm3135_vm8, %v6454_v41 }
 0xac7   : > { %v6116_v58 = vmax.f32 %v6084_v10, 0.0  ;;  %v6009_v10 = vpop.f32.mrf.mxu0 }
 0xac8   : > { %v5890_v60 = vpop.f32.mrf.mxu3 }
 0xac9   : > { %6148 = vst.msk [vmem:[#allocation3 + $0x1a8] sm:$0xff] %vm502_vm5, %v6116_v58  ;;  %v6004_v31 = vadd.f32 %v6003_v35, %v5890_v60  ;;  %7425 = vrot.lane.b32.xlu2 %v13990_v59, %s8899_s17  ;;  %v5381_v35 = vadd.f32 %v5380_v56, %v5202_v37  ;;  %v14015_v58 = vld [vmem:[#allocation3 + $0x18f] sm:$0xff]  ;;  %v15185_v60 = vld [vmem:[#allocation37_spill] sm:$0xff]  ;;  %v6424_v56 = vsel %vm502_vm5, %v13449_v13, %v6237_v38 }
 0xaca   : > { %6268 = vrot.lane.b32.xlu1 %v13992_v19, %s8898_s16  ;;  %6360 = vrot.lane.b32.xlu0 %v13978_v33, %s8899_s17  ;;  %v6456_v2 = vsel %vm549_vm7, %v6424_v56, %v13963_v53 }
 0xacb   : > { %v6049_v5 = vadd.f32 %v6004_v31, %v5491_v34  ;;  %v14003_v43 = vpop.permute.xlu2 %6246  ;;  %v5205_v34 = vadd.f32 %v15186_v40, %v15185_v60  ;;  %v5494_v52 = vadd.f32 %v5493_v12, %v5381_v35  ;;  %v5386_v35 = vpop.f32.mrf.mxu1 }
 0xacc   : > { %v14005_v6 = vpop.permute.xlu1 %6580  ;;  %v14010_v1 = vpop.permute.xlu0 %6578 }
 0xacd   : > { %v6085_v25 = vadd.f32 %v13946_v42, %v6049_v5  ;;  %v5384_v12 = vadd.f32 %v5383_v46, %v5205_v34  ;;  %v5499_v38 = vpop.f32.mrf.mxu2 }
 0xace   : > { %8464 = vmatmul.msk.f32.gmra.mxu2 %vm3135_vm8, %v6455_v48 }
 0xacf   : > { %v6117_v32 = vmax.f32 %v6085_v25, 0.0  ;;  %v15188_v25 = vld [vmem:[#allocation8_spill] sm:$0xff]  ;;  %v6012_v46 = vpop.f32.mrf.mxu0 }
 0xad0   : > { %v5893_v41 = vpop.f32.mrf.mxu3  ;;  %v14045_v53 = vld [vmem:[#allocation3 + $0x1a7] sm:$0xff] }
 0xad1   : > { %6149 = vst.msk [vmem:[#allocation3 + $0x1b0] sm:$0xff] %vm502_vm5, %v6117_v32  ;;  %v6007_v3 = vadd.f32 %v6006_v20, %v5893_v41  ;;  %6270 = vrot.lane.b32.xlu2 %v14015_v58, %s8898_s16  ;;  %v5497_v41 = vadd.f32 %v5496_v54, %v5384_v12  ;;  %v6425_v54 = vsel %vm502_vm5, %v13493_v44, %v13965_v9 }
 0xad2   : > { %6362 = vrot.lane.b32.xlu1 %v13992_v19, %s8899_s17  ;;  %6668 = vrot.lane.b32.xlu0 %v13495_v50, %s8899_s17  ;;  %v15187_v50 = vld [vmem:[#allocation40_spill] sm:$0xff] }
 0xad3   : > { %v6050_v4 = vadd.f32 %v6007_v3, %v5494_v52  ;;  %v14028_v37 = vpop.permute.xlu2 %6340  ;;  %v5208_v32 = vadd.f32 %v15188_v25, %v15187_v50  ;;  %v15189_v50 = vld [vmem:[#allocation24_spill] sm:$0xff]  ;;  %v15190_v25 = vld [vmem:[#allocation39_spill] sm:$0xff] }
 0xad4   : > { %v14030_v31 = vpop.permute.xlu1 %6244  ;;  %v14032_v5 = vpop.permute.xlu0 %6242 }
 0xad5   : > { %v6086_v20 = vadd.f32 %v13946_v42, %v6050_v4  ;;  %v5387_v3 = vadd.f32 %v5386_v35, %v5208_v32  ;;  %v5502_v35 = vpop.f32.mrf.mxu2 }
 0xad6   : > { %8465 = vmatmul.msk.f32.gmra.mxu2 %vm3135_vm8, %v6456_v2 }
 0xad7   : > { %v6118_v13 = vmax.f32 %v6086_v20, 0.0  ;;  %v5389_v20 = vpop.f32.mrf.mxu1  ;;  %v5500_v44 = vadd.f32 %v5499_v38, %v5387_v3  ;;  %v6426_v38 = vsel %vm502_vm5, %v13526_v14, %v13933_v45 }
 0xad8   : > { %v5896_v48 = vpop.f32.mrf.mxu3 }
 0xad9   : > { %6150 = vst.msk [vmem:[#allocation3 + $0x1c8] sm:$0xff] %vm502_vm5, %v6118_v13  ;;  %v6010_v60 = vadd.f32 %v6009_v10, %v5896_v48  ;;  %6364 = vrot.lane.b32.xlu2 %v14015_v58, %s8899_s17  ;;  %v14057_v13 = vld [vmem:[#allocation3 + $0x91] sm:$0xff] }
 0xada   : > { %7331 = vrot.lane.b32.xlu1 %v13990_v59, %s8898_s16  ;;  %6272 = vrot.lane.b32.xlu0 %v14045_v53, %s8898_s16  ;;  %v14059_v48 = vld [vmem:[#allocation3 + $0x1af] sm:$0xff] }
 0xadb   : > { %v6051_v40 = vadd.f32 %v6010_v60, %v5497_v41  ;;  %v14049_v34 = vpop.permute.xlu2 %6588  ;;  %v5211_v41 = vadd.f32 %v15190_v25, %v15189_v50  ;;  %v15191_v50 = vld [vmem:[#allocation36_spill] sm:$0xff] }
 0xadc   : > { %v6339_v52 = vpop.permute.xlu1 %6338  ;;  %v6337_v10 = vpop.permute.xlu0 %6336  ;;  %v15192_v25 = vld [vmem:[#allocation16_spill] sm:$0xff] }
 0xadd   : > { %v6087_v56 = vadd.f32 %v13946_v42, %v6051_v40  ;;  %v6457_v4 = vsel %vm549_vm7, %v6425_v54, %v6337_v10  ;;  %v6015_v54 = vpop.f32.mrf.mxu0  ;;  %v5390_v10 = vadd.f32 %v5389_v20, %v5211_v41  ;;  %v6458_v3 = vsel %vm549_vm7, %v6426_v38, %v6339_v52  ;;  %v5505_v52 = vpop.f32.mrf.mxu2  ;;  %v8869_v20 = vld [vmem:[#allocation3 + $0x8f] sm:$0xff] }
 0xade   : > { %8466 = vmatmul.msk.f32.gmra.mxu2 %vm3135_vm8, %v6457_v4  ;;  %v6427_v41 = vsel %vm502_vm5, %v8869_v20, %v14032_v5 }
 0xadf   : > { %v6119_v12 = vmax.f32 %v6087_v56, 0.0  ;;  %v5392_v45 = vpop.f32.mrf.mxu1 }
 0xae0   : > { %v5899_v2 = vpop.f32.mrf.mxu3 }
 0xae1   : > { %6151 = vst.msk [vmem:[#allocation3 + $0x1d0] sm:$0xff] %vm502_vm5, %v6119_v12  ;;  %v6013_v9 = vadd.f32 %v6012_v46, %v5899_v2  ;;  %7427 = vrot.lane.b32.xlu2 %v14057_v13, %s8899_s17  ;;  %v14080_v2 = vld [vmem:[#allocation3 + $0x1c7] sm:$0xff] }
 0xae2   : > { %6274 = vrot.lane.b32.xlu1 %v14059_v48, %s8898_s16  ;;  %6366 = vrot.lane.b32.xlu0 %v14045_v53, %s8899_s17 }
 0xae3   : > { %v6052_v32 = vadd.f32 %v6013_v9, %v5500_v44  ;;  %v14070_v60 = vpop.permute.xlu2 %6252  ;;  %v5214_v44 = vadd.f32 %v15192_v25, %v15191_v50  ;;  %v5503_v9 = vadd.f32 %v5502_v35, %v5390_v10  ;;  %v15193_v25 = vld [vmem:[#allocation10_spill] sm:$0xff] }
 0xae4   : > { %v7324_v40 = vpop.permute.xlu1 %7323  ;;  %v14075_v46 = vpop.permute.xlu0 %6584 }
 0xae5   : > { %v6088_v56 = vadd.f32 %v13946_v42, %v6052_v32  ;;  %v6018_v10 = vpop.f32.mrf.mxu0 }
 0xae6   : > { %8467 = vmatmul.msk.f32.gmra.mxu2 %vm3135_vm8, %v6458_v3  ;;  %v5393_v3 = vadd.f32 %v5392_v45, %v5214_v44 }
 0xae7   : > { %v6120_v4 = vmax.f32 %v6088_v56, 0.0 }
 0xae8   : > { %v5902_v12 = vpop.f32.mrf.mxu3  ;;  %v5506_v50 = vadd.f32 %v5505_v52, %v5393_v3  ;;  %v14108_v44 = vld [vmem:[#allocation3 + $0x1cf] sm:$0xff] }
 0xae9   : > { %6152 = vst.msk [vmem:[#allocation3 + $0x1e8] sm:$0xff] %vm502_vm5, %v6120_v4  ;;  %v6016_v14 = vadd.f32 %v6015_v54, %v5902_v12  ;;  %6276 = vrot.lane.b32.xlu2 %v14080_v2, %s8898_s16  ;;  %v6459_v4 = vsel %vm549_vm7, %v6427_v41, %v14028_v37  ;;  %v14110_v37 = vld [vmem:[#allocation3 + $0x29] sm:$0xff] }
 0xaea   : > { %6368 = vrot.lane.b32.xlu1 %v14059_v48, %s8899_s17  ;;  %6670 = vrot.lane.b32.xlu0 %v13540_v30, %s8899_s17  ;;  %v15194_v30 = vld [vmem:[#allocation7_spill] sm:$0xff]  ;;  %15195 = vst [vmem:[#allocation17_spill] sm:$0xff] %v14110_v37  ;;  %v7515_v45 = vsel %vm502_vm5, %v14110_v37, %v7324_v40 }
 0xaeb   : > { %v6053_v32 = vadd.f32 %v6016_v14, %v5503_v9  ;;  %v14093_v38 = vpop.permute.xlu2 %6346  ;;  %v5217_v9 = vadd.f32 %v15194_v30, %v15193_v25  ;;  %v5508_v25 = vpop.f32.mrf.mxu2 }
 0xaec   : > { %v14095_v35 = vpop.permute.xlu1 %6586  ;;  %v6249_v54 = vpop.permute.xlu0 %6248 }
 0xaed   : > { %v6089_v56 = vadd.f32 %v13946_v42, %v6053_v32  ;;  %v5395_v32 = vpop.f32.mrf.mxu1  ;;  %v6021_v40 = vpop.f32.mrf.mxu0 }
 0xaee   : > { %8468 = vmatmul.msk.f32.gmra.mxu2 %vm3135_vm8, %v6459_v4  ;;  %v5396_v4 = vadd.f32 %v5395_v32, %v5217_v9 }
 0xaef   : > { %v6121_v12 = vmax.f32 %v6089_v56, 0.0 }
 0xaf0   : > { %v5905_v5 = vpop.f32.mrf.mxu3  ;;  %v14126_v37 = vld [vmem:[#allocation3 + $0x1e7] sm:$0xff] }
 0xaf1   : > { %6153 = vst.msk [vmem:[#allocation3 + $0x1f0] sm:$0xff] %vm502_vm5, %v6121_v12  ;;  %v6019_v14 = vadd.f32 %v6018_v10, %v5905_v5  ;;  %6370 = vrot.lane.b32.xlu2 %v14080_v2, %s8899_s17  ;;  %v6428_v10 = vsel %vm502_vm5, %v13578_v24, %v14030_v31  ;;  %v5509_v24 = vadd.f32 %v5508_v25, %v5396_v4  ;;  %v6495_v31 = vld [vmem:[#allocation3 + $0x10] sm:$0xff] }
 0xaf2   : > { %7333 = vrot.lane.b32.xlu1 %v14057_v13, %s8898_s16  ;;  %6278 = vrot.lane.b32.xlu0 %v14108_v44, %s8898_s16 }
 0xaf3   : > { %v6054_v52 = vadd.f32 %v6019_v14, %v5506_v50  ;;  %v7422_v20 = vpop.permute.xlu2 %7421  ;;  %v14124_v14 = vld [vmem:[#allocation3 + $0xa9] sm:$0xff] }
 0xaf4   : > { %v6251_v41 = vpop.permute.xlu1 %6250  ;;  %v7547_v3 = vsel %vm549_vm7, %v7515_v45, %v7422_v20  ;;  %v6343_v56 = vpop.permute.xlu0 %6342  ;;  %v6429_v45 = vsel %vm502_vm5, %v13627_v21, %v14003_v43 }
 0xaf5   : > { %v6090_v12 = vadd.f32 %v13946_v42, %v6054_v52  ;;  %v6460_v5 = vsel %vm549_vm7, %v6428_v10, %v6343_v56  ;;  %8505 = vmatmul.msk.f32.gmra.mxu3 %vm3135_vm8, %v7547_v3  ;;  %v6757_v10 = vsel %vm502_vm5, %v6495_v31, %v13729_v28  ;;  %v6430_v28 = vsel %vm502_vm5, %v13611_v17, %v6249_v54  ;;  %v8871_v54 = vld [vmem:[#allocation3 + $0x31] sm:$0xff] }
 0xaf6   : > { %8469 = vmatmul.msk.f32.gmra.mxu2 %vm3135_vm8, %v6460_v5 }
 0xaf7   : > { %v6122_v50 = vmax.f32 %v6090_v12, 0.0 }
 0xaf8   : > { %v5908_v30 = vpop.f32.mrf.mxu3  ;;  %v14147_v21 = vld [vmem:[#allocation3 + $0x1ef] sm:$0xff] }
 0xaf9   : > { %6154 = vst.msk [vmem:[#allocation3 + $0x208] sm:$0xff] %vm502_vm5, %v6122_v50  ;;  %v6022_v9 = vadd.f32 %v6021_v40, %v5908_v30  ;;  %7429 = vrot.lane.b32.xlu2 %v14124_v14, %s8899_s17  ;;  %v6462_v50 = vsel %vm549_vm7, %v6430_v28, %v14093_v38 }
 0xafa   : > { %6280 = vrot.lane.b32.xlu1 %v14126_v37, %s8898_s16  ;;  %6372 = vrot.lane.b32.xlu0 %v14108_v44, %s8899_s17 }
 0xafb   : > { %v6055_v52 = vadd.f32 %v6022_v9, %v5509_v24  ;;  %v14138_v20 = vpop.permute.xlu2 %6258  ;;  %v6431_v9 = vsel %vm502_vm5, %v13704_v16, %v6251_v41  ;;  %v6432_v16 = vsel %vm502_vm5, %v13767_v0, %v14070_v60 }
 0xafc   : > { %v6345_v32 = vpop.permute.xlu1 %6344  ;;  %v6663_v56 = vpop.permute.xlu0 %6662 }
 0xafd   : > { %v6461_v3 = vsel %vm549_vm7, %v6429_v45, %v6345_v32  ;;  %v6091_v4 = vadd.f32 %v13946_v42, %v6055_v52  ;;  %v6789_v12 = vsel %vm549_vm7, %v6757_v10, %v6663_v56  ;;  %v14156_v42 = vld [vmem:[#allocation3 + $0xa8] sm:$0xff]  ;;  %v14175_v32 = vld [vmem:[#allocation3 + $0xb1] sm:$0xff] }
 0xafe   : > { %8428 = vmatmul.msk.f32.gmra.mxu1 %vm3135_vm8, %v6789_v12  ;;  %8470 = vmatmul.msk.f32.gmra.mxu2 %vm3135_vm8, %v6461_v3  ;;  %v8872_v56 = vld [vmem:[#allocation3 + $0x28] sm:$0xff] }
 0xaff   : > { %v6123_v5 = vmax.f32 %v6091_v4, 0.0  ;;  %v6758_v4 = vsel %vm502_vm5, %v8872_v56, %v13855_v27  ;;  %v14199_v27 = vld [vmem:[#allocation3 + $0xb0] sm:$0xff] }
 0xb00   : > { %v6188_v17 = vld [vmem:[#allocation3 + $0x207] sm:$0xff] }
 0xb01   : > { %6155 = vst.msk [vmem:[#allocation3 + $0x210] sm:$0xff] %vm502_vm5, %v6123_v5  ;;  %6282 = vrot.lane.b32.xlu2 %v14147_v21, %s8898_s16 }
 0xb02   : > { %6374 = vrot.lane.b32.xlu1 %v14126_v37, %s8899_s17  ;;  %6672 = vrot.lane.b32.xlu0 %v14156_v42, %s8899_s17 }
 0xb03   : > { %v6353_v43 = vpop.permute.xlu2 %6352 }
 0xb04   : > { %v7326_v25 = vpop.permute.xlu1 %7325  ;;  %v6255_v40 = vpop.permute.xlu0 %6254 }
 0xb05   : > { %v7516_v30 = vsel %vm502_vm5, %v8871_v54, %v7326_v25  ;;  %v14192_v25 = vld [vmem:[#allocation3 + $0xc9] sm:$0xff]  ;;  %v6433_v0 = vsel %vm502_vm5, %v13797_v51, %v6255_v40 }
 0xb06   : > { %8471 = vmatmul.msk.f32.gmra.mxu2 %vm3135_vm8, %v6462_v50  ;;  %v6465_v54 = vsel %vm549_vm7, %v6433_v0, %v6353_v43 }
 0xb08   : > { %v6189_v10 = vld [vmem:[#allocation3 + $0x20f] sm:$0xff] }
 0xb09   : > { %6376 = vrot.lane.b32.xlu2 %v14147_v21, %s8899_s17 }
 0xb0a   : > { %7335 = vrot.lane.b32.xlu1 %v14124_v14, %s8898_s16  ;;  %6284 = vrot.lane.b32.xlu0 %v6188_v17, %s8898_s16 }
 0xb0b   : > { %v7424_v24 = vpop.permute.xlu2 %7423 }
 0xb0c   : > { %v6257_v31 = vpop.permute.xlu1 %6256  ;;  %v7548_v38 = vsel %vm549_vm7, %v7516_v30, %v7424_v24  ;;  %v6349_v45 = vpop.permute.xlu0 %6348  ;;  %v14205_v30 = vld [vmem:[#allocation3 + $0xd1] sm:$0xff] }
 0xb0d   : > { %v6463_v52 = vsel %vm549_vm7, %v6431_v9, %v6349_v45  ;;  %8506 = vmatmul.msk.f32.gmra.mxu3 %vm3135_vm8, %v7548_v38  ;;  %v6434_v43 = vsel %vm502_vm5, %v13822_v39, %v6257_v31  ;;  %v6435_v31 = vsel %vm502_vm5, %v13848_v57, %v14138_v20 }
 0xb0e   : > { %8472 = vmatmul.msk.f32.gmra.mxu2 %vm3135_vm8, %v6463_v52  ;;  %v14221_v52 = vld [vmem:[#allocation3 + $0xe9] sm:$0xff] }
 0xb11   : > { %7431 = vrot.lane.b32.xlu2 %v14175_v32, %s8899_s17 }
 0xb12   : > { %6286 = vrot.lane.b32.xlu1 %v6189_v10, %s8898_s16  ;;  %6378 = vrot.lane.b32.xlu0 %v6188_v17, %s8899_s17 }
 0xb13   : > { %v14184_v41 = vpop.permute.xlu2 %6264 }
 0xb14   : > { %v6351_v3 = vpop.permute.xlu1 %6350  ;;  %v6665_v5 = vpop.permute.xlu0 %6664 }
 0xb15   : > { %v6464_v12 = vsel %vm549_vm7, %v6432_v16, %v6351_v3  ;;  %v6790_v28 = vsel %vm549_vm7, %v6758_v4, %v6665_v5  ;;  %v14252_v5 = vld [vmem:[#allocation3 + $0x109] sm:$0xff] }
 0xb16   : > { %8429 = vmatmul.msk.f32.gmra.mxu1 %vm3135_vm8, %v6790_v28  ;;  %8473 = vmatmul.msk.f32.gmra.mxu2 %vm3135_vm8, %v6464_v12 }
 0xb19   : > { %7433 = vrot.lane.b32.xlu2 %v14192_v25, %s8899_s17 }
 0xb1a   : > { %6380 = vrot.lane.b32.xlu1 %v6189_v10, %s8899_s17  ;;  %6674 = vrot.lane.b32.xlu0 %v14199_v27, %s8899_s17 }
 0xb1b   : > { %v6359_v60 = vpop.permute.xlu2 %6358 }
 0xb1c   : > { %v7328_v50 = vpop.permute.xlu1 %7327  ;;  %v6261_v17 = vpop.permute.xlu0 %6260 }
 0xb1d   : > { %v7517_v51 = vsel %vm502_vm5, %v13706_v55, %v7328_v50  ;;  %v8874_v55 = vld [vmem:[#allocation3 + $0x30] sm:$0xff]  ;;  %v6436_v57 = vsel %vm502_vm5, %v13863_v18, %v6261_v17 }
 0xb1e   : > { %8474 = vmatmul.msk.f32.gmra.mxu2 %vm3135_vm8, %v6465_v54  ;;  %v6759_v39 = vsel %vm502_vm5, %v8874_v55, %v13878_v61  ;;  %v6468_v12 = vsel %vm549_vm7, %v6436_v57, %v6359_v60  ;;  %v8875_v18 = vld [vmem:[#allocation3 + $0x51] sm:$0xff] }
 0xb21   : > { %7435 = vrot.lane.b32.xlu2 %v14205_v30, %s8899_s17 }
 0xb22   : > { %7337 = vrot.lane.b32.xlu1 %v14175_v32, %s8898_s16  ;;  %6676 = vrot.lane.b32.xlu0 %v13660_v29, %s8899_s17 }
 0xb23   : > { %v7426_v40 = vpop.permute.xlu2 %7425 }
 0xb24   : > { %v7549_v24 = vsel %vm549_vm7, %v7517_v51, %v7426_v40  ;;  %v6263_v9 = vpop.permute.xlu1 %6262  ;;  %v6355_v38 = vpop.permute.xlu0 %6354  ;;  %v14267_v51 = vld [vmem:[#allocation3 + $0x111] sm:$0xff]  ;;  %v8876_v40 = vld [vmem:[#allocation3 + $0x48] sm:$0xff] }
 0xb25   : > { %v6466_v45 = vsel %vm549_vm7, %v6434_v43, %v6355_v38  ;;  %8507 = vmatmul.msk.f32.gmra.mxu3 %vm3135_vm8, %v7549_v24  ;;  %v6437_v0 = vsel %vm502_vm5, %v13885_v26, %v6263_v9  ;;  %v6760_v43 = vsel %vm502_vm5, %v8876_v40, %v13852_v62  ;;  %v6438_v24 = vsel %vm502_vm5, %v13909_v15, %v14184_v41  ;;  %v14294_v62 = vld [vmem:[#allocation3 + $0x110] sm:$0xff] }
 0xb26   : > { %8475 = vmatmul.msk.f32.gmra.mxu2 %vm3135_vm8, %v6466_v45 }
 0xb29   : > { %7437 = vrot.lane.b32.xlu2 %v14221_v52, %s8899_s17 }
 0xb2a   : > { %7339 = vrot.lane.b32.xlu1 %v14192_v25, %s8898_s16  ;;  %6678 = vrot.lane.b32.xlu0 %v13720_v47, %s8899_s17  ;;  %v14240_v47 = vld [vmem:[#allocation3 + $0xf1] sm:$0xff] }
 0xb2b   : > { %v14229_v29 = vpop.permute.xlu2 %6270 }
 0xb2c   : > { %v6357_v10 = vpop.permute.xlu1 %6356  ;;  %v6667_v16 = vpop.permute.xlu0 %6666 }
 0xb2d   : > { %v6467_v3 = vsel %vm549_vm7, %v6435_v31, %v6357_v10  ;;  %v6791_v56 = vsel %vm549_vm7, %v6759_v39, %v6667_v16  ;;  %v14288_v39 = vld [vmem:[#allocation3 + $0x129] sm:$0xff] }
 0xb2e   : > { %8430 = vmatmul.msk.f32.gmra.mxu1 %vm3135_vm8, %v6791_v56  ;;  %8476 = vmatmul.msk.f32.gmra.mxu2 %vm3135_vm8, %v6467_v3  ;;  %v14302_v3 = vld [vmem:[#allocation3 + $0x128] sm:$0xff] }
 0xb31   : > { %7439 = vrot.lane.b32.xlu2 %v14240_v47, %s8899_s17 }
 0xb32   : > { %7341 = vrot.lane.b32.xlu1 %v14205_v30, %s8898_s16  ;;  %6680 = vrot.lane.b32.xlu0 %v13753_v8, %s8899_s17 }
 0xb33   : > { %v6365_v61 = vpop.permute.xlu2 %6364 }
 0xb34   : > { %v7330_v20 = vpop.permute.xlu1 %7329  ;;  %v6267_v4 = vpop.permute.xlu0 %6266 }
 0xb35   : > { %v7518_v8 = vsel %vm502_vm5, %v8875_v18, %v7330_v20  ;;  %v6439_v15 = vsel %vm502_vm5, %v13922_v63, %v6267_v4  ;;  %v15196_v63 = vld [vmem:[#allocation34_spill] sm:$0xff] }
 0xb36   : > { %8477 = vmatmul.msk.f32.gmra.mxu2 %vm3135_vm8, %v6468_v12  ;;  %v6471_v16 = vsel %vm549_vm7, %v6439_v15, %v6365_v61  ;;  %v14355_v15 = vld [vmem:[#allocation3 + $0x151] sm:$0xff] }
 0xb39   : > { %7441 = vrot.lane.b32.xlu2 %v14252_v5, %s8899_s17 }
 0xb3a   : > { %7343 = vrot.lane.b32.xlu1 %v14221_v52, %s8898_s16  ;;  %6682 = vrot.lane.b32.xlu0 %v13795_v36, %s8899_s17  ;;  %v14273_v36 = vld [vmem:[#allocation3 + $0x108] sm:$0xff] }
 0xb3b   : > { %v7428_v28 = vpop.permute.xlu2 %7427 }
 0xb3c   : > { %v7550_v60 = vsel %vm549_vm7, %v7518_v8, %v7428_v28  ;;  %v6269_v50 = vpop.permute.xlu1 %6268  ;;  %v6361_v17 = vpop.permute.xlu0 %6360  ;;  %v14318_v8 = vld [vmem:[#allocation3 + $0x130] sm:$0xff] }
 0xb3d   : > { %v6469_v54 = vsel %vm549_vm7, %v6437_v0, %v6361_v17  ;;  %8508 = vmatmul.msk.f32.gmra.mxu3 %vm3135_vm8, %v7550_v60  ;;  %v6440_v61 = vsel %vm502_vm5, %v13950_v49, %v6269_v50  ;;  %v14320_v28 = vpop.f32.mrf.mxu2  ;;  %v14326_v49 = vld [vmem:[#allocation3 + $0x131] sm:$0xff]  ;;  %v6441_v17 = vsel %vm502_vm5, %v13978_v33, %v14229_v29 }
 0xb3e   : > { %8478 = vmatmul.msk.f32.gmra.mxu2 %vm3135_vm8, %v6469_v54  ;;  %v8877_v60 = vld [vmem:[#allocation3 + $0x50] sm:$0xff] }
 0xb3f   : > { %v6761_v50 = vsel %vm502_vm5, %v8877_v60, %v13940_v11 }
 0xb41   : > { %7443 = vrot.lane.b32.xlu2 %v14267_v51, %s8899_s17 }
 0xb42   : > { %7345 = vrot.lane.b32.xlu1 %v14240_v47, %s8898_s16  ;;  %6684 = vrot.lane.b32.xlu0 %v14273_v36, %s8899_s17 }
 0xb43   : > { %v14277_v26 = vpop.permute.xlu2 %6276 }
 0xb44   : > { %v6363_v9 = vpop.permute.xlu1 %6362  ;;  %v6669_v38 = vpop.permute.xlu0 %6668 }
 0xb45   : > { %v6470_v45 = vsel %vm549_vm7, %v6438_v24, %v6363_v9  ;;  %v6792_v55 = vsel %vm549_vm7, %v6760_v43, %v6669_v38  ;;  %v14341_v9 = vld [vmem:[#allocation3 + $0x149] sm:$0xff]  ;;  %v14343_v38 = vpop.f32.mrf.mxu2 }
 0xb46   : > { %8431 = vmatmul.msk.f32.gmra.mxu1 %vm3135_vm8, %v6792_v55  ;;  %8479 = vmatmul.msk.f32.gmra.mxu2 %vm3135_vm8, %v6470_v45 }
 0xb49   : > { %7445 = vrot.lane.b32.xlu2 %v14288_v39, %s8899_s17 }
 0xb4a   : > { %7347 = vrot.lane.b32.xlu1 %v14252_v5, %s8898_s16  ;;  %6686 = vrot.lane.b32.xlu0 %v14294_v62, %s8899_s17 }
 0xb4b   : > { %v6371_v41 = vpop.permute.xlu2 %6370 }
 0xb4c   : > { %v7332_v31 = vpop.permute.xlu1 %7331  ;;  %v6273_v10 = vpop.permute.xlu0 %6272 }
 0xb4d   : > { %v7519_v56 = vsel %vm502_vm5, %v15196_v63, %v7332_v31  ;;  %v6442_v11 = vsel %vm502_vm5, %v13992_v19, %v6273_v10  ;;  %v14361_v31 = vld [vmem:[#allocation3 + $0x148] sm:$0xff]  ;;  %v14365_v19 = vpop.f32.mrf.mxu2 }
 0xb4e   : > { %8480 = vmatmul.msk.f32.gmra.mxu2 %vm3135_vm8, %v6471_v16  ;;  %v6474_v55 = vsel %vm549_vm7, %v6442_v11, %v6371_v41 }
 0xb51   : > { %7349 = vrot.lane.b32.xlu2 %v14267_v51, %s8898_s16 }
 0xb52   : > { %6688 = vrot.lane.b32.xlu1 %v14302_v3, %s8899_s17  ;;  %6590 = vrot.lane.b32.xlu0 %v14273_v36, %s8898_s16 }
 0xb53   : > { %v7430_v57 = vpop.permute.xlu2 %7429 }
 0xb54   : > { %v7551_v20 = vsel %vm549_vm7, %v7519_v56, %v7430_v57  ;;  %v6275_v4 = vpop.permute.xlu1 %6274  ;;  %v6367_v12 = vpop.permute.xlu0 %6366 }
 0xb55   : > { %v6472_v18 = vsel %vm549_vm7, %v6440_v61, %v6367_v12  ;;  %8509 = vmatmul.msk.f32.gmra.mxu3 %vm3135_vm8, %v7551_v20  ;;  %v6443_v16 = vsel %vm502_vm5, %v14015_v58, %v6275_v4  ;;  %v14375_v20 = vld [vmem:[#allocation3 + $0x150] sm:$0xff]  ;;  %v8878_v58 = vld [vmem:[#allocation3 + $0x68] sm:$0xff]  ;;  %v6444_v12 = vsel %vm502_vm5, %v14045_v53, %v14277_v26 }
 0xb56   : > { %8481 = vmatmul.msk.f32.gmra.mxu2 %vm3135_vm8, %v6472_v18  ;;  %v6762_v4 = vsel %vm502_vm5, %v8878_v58, %v13935_v22  ;;  %v14400_v22 = vld [vmem:[#allocation3 + $0x169] sm:$0xff] }
 0xb59   : > { %6690 = vrot.lane.b32.xlu2 %v14318_v8, %s8899_s17 }
 0xb5a   : > { %6592 = vrot.lane.b32.xlu1 %v14294_v62, %s8898_s16  ;;  %7447 = vrot.lane.b32.xlu0 %v14326_v49, %s8899_s17 }
 0xb5b   : > { %v14330_v0 = vpop.permute.xlu2 %6282 }
 0xb5c   : > { %v6369_v54 = vpop.permute.xlu1 %6368  ;;  %v6671_v40 = vpop.permute.xlu0 %6670 }
 0xb5d   : > { %v6473_v43 = vsel %vm549_vm7, %v6441_v17, %v6369_v54  ;;  %v6793_v24 = vsel %vm549_vm7, %v6761_v50, %v6671_v40  ;;  %v14388_v50 = vpop.f32.mrf.mxu2  ;;  %v14394_v40 = vld [vmem:[#allocation3 + $0x168] sm:$0xff] }
 0xb5e   : > { %8432 = vmatmul.msk.f32.gmra.mxu1 %vm3135_vm8, %v6793_v24  ;;  %8482 = vmatmul.msk.f32.gmra.mxu2 %vm3135_vm8, %v6473_v43 }
 0xb61   : > { %6594 = vrot.lane.b32.xlu2 %v14302_v3, %s8898_s16 }
 0xb62   : > { %7449 = vrot.lane.b32.xlu1 %v14341_v9, %s8899_s17  ;;  %7351 = vrot.lane.b32.xlu0 %v14288_v39, %s8898_s16 }
 0xb63   : > { %v6377_v33 = vpop.permute.xlu2 %6376 }
 0xb64   : > { %v7334_v29 = vpop.permute.xlu1 %7333  ;;  %v6279_v45 = vpop.permute.xlu0 %6278 }
 0xb65   : > { %v7520_v41 = vsel %vm502_vm5, %v13920_v23, %v7334_v29  ;;  %v6445_v53 = vsel %vm502_vm5, %v14059_v48, %v6279_v45  ;;  %v14414_v48 = vld [vmem:[#allocation3 + $0x171] sm:$0xff] }
 0xb66   : > { %8483 = vmatmul.msk.f32.gmra.mxu2 %vm3135_vm8, %v6474_v55  ;;  %v6477_v29 = vsel %vm549_vm7, %v6445_v53, %v6377_v33 }
 0xb69   : > { %7451 = vrot.lane.b32.xlu2 %v14355_v15, %s8899_s17 }
 0xb6a   : > { %7353 = vrot.lane.b32.xlu1 %v14326_v49, %s8898_s16  ;;  %6692 = vrot.lane.b32.xlu0 %v14361_v31, %s8899_s17 }
 0xb6b   : > { %v7432_v10 = vpop.permute.xlu2 %7431 }
 0xb6c   : > { %v7552_v63 = vsel %vm549_vm7, %v7520_v41, %v7432_v10  ;;  %v6281_v56 = vpop.permute.xlu1 %6280  ;;  %v6373_v57 = vpop.permute.xlu0 %6372 }
 0xb6d   : > { %v6475_v61 = vsel %vm549_vm7, %v6443_v16, %v6373_v57  ;;  %8510 = vmatmul.msk.f32.gmra.mxu3 %vm3135_vm8, %v7552_v63  ;;  %v14411_v41 = vpop.f32.mrf.mxu2  ;;  %v6446_v33 = vsel %vm502_vm5, %v14080_v2, %v6281_v56  ;;  %v14426_v63 = vld [vmem:[#allocation3 + $0x189] sm:$0xff] }
 0xb6e   : > { %8484 = vmatmul.msk.f32.gmra.mxu2 %vm3135_vm8, %v6475_v61  ;;  %v14434_v61 = vld [vmem:[#allocation3 + $0x170] sm:$0xff] }
 0xb6f   : > { %v8879_v56 = vld [vmem:[#allocation3 + $0x70] sm:$0xff] }
 0xb71   : > { %7355 = vrot.lane.b32.xlu2 %v14341_v9, %s8898_s16 }
 0xb72   : > { %6694 = vrot.lane.b32.xlu1 %v14375_v20, %s8899_s17  ;;  %6596 = vrot.lane.b32.xlu0 %v14318_v8, %s8898_s16 }
 0xb73   : > { %v7434_v23 = vpop.permute.xlu2 %7433 }
 0xb74   : > { %v6375_v18 = vpop.permute.xlu1 %6374  ;;  %v6673_v60 = vpop.permute.xlu0 %6672 }
 0xb75   : > { %v6476_v17 = vsel %vm549_vm7, %v6444_v12, %v6375_v18  ;;  %v6794_v54 = vsel %vm549_vm7, %v6762_v4, %v6673_v60  ;;  %v14428_v57 = vpop.f32.mrf.mxu2  ;;  %v6447_v4 = vsel %vm502_vm5, %v14108_v44, %v14330_v0 }
 0xb76   : > { %8433 = vmatmul.msk.f32.gmra.mxu1 %vm3135_vm8, %v6794_v54  ;;  %8485 = vmatmul.msk.f32.gmra.mxu2 %vm3135_vm8, %v6476_v17  ;;  %v14447_v54 = vld [vmem:[#allocation3 + $0x188] sm:$0xff] }
 0xb79   : > { %6696 = vrot.lane.b32.xlu2 %v14394_v40, %s8899_s17 }
 0xb7a   : > { %6598 = vrot.lane.b32.xlu1 %v14361_v31, %s8898_s16  ;;  %7453 = vrot.lane.b32.xlu0 %v14400_v22, %s8899_s17 }
 0xb7b   : > { %v7436_v26 = vpop.permute.xlu2 %7435 }
 0xb7c   : > { %v7336_v43 = vpop.permute.xlu1 %7335  ;;  %v6285_v24 = vpop.permute.xlu0 %6284 }
 0xb7d   : > { %v7521_v11 = vsel %vm502_vm5, %v13990_v59, %v7336_v43  ;;  %v6448_v44 = vsel %vm502_vm5, %v14126_v37, %v6285_v24  ;;  %v14457_v0 = vpop.f32.mrf.mxu2  ;;  %v8880_v43 = vld [vmem:[#allocation3 + $0x88] sm:$0xff] }
 0xb7e   : > { %8486 = vmatmul.msk.f32.gmra.mxu2 %vm3135_vm8, %v6477_v29  ;;  %v7553_v55 = vsel %vm549_vm7, %v7521_v11, %v7434_v23  ;;  %v15197_v23 = vld [vmem:[#allocation25_spill] sm:$0xff]  ;;  %v6764_v11 = vsel %vm502_vm5, %v8880_v43, %v14010_v1  ;;  %v14476_v1 = vld [vmem:[#allocation3 + $0x191] sm:$0xff] }
 0xb7f   : > { %8511 = vmatmul.msk.f32.gmra.mxu3 %vm3135_vm8, %v7553_v55  ;;  %v6763_v58 = vsel %vm502_vm5, %v8879_v56, %v15197_v23  ;;  %v14470_v56 = vld [vmem:[#allocation3 + $0x190] sm:$0xff] }
 0xb81   : > { %6600 = vrot.lane.b32.xlu2 %v14375_v20, %s8898_s16 }
 0xb82   : > { %7455 = vrot.lane.b32.xlu1 %v14414_v48, %s8899_s17  ;;  %7357 = vrot.lane.b32.xlu0 %v14355_v15, %s8898_s16 }
 0xb83   : > { %v7438_v59 = vpop.permute.xlu2 %7437 }
 0xb84   : > { %v6287_v45 = vpop.permute.xlu1 %6286  ;;  %v6379_v10 = vpop.permute.xlu0 %6378 }
 0xb85   : > { %v6478_v16 = vsel %vm549_vm7, %v6446_v33, %v6379_v10  ;;  %v14489_v43 = vpop.f32.mrf.mxu2 }
 0xb86   : > { %8487 = vmatmul.msk.f32.gmra.mxu2 %vm3135_vm8, %v6478_v16  ;;  %v15198_v16 = vld [vmem:[#allocation38_spill] sm:$0xff] }
 0xb87   : > { %v6480_v37 = vsel %vm549_vm7, %v6448_v44, %v15198_v16 }
 0xb89   : > { %7457 = vrot.lane.b32.xlu2 %v14426_v63, %s8899_s17 }
 0xb8a   : > { %7359 = vrot.lane.b32.xlu1 %v14400_v22, %s8898_s16  ;;  %6698 = vrot.lane.b32.xlu0 %v14434_v61, %s8899_s17 }
 0xb8b   : > { %v7440_v2 = vpop.permute.xlu2 %7439 }
 0xb8c   : > { %v6381_v12 = vpop.permute.xlu1 %6380  ;;  %v6675_v18 = vpop.permute.xlu0 %6674 }
 0xb8d   : > { %v6479_v60 = vsel %vm549_vm7, %v6447_v4, %v6381_v12  ;;  %v6795_v17 = vsel %vm549_vm7, %v6763_v58, %v6675_v18 }
 0xb8e   : > { %8434 = vmatmul.msk.f32.gmra.mxu1 %vm3135_vm8, %v6795_v17  ;;  %8488 = vmatmul.msk.f32.gmra.mxu2 %vm3135_vm8, %v6479_v60  ;;  %v15199_v17 = vld [vmem:[#allocation20_spill] sm:$0xff] }
 0xb91   : > { %7361 = vrot.lane.b32.xlu2 %v14414_v48, %s8898_s16 }
 0xb92   : > { %6700 = vrot.lane.b32.xlu1 %v14447_v54, %s8899_s17  ;;  %6602 = vrot.lane.b32.xlu0 %v14394_v40, %s8898_s16 }
 0xb93   : > { %v7442_v53 = vpop.permute.xlu2 %7441 }
 0xb94   : > { %v7338_v29 = vpop.permute.xlu1 %7337  ;;  %v6677_v55 = vpop.permute.xlu0 %6676 }
 0xb95   : > { %v7522_v33 = vsel %vm502_vm5, %v14057_v13, %v7338_v29  ;;  %v6796_v10 = vsel %vm549_vm7, %v6764_v11, %v6677_v55  ;;  %v6449_v13 = vsel %vm502_vm5, %v14147_v21, %v6287_v45  ;;  %v6766_v45 = vsel %vm502_vm5, %v14156_v42, %v13982_v7  ;;  %v14518_v7 = vld [vmem:[#allocation3 + $0x1a8] sm:$0xff] }
 0xb96   : > { %8435 = vmatmul.msk.f32.gmra.mxu1 %vm3135_vm8, %v6796_v10  ;;  %8489 = vmatmul.msk.f32.gmra.mxu2 %vm3135_vm8, %v6480_v37  ;;  %v7554_v24 = vsel %vm549_vm7, %v7522_v33, %v7436_v26  ;;  %v8881_v26 = vld [vmem:[#allocation3 + $0x90] sm:$0xff]  ;;  %v6481_v44 = vsel %vm549_vm7, %v6449_v13, %v15199_v17 }
 0xb97   : > { %8512 = vmatmul.msk.f32.gmra.mxu3 %vm3135_vm8, %v7554_v24  ;;  %v6765_v58 = vsel %vm502_vm5, %v8881_v26, %v14005_v6  ;;  %v14495_v6 = vld [vmem:[#allocation3 + $0x1a9] sm:$0xff]  ;;  %v14512_v10 = vld [vmem:[#allocation3 + $0x1b1] sm:$0xff] }
 0xb98   : > { %v14531_v26 = vld [vmem:[#allocation3 + $0x1b0] sm:$0xff] }
 0xb99   : > { %6702 = vrot.lane.b32.xlu2 %v14470_v56, %s8899_s17  ;;  %v8883_v17 = vld [vmem:[#allocation3 + $0xd0] sm:$0xff] }
 0xb9a   : > { %6604 = vrot.lane.b32.xlu1 %v14434_v61, %s8898_s16  ;;  %7459 = vrot.lane.b32.xlu0 %v14476_v1, %s8899_s17 }
 0xb9b   : > { %v7444_v23 = vpop.permute.xlu2 %7443 }
 0xb9c   : > { %v7340_v4 = vpop.permute.xlu1 %7339  ;;  %v6679_v12 = vpop.permute.xlu0 %6678 }
 0xb9d   : > { %v7523_v18 = vsel %vm502_vm5, %v14124_v14, %v7340_v4  ;;  %v6797_v60 = vsel %vm549_vm7, %v6765_v58, %v6679_v12 }
 0xb9e   : > { %8436 = vmatmul.msk.f32.gmra.mxu1 %vm3135_vm8, %v6797_v60  ;;  %8490 = vmatmul.msk.f32.gmra.mxu2 %vm3135_vm8, %v6481_v44  ;;  %v7555_v21 = vsel %vm549_vm7, %v7523_v18, %v7438_v59  ;;  %v14547_v60 = vld [vmem:[#allocation3 + $0x1c8] sm:$0xff] }
 0xb9f   : > { %8513 = vmatmul.msk.f32.gmra.mxu3 %vm3135_vm8, %v7555_v21 }
 0xba1   : > { %6606 = vrot.lane.b32.xlu2 %v14447_v54, %s8898_s16 }
 0xba2   : > { %7461 = vrot.lane.b32.xlu1 %v14495_v6, %s8899_s17  ;;  %7363 = vrot.lane.b32.xlu0 %v14426_v63, %s8898_s16 }
 0xba3   : > { %v7446_v14 = vpop.permute.xlu2 %7445 }
 0xba4   : > { %v7342_v11 = vpop.permute.xlu1 %7341  ;;  %v6681_v59 = vpop.permute.xlu0 %6680 }
 0xba5   : > { %v7524_v29 = vsel %vm502_vm5, %v14175_v32, %v7342_v11  ;;  %v6798_v55 = vsel %vm549_vm7, %v6766_v45, %v6681_v59  ;;  %v6767_v32 = vsel %vm502_vm5, %v14199_v27, %v14075_v46 }
 0xba6   : > { %8437 = vmatmul.msk.f32.gmra.mxu1 %vm3135_vm8, %v6798_v55  ;;  %v7556_v33 = vsel %vm549_vm7, %v7524_v29, %v7440_v2  ;;  %v14565_v29 = vld [vmem:[#allocation3 + $0x1d1] sm:$0xff] }
 0xba7   : > { %8514 = vmatmul.msk.f32.gmra.mxu3 %vm3135_vm8, %v7556_v33  ;;  %v8884_v33 = vld [vmem:[#allocation3 + $0xe8] sm:$0xff] }
 0xba9   : > { %7463 = vrot.lane.b32.xlu2 %v14512_v10, %s8899_s17 }
 0xbaa   : > { %7365 = vrot.lane.b32.xlu1 %v14476_v1, %s8898_s16  ;;  %6704 = vrot.lane.b32.xlu0 %v14518_v7, %s8899_s17 }
 0xbab   : > { %v7350_v42 = vpop.permute.xlu2 %7349 }
 0xbac   : > { %v7344_v2 = vpop.permute.xlu1 %7343  ;;  %v6683_v16 = vpop.permute.xlu0 %6682 }
 0xbad   : > { %v7525_v37 = vsel %vm502_vm5, %v14192_v25, %v7344_v2  ;;  %v6799_v24 = vsel %vm549_vm7, %v6767_v32, %v6683_v16  ;;  %v8882_v25 = vld [vmem:[#allocation3 + $0xc8] sm:$0xff]  ;;  %v14582_v16 = vld [vmem:[#allocation3 + $0x1d0] sm:$0xff] }
 0xbae   : > { %8438 = vmatmul.msk.f32.gmra.mxu1 %vm3135_vm8, %v6799_v24  ;;  %v7557_v13 = vsel %vm549_vm7, %v7525_v37, %v7442_v53  ;;  %v6768_v27 = vsel %vm502_vm5, %v8882_v25, %v14095_v35  ;;  %v14553_v35 = vld [vmem:[#allocation3 + $0x1c9] sm:$0xff]  ;;  %v7528_v24 = vsel %vm502_vm5, %v14240_v47, %v7350_v42  ;;  %v15200_v47 = vld [vmem:[#allocation17_spill] sm:$0xff]  ;;  %v14598_v42 = vpop.f32.mrf.mxu1 }
 0xbaf   : > { %8515 = vmatmul.msk.f32.gmra.mxu3 %vm3135_vm8, %v7557_v13  ;;  %v14576_v2 = vld [vmem:[#allocation3 + $0x1e9] sm:$0xff] }
 0xbb1   : > { %7367 = vrot.lane.b32.xlu2 %v14495_v6, %s8898_s16 }
 0xbb2   : > { %6706 = vrot.lane.b32.xlu1 %v14531_v26, %s8899_s17  ;;  %6608 = vrot.lane.b32.xlu0 %v14470_v56, %s8898_s16 }
 0xbb3   : > { %v6691_v46 = vpop.permute.xlu2 %6690 }
 0xbb4   : > { %v7346_v58 = vpop.permute.xlu1 %7345  ;;  %v6685_v53 = vpop.permute.xlu0 %6684 }
 0xbb5   : > { %v7526_v4 = vsel %vm502_vm5, %v14205_v30, %v7346_v58  ;;  %v6800_v12 = vsel %vm549_vm7, %v6768_v27, %v6685_v53  ;;  %v8885_v27 = vld [vmem:[#allocation3 + $0xf0] sm:$0xff] }
 0xbb6   : > { %8439 = vmatmul.msk.f32.gmra.mxu1 %vm3135_vm8, %v6800_v12  ;;  %v7558_v18 = vsel %vm549_vm7, %v7526_v4, %v7444_v23  ;;  %v6769_v23 = vsel %vm502_vm5, %v8883_v17, %v14049_v34  ;;  %v8886_v12 = vld [vmem:[#allocation3 + $0x49] sm:$0xff] }
 0xbb7   : > { %8516 = vmatmul.msk.f32.gmra.mxu3 %vm3135_vm8, %v7558_v18 }
 0xbb9   : > { %6708 = vrot.lane.b32.xlu2 %v14547_v60, %s8899_s17 }
 0xbba   : > { %6610 = vrot.lane.b32.xlu1 %v14518_v7, %s8898_s16  ;;  %7465 = vrot.lane.b32.xlu0 %v14553_v35, %s8899_s17 }
 0xbbb   : > { %v6595_v30 = vpop.permute.xlu2 %6594 }
 0xbbc   : > { %v7348_v44 = vpop.permute.xlu1 %7347  ;;  %v6687_v21 = vpop.permute.xlu0 %6686 }
 0xbbd   : > { %v7527_v45 = vsel %vm502_vm5, %v14221_v52, %v7348_v44  ;;  %v6801_v11 = vsel %vm549_vm7, %v6769_v23, %v6687_v21  ;;  %v14604_v21 = vld [vmem:[#allocation3 + $0x1f1] sm:$0xff] }
 0xbbe   : > { %8440 = vmatmul.msk.f32.gmra.mxu1 %vm3135_vm8, %v6801_v11  ;;  %v7559_v59 = vsel %vm549_vm7, %v7527_v45, %v7446_v14  ;;  %v14610_v45 = vld [vmem:[#allocation3 + $0x1e8] sm:$0xff]  ;;  %v14612_v11 = vpop.f32.mrf.mxu3 }
 0xbbf   : > { %8517 = vmatmul.msk.f32.gmra.mxu3 %vm3135_vm8, %v7559_v59 }
 0xbc1   : > { %6612 = vrot.lane.b32.xlu2 %v14531_v26, %s8898_s16 }
 0xbc2   : > { %7467 = vrot.lane.b32.xlu1 %v14565_v29, %s8899_s17  ;;  %7369 = vrot.lane.b32.xlu0 %v14512_v10, %s8898_s16 }
 0xbc3   : > { %v7452_v34 = vpop.permute.xlu2 %7451 }
 0xbc4   : > { %v6689_v52 = vpop.permute.xlu1 %6688  ;;  %v6591_v55 = vpop.permute.xlu0 %6590 }
 0xbc5   : > { %v6770_v32 = vsel %vm502_vm5, %v8884_v33, %v6591_v55 }
 0xbc6   : > { %v6802_v14 = vsel %vm549_vm7, %v6770_v32, %v6689_v52  ;;  %v6772_v52 = vsel %vm502_vm5, %v14273_v36, %v6595_v30  ;;  %v14632_v36 = vpop.f32.mrf.mxu3 }
 0xbc7   : > { %8441 = vmatmul.msk.f32.gmra.mxu1 %vm3135_vm8, %v6802_v14 }
 0xbc9   : > { %7469 = vrot.lane.b32.xlu2 %v14576_v2, %s8899_s17 }
 0xbca   : > { %7371 = vrot.lane.b32.xlu1 %v14553_v35, %s8898_s16  ;;  %6710 = vrot.lane.b32.xlu0 %v14582_v16, %s8899_s17 }
 0xbcb   : > { %v7356_v37 = vpop.permute.xlu2 %7355 }
 0xbcc   : > { %v6593_v13 = vpop.permute.xlu1 %6592  ;;  %v7448_v25 = vpop.permute.xlu0 %7447 }
 0xbcd   : > { %v6771_v58 = vsel %vm502_vm5, %v8885_v27, %v6593_v13  ;;  %v7560_v53 = vsel %vm549_vm7, %v7528_v24, %v7448_v25  ;;  %v14626_v13 = vld [vmem:[#allocation3 + $0x1f0] sm:$0xff] }
 0xbce   : > { %8518 = vmatmul.msk.f32.gmra.mxu3 %vm3135_vm8, %v7560_v53  ;;  %v6803_v4 = vsel %vm549_vm7, %v6771_v58, %v6691_v46  ;;  %v6526_v53 = vld [vmem:[#allocation3 + $0x208] sm:$0xff] }
 0xbcf   : > { %8442 = vmatmul.msk.f32.gmra.mxu1 %vm3135_vm8, %v6803_v4  ;;  %v7283_v4 = vld [vmem:[#allocation3 + $0x209] sm:$0xff] }
 0xbd1   : > { %7417 = vrot.lane.b32.xlu2 %v8886_v12, %s8899_s17  ;;  %v14645_v12 = vpop.f32.mrf.mxu3 }
 0xbd2   : > { %6614 = vrot.lane.b32.xlu1 %v14547_v60, %s8898_s16  ;;  %7319 = vrot.lane.b32.xlu0 %v15200_v47, %s8898_s16 }
 0xbd3   : > { %v6697_v18 = vpop.permute.xlu2 %6696 }
 0xbd4   : > { %v7450_v17 = vpop.permute.xlu1 %7449  ;;  %v7352_v23 = vpop.permute.xlu0 %7351 }
 0xbd5   : > { %v7529_v44 = vsel %vm502_vm5, %v14252_v5, %v7352_v23  ;;  %v14616_v5 = vpop.f32.mrf.mxu1 }
 0xbd6   : > { %v7561_v46 = vsel %vm549_vm7, %v7529_v44, %v7450_v17 }
 0xbd7   : > { %8519 = vmatmul.msk.f32.gmra.mxu3 %vm3135_vm8, %v7561_v46 }
 0xbd9   : > { %7471 = vrot.lane.b32.xlu2 %v14604_v21, %s8899_s17 }
 0xbda   : > { %7373 = vrot.lane.b32.xlu1 %v14565_v29, %s8898_s16  ;;  %6712 = vrot.lane.b32.xlu0 %v14610_v45, %s8899_s17 }
 0xbdb   : > { %v6601_v59 = vpop.permute.xlu2 %6600 }
 0xbdc   : > { %v7354_v55 = vpop.permute.xlu1 %7353  ;;  %v6693_v33 = vpop.permute.xlu0 %6692 }
 0xbdd   : > { %v7530_v32 = vsel %vm502_vm5, %v14267_v51, %v7354_v55  ;;  %v6804_v14 = vsel %vm549_vm7, %v6772_v52, %v6693_v33  ;;  %v14636_v51 = vpop.f32.mrf.mxu1  ;;  %v7284_v33 = vld [vmem:[#allocation3 + $0x211] sm:$0xff] }
 0xbde   : > { %8443 = vmatmul.msk.f32.gmra.mxu1 %vm3135_vm8, %v6804_v14  ;;  %v7562_v24 = vsel %vm549_vm7, %v7530_v32, %v7452_v34 }
 0xbdf   : > { %8520 = vmatmul.msk.f32.gmra.mxu3 %vm3135_vm8, %v7562_v24 }
 0xbe1   : > { %7375 = vrot.lane.b32.xlu2 %v14576_v2, %s8898_s16 }
 0xbe2   : > { %6714 = vrot.lane.b32.xlu1 %v14626_v13, %s8899_s17  ;;  %6616 = vrot.lane.b32.xlu0 %v14582_v16, %s8898_s16 }
 0xbe3   : > { %v7458_v30 = vpop.permute.xlu2 %7457 }
 0xbe4   : > { %v6695_v25 = vpop.permute.xlu1 %6694  ;;  %v6597_v34 = vpop.permute.xlu0 %6596 }
 0xbe5   : > { %v6773_v27 = vsel %vm502_vm5, %v14294_v62, %v6597_v34  ;;  %v14648_v47 = vpop.f32.mrf.mxu1  ;;  %v7531_v62 = vsel %vm502_vm5, %v14288_v39, %v7356_v37  ;;  %v14661_v39 = vpop.f32.mrf.mxu3  ;;  %v6527_v34 = vld [vmem:[#allocation3 + $0x210] sm:$0xff] }
 0xbe6   : > { %v6805_v58 = vsel %vm549_vm7, %v6773_v27, %v6695_v25  ;;  %v7285_v25 = vld [vmem:[#allocation3 + $0x229] sm:$0xff] }
 0xbe7   : > { %8444 = vmatmul.msk.f32.gmra.mxu1 %vm3135_vm8, %v6805_v58 }
 0xbe9   : > { %6716 = vrot.lane.b32.xlu2 %v6526_v53, %s8899_s17 }
 0xbea   : > { %6618 = vrot.lane.b32.xlu1 %v14610_v45, %s8898_s16  ;;  %7473 = vrot.lane.b32.xlu0 %v7283_v4, %s8899_s17 }
 0xbeb   : > { %v7362_v17 = vpop.permute.xlu2 %7361 }
 0xbec   : > { %v6599_v23 = vpop.permute.xlu1 %6598  ;;  %v7454_v44 = vpop.permute.xlu0 %7453 }
 0xbed   : > { %v6774_v46 = vsel %vm502_vm5, %v14302_v3, %v6599_v23  ;;  %v7563_v52 = vsel %vm549_vm7, %v7531_v62, %v7454_v44  ;;  %v14665_v3 = vpop.f32.mrf.mxu1  ;;  %v14673_v27 = vpop.f32.mrf.mxu3 }
 0xbee   : > { %8521 = vmatmul.msk.f32.gmra.mxu3 %vm3135_vm8, %v7563_v52  ;;  %v6806_v55 = vsel %vm549_vm7, %v6774_v46, %v6697_v18 }
 0xbef   : > { %8445 = vmatmul.msk.f32.gmra.mxu1 %vm3135_vm8, %v6806_v55  ;;  %v6528_v55 = vld [vmem:[#allocation3 + $0x228] sm:$0xff] }
 0xbf1   : > { %6620 = vrot.lane.b32.xlu2 %v14626_v13, %s8898_s16 }
 0xbf2   : > { %7475 = vrot.lane.b32.xlu1 %v7284_v33, %s8899_s17  ;;  %7377 = vrot.lane.b32.xlu0 %v14604_v21, %s8898_s16 }
 0xbf3   : > { %v6703_v37 = vpop.permute.xlu2 %6702 }
 0xbf4   : > { %v7456_v32 = vpop.permute.xlu1 %7455  ;;  %v7358_v14 = vpop.permute.xlu0 %7357 }
 0xbf5   : > { %v7532_v18 = vsel %vm502_vm5, %v14326_v49, %v7358_v14  ;;  %v14676_v58 = vpop.f32.mrf.mxu1  ;;  %v6775_v49 = vsel %vm502_vm5, %v14318_v8, %v6601_v59 }
 0xbf6   : > { %v7564_v24 = vsel %vm549_vm7, %v7532_v18, %v7456_v32  ;;  %v14688_v32 = vpop.f32.mrf.mxu3 }
 0xbf7   : > { %8522 = vmatmul.msk.f32.gmra.mxu3 %vm3135_vm8, %v7564_v24  ;;  %v6529_v24 = vld [vmem:[#allocation3 + $0x230] sm:$0xff] }
 0xbf9   : > { %7477 = vrot.lane.b32.xlu2 %v7285_v25, %s8899_s17  ;;  %v7179_v25 = vpop.f32.mrf.mxu2 }
 0xbfa   : > { %7379 = vrot.lane.b32.xlu1 %v7283_v4, %s8898_s16  ;;  %6718 = vrot.lane.b32.xlu0 %v6527_v34, %s8899_s17 }
 0xbfb   : > { %v6607_v62 = vpop.permute.xlu2 %6606 }
 0xbfc   : > { %v7360_v23 = vpop.permute.xlu1 %7359  ;;  %v6699_v44 = vpop.permute.xlu0 %6698 }
 0xbfd   : > { %v7533_v46 = vsel %vm502_vm5, %v14341_v9, %v7360_v23  ;;  %v6807_v52 = vsel %vm549_vm7, %v6775_v49, %v6699_v44  ;;  %v14691_v8 = vpop.f32.mrf.mxu1 }
 0xbfe   : > { %8446 = vmatmul.msk.f32.gmra.mxu1 %vm3135_vm8, %v6807_v52  ;;  %v7565_v4 = vsel %vm549_vm7, %v7533_v46, %v7458_v30 }
 0xbff   : > { %8523 = vmatmul.msk.f32.gmra.mxu3 %vm3135_vm8, %v7565_v4 }
 0xc01   : > { %7381 = vrot.lane.b32.xlu2 %v7284_v33, %s8898_s16  ;;  %v7286_v33 = vld [vmem:[#allocation3 + $0x231] sm:$0xff] }
 0xc02   : > { %6720 = vrot.lane.b32.xlu1 %v6528_v55, %s8899_s17  ;;  %6622 = vrot.lane.b32.xlu0 %v6526_v53, %s8898_s16  ;;  %v14699_v53 = vpop.f32.mrf.mxu3  ;;  %v7182_v55 = vpop.f32.mrf.mxu2 }
 0xc03   : > { %v7464_v14 = vpop.permute.xlu2 %7463 }
 0xc04   : > { %v6701_v9 = vpop.permute.xlu1 %6700  ;;  %v6603_v59 = vpop.permute.xlu0 %6602 }
 0xc05   : > { %v6776_v18 = vsel %vm502_vm5, %v14361_v31, %v6603_v59  ;;  %v7534_v31 = vsel %vm502_vm5, %v14355_v15, %v7362_v17 }
 0xc06   : > { %v6808_v30 = vsel %vm549_vm7, %v6776_v18, %v6701_v9 }
 0xc07   : > { %8447 = vmatmul.msk.f32.gmra.mxu1 %vm3135_vm8, %v6808_v30 }
 0xc09   : > { %6722 = vrot.lane.b32.xlu2 %v6529_v24, %s8899_s17 }
 0xc0a   : > { %6624 = vrot.lane.b32.xlu1 %v6527_v34, %s8898_s16  ;;  %7479 = vrot.lane.b32.xlu0 %v7286_v33, %s8899_s17  ;;  %v7727_v9 = vpop.f32.mrf.mxu3 }
 0xc0b   : > { %v14702_v49 = vpop.f32.mrf.mxu1  ;;  %v7368_v4 = vpop.permute.xlu2 %7367 }
 0xc0c   : > { %v6605_v23 = vpop.permute.xlu1 %6604  ;;  %v7460_v44 = vpop.permute.xlu0 %7459 }
 0xc0d   : > { %v6777_v46 = vsel %vm502_vm5, %v14375_v20, %v6605_v23  ;;  %v7566_v52 = vsel %vm549_vm7, %v7534_v31, %v7460_v44  ;;  %v7185_v31 = vpop.f32.mrf.mxu2  ;;  %v6778_v44 = vsel %vm502_vm5, %v14394_v40, %v6607_v62 }
 0xc0e   : > { %8524 = vmatmul.msk.f32.gmra.mxu3 %vm3135_vm8, %v7566_v52  ;;  %v6809_v34 = vsel %vm549_vm7, %v6777_v46, %v6703_v37 }
 0xc0f   : > { %8448 = vmatmul.msk.f32.gmra.mxu1 %vm3135_vm8, %v6809_v34 }
 0xc13   : > { %v6970_v59 = vpop.f32.mrf.mxu1  ;;  %v6709_v33 = vpop.permute.xlu2 %6708 }
 0xc14   : > { %v7180_v18 = vadd.f32 %v7179_v25, %v6970_v59  ;;  %v7462_v30 = vpop.permute.xlu1 %7461  ;;  %v7364_v15 = vpop.permute.xlu0 %7363 }
 0xc15   : > { %v7535_v17 = vsel %vm502_vm5, %v14400_v22, %v7364_v15 }
 0xc16   : > { %v14714_v24 = vadd.f32 %v7727_v9, %v7180_v18  ;;  %v7567_v20 = vsel %vm549_vm7, %v7535_v17, %v7462_v30  ;;  %v7188_v17 = vpop.f32.mrf.mxu2 }
 0xc17   : > { %8525 = vmatmul.msk.f32.gmra.mxu3 %vm3135_vm8, %v7567_v20 }
 0xc1a   : > { %v7730_v37 = vpop.f32.mrf.mxu3 }
 0xc1b   : > { %v6973_v23 = vpop.f32.mrf.mxu1  ;;  %v6613_v30 = vpop.permute.xlu2 %6612 }
 0xc1c   : > { %v7183_v46 = vadd.f32 %v7182_v55, %v6973_v23  ;;  %v7366_v25 = vpop.permute.xlu1 %7365  ;;  %v6705_v52 = vpop.permute.xlu0 %6704 }
 0xc1d   : > { %v7536_v34 = vsel %vm502_vm5, %v14414_v48, %v7366_v25  ;;  %v6810_v22 = vsel %vm549_vm7, %v6778_v44, %v6705_v52  ;;  %v7537_v44 = vsel %vm502_vm5, %v14426_v63, %v7368_v4 }
 0xc1e   : > { %v14723_v9 = vadd.f32 %v7730_v37, %v7183_v46  ;;  %8449 = vmatmul.msk.f32.gmra.mxu1 %vm3135_vm8, %v6810_v22  ;;  %v7568_v59 = vsel %vm549_vm7, %v7536_v34, %v7464_v14 }
 0xc1f   : > { %8526 = vmatmul.msk.f32.gmra.mxu3 %vm3135_vm8, %v7568_v59 }
 0xc22   : > { %v7733_v18 = vpop.f32.mrf.mxu3 }
 0xc23   : > { %v6976_v15 = vpop.f32.mrf.mxu1  ;;  %v7470_v52 = vpop.permute.xlu2 %7469 }
 0xc24   : > { %v7186_v40 = vadd.f32 %v7185_v31, %v6976_v15  ;;  %v6707_v62 = vpop.permute.xlu1 %6706  ;;  %v6609_v55 = vpop.permute.xlu0 %6608 }
 0xc25   : > { %v6779_v48 = vsel %vm502_vm5, %v14434_v61, %v6609_v55 }
 0xc26   : > { %v14730_v20 = vadd.f32 %v7733_v18, %v7186_v40  ;;  %v6811_v37 = vsel %vm549_vm7, %v6779_v48, %v6707_v62  ;;  %v7191_v18 = vpop.f32.mrf.mxu2 }
 0xc27   : > { %8450 = vmatmul.msk.f32.gmra.mxu1 %vm3135_vm8, %v6811_v37 }
 0xc2a   : > { %v7736_v23 = vpop.f32.mrf.mxu3 }
 0xc2b   : > { %v6979_v14 = vpop.f32.mrf.mxu1  ;;  %v7418_v48 = vpop.permute.xlu2 %7417 }
 0xc2c   : > { %v7189_v46 = vadd.f32 %v7188_v17, %v6979_v14  ;;  %v6611_v25 = vpop.permute.xlu1 %6610  ;;  %v7466_v31 = vpop.permute.xlu0 %7465  ;;  %v6781_v14 = vsel %vm502_vm5, %v14470_v56, %v6613_v30 }
 0xc2d   : > { %v6780_v34 = vsel %vm502_vm5, %v14447_v54, %v6611_v25  ;;  %v7569_v61 = vsel %vm549_vm7, %v7537_v44, %v7466_v31 }
 0xc2e   : > { %v14739_v22 = vadd.f32 %v7736_v23, %v7189_v46  ;;  %8527 = vmatmul.msk.f32.gmra.mxu3 %vm3135_vm8, %v7569_v61  ;;  %v6812_v59 = vsel %vm549_vm7, %v6780_v34, %v6709_v33  ;;  %v7194_v37 = vpop.f32.mrf.mxu2 }
 0xc2f   : > { %8451 = vmatmul.msk.f32.gmra.mxu1 %vm3135_vm8, %v6812_v59 }
 0xc32   : > { %v7739_v15 = vpop.f32.mrf.mxu3 }
 0xc33   : > { %v6982_v63 = vpop.f32.mrf.mxu1  ;;  %v7472_v59 = vpop.permute.xlu2 %7471 }
 0xc34   : > { %v7192_v4 = vadd.f32 %v7191_v18, %v6982_v63  ;;  %v7468_v40 = vpop.permute.xlu1 %7467  ;;  %v7370_v62 = vpop.permute.xlu0 %7369 }
 0xc35   : > { %v7538_v55 = vsel %vm502_vm5, %v14476_v1, %v7370_v62 }
 0xc36   : > { %v14746_v54 = vadd.f32 %v7739_v15, %v7192_v4  ;;  %v7570_v17 = vsel %vm549_vm7, %v7538_v55, %v7468_v40  ;;  %v7197_v18 = vpop.f32.mrf.mxu2  ;;  %v7251_v15 = vld [vmem:[#allocation3 + $0x9] sm:$0xff] }
 0xc37   : > { %8528 = vmatmul.msk.f32.gmra.mxu3 %vm3135_vm8, %v7570_v17 }
 0xc3a   : > { %v7742_v33 = vpop.f32.mrf.mxu3 }
 0xc3b   : > { %v6985_v23 = vpop.f32.mrf.mxu1  ;;  %v7376_v17 = vpop.permute.xlu2 %7375 }
 0xc3c   : > { %v7195_v44 = vadd.f32 %v7194_v37, %v6985_v23  ;;  %v7372_v46 = vpop.permute.xlu1 %7371  ;;  %v6711_v25 = vpop.permute.xlu0 %6710 }
 0xc3d   : > { %v7539_v31 = vsel %vm502_vm5, %v14495_v6, %v7372_v46  ;;  %v6813_v1 = vsel %vm549_vm7, %v6781_v14, %v6711_v25 }
 0xc3e   : > { %v14755_v34 = vadd.f32 %v7742_v33, %v7195_v44  ;;  %8452 = vmatmul.msk.f32.gmra.mxu1 %vm3135_vm8, %v6813_v1  ;;  %v7571_v61 = vsel %vm549_vm7, %v7539_v31, %v7470_v52  ;;  %v7200_v25 = vpop.f32.mrf.mxu2 }
 0xc3f   : > { %8529 = vmatmul.msk.f32.gmra.mxu3 %vm3135_vm8, %v7571_v61 }
 0xc42   : > { %v7745_v40 = vpop.f32.mrf.mxu3 }
 0xc44   : > { %v6615_v56 = vpop.permute.xlu1 %6614  ;;  %v6988_v30 = vpop.f32.mrf.mxu1 }
 0xc45   : > { %v7198_v63 = vadd.f32 %v7197_v18, %v6988_v30  ;;  %v7320_v4 = vpop.permute.xlu0 %7319  ;;  %v6782_v37 = vsel %vm502_vm5, %v14518_v7, %v6615_v56  ;;  %v6717_v7 = vpop.permute.xlu2 %6716 }
 0xc46   : > { %v7513_v6 = vsel %vm502_vm5, %v7251_v15, %v7320_v4 }
 0xc47   : > { %v14761_v62 = vadd.f32 %v7745_v40, %v7198_v63  ;;  %v7545_v55 = vsel %vm549_vm7, %v7513_v6, %v7418_v48  ;;  %v7541_v40 = vsel %vm502_vm5, %v14553_v35, %v7376_v17 }
 0xc48   : > { %8503 = vmatmul.msk.f32.vlgmr.msra.gmra.mxu0 %vm3135_vm8, %v7545_v55 }
 0xc4c   : > { %v7374_v52 = vpop.permute.xlu1 %7373  ;;  %v6991_v23 = vpop.f32.mrf.mxu1 }
 0xc4d   : > { %v7540_v33 = vsel %vm502_vm5, %v14512_v10, %v7374_v52  ;;  %v6713_v14 = vpop.permute.xlu0 %6712  ;;  %v7201_v48 = vadd.f32 %v7200_v25, %v6991_v23  ;;  %v6621_v23 = vpop.permute.xlu2 %6620 }
 0xc4e   : > { %v6814_v44 = vsel %vm549_vm7, %v6782_v37, %v6713_v14  ;;  %v7572_v46 = vsel %vm549_vm7, %v7540_v33, %v7472_v59  ;;  %v7203_v59 = vpop.f32.mrf.mxu2 }
 0xc4f   : > { %8453 = vmatmul.msk.f32.gmra.mxu1 %vm3135_vm8, %v6814_v44  ;;  %8530 = vmatmul.msk.f32.gmra.mxu3 %vm3135_vm8, %v7572_v46 }
 0xc51   : > { %v7748_v31 = vpop.f32.mrf.mxu3 }
 0xc52   : > { %v14773_v1 = vadd.f32 %v7748_v31, %v7201_v48 }
 0xc54   : > { %v6715_v61 = vpop.permute.xlu1 %6714 }
 0xc55   : > { %v6617_v18 = vpop.permute.xlu0 %6616 }
 0xc56   : > { %v6783_v10 = vsel %vm502_vm5, %v14531_v26, %v6617_v18  ;;  %v14786_v26 = vld [vmem:[%s14899_s12] ss:$0 sm:$0xff] }
 0xc57   : > { %v6815_v15 = vsel %vm549_vm7, %v6783_v10, %v6715_v61 }
 0xc58   : > { %8454 = vmatmul.msk.f32.gmra.mxu1 %vm3135_vm8, %v6815_v15  ;;  %v6785_v15 = vsel %vm502_vm5, %v14582_v16, %v6621_v23 }
 0xc5a   : > { %v7751_v30 = vpop.f32.mrf.mxu3 }
 0xc5b   : > { %v6994_v56 = vpop.f32.mrf.mxu1 }
 0xc5c   : > { %v7204_v63 = vadd.f32 %v7203_v59, %v6994_v56  ;;  %v6619_v4 = vpop.permute.xlu1 %6618 }
 0xc5d   : > { %v6784_v6 = vsel %vm502_vm5, %v14547_v60, %v6619_v4  ;;  %v7474_v55 = vpop.permute.xlu0 %7473  ;;  %v7206_v60 = vpop.f32.mrf.mxu2 }
 0xc5e   : > { %v7815_v52 = vadd.f32 %v7751_v30, %v7204_v63  ;;  %v7573_v37 = vsel %vm549_vm7, %v7541_v40, %v7474_v55  ;;  %v6816_v33 = vsel %vm549_vm7, %v6784_v6, %v6717_v7  ;;  %v7478_v7 = vpop.permute.xlu2 %7477 }
 0xc5f   : > { %8531 = vmatmul.msk.f32.gmra.mxu3 %vm3135_vm8, %v7573_v37 }
 0xc60   : > { %8455 = vmatmul.msk.f32.gmra.mxu1 %vm3135_vm8, %v6816_v33  ;;  %v7851_v35 = vadd.f32 %v14786_v26, %v7815_v52 }
 0xc62   : > { %7899 = vxpose.xlu1.b32.start [1/16] (narrow) %v7851_v35, 8  ;;  %v7754_v25 = vpop.f32.mrf.mxu3 }
 0xc64   : > { %v7476_v17 = vpop.permute.xlu1 %7475  ;;  %v6997_v14 = vpop.f32.mrf.mxu1 }
 0xc65   : > { %v7207_v44 = vadd.f32 %v7206_v60, %v6997_v14  ;;  %v7378_v46 = vpop.permute.xlu0 %7377  ;;  %v7209_v4 = vpop.f32.mrf.mxu2 }
 0xc66   : > { %v7542_v48 = vsel %vm502_vm5, %v14565_v29, %v7378_v46  ;;  %v7382_v52 = vpop.permute.xlu2 %7381 }
 0xc67   : > { %v7816_v31 = vadd.f32 %v7754_v25, %v7207_v44  ;;  %v7574_v61 = vsel %vm549_vm7, %v7542_v48, %v7476_v17  ;;  %v7544_v25 = vsel %vm502_vm5, %v14604_v21, %v7382_v52 }
 0xc68   : > { %8532 = vmatmul.msk.f32.gmra.mxu3 %vm3135_vm8, %v7574_v61 }
 0xc69   : > { %v7852_v18 = vadd.f32 %v14786_v26, %v7816_v31 }
 0xc6b   : > { %7900 = vxpose.xlu1.b32.cont [2/16] (narrow) %v7852_v18, 8 }
 0xc6c   : > { %v7380_v10 = vpop.permute.xlu1 %7379  ;;  %v7000_v56 = vpop.f32.mrf.mxu1 }
 0xc6d   : > { %v7543_v59 = vsel %vm502_vm5, %v14576_v2, %v7380_v10  ;;  %v6719_v30 = vpop.permute.xlu0 %6718  ;;  %v7210_v40 = vadd.f32 %v7209_v4, %v7000_v56  ;;  %v7212_v35 = vpop.f32.mrf.mxu2 }
 0xc6e   : > { %v6817_v29 = vsel %vm549_vm7, %v6785_v15, %v6719_v30  ;;  %v7575_v63 = vsel %vm549_vm7, %v7543_v59, %v7478_v7  ;;  %v6723_v17 = vpop.permute.xlu2 %6722 }
 0xc6f   : > { %8456 = vmatmul.msk.f32.gmra.mxu1 %vm3135_vm8, %v6817_v29 }
 0xc70   : > { %8533 = vmatmul.msk.f32.gmra.mxu3 %vm3135_vm8, %v7575_v63 }
 0xc71   : > { %v7757_v6 = vpop.f32.mrf.mxu3 }
 0xc72   : > { %v7817_v55 = vadd.f32 %v7757_v6, %v7210_v40 }
 0xc74   : > { %v7853_v16 = vadd.f32 %v14786_v26, %v7817_v55  ;;  %v6721_v37 = vpop.permute.xlu1 %6720 }
 0xc75   : > { %v6623_v33 = vpop.permute.xlu0 %6622  ;;  %v7215_v10 = vpop.f32.mrf.mxu2 }
 0xc76   : > { %v6786_v2 = vsel %vm502_vm5, %v14610_v45, %v6623_v33  ;;  %7901 = vxpose.xlu1.b32.cont [3/16] (narrow) %v7853_v16, 8 }
 0xc77   : > { %v6818_v23 = vsel %vm549_vm7, %v6786_v2, %v6721_v37 }
 0xc78   : > { %8457 = vmatmul.msk.f32.gmra.mxu1 %vm3135_vm8, %v6818_v23 }
 0xc7a   : > { %v7760_v14 = vpop.f32.mrf.mxu3 }
 0xc7b   : > { %v7003_v60 = vpop.f32.mrf.mxu1 }
 0xc7c   : > { %v7213_v44 = vadd.f32 %v7212_v35, %v7003_v60  ;;  %v6625_v46 = vpop.permute.xlu1 %6624 }
 0xc7d   : > { %v6787_v48 = vsel %vm502_vm5, %v14626_v13, %v6625_v46  ;;  %v7480_v31 = vpop.permute.xlu0 %7479  ;;  %v7218_v29 = vpop.f32.mrf.mxu2 }
 0xc7e   : > { %v7818_v61 = vadd.f32 %v7760_v14, %v7213_v44  ;;  %v7576_v45 = vsel %vm549_vm7, %v7544_v25, %v7480_v31  ;;  %v6819_v7 = vsel %vm549_vm7, %v6787_v48, %v6723_v17 }
 0xc7f   : > { %8534 = vmatmul.msk.f32.gmra.mxu3 %vm3135_vm8, %v7576_v45 }
 0xc80   : > { %8458 = vmatmul.msk.f32.gmra.mxu1 %vm3135_vm8, %v6819_v7  ;;  %v7854_v18 = vadd.f32 %v14786_v26, %v7818_v61 }
 0xc82   : > { %7902 = vxpose.xlu1.b32.cont [4/16] (narrow) %v7854_v18, 8  ;;  %v7763_v21 = vpop.f32.mrf.mxu3 }
 0xc84   : > { %v7006_v15 = vpop.f32.mrf.mxu1 }
 0xc85   : > { %v7216_v59 = vadd.f32 %v7215_v10, %v7006_v15  ;;  %v7221_v55 = vpop.f32.mrf.mxu2 }
 0xc87   : > { %v7819_v56 = vadd.f32 %v7763_v21, %v7216_v59 }
 0xc89   : > { %v7855_v13 = vadd.f32 %v14786_v26, %v7819_v56  ;;  %v7156_v56 = vadd.f32 %v14320_v28, %v14598_v42  ;;  %v7162_v28 = vadd.f32 %v14365_v19, %v14636_v51 }
 0xc8b   : > { %7903 = vxpose.xlu1.b32.cont [5/16] (narrow) %v7855_v13, 8 }
 0xc8c   : > { %v7009_v30 = vpop.f32.mrf.mxu1 }
 0xc8d   : > { %v7219_v63 = vadd.f32 %v7218_v29, %v7009_v30  ;;  %v7224_v23 = vpop.f32.mrf.mxu2  ;;  %v7159_v29 = vadd.f32 %v14343_v38, %v14616_v5  ;;  %v7801_v38 = vadd.f32 %v14632_v36, %v7162_v28  ;;  %v7168_v36 = vadd.f32 %v14411_v41, %v14665_v3 }
 0xc91   : > { %v7766_v4 = vpop.f32.mrf.mxu3 }
 0xc92   : > { %v7820_v40 = vadd.f32 %v7766_v4, %v7219_v63 }
 0xc94   : > { %v7856_v6 = vadd.f32 %v14786_v26, %v7820_v40  ;;  %v7800_v40 = vadd.f32 %v14612_v11, %v7159_v29  ;;  %v7837_v11 = vadd.f32 %v14786_v26, %v7801_v38 }
 0xc95   : > { %v7227_v25 = vpop.f32.mrf.mxu2 }
 0xc96   : > { %7904 = vxpose.xlu1.b32.cont [6/16] (narrow) %v7856_v6, 8 }
 0xc9a   : > { %v7769_v16 = vpop.f32.mrf.mxu3 }
 0xc9b   : > { %v7012_v52 = vpop.f32.mrf.mxu1 }
 0xc9c   : > { %v7222_v37 = vadd.f32 %v7221_v55, %v7012_v52 }
 0xc9d   : > { %v7230_v7 = vpop.f32.mrf.mxu2 }
 0xc9e   : > { %v7821_v33 = vadd.f32 %v7769_v16, %v7222_v37  ;;  %v7836_v37 = vadd.f32 %v14786_v26, %v7800_v40 }
 0xca0   : > { %v7857_v2 = vadd.f32 %v14786_v26, %v7821_v33 }
 0xca2   : > { %7905 = vxpose.xlu1.b32.cont [7/16] (narrow) %v7857_v2, 8  ;;  %v7772_v17 = vpop.f32.mrf.mxu3 }
 0xca4   : > { %v7015_v35 = vpop.f32.mrf.mxu1 }
 0xca5   : > { %v7225_v60 = vadd.f32 %v7224_v23, %v7015_v35  ;;  %v7233_v4 = vpop.f32.mrf.mxu2  ;;  %v7165_v35 = vadd.f32 %v14388_v50, %v14648_v47  ;;  %v7803_v50 = vadd.f32 %v14661_v39, %v7168_v36  ;;  %v7174_v39 = vadd.f32 %v14457_v0, %v14691_v8 }
 0xca7   : > { %v7822_v14 = vadd.f32 %v7772_v17, %v7225_v60  ;;  %v7802_v19 = vadd.f32 %v14645_v12, %v7165_v35  ;;  %v7171_v12 = vadd.f32 %v14428_v57, %v14676_v58 }
 0xca9   : > { %v7858_v44 = vadd.f32 %v14786_v26, %v7822_v14  ;;  %v7838_v14 = vadd.f32 %v14786_v26, %v7802_v19 }
 0xcab   : > { %7906 = vxpose.xlu1.b32.cont [8/16] (narrow) %v7858_v44, 8 }
 0xcac   : > { %v7018_v46 = vpop.f32.mrf.mxu1 }
 0xcad   : > { %v7228_v48 = vadd.f32 %v7227_v25, %v7018_v46  ;;  %v7236_v5 = vpop.f32.mrf.mxu2 }
 0xcb1   : > { %v7775_v31 = vpop.f32.mrf.mxu3 }
 0xcb2   : > { %v7823_v61 = vadd.f32 %v7775_v31, %v7228_v48  ;;  %v7839_v31 = vadd.f32 %v14786_v26, %v7803_v50 }
 0xcb4   : > { %v7859_v45 = vadd.f32 %v14786_v26, %v7823_v61 }
 0xcb5   : > { %v7239_v44 = vpop.f32.mrf.mxu2 }
 0xcb6   : > { %7907 = vxpose.xlu1.b32.cont [9/16] (narrow) %v7859_v45, 8  ;;  %v7804_v45 = vadd.f32 %v14673_v27, %v7171_v12 }
 0xcba   : > { %v7778_v15 = vpop.f32.mrf.mxu3 }
 0xcbb   : > { %v7021_v18 = vpop.f32.mrf.mxu1 }
 0xcbc   : > { %v7231_v10 = vadd.f32 %v7230_v7, %v7021_v18 }
 0xcbd   : > { %v7242_v61 = vpop.f32.mrf.mxu2 }
 0xcbe   : > { %v7824_v59 = vadd.f32 %v7778_v15, %v7231_v10  ;;  %v7840_v10 = vadd.f32 %v14786_v26, %v7804_v45 }
 0xcc0   : > { %v7860_v21 = vadd.f32 %v14786_v26, %v7824_v59  ;;  %v7805_v59 = vadd.f32 %v14688_v32, %v7174_v39 }
 0xcc2   : > { %7908 = vxpose.xlu1.b32.cont [10/16] (narrow) %v7860_v21, 8  ;;  %v7781_v52 = vpop.f32.mrf.mxu3  ;;  %v7841_v27 = vadd.f32 %v14786_v26, %v7805_v59 }
 0xcc5   : > { %v7703_v13 = vpop.f32.mrf.mxu0  ;;  %v7245_v57 = vpop.f32.mrf.mxu2 }
 0xcc6   : > { %v7799_v30 = vadd.f32 %v7703_v13, %v7156_v56  ;;  %v7177_v13 = vadd.f32 %v14489_v43, %v14702_v49  ;;  %v7843_v43 = vadd.f32 %v14786_v26, %v14714_v24  ;;  %v7844_v49 = vadd.f32 %v14786_v26, %v14723_v9 }
 0xcc7   : > { %v7848_v24 = vadd.f32 %v14786_v26, %v14755_v34  ;;  %v7849_v9 = vadd.f32 %v14786_v26, %v14761_v62 }
 0xcc8   : > { %v7835_v63 = vadd.f32 %v14786_v26, %v7799_v30  ;;  %v7806_v0 = vadd.f32 %v14699_v53, %v7177_v13  ;;  %v7845_v53 = vadd.f32 %v14786_v26, %v14730_v20  ;;  %v7850_v20 = vadd.f32 %v14786_v26, %v14773_v1 }
 0xcca   : > { %7867 = vxpose.xlu0.b32.start [1/16] (narrow) %v7835_v63, 8  ;;  %v7842_v63 = vadd.f32 %v14786_v26, %v7806_v0 }
 0xccc   : > { %v7024_v6 = vpop.f32.mrf.mxu1 }
 0xccd   : > { %v7234_v55 = vadd.f32 %v7233_v4, %v7024_v6  ;;  %v7248_v32 = vpop.f32.mrf.mxu2 }
 0xccf   : > { %v7825_v16 = vadd.f32 %v7781_v52, %v7234_v55  ;;  %v7846_v52 = vadd.f32 %v14786_v26, %v14739_v22 }
 0xcd1   : > { %v7861_v42 = vadd.f32 %v14786_v26, %v7825_v16  ;;  %v7847_v16 = vadd.f32 %v14786_v26, %v14746_v54 }
 0xcd2   : > { %7868 = vxpose.xlu0.b32.cont [2/16] (narrow) %v7836_v37, 8  ;;  %v7784_v23 = vpop.f32.mrf.mxu3 }
 0xcd3   : > { %7909 = vxpose.xlu1.b32.cont [11/16] (narrow) %v7861_v42, 8 }
 0xcd5   : > { %v7027_v33 = vpop.f32.mrf.mxu1 }
 0xcd6   : > { %v7237_v2 = vadd.f32 %v7236_v5, %v7027_v33 }
 0xcd8   : > { %v7826_v60 = vadd.f32 %v7784_v23, %v7237_v2 }
 0xcda   : > { %7869 = vxpose.xlu0.b32.cont [3/16] (narrow) %v7837_v11, 8  ;;  %v7862_v17 = vadd.f32 %v14786_v26, %v7826_v60 }
 0xcdc   : > { %7910 = vxpose.xlu1.b32.cont [12/16] (narrow) %v7862_v17, 8 }
 0xcdd   : > { %v7030_v51 = vpop.f32.mrf.mxu1 }
 0xcde   : > { %v7240_v46 = vadd.f32 %v7239_v44, %v7030_v51 }
 0xce2   : > { %v7787_v25 = vpop.f32.mrf.mxu3  ;;  %7870 = vxpose.xlu0.b32.cont [4/16] (narrow) %v7838_v14, 8 }
 0xce3   : > { %v7827_v48 = vadd.f32 %v7787_v25, %v7240_v46 }
 0xce5   : > { %v7863_v47 = vadd.f32 %v14786_v26, %v7827_v48 }
 0xce7   : > { %7911 = vxpose.xlu1.b32.cont [13/16] (narrow) %v7863_v47, 8 }
 0xcea   : > { %7871 = vxpose.xlu0.b32.cont [5/16] (narrow) %v7839_v31, 8 }
 0xceb   : > { %v7790_v3 = vpop.f32.mrf.mxu3 }
 0xcec   : > { %v7033_v41 = vpop.f32.mrf.mxu1 }
 0xced   : > { %v7243_v7 = vadd.f32 %v7242_v61, %v7033_v41 }
 0xcef   : > { %v7828_v18 = vadd.f32 %v7790_v3, %v7243_v7 }
 0xcf1   : > { %v7864_v15 = vadd.f32 %v14786_v26, %v7828_v18 }
 0xcf2   : > { %7872 = vxpose.xlu0.b32.cont [6/16] (narrow) %v7840_v10, 8 }
 0xcf3   : > { %7912 = vxpose.xlu1.b32.cont [14/16] (narrow) %v7864_v15, 8  ;;  %v7793_v56 = vpop.f32.mrf.mxu3 }
 0xcf5   : > { %v7036_v58 = vpop.f32.mrf.mxu1 }
 0xcf6   : > { %v7246_v21 = vadd.f32 %v7245_v57, %v7036_v58 }
 0xcf8   : > { %v7829_v30 = vadd.f32 %v7793_v56, %v7246_v21 }
 0xcfa   : > { %7873 = vxpose.xlu0.b32.cont [7/16] (narrow) %v7841_v27, 8  ;;  %v7865_v29 = vadd.f32 %v14786_v26, %v7829_v30 }
 0xcfc   : > { %7913 = vxpose.xlu1.b32.cont [15/16] (narrow) %v7865_v29, 8 }
 0xcfd   : > { %v7039_v8 = vpop.f32.mrf.mxu1 }
 0xcfe   : > { %v7249_v4 = vadd.f32 %v7248_v32, %v7039_v8 }
 0xd02   : > { %v7796_v40 = vpop.f32.mrf.mxu3  ;;  %7874 = vxpose.xlu0.b32.cont [8/16] (narrow) %v7842_v63, 8 }
 0xd03   : > { %v7830_v6 = vadd.f32 %v7796_v40, %v7249_v4 }
 0xd05   : > { %v7866_v55 = vadd.f32 %v14786_v26, %v7830_v6 }
 0xd07   : > { %7914 = vxpose.xlu1.b32.end [16/16] (narrow) %v7866_v55, 8 }
 0xd0a   : > { %7875 = vxpose.xlu0.b32.cont [9/16] (narrow) %v7843_v43, 8 }
 0xd12   : > { %7876 = vxpose.xlu0.b32.cont [10/16] (narrow) %v7844_v49, 8 }
 0xd1a   : > { %7877 = vxpose.xlu0.b32.cont [11/16] (narrow) %v7845_v53, 8 }
 0xd22   : > { %7878 = vxpose.xlu0.b32.cont [12/16] (narrow) %v7846_v52, 8 }
 0xd2a   : > { %7879 = vxpose.xlu0.b32.cont [13/16] (narrow) %v7847_v16, 8 }
 0xd32   : > { %7880 = vxpose.xlu0.b32.cont [14/16] (narrow) %v7848_v24, 8 }
 0xd33   : > { %v7915_v37 = vpop.trf.xlu1 }
 0xd34   : > { %8808 = vtanh.f32 %v7915_v37 }
 0xd3a   : > { %7881 = vxpose.xlu0.b32.cont [15/16] (narrow) %v7849_v9, 8  ;;  %v8809_v22 = vpop.eup %8808 }
 0xd3b   : > { %v7934_v54 = vmul.f32 0.02, %v8809_v22 }
 0xd3d   : > { %v7937_v42 = vrot.slane %v7934_v54, 4 }
 0xd42   : > { %7882 = vxpose.xlu0.b32.end [16/16] (narrow) %v7850_v20, 8 }
 0xd6e   : > { %v7883_v28 = vpop.trf.xlu0 }
 0xd6f   : > { %8810 = vtanh.f32 %v7883_v28 }
 0xd75   : > { %v8811_v38 = vpop.eup %8810 }
 0xd76   : > { %v7933_v34 = vmul.f32 0.02, %v8811_v38 }
 0xd78   : > { %v7939_v62 = vsel %vm7938_vm10, %v7933_v34, %v7937_v42 }
 0xd79   : > { %7941 = vst [vmem:[%s454_s15] sm:$0x77] %v7939_v62 }
 0xd7a PF: > { %s23_s25 = sadd.s32 1, %s8893_s25  }
 0xd7b   : > { %p20_p4 = scmp.ge.s32.totalorder %s23_s25, 4  }
 0xd7d   :  { %22 = sbr.rel (!%p20_p4) target bundleno = 1 (0x1), region = 119 }

</bundles_post_ra>
